<compile_context>
chip_gen: v7x
topology: tpu7x:2x2x1
jax: 0.10.0
libtpu: 0.0.40
codegen_flags: <defaults>
</compile_context>

<pallas_src>
import functools

import jax
import jax.numpy as jnp
from jax.experimental import pallas as pl
from jax.experimental.pallas import tpu as pltpu


_NEG_INF = -1e30  # finite "minus infinity": stays NaN-free under max / exp


def _make_kernel(tile_n, tile_m, dim, n_valid, m_valid, pos_radius, safe_radius,
                 pos_margin, neg_margin, pos_optimal, neg_optimal, log_scale):
    pos_r2 = float(pos_radius) ** 2
    safe_r2 = float(safe_radius) ** 2
    pos_margin = float(pos_margin)
    neg_margin = float(neg_margin)
    pos_optimal = float(pos_optimal)
    neg_optimal = float(neg_optimal)
    log_scale = float(log_scale)

    nt_dims = (((1,), (1,)), ((), ()))   # contract last dims: A @ B^T
    nn_dims = (((1,), (0,)), ((), ()))   # standard matmul:    A @ B

    def kernel(refp_ref, srcpt_ref, reff_ref, srcf_ref, row_ref, col_ref, racc):
        i = pl.program_id(0)
        j = pl.program_id(1)
        last_j = pl.num_programs(1) - 1

        # ---- squared coordinate distance, exact f32 on the VPU (D is tiny) ----
        coords_sq = None
        for k in range(dim):
            rk = refp_ref[:, k:k + 1]          # (tile_n, 1)
            sk = srcpt_ref[k:k + 1, :]         # (1, tile_m)
            d = rk - sk
            coords_sq = d * d if coords_sq is None else coords_sq + d * d

        # ---- feature distance (unit-norm feats): sqrt(clamp(2 - 2 <r,s>, 0)) ----
        feat_dot = jax.lax.dot_general(
            reff_ref[...], srcf_ref[...], nt_dims,
            precision=jax.lax.Precision.HIGHEST,
            preferred_element_type=jnp.float32)
        feats_dist = jnp.sqrt(jnp.maximum(2.0 - 2.0 * feat_dot, 0.0))

        # ---- validity of padded rows / cols: two rank-1 iota compares ----
        row_valid = (i * tile_n + jax.lax.broadcasted_iota(
            jnp.int32, (tile_n, 1), 0)) < n_valid
        col_valid = (j * tile_m + jax.lax.broadcasted_iota(
            jnp.int32, (1, tile_m), 1)) < m_valid
        valid_f = row_valid.astype(jnp.float32) * col_valid.astype(jnp.float32)

        # pos/neg membership of valid pairs (select form; no 1e5 trick)
        pos_f = jnp.where(coords_sq < pos_r2, valid_f, 0.0)
        neg_f = jnp.where(coords_sq > safe_r2, valid_f, 0.0)

        pos_w = jnp.maximum(feats_dist - pos_optimal, 0.0) * pos_f
        neg_w = jnp.maximum(neg_optimal - feats_dist, 0.0) * neg_f
        pos_arg = (log_scale * (feats_dist - pos_margin)) * pos_w
        neg_arg = (log_scale * (neg_margin - feats_dist)) * neg_w

        # one scalar max per block (pos / neg) -> only two exp passes (EUP)
        gmax_pos = jnp.max(pos_arg)
        gmax_neg = jnp.max(neg_arg)
        e_pos = jnp.exp(pos_arg - gmax_pos) * valid_f
        e_neg = jnp.exp(neg_arg - gmax_neg) * valid_f

        # ---- sum / count reductions offloaded to the otherwise idle MXU ----
        ones_m = jnp.ones((8, tile_m), jnp.float32)
        ones_n = jnp.ones((8, tile_n), jnp.float32)

        def row_reduce(x):   # sum over columns -> (1, tile_n), lane-dense
            r = jax.lax.dot_general(ones_m, x, nt_dims,
                                    preferred_element_type=jnp.float32)
            return r[0:1, :]

        def col_reduce(x):   # sum over rows -> (1, tile_m), lane-dense
            r = jax.lax.dot_general(ones_n, x, nn_dims,
                                    preferred_element_type=jnp.float32)
            return r[0:1, :]

        row_sum_pos = row_reduce(e_pos)
        row_sum_neg = row_reduce(e_neg)
        row_cnt_pos = row_reduce(pos_f)
        row_cnt_neg = row_reduce(neg_f)
        col_sum_pos = col_reduce(e_pos)
        col_sum_neg = col_reduce(e_neg)
        col_cnt_pos = col_reduce(pos_f)
        col_cnt_neg = col_reduce(neg_f)

        # ---- per-(i, j) column stats: lane-dense (8, tile_m) block ----
        # rows: [m_pos, m_neg, s_pos, s_neg, cnt_pos, cnt_neg, 0, 0]
        col_ref[0:1, :] = gmax_pos + jnp.zeros((1, tile_m), jnp.float32)
        col_ref[1:2, :] = gmax_neg + jnp.zeros((1, tile_m), jnp.float32)
        col_ref[2:3, :] = col_sum_pos
        col_ref[3:4, :] = col_sum_neg
        col_ref[4:5, :] = col_cnt_pos
        col_ref[5:6, :] = col_cnt_neg
        col_ref[6:8, :] = jnp.zeros((2, tile_m), jnp.float32)

        # ---- row stats: online LSE accumulation across the inner j axis ----
        @pl.when(j == 0)
        def _init():
            racc[...] = jnp.zeros_like(racc)
            racc[0:2, :] = jnp.full((2, tile_n), _NEG_INF, jnp.float32)

        m_pos_old = racc[0:1, :]
        m_neg_old = racc[1:2, :]
        m_pos_new = jnp.maximum(m_pos_old, gmax_pos)
        m_neg_new = jnp.maximum(m_neg_old, gmax_neg)
        racc[2:3, :] = (racc[2:3, :] * jnp.exp(m_pos_old - m_pos_new)
                        + row_sum_pos * jnp.exp(gmax_pos - m_pos_new))
        racc[3:4, :] = (racc[3:4, :] * jnp.exp(m_neg_old - m_neg_new)
                        + row_sum_neg * jnp.exp(gmax_neg - m_neg_new))
        racc[0:1, :] = m_pos_new
        racc[1:2, :] = m_neg_new
        racc[4:5, :] = racc[4:5, :] + row_cnt_pos
        racc[5:6, :] = racc[5:6, :] + row_cnt_neg

        @pl.when(j == last_j)
        def _finalize():
            row_ref[...] = racc[...]

    return kernel


def fine_level_circle_loss(ref_points, src_points, ref_feats, src_feats, *,
                           pos_radius, safe_radius, pos_margin, neg_margin,
                           pos_optimal, neg_optimal, log_scale,
                           tile_n=256, tile_m=256):
    ref_points = jnp.asarray(ref_points, jnp.float32)
    src_points = jnp.asarray(src_points, jnp.float32)
    ref_feats = jnp.asarray(ref_feats, jnp.float32)
    src_feats = jnp.asarray(src_feats, jnp.float32)

    n, dim = ref_points.shape
    m = src_points.shape[0]
    c = ref_feats.shape[1]

    n_blocks = pl.cdiv(n, tile_n)
    m_blocks = pl.cdiv(m, tile_m)
    n_pad = n_blocks * tile_n
    m_pad = m_blocks * tile_m
    d_pad = max(8, ((dim + 7) // 8) * 8)

    # ref points natural, src points transposed so each coordinate is a
    # lane-dense (1, tile_m) row inside the kernel (no in-kernel transposes).
    refp = jnp.pad(ref_points, ((0, n_pad - n), (0, d_pad - dim)))
    srcpt = jnp.pad(src_points.T, ((0, d_pad - dim), (0, m_pad - m)))
    reff = jnp.pad(ref_feats, ((0, n_pad - n), (0, 0)))
    srcf = jnp.pad(src_feats, ((0, m_pad - m), (0, 0)))

    kernel = _make_kernel(tile_n, tile_m, dim, n, m, pos_radius, safe_radius,
                          pos_margin, neg_margin, pos_optimal, neg_optimal,
                          log_scale)

    row_stats, col_stats = pl.pallas_call(
        kernel,
        out_shape=(
            jax.ShapeDtypeStruct((n_blocks, 8, tile_n), jnp.float32),
            jax.ShapeDtypeStruct((n_blocks, m_blocks, 8, tile_m), jnp.float32),
        ),
        grid_spec=pltpu.PrefetchScalarGridSpec(
            num_scalar_prefetch=0,
            grid=(n_blocks, m_blocks),
            in_specs=[
                pl.BlockSpec((tile_n, d_pad), lambda i, j: (i, 0)),
                pl.BlockSpec((d_pad, tile_m), lambda i, j: (0, j)),
                pl.BlockSpec((tile_n, c), lambda i, j: (i, 0)),
                pl.BlockSpec((tile_m, c), lambda i, j: (j, 0)),
            ],
            out_specs=[
                pl.BlockSpec((pl.Squeezed(), 8, tile_n),
                             lambda i, j: (i, 0, 0)),
                pl.BlockSpec((pl.Squeezed(), pl.Squeezed(), 8, tile_m),
                             lambda i, j: (i, j, 0, 0)),
            ],
            scratch_shapes=[pltpu.VMEM((8, tile_n), jnp.float32)],
        ),
        compiler_params=pltpu.CompilerParams(
            dimension_semantics=("parallel", "arbitrary")),
    )(refp, srcpt, reff, srcf)

    # ---- tiny O(N + M) epilogue in JAX ----
    # rows were fully reduced inside the kernel (accumulated over j)
    def row_stat(k):
        return row_stats[:, k, :].reshape(-1)[:n]

    lse_pos_row = row_stat(0) + jnp.log(row_stat(2))
    lse_neg_row = row_stat(1) + jnp.log(row_stat(3))
    row_has_pos = row_stat(4) > 0
    row_has_neg = row_stat(5) > 0

    # columns: merge the per-row-block LSE partials
    def col_merge(mk, sk):
        m_blk = col_stats[:, :, mk, :]
        s_blk = col_stats[:, :, sk, :]
        m_all = jnp.max(m_blk, axis=0)
        s_all = jnp.sum(s_blk * jnp.exp(m_blk - m_all[None]), axis=0)
        return (m_all + jnp.log(s_all)).reshape(-1)[:m]

    lse_pos_col = col_merge(0, 2)
    lse_neg_col = col_merge(1, 3)
    col_has_pos = jnp.sum(col_stats[:, :, 4, :], axis=0).reshape(-1)[:m] > 0
    col_has_neg = jnp.sum(col_stats[:, :, 5, :], axis=0).reshape(-1)[:m] > 0

    loss_row = jax.nn.softplus(lse_pos_row + lse_neg_row) / log_scale
    loss_col = jax.nn.softplus(lse_pos_col + lse_neg_col) / log_scale
    row_mask = row_has_pos & row_has_neg
    col_mask = col_has_pos & col_has_neg
    row_mean = (jnp.sum(jnp.where(row_mask, loss_row, 0.0))
                / jnp.sum(row_mask.astype(jnp.float32)))
    col_mean = (jnp.sum(jnp.where(col_mask, loss_col, 0.0))
                / jnp.sum(col_mask.astype(jnp.float32)))
    return 0.5 * (row_mean + col_mean)


def _reference_loss(ref_points, src_points, ref_feats, src_feats, *, pos_radius,
                    safe_radius, pos_margin, neg_margin, pos_optimal,
                    neg_optimal, log_scale):
    hp = jax.lax.Precision.HIGHEST
    ref_points = ref_points.astype(jnp.float32)
    src_points = src_points.astype(jnp.float32)
    ref_feats = ref_feats.astype(jnp.float32)
    src_feats = src_feats.astype(jnp.float32)

    coords_sq = (jnp.sum(ref_points ** 2, axis=1, keepdims=True)
                 - 2.0 * jnp.matmul(ref_points, src_points.T, precision=hp)
                 + jnp.sum(src_points ** 2, axis=1)[None, :])
    coords_dist = jnp.sqrt(jnp.maximum(coords_sq, 0.0))
    feats_sq = jnp.maximum(
        2.0 - 2.0 * jnp.matmul(ref_feats, src_feats.T, precision=hp), 0.0)
    feats_dist = jnp.sqrt(feats_sq)

    pos_mask = coords_dist < pos_radius
    neg_mask = coords_dist > safe_radius
    pos_w = jnp.maximum(
        feats_dist - 1e5 * (~pos_mask).astype(jnp.float32) - pos_optimal, 0.0)
    neg_w = jnp.maximum(
        neg_optimal - (feats_dist + 1e5 * (~neg_mask).astype(jnp.float32)), 0.0)

    lpr = jax.nn.logsumexp(log_scale * (feats_dist - pos_margin) * pos_w, axis=-1)
    lpc = jax.nn.logsumexp(log_scale * (feats_dist - pos_margin) * pos_w, axis=0)
    lnr = jax.nn.logsumexp(log_scale * (neg_margin - feats_dist) * neg_w, axis=-1)
    lnc = jax.nn.logsumexp(log_scale * (neg_margin - feats_dist) * neg_w, axis=0)

    loss_row = jax.nn.softplus(lpr + lnr) / log_scale
    loss_col = jax.nn.softplus(lpc + lnc) / log_scale
    row_mask = (jnp.sum(pos_mask, axis=-1) > 0) & (jnp.sum(neg_mask, axis=-1) > 0)
    col_mask = (jnp.sum(pos_mask, axis=0) > 0) & (jnp.sum(neg_mask, axis=0) > 0)
    row_mean = (jnp.sum(jnp.where(row_mask, loss_row, 0.0))
                / jnp.sum(row_mask.astype(jnp.float32)))
    col_mean = (jnp.sum(jnp.where(col_mask, loss_col, 0.0))
                / jnp.sum(col_mask.astype(jnp.float32)))
    return 0.5 * (row_mean + col_mean)


if __name__ == "__main__":
    key = jax.random.PRNGKey(0)
    k1, k2, k3, k4 = jax.random.split(key, 4)

    # small, ragged shapes (not tile multiples) to exercise padding + both
    # a multi-block row axis (j-accumulation) and a multi-block col merge
    N, M, D, C = 300, 380, 3, 64
    cfg = dict(pos_radius=0.105, safe_radius=0.1551,
               pos_margin=0.1, neg_margin=1.4,
               pos_optimal=0.1, neg_optimal=1.4, log_scale=16.0)

    # points on a 1/64 lattice so no pairwise distance sits within fp error of
    # the radius thresholds (mask decisions identical across implementations)
    ref_points = jnp.round(jax.random.uniform(k1, (N, D)) * 64.0) / 64.0
    src_points = jnp.round(jax.random.uniform(k2, (M, D)) * 64.0) / 64.0
    ref_feats = jax.random.normal(k3, (N, C), dtype=jnp.float32)
    src_feats = jax.random.normal(k4, (M, C), dtype=jnp.float32)
    ref_feats = ref_feats / jnp.linalg.norm(ref_feats, axis=1, keepdims=True)
    src_feats = src_feats / jnp.linalg.norm(src_feats, axis=1, keepdims=True)

    loss_fn = jax.jit(functools.partial(fine_level_circle_loss, **cfg))
    loss = jax.block_until_ready(
        loss_fn(ref_points, src_points, ref_feats, src_feats))

    ref = _reference_loss(ref_points, src_points, ref_feats, src_feats, **cfg)
    assert jnp.isfinite(loss), loss
    assert jnp.allclose(loss, ref, atol=2e-3, rtol=2e-3), (loss, ref)

    print("KERNEL_OK")
</pallas_src>

<mosaic_0001>
module attributes {stable_mosaic.version = 11 : i64} {
  func.func @kernel(%arg0: i32, %arg1: i32, %arg2: memref<256x8xf32, #tpu.memory_space<vmem>>, %arg3: memref<8x256xf32, #tpu.memory_space<vmem>>, %arg4: memref<256x64xf32, #tpu.memory_space<vmem>>, %arg5: memref<256x64xf32, #tpu.memory_space<vmem>>, %arg6: memref<1x8x256xf32, #tpu.memory_space<vmem>>, %arg7: memref<1x1x8x256xf32, #tpu.memory_space<vmem>>, %arg8: memref<8x256xf32, #tpu.memory_space<vmem>>) attributes {dimension_semantics = [#tpu.dimension_semantics<parallel>, #tpu.dimension_semantics<arbitrary>], iteration_bounds = array<i64: 2, 2>, scalar_prefetch = 0 : i64, scratch_operands = 1 : i64, tpu.core_type = #tpu.core_type<tc>, window_params = [{transform_indices = @transform_0, window_bounds = array<i64: 256, 8>}, {transform_indices = @transform_1, window_bounds = array<i64: 8, 256>}, {transform_indices = @transform_2, window_bounds = array<i64: 256, 64>}, {transform_indices = @transform_3, window_bounds = array<i64: 256, 64>}, {transform_indices = @transform_4, window_bounds = array<i64: 1, 8, 256>}, {transform_indices = @transform_5, window_bounds = array<i64: 1, 1, 8, 256>}]} {
    %c0 = arith.constant 0 : index
    %c0_0 = arith.constant 0 : index
    %0 = vector.load %arg2[%c0, %c0_0] : memref<256x8xf32, #tpu.memory_space<vmem>>, vector<256x1xf32>
    %c0_1 = arith.constant 0 : index
    %c0_2 = arith.constant 0 : index
    %1 = vector.load %arg3[%c0_1, %c0_2] : memref<8x256xf32, #tpu.memory_space<vmem>>, vector<1x256xf32>
    %2 = vector.broadcast %0 : vector<256x1xf32> to vector<256x256xf32>
    %3 = vector.broadcast %1 : vector<1x256xf32> to vector<256x256xf32>
    %4 = arith.subf %2, %3 : vector<256x256xf32>
    %5 = arith.mulf %4, %4 : vector<256x256xf32>
    %c0_3 = arith.constant 0 : index
    %c1 = arith.constant 1 : index
    %6 = vector.load %arg2[%c0_3, %c1] : memref<256x8xf32, #tpu.memory_space<vmem>>, vector<256x1xf32>
    %c1_4 = arith.constant 1 : index
    %c0_5 = arith.constant 0 : index
    %7 = vector.load %arg3[%c1_4, %c0_5] : memref<8x256xf32, #tpu.memory_space<vmem>>, vector<1x256xf32>
    %8 = vector.broadcast %6 : vector<256x1xf32> to vector<256x256xf32>
    %9 = vector.broadcast %7 : vector<1x256xf32> to vector<256x256xf32>
    %10 = arith.subf %8, %9 : vector<256x256xf32>
    %11 = arith.mulf %10, %10 : vector<256x256xf32>
    %12 = arith.addf %5, %11 : vector<256x256xf32>
    %c0_6 = arith.constant 0 : index
    %c2 = arith.constant 2 : index
    %13 = vector.load %arg2[%c0_6, %c2] : memref<256x8xf32, #tpu.memory_space<vmem>>, vector<256x1xf32>
    %c2_7 = arith.constant 2 : index
    %c0_8 = arith.constant 0 : index
    %14 = vector.load %arg3[%c2_7, %c0_8] : memref<8x256xf32, #tpu.memory_space<vmem>>, vector<1x256xf32>
    %15 = vector.broadcast %13 : vector<256x1xf32> to vector<256x256xf32>
    %16 = vector.broadcast %14 : vector<1x256xf32> to vector<256x256xf32>
    %17 = arith.subf %15, %16 : vector<256x256xf32>
    %18 = arith.mulf %17, %17 : vector<256x256xf32>
    %19 = arith.addf %12, %18 : vector<256x256xf32>
    %c0_9 = arith.constant 0 : index
    %c0_10 = arith.constant 0 : index
    %20 = vector.load %arg4[%c0_9, %c0_10] : memref<256x64xf32, #tpu.memory_space<vmem>>, vector<256x64xf32>
    %c0_11 = arith.constant 0 : index
    %c0_12 = arith.constant 0 : index
    %21 = vector.load %arg5[%c0_11, %c0_12] : memref<256x64xf32, #tpu.memory_space<vmem>>, vector<256x64xf32>
    %cst = arith.constant dense<0.000000e+00> : vector<256x256xf32>
    %22 = tpu.matmul %20, %21, %cst {dimension_numbers = #tpu.dot_dimension_numbers<[1], [1], [0], [0], [0, 0, 1, 0], [], []>, precision = #tpu.contract_precision<fp32>} : vector<256x64xf32>, vector<256x64xf32>, vector<256x256xf32> -> vector<256x256xf32>
    %cst_13 = arith.constant 2.000000e+00 : f32
    %23 = vector.broadcast %cst_13 : f32 to vector<256x256xf32>
    %24 = arith.mulf %23, %22 : vector<256x256xf32>
    %cst_14 = arith.constant 2.000000e+00 : f32
    %25 = vector.broadcast %cst_14 : f32 to vector<256x256xf32>
    %26 = arith.subf %25, %24 : vector<256x256xf32>
    %cst_15 = arith.constant 0.000000e+00 : f32
    %27 = vector.broadcast %cst_15 : f32 to vector<256x256xf32>
    %28 = arith.maximumf %26, %27 : vector<256x256xf32>
    %29 = math.sqrt %28 : vector<256x256xf32>
    %c256_i32 = arith.constant 256 : i32
    %30 = arith.muli %arg0, %c256_i32 : i32
    %31 = tpu.iota {dimensions = array<i32: 0>} : vector<256x1xi32>
    %32 = vector.broadcast %30 : i32 to vector<256x1xi32>
    %33 = arith.addi %32, %31 : vector<256x1xi32>
    %c300_i32 = arith.constant 300 : i32
    %34 = vector.broadcast %c300_i32 : i32 to vector<256x1xi32>
    %35 = arith.cmpi slt, %33, %34 : vector<256x1xi32>
    %c256_i32_16 = arith.constant 256 : i32
    %36 = arith.muli %arg1, %c256_i32_16 : i32
    %37 = tpu.iota {dimensions = array<i32: 1>} : vector<1x256xi32>
    %38 = vector.broadcast %36 : i32 to vector<1x256xi32>
    %39 = arith.addi %38, %37 : vector<1x256xi32>
    %c380_i32 = arith.constant 380 : i32
    %40 = vector.broadcast %c380_i32 : i32 to vector<1x256xi32>
    %41 = arith.cmpi slt, %39, %40 : vector<1x256xi32>
    %42 = arith.extui %35 : vector<256x1xi1> to vector<256x1xi32>
    %43 = arith.sitofp %42 : vector<256x1xi32> to vector<256x1xf32>
    %44 = arith.extui %41 : vector<1x256xi1> to vector<1x256xi32>
    %45 = arith.sitofp %44 : vector<1x256xi32> to vector<1x256xf32>
    %46 = vector.broadcast %43 : vector<256x1xf32> to vector<256x256xf32>
    %47 = vector.broadcast %45 : vector<1x256xf32> to vector<256x256xf32>
    %48 = arith.mulf %46, %47 : vector<256x256xf32>
    %cst_17 = arith.constant 1.102500e-02 : f32
    %49 = vector.broadcast %cst_17 : f32 to vector<256x256xf32>
    %50 = arith.cmpf olt, %19, %49 : vector<256x256xf32>
    %cst_18 = arith.constant 0.000000e+00 : f32
    %51 = vector.broadcast %cst_18 : f32 to vector<256x256xf32>
    %52 = arith.select %50, %48, %51 : vector<256x256xi1>, vector<256x256xf32>
    %cst_19 = arith.constant 0.0240560099 : f32
    %53 = vector.broadcast %cst_19 : f32 to vector<256x256xf32>
    %54 = arith.cmpf ogt, %19, %53 : vector<256x256xf32>
    %cst_20 = arith.constant 0.000000e+00 : f32
    %55 = vector.broadcast %cst_20 : f32 to vector<256x256xf32>
    %56 = arith.select %54, %48, %55 : vector<256x256xi1>, vector<256x256xf32>
    %cst_21 = arith.constant 1.000000e-01 : f32
    %57 = vector.broadcast %cst_21 : f32 to vector<256x256xf32>
    %58 = arith.subf %29, %57 : vector<256x256xf32>
    %cst_22 = arith.constant 0.000000e+00 : f32
    %59 = vector.broadcast %cst_22 : f32 to vector<256x256xf32>
    %60 = arith.maximumf %58, %59 : vector<256x256xf32>
    %61 = arith.mulf %60, %52 : vector<256x256xf32>
    %cst_23 = arith.constant 1.400000e+00 : f32
    %62 = vector.broadcast %cst_23 : f32 to vector<256x256xf32>
    %63 = arith.subf %62, %29 : vector<256x256xf32>
    %cst_24 = arith.constant 0.000000e+00 : f32
    %64 = vector.broadcast %cst_24 : f32 to vector<256x256xf32>
    %65 = arith.maximumf %63, %64 : vector<256x256xf32>
    %66 = arith.mulf %65, %56 : vector<256x256xf32>
    %cst_25 = arith.constant 1.000000e-01 : f32
    %67 = vector.broadcast %cst_25 : f32 to vector<256x256xf32>
    %68 = arith.subf %29, %67 : vector<256x256xf32>
    %cst_26 = arith.constant 1.600000e+01 : f32
    %69 = vector.broadcast %cst_26 : f32 to vector<256x256xf32>
    %70 = arith.mulf %69, %68 : vector<256x256xf32>
    %71 = arith.mulf %70, %61 : vector<256x256xf32>
    %cst_27 = arith.constant 1.400000e+00 : f32
    %72 = vector.broadcast %cst_27 : f32 to vector<256x256xf32>
    %73 = arith.subf %72, %29 : vector<256x256xf32>
    %cst_28 = arith.constant 1.600000e+01 : f32
    %74 = vector.broadcast %cst_28 : f32 to vector<256x256xf32>
    %75 = arith.mulf %74, %73 : vector<256x256xf32>
    %76 = arith.mulf %75, %66 : vector<256x256xf32>
    %77 = vector.shape_cast %71 : vector<256x256xf32> to vector<1x256x256xf32>
    %cst_29 = arith.constant dense<0xFF800000> : vector<1xf32>
    %78 = vector.multi_reduction <maximumf>, %77, %cst_29 [1, 2] : vector<1x256x256xf32> to vector<1xf32>
    %79 = vector.shape_cast %78 : vector<1xf32> to vector<1x1x1xf32>
    %80 = vector.extract %79[0, 0, 0] : f32 from vector<1x1x1xf32>
    %81 = vector.shape_cast %76 : vector<256x256xf32> to vector<1x256x256xf32>
    %cst_30 = arith.constant dense<0xFF800000> : vector<1xf32>
    %82 = vector.multi_reduction <maximumf>, %81, %cst_30 [1, 2] : vector<1x256x256xf32> to vector<1xf32>
    %83 = vector.shape_cast %82 : vector<1xf32> to vector<1x1x1xf32>
    %84 = vector.extract %83[0, 0, 0] : f32 from vector<1x1x1xf32>
    %85 = vector.broadcast %80 : f32 to vector<256x256xf32>
    %86 = arith.subf %71, %85 : vector<256x256xf32>
    %87 = math.exp %86 : vector<256x256xf32>
    %88 = arith.mulf %87, %48 : vector<256x256xf32>
    %89 = vector.broadcast %84 : f32 to vector<256x256xf32>
    %90 = arith.subf %76, %89 : vector<256x256xf32>
    %91 = math.exp %90 : vector<256x256xf32>
    %92 = arith.mulf %91, %48 : vector<256x256xf32>
    %cst_31 = arith.constant 1.000000e+00 : f32
    %93 = vector.broadcast %cst_31 : f32 to vector<8x256xf32>
    %cst_32 = arith.constant 1.000000e+00 : f32
    %94 = vector.broadcast %cst_32 : f32 to vector<8x256xf32>
    %cst_33 = arith.constant dense<0.000000e+00> : vector<8x256xf32>
    %95 = tpu.matmul %93, %88, %cst_33 {dimension_numbers = #tpu.dot_dimension_numbers<[1], [1], [0], [0], [0, 0, 1, 0], [], []>} : vector<8x256xf32>, vector<256x256xf32>, vector<8x256xf32> -> vector<8x256xf32>
    %96 = vector.extract_strided_slice %95 {offsets = [0, 0], sizes = [1, 256], strides = [1, 1]} : vector<8x256xf32> to vector<1x256xf32>
    %cst_34 = arith.constant dense<0.000000e+00> : vector<8x256xf32>
    %97 = tpu.matmul %93, %92, %cst_34 {dimension_numbers = #tpu.dot_dimension_numbers<[1], [1], [0], [0], [0, 0, 1, 0], [], []>} : vector<8x256xf32>, vector<256x256xf32>, vector<8x256xf32> -> vector<8x256xf32>
    %98 = vector.extract_strided_slice %97 {offsets = [0, 0], sizes = [1, 256], strides = [1, 1]} : vector<8x256xf32> to vector<1x256xf32>
    %cst_35 = arith.constant dense<0.000000e+00> : vector<8x256xf32>
    %99 = tpu.matmul %93, %52, %cst_35 {dimension_numbers = #tpu.dot_dimension_numbers<[1], [1], [0], [0], [0, 0, 1, 0], [], []>} : vector<8x256xf32>, vector<256x256xf32>, vector<8x256xf32> -> vector<8x256xf32>
    %100 = vector.extract_strided_slice %99 {offsets = [0, 0], sizes = [1, 256], strides = [1, 1]} : vector<8x256xf32> to vector<1x256xf32>
    %cst_36 = arith.constant dense<0.000000e+00> : vector<8x256xf32>
    %101 = tpu.matmul %93, %56, %cst_36 {dimension_numbers = #tpu.dot_dimension_numbers<[1], [1], [0], [0], [0, 0, 1, 0], [], []>} : vector<8x256xf32>, vector<256x256xf32>, vector<8x256xf32> -> vector<8x256xf32>
    %102 = vector.extract_strided_slice %101 {offsets = [0, 0], sizes = [1, 256], strides = [1, 1]} : vector<8x256xf32> to vector<1x256xf32>
    %cst_37 = arith.constant dense<0.000000e+00> : vector<8x256xf32>
    %103 = tpu.matmul %94, %88, %cst_37 {dimension_numbers = #tpu.dot_dimension_numbers<[1], [0], [0], [1], [0, 0, 1, 1], [], []>} : vector<8x256xf32>, vector<256x256xf32>, vector<8x256xf32> -> vector<8x256xf32>
    %104 = vector.extract_strided_slice %103 {offsets = [0, 0], sizes = [1, 256], strides = [1, 1]} : vector<8x256xf32> to vector<1x256xf32>
    %cst_38 = arith.constant dense<0.000000e+00> : vector<8x256xf32>
    %105 = tpu.matmul %94, %92, %cst_38 {dimension_numbers = #tpu.dot_dimension_numbers<[1], [0], [0], [1], [0, 0, 1, 1], [], []>} : vector<8x256xf32>, vector<256x256xf32>, vector<8x256xf32> -> vector<8x256xf32>
    %106 = vector.extract_strided_slice %105 {offsets = [0, 0], sizes = [1, 256], strides = [1, 1]} : vector<8x256xf32> to vector<1x256xf32>
    %cst_39 = arith.constant dense<0.000000e+00> : vector<8x256xf32>
    %107 = tpu.matmul %94, %52, %cst_39 {dimension_numbers = #tpu.dot_dimension_numbers<[1], [0], [0], [1], [0, 0, 1, 1], [], []>} : vector<8x256xf32>, vector<256x256xf32>, vector<8x256xf32> -> vector<8x256xf32>
    %108 = vector.extract_strided_slice %107 {offsets = [0, 0], sizes = [1, 256], strides = [1, 1]} : vector<8x256xf32> to vector<1x256xf32>
    %cst_40 = arith.constant dense<0.000000e+00> : vector<8x256xf32>
    %109 = tpu.matmul %94, %56, %cst_40 {dimension_numbers = #tpu.dot_dimension_numbers<[1], [0], [0], [1], [0, 0, 1, 1], [], []>} : vector<8x256xf32>, vector<256x256xf32>, vector<8x256xf32> -> vector<8x256xf32>
    %110 = vector.extract_strided_slice %109 {offsets = [0, 0], sizes = [1, 256], strides = [1, 1]} : vector<8x256xf32> to vector<1x256xf32>
    %cst_41 = arith.constant 0.000000e+00 : f32
    %111 = vector.broadcast %cst_41 : f32 to vector<1x256xf32>
    %112 = vector.broadcast %80 : f32 to vector<1x256xf32>
    %113 = arith.addf %112, %111 : vector<1x256xf32>
    %c0_42 = arith.constant 0 : index
    %c0_43 = arith.constant 0 : index
    %c0_44 = arith.constant 0 : index
    %c0_45 = arith.constant 0 : index
    %114 = vector.load %arg7[%c0_42, %c0_43, %c0_44, %c0_45] : memref<1x1x8x256xf32, #tpu.memory_space<vmem>>, vector<1x1x1x256xf32>
    %115 = vector.shape_cast %114 : vector<1x1x1x256xf32> to vector<1x256xf32>
    %116 = vector.shape_cast %113 : vector<1x256xf32> to vector<1x1x1x256xf32>
    tpu.vector_store %arg7[%c0_42, %c0_43, %c0_44, %c0_45], %116 {strides = array<i32>} : memref<1x1x8x256xf32, #tpu.memory_space<vmem>>, vector<1x1x1x256xf32>,
    %cst_46 = arith.constant 0.000000e+00 : f32
    %117 = vector.broadcast %cst_46 : f32 to vector<1x256xf32>
    %118 = vector.broadcast %84 : f32 to vector<1x256xf32>
    %119 = arith.addf %118, %117 : vector<1x256xf32>
    %c0_47 = arith.constant 0 : index
    %c0_48 = arith.constant 0 : index
    %c1_49 = arith.constant 1 : index
    %c0_50 = arith.constant 0 : index
    %120 = vector.load %arg7[%c0_47, %c0_48, %c1_49, %c0_50] : memref<1x1x8x256xf32, #tpu.memory_space<vmem>>, vector<1x1x1x256xf32>
    %121 = vector.shape_cast %120 : vector<1x1x1x256xf32> to vector<1x256xf32>
    %122 = vector.shape_cast %119 : vector<1x256xf32> to vector<1x1x1x256xf32>
    tpu.vector_store %arg7[%c0_47, %c0_48, %c1_49, %c0_50], %122 {strides = array<i32>} : memref<1x1x8x256xf32, #tpu.memory_space<vmem>>, vector<1x1x1x256xf32>,
    %c0_51 = arith.constant 0 : index
    %c0_52 = arith.constant 0 : index
    %c2_53 = arith.constant 2 : index
    %c0_54 = arith.constant 0 : index
    %123 = vector.load %arg7[%c0_51, %c0_52, %c2_53, %c0_54] : memref<1x1x8x256xf32, #tpu.memory_space<vmem>>, vector<1x1x1x256xf32>
    %124 = vector.shape_cast %123 : vector<1x1x1x256xf32> to vector<1x256xf32>
    %125 = vector.shape_cast %104 : vector<1x256xf32> to vector<1x1x1x256xf32>
    tpu.vector_store %arg7[%c0_51, %c0_52, %c2_53, %c0_54], %125 {strides = array<i32>} : memref<1x1x8x256xf32, #tpu.memory_space<vmem>>, vector<1x1x1x256xf32>,
    %c0_55 = arith.constant 0 : index
    %c0_56 = arith.constant 0 : index
    %c3 = arith.constant 3 : index
    %c0_57 = arith.constant 0 : index
    %126 = vector.load %arg7[%c0_55, %c0_56, %c3, %c0_57] : memref<1x1x8x256xf32, #tpu.memory_space<vmem>>, vector<1x1x1x256xf32>
    %127 = vector.shape_cast %126 : vector<1x1x1x256xf32> to vector<1x256xf32>
    %128 = vector.shape_cast %106 : vector<1x256xf32> to vector<1x1x1x256xf32>
    tpu.vector_store %arg7[%c0_55, %c0_56, %c3, %c0_57], %128 {strides = array<i32>} : memref<1x1x8x256xf32, #tpu.memory_space<vmem>>, vector<1x1x1x256xf32>,
    %c0_58 = arith.constant 0 : index
    %c0_59 = arith.constant 0 : index
    %c4 = arith.constant 4 : index
    %c0_60 = arith.constant 0 : index
    %129 = vector.load %arg7[%c0_58, %c0_59, %c4, %c0_60] : memref<1x1x8x256xf32, #tpu.memory_space<vmem>>, vector<1x1x1x256xf32>
    %130 = vector.shape_cast %129 : vector<1x1x1x256xf32> to vector<1x256xf32>
    %131 = vector.shape_cast %108 : vector<1x256xf32> to vector<1x1x1x256xf32>
    tpu.vector_store %arg7[%c0_58, %c0_59, %c4, %c0_60], %131 {strides = array<i32>} : memref<1x1x8x256xf32, #tpu.memory_space<vmem>>, vector<1x1x1x256xf32>,
    %c0_61 = arith.constant 0 : index
    %c0_62 = arith.constant 0 : index
    %c5 = arith.constant 5 : index
    %c0_63 = arith.constant 0 : index
    %132 = vector.load %arg7[%c0_61, %c0_62, %c5, %c0_63] : memref<1x1x8x256xf32, #tpu.memory_space<vmem>>, vector<1x1x1x256xf32>
    %133 = vector.shape_cast %132 : vector<1x1x1x256xf32> to vector<1x256xf32>
    %134 = vector.shape_cast %110 : vector<1x256xf32> to vector<1x1x1x256xf32>
    tpu.vector_store %arg7[%c0_61, %c0_62, %c5, %c0_63], %134 {strides = array<i32>} : memref<1x1x8x256xf32, #tpu.memory_space<vmem>>, vector<1x1x1x256xf32>,
    %cst_64 = arith.constant 0.000000e+00 : f32
    %135 = vector.broadcast %cst_64 : f32 to vector<2x256xf32>
    %c0_65 = arith.constant 0 : index
    %c0_66 = arith.constant 0 : index
    %c6 = arith.constant 6 : index
    %c0_67 = arith.constant 0 : index
    %136 = vector.load %arg7[%c0_65, %c0_66, %c6, %c0_67] : memref<1x1x8x256xf32, #tpu.memory_space<vmem>>, vector<1x1x2x256xf32>
    %137 = vector.shape_cast %136 : vector<1x1x2x256xf32> to vector<2x256xf32>
    %138 = vector.shape_cast %135 : vector<2x256xf32> to vector<1x1x2x256xf32>
    tpu.vector_store %arg7[%c0_65, %c0_66, %c6, %c0_67], %138 {strides = array<i32>} : memref<1x1x8x256xf32, #tpu.memory_space<vmem>>, vector<1x1x2x256xf32>,
    %c0_i32 = arith.constant 0 : i32
    %139 = arith.cmpi eq, %arg1, %c0_i32 : i32
    %140 = arith.extui %139 : i1 to i32
    %c0_i32_68 = arith.constant 0 : i32
    %141 = arith.cmpi ne, %140, %c0_i32_68 : i32
    scf.if %141 {
      %cst_94 = arith.constant 0.000000e+00 : f32
      %179 = vector.broadcast %cst_94 : f32 to vector<8x256xf32>
      %c0_95 = arith.constant 0 : index
      %c0_96 = arith.constant 0 : index
      %180 = vector.load %arg8[%c0_95, %c0_96] : memref<8x256xf32, #tpu.memory_space<vmem>>, vector<8x256xf32>
      tpu.vector_store %arg8[%c0_95, %c0_96], %179 {strides = array<i32>} : memref<8x256xf32, #tpu.memory_space<vmem>>, vector<8x256xf32>,
      %cst_97 = arith.constant -1.000000e+30 : f32
      %181 = vector.broadcast %cst_97 : f32 to vector<2x256xf32>
      %c0_98 = arith.constant 0 : index
      %c0_99 = arith.constant 0 : index
      %182 = vector.load %arg8[%c0_98, %c0_99] : memref<8x256xf32, #tpu.memory_space<vmem>>, vector<2x256xf32>
      tpu.vector_store %arg8[%c0_98, %c0_99], %181 {strides = array<i32>} : memref<8x256xf32, #tpu.memory_space<vmem>>, vector<2x256xf32>,
    } else {
    }
    %c0_69 = arith.constant 0 : index
    %c0_70 = arith.constant 0 : index
    %142 = vector.load %arg8[%c0_69, %c0_70] : memref<8x256xf32, #tpu.memory_space<vmem>>, vector<1x256xf32>
    %c1_71 = arith.constant 1 : index
    %c0_72 = arith.constant 0 : index
    %143 = vector.load %arg8[%c1_71, %c0_72] : memref<8x256xf32, #tpu.memory_space<vmem>>, vector<1x256xf32>
    %144 = vector.broadcast %80 : f32 to vector<1x256xf32>
    %145 = arith.maximumf %142, %144 : vector<1x256xf32>
    %146 = vector.broadcast %84 : f32 to vector<1x256xf32>
    %147 = arith.maximumf %143, %146 : vector<1x256xf32>
    %c2_73 = arith.constant 2 : index
    %c0_74 = arith.constant 0 : index
    %148 = vector.load %arg8[%c2_73, %c0_74] : memref<8x256xf32, #tpu.memory_space<vmem>>, vector<1x256xf32>
    %149 = arith.subf %142, %145 : vector<1x256xf32>
    %150 = math.exp %149 : vector<1x256xf32>
    %151 = arith.mulf %148, %150 : vector<1x256xf32>
    %152 = vector.broadcast %80 : f32 to vector<1x256xf32>
    %153 = arith.subf %152, %145 : vector<1x256xf32>
    %154 = math.exp %153 : vector<1x256xf32>
    %155 = arith.mulf %96, %154 : vector<1x256xf32>
    %156 = arith.addf %151, %155 : vector<1x256xf32>
    %c2_75 = arith.constant 2 : index
    %c0_76 = arith.constant 0 : index
    %157 = vector.load %arg8[%c2_75, %c0_76] : memref<8x256xf32, #tpu.memory_space<vmem>>, vector<1x256xf32>
    tpu.vector_store %arg8[%c2_75, %c0_76], %156 {strides = array<i32>} : memref<8x256xf32, #tpu.memory_space<vmem>>, vector<1x256xf32>,
    %c3_77 = arith.constant 3 : index
    %c0_78 = arith.constant 0 : index
    %158 = vector.load %arg8[%c3_77, %c0_78] : memref<8x256xf32, #tpu.memory_space<vmem>>, vector<1x256xf32>
    %159 = arith.subf %143, %147 : vector<1x256xf32>
    %160 = math.exp %159 : vector<1x256xf32>
    %161 = arith.mulf %158, %160 : vector<1x256xf32>
    %162 = vector.broadcast %84 : f32 to vector<1x256xf32>
    %163 = arith.subf %162, %147 : vector<1x256xf32>
    %164 = math.exp %163 : vector<1x256xf32>
    %165 = arith.mulf %98, %164 : vector<1x256xf32>
    %166 = arith.addf %161, %165 : vector<1x256xf32>
    %c3_79 = arith.constant 3 : index
    %c0_80 = arith.constant 0 : index
    %167 = vector.load %arg8[%c3_79, %c0_80] : memref<8x256xf32, #tpu.memory_space<vmem>>, vector<1x256xf32>
    tpu.vector_store %arg8[%c3_79, %c0_80], %166 {strides = array<i32>} : memref<8x256xf32, #tpu.memory_space<vmem>>, vector<1x256xf32>,
    %c0_81 = arith.constant 0 : index
    %c0_82 = arith.constant 0 : index
    %168 = vector.load %arg8[%c0_81, %c0_82] : memref<8x256xf32, #tpu.memory_space<vmem>>, vector<1x256xf32>
    tpu.vector_store %arg8[%c0_81, %c0_82], %145 {strides = array<i32>} : memref<8x256xf32, #tpu.memory_space<vmem>>, vector<1x256xf32>,
    %c1_83 = arith.constant 1 : index
    %c0_84 = arith.constant 0 : index
    %169 = vector.load %arg8[%c1_83, %c0_84] : memref<8x256xf32, #tpu.memory_space<vmem>>, vector<1x256xf32>
    tpu.vector_store %arg8[%c1_83, %c0_84], %147 {strides = array<i32>} : memref<8x256xf32, #tpu.memory_space<vmem>>, vector<1x256xf32>,
    %c4_85 = arith.constant 4 : index
    %c0_86 = arith.constant 0 : index
    %170 = vector.load %arg8[%c4_85, %c0_86] : memref<8x256xf32, #tpu.memory_space<vmem>>, vector<1x256xf32>
    %171 = arith.addf %170, %100 : vector<1x256xf32>
    %c4_87 = arith.constant 4 : index
    %c0_88 = arith.constant 0 : index
    %172 = vector.load %arg8[%c4_87, %c0_88] : memref<8x256xf32, #tpu.memory_space<vmem>>, vector<1x256xf32>
    tpu.vector_store %arg8[%c4_87, %c0_88], %171 {strides = array<i32>} : memref<8x256xf32, #tpu.memory_space<vmem>>, vector<1x256xf32>,
    %c5_89 = arith.constant 5 : index
    %c0_90 = arith.constant 0 : index
    %173 = vector.load %arg8[%c5_89, %c0_90] : memref<8x256xf32, #tpu.memory_space<vmem>>, vector<1x256xf32>
    %174 = arith.addf %173, %102 : vector<1x256xf32>
    %c5_91 = arith.constant 5 : index
    %c0_92 = arith.constant 0 : index
    %175 = vector.load %arg8[%c5_91, %c0_92] : memref<8x256xf32, #tpu.memory_space<vmem>>, vector<1x256xf32>
    tpu.vector_store %arg8[%c5_91, %c0_92], %174 {strides = array<i32>} : memref<8x256xf32, #tpu.memory_space<vmem>>, vector<1x256xf32>,
    %c1_i32 = arith.constant 1 : i32
    %176 = arith.cmpi eq, %arg1, %c1_i32 : i32
    %177 = arith.extui %176 : i1 to i32
    %c0_i32_93 = arith.constant 0 : i32
    %178 = arith.cmpi ne, %177, %c0_i32_93 : i32
    scf.if %178 {
      %c0_94 = arith.constant 0 : index
      %c0_95 = arith.constant 0 : index
      %179 = vector.load %arg8[%c0_94, %c0_95] : memref<8x256xf32, #tpu.memory_space<vmem>>, vector<8x256xf32>
      %c0_96 = arith.constant 0 : index
      %c0_97 = arith.constant 0 : index
      %c0_98 = arith.constant 0 : index
      %180 = vector.load %arg6[%c0_96, %c0_97, %c0_98] : memref<1x8x256xf32, #tpu.memory_space<vmem>>, vector<1x8x256xf32>
      %181 = vector.shape_cast %180 : vector<1x8x256xf32> to vector<8x256xf32>
      %182 = vector.shape_cast %179 : vector<8x256xf32> to vector<1x8x256xf32>
      tpu.vector_store %arg6[%c0_96, %c0_97, %c0_98], %182 {strides = array<i32>} : memref<1x8x256xf32, #tpu.memory_space<vmem>>, vector<1x8x256xf32>,
    } else {
    }
    return
  }
  func.func @transform_0(%arg0: i32, %arg1: i32) -> (i32, i32) {
    %c0_i32 = arith.constant 0 : i32
    %c0_i32_0 = arith.constant 0 : i32
    return %arg0, %c0_i32 : i32, i32
  }
  func.func @transform_1(%arg0: i32, %arg1: i32) -> (i32, i32) {
    %c0_i32 = arith.constant 0 : i32
    %c0_i32_0 = arith.constant 0 : i32
    return %c0_i32, %arg1 : i32, i32
  }
  func.func @transform_2(%arg0: i32, %arg1: i32) -> (i32, i32) {
    %c0_i32 = arith.constant 0 : i32
    %c0_i32_0 = arith.constant 0 : i32
    return %arg0, %c0_i32 : i32, i32
  }
  func.func @transform_3(%arg0: i32, %arg1: i32) -> (i32, i32) {
    %c0_i32 = arith.constant 0 : i32
    %c0_i32_0 = arith.constant 0 : i32
    return %arg1, %c0_i32 : i32, i32
  }
  func.func @transform_4(%arg0: i32, %arg1: i32) -> (i32, i32, i32) {
    %c0_i32 = arith.constant 0 : i32
    %c0_i32_0 = arith.constant 0 : i32
    %c0_i32_1 = arith.constant 0 : i32
    return %arg0, %c0_i32, %c0_i32_0 : i32, i32, i32
  }
  func.func @transform_5(%arg0: i32, %arg1: i32) -> (i32, i32, i32, i32) {
    %c0_i32 = arith.constant 0 : i32
    %c0_i32_0 = arith.constant 0 : i32
    %c0_i32_1 = arith.constant 0 : i32
    return %arg0, %arg1, %c0_i32, %c0_i32_0 : i32, i32, i32, i32
  }
}

</mosaic_0001>

<bundles_post_ra>
// kernel: fine_level_circle_loss.1
= control target key start
LH: loop header
LB: loop body
LE: loop exit
PB: predicated region body
PF: predicated region fallthrough
CT: control target
= control target key end

     0   :  { %s10051_s18 = smov 0   ;;  %s10053_s19 = smov 0   ;;  %s17284_s0 = inlined_call_operand.vmem [shape: f32[512,8], index: 0, kind: input, shape index: {}]   ;;  %s17285_s1 = inlined_call_operand.vmem [shape: f32[8,512], index: 1, kind: input, shape index: {}]   ;;  %s17286_s2 = inlined_call_operand.vmem [shape: f32[512,64], index: 2, kind: input, shape index: {}]   ;;  %s17287_s3 = inlined_call_operand.vmem [shape: f32[512,64], index: 3, kind: input, shape index: {}]   ;;  %s17288_s4 = inlined_call_operand.vmem [shape: f32[2,8,256], index: 4, kind: output, shape index: {0}]   ;;  %s17289_s5 = inlined_call_operand.vmem [shape: f32[2,2,8,256], index: 5, kind: output, shape index: {1}]  }
   0x1   :  { %s10055_s20 = smov 0   ;;  %s10057_s21 = smov 0  }
   0x2   :  { %s10059_s22 = smov 0  }
   0x3 LB: > { %s25_s23 = sadd.s32 1, %s10003_s20  ;;  %s28_s24 = sadd.s32 1, %s10007_s21  ;;  %s10011_s22 = sphi %s10059_s22, %s16_s22   ;;  %s10007_s21 = sphi %s10057_s21, %s20244_s21   ;;  %s10003_s20 = sphi %s10055_s20, %s20243_s20   ;;  %s9999_s19 = sphi %s10053_s19, %s20242_s19   ;;  %s9995_s18 = sphi %s10051_s18, %s20241_s18  }
   0x4   : > { %p26_p0 = scmp.ge.s32.totalorder %s25_s23, 2  ;;  %p7372_p1 = scmp.ge.s32.totalorder %s10011_s22, 1 }
   0x5   : > { %p238_p2 = scmp.lt.s32.totalorder %s10011_s22, 5 }
   0x6   : > { %s20246_s23 = smov (%p26_p0, %s25_s23), 0  ;;  %s20248_s24 = smov (!%p26_p0, %s28_s24), %s10007_s21 }
   0x7   : > { %p239_p3 = pnand %p7372_p1, %p238_p2  ;;  %p30_p4 = scmp.ge.s32.totalorder %s20248_s24, 2 }
   0x9   : > { %s20250_s24 = smov (%p30_p4, %s20248_s24), 0  ;;  %242 = sbr.rel (%p239_p3) target bundleno = 2636 (0xa4c), region = 36 }
  0x10   : > { %s7379_s25 = sshll.u32 %s9995_s18, 5  ;;  %vm1390_vm0 = vcmask 523264   ;;  %s7373_s30 = sshll.u32 %s9999_s19, 5 }
  0x11   : > { %p309_p5 = scmp.lt.s32.totalorder %s7379_s25, 63  ;;  %p291_p6 = scmp.lt.s32.totalorder %s7373_s30, 63 }
  0x12   : > { %s7375_s13 = sshll.u32 %s9995_s18, 1  ;;  %p314_p8 = scmp.lt.s32.totalorder %s9999_s19, 1 }
  0x13   : > { %s20252_s25 = smov (!%p309_p5, %s7379_s25), 63  ;;  %s20254_s30 = smov (!%p291_p6, %s7373_s30), 63 }
  0x14   : > { %s7380_s26 = sshll.u32 %s20252_s25, 3  ;;  %s7374_s6 = sshll.u32 %s20254_s30, 3 }
  0x15   : > { %s10089_s29 = scalar_lea.vmem %s17287_s3, %s7380_s26  ;;  %s10233_s9 = scalar_lea.vmem %s17286_s2, %s7374_s6 }
  0x16   : > { %v1374_v0 = vld [vmem:[%s10089_s29 + $0x80] sm:$0xff]  ;;  %v1375_v1 = vld [vmem:[%s10089_s29 + $0x88] sm:$0xff]  ;;  %v1376_v7 = vld [vmem:[%s10089_s29 + $0x90] sm:$0xff]  ;;  %s11171_s12 = scalar_lea.vmem %s17284_s0, %s7374_s6  ;;  %p297_p7 = scmp.lt.s32.totalorder %s7375_s13, 3 }
  0x17   : > { %v1358_v2 = vld [vmem:[%s10089_s29] sm:$0xff]  ;;  %v10095_v3 = vsel %vm1390_vm0, %v1374_v0, 0  ;;  %v10098_v4 = vsel %vm1390_vm0, %v1375_v1, 0  ;;  %v1359_v5 = vld [vmem:[%s10089_s29 + $0x8] sm:$0xff]  ;;  %v1377_v8 = vld [vmem:[%s10089_s29 + $0x98] sm:$0xff]  ;;  %v10115_v15 = vsel %vm1390_vm0, %v1376_v7, 0 }
  0x18   : > { %v10102_v6 = vsel %vm1390_vm0, %v1358_v2, 0  ;;  %v1632_v9 = vand.u32 4294901760, %v10095_v3  ;;  %v1635_v10 = vand.u32 4294901760, %v10098_v4  ;;  %v10109_v11 = vsel %vm1390_vm0, %v1359_v5, 0  ;;  %v1360_v13 = vld [vmem:[%s10089_s29 + $0x10] sm:$0xff]  ;;  %v1361_v17 = vld [vmem:[%s10089_s29 + $0x18] sm:$0xff] }
  0x19   : > { %v1584_v12 = vand.u32 4294901760, %v10102_v6  ;;  %v1587_v14 = vand.u32 4294901760, %v10109_v11  ;;  %v10118_v16 = vsel %vm1390_vm0, %v1377_v8, 0  ;;  %v1378_v18 = vld [vmem:[%s10089_s29 + $0xa0] sm:$0xff]  ;;  %v1379_v19 = vld [vmem:[%s10089_s29 + $0xa8] sm:$0xff]  ;;  %v10130_v21 = vsel %vm1390_vm0, %v1360_v13, 0 }
  0x1a   : > { %v10127_v20 = vpack.c.bf16 %v1635_v10, %v1632_v9  ;;  %v1638_v23 = vand.u32 4294901760, %v10115_v15  ;;  %v1641_v24 = vand.u32 4294901760, %v10118_v16  ;;  %v10142_v25 = vsel %vm1390_vm0, %v1361_v17, 0  ;;  %v1362_v33 = vld [vmem:[%s10089_s29 + $0x20] sm:$0xff]  ;;  %v1363_v34 = vld [vmem:[%s10089_s29 + $0x28] sm:$0xff]  ;;  %v1380_v35 = vld [vmem:[%s10089_s29 + $0xb0] sm:$0xff] }
  0x1b   : > { %v10136_v22 = vpack.c.bf16 %v1587_v14, %v1584_v12  ;;  %v10145_v26 = vsel %vm1390_vm0, %v1378_v18, 0  ;;  %v10148_v27 = vsel %vm1390_vm0, %v1379_v19, 0  ;;  %v17309_v29 = vand.u32 4294901760, %v10130_v21  ;;  %v1381_v36 = vld [vmem:[%s10089_s29 + $0xb8] sm:$0xff]  ;;  %v1364_v47 = vld [vmem:[%s10089_s29 + $0x30] sm:$0xff]  ;;  %v1382_v49 = vld [vmem:[%s10089_s29 + $0xc0] sm:$0xff] }
  0x1c   : > { %18292 = vst [vmem:[#allocation3_spill] sm:$0xff] %v10127_v20  ;;  %8331 = vmatprep.subr.bf16.mxu0 %v10127_v20  ;;  %v10155_v28 = vpack.c.bf16 %v1641_v24, %v1638_v23  ;;  %v17308_v30 = vand.u32 4294901760, %v10142_v25  ;;  %v17307_v31 = vand.u32 4294901760, %v10145_v26  ;;  %v17306_v32 = vand.u32 4294901760, %v10148_v27  ;;  %v1365_v48 = vld [vmem:[%s10089_s29 + $0x38] sm:$0xff]  ;;  %v1383_v50 = vld [vmem:[%s10089_s29 + $0xc8] sm:$0xff] }
  0x1d   : > { %18293 = vst [vmem:[#allocation4_spill] sm:$0xff] %v10136_v22  ;;  %8333 = vmatpush3.bf16.xpose.msra.mxu0 %v10136_v22  ;;  %v10180_v39 = vsel %vm1390_vm0, %v1362_v33, 0  ;;  %v10183_v40 = vsel %vm1390_vm0, %v1363_v34, 0  ;;  %v10186_v41 = vsel %vm1390_vm0, %v1380_v35, 0  ;;  %v10189_v42 = vsel %vm1390_vm0, %v1381_v36, 0  ;;  %v1326_v61 = vld [vmem:[%s10233_s9] sm:$0xff] }
  0x1e   : > { %18294 = vst [vmem:[#allocation5_spill] sm:$0xff] %v10155_v28  ;;  %8335 = vmatprep.subr.bf16.mxu0 %v10155_v28  ;;  %v10171_v37 = vpack.c.bf16 %v17308_v30, %v17309_v29  ;;  %v10177_v38 = vpack.c.bf16 %v17306_v32, %v17307_v31  ;;  %v17305_v43 = vand.u32 4294901760, %v10180_v39  ;;  %v17300_v44 = vand.u32 4294901760, %v10183_v40  ;;  %v1366_v62 = vld [vmem:[%s10089_s29 + $0x40] sm:$0xff]  ;;  %v1367_v63 = vld [vmem:[%s10089_s29 + $0x48] sm:$0xff]  ;;  %v1384_v0 = vld [vmem:[%s10089_s29 + $0xd0] sm:$0xff] }
  0x1f   : > { %v17299_v45 = vand.u32 4294901760, %v10186_v41  ;;  %v17298_v46 = vand.u32 4294901760, %v10189_v42  ;;  %v10217_v53 = vsel %vm1390_vm0, %v1364_v47, 0  ;;  %v10220_v54 = vsel %vm1390_vm0, %v1365_v48, 0  ;;  %v1385_v1 = vld [vmem:[%s10089_s29 + $0xd8] sm:$0xff]  ;;  %v1368_v48 = vld [vmem:[%s10089_s29 + $0x50] sm:$0xff] }
  0x20   : > { %18295 = vst [vmem:[#allocation6_spill] sm:$0xff] %v10171_v37  ;;  %18296 = vst [vmem:[#allocation7_spill] sm:$0xff] %v10177_v38  ;;  %v10208_v51 = vpack.c.bf16 %v17300_v44, %v17305_v43  ;;  %v10223_v55 = vsel %vm1390_vm0, %v1382_v49, 0  ;;  %v10226_v56 = vsel %vm1390_vm0, %v1383_v50, 0  ;;  %v17297_v57 = vand.u32 4294901760, %v10217_v53  ;;  %v1369_v49 = vld [vmem:[%s10089_s29 + $0x58] sm:$0xff] }
  0x21   : > { %v10214_v52 = vpack.c.bf16 %v17298_v46, %v17299_v45  ;;  %v17296_v58 = vand.u32 4294901760, %v10220_v54  ;;  %v17293_v59 = vand.u32 4294901760, %v10223_v55  ;;  %v17290_v60 = vand.u32 4294901760, %v10226_v56  ;;  %v1328_v32 = vld [vmem:[%s10233_s9 + $0x10] sm:$0xff]  ;;  %v1373_v31 = vld [vmem:[%s10089_s29 + $0x78] sm:$0xff]  ;;  %s20256_s13 = smov (!%p297_p7, %s7375_s13), 3 }
  0x22   : > { %18297 = vst [vmem:[#allocation8_spill] sm:$0xff] %v10208_v51  ;;  %v1392_v5 = vsel %vm1390_vm0, %v1326_v61, 0  ;;  %v10260_v8 = vsel %vm1390_vm0, %v1366_v62, 0  ;;  %v10263_v13 = vsel %vm1390_vm0, %v1367_v63, 0  ;;  %v10266_v17 = vsel %vm1390_vm0, %v1384_v0, 0  ;;  %v1386_v61 = vld [vmem:[%s10089_s29 + $0xe0] sm:$0xff] }
  0x23   : > { %18298 = vst [vmem:[#allocation9_spill] sm:$0xff] %v10214_v52  ;;  %v10250_v2 = vpack.c.bf16 %v17296_v58, %v17297_v57  ;;  %v10257_v7 = vpack.c.bf16 %v17290_v60, %v17293_v59  ;;  %v10269_v18 = vsel %vm1390_vm0, %v1385_v1, 0  ;;  %v10271_v19 = vand.u32 4294901760, %v1392_v5  ;;  %v1387_v62 = vld [vmem:[%s10089_s29 + $0xe8] sm:$0xff]  ;;  %v1388_v58 = vld [vmem:[%s10089_s29 + $0xf0] sm:$0xff]  ;;  %s7376_s14 = sshll.u32 %s20256_s13, 3 }
  0x24   : > { %v17292_v33 = vand.u32 4294901760, %v10260_v8  ;;  %v17291_v34 = vand.u32 4294901760, %v10263_v13  ;;  %v17295_v36 = vand.u32 4294901760, %v10266_v17  ;;  %v17294_v47 = vand.u32 4294901760, %v10269_v18  ;;  %s11635_s17 = scalar_lea.vmem %s17285_s1, %s7376_s14  ;;  %s7388_s25 = sshll.u32 %s9999_s19, 8 }
  0x25   : > { %8337 = vmatpush3.bf16.xpose.msra.mxu0 %v10171_v37  ;;  %18299 = vst [vmem:[#allocation10_spill] sm:$0xff] %v10250_v2  ;;  %18300 = vst [vmem:[#allocation11_spill] sm:$0xff] %v10257_v7  ;;  %v10277_v35 = vsub.f32 %v1392_v5, %v10271_v19  ;;  %v10304_v5 = vsel %vm1390_vm0, %v1368_v48, 0  ;;  %v10307_v60 = vsel %vm1390_vm0, %v1369_v49, 0  ;;  %v10331_v57 = vsub.f32 %v10095_v3, %v1632_v9  ;;  %v1332_v37 = vld [vmem:[%s10233_s9 + $0x30] sm:$0xff]  ;;  %s7389_s26 = sshll.u32 %s9995_s18, 8 }
  0x26   : > { %8339 = vmatprep.subr.bf16.mxu0 %v10177_v38  ;;  %v10293_v63 = vpack.c.bf16 %v17291_v34, %v17292_v33  ;;  %v10301_v1 = vpack.c.bf16 %v17294_v47, %v17295_v36  ;;  %v10310_v34 = vsel %vm1390_vm0, %v1386_v61, 0  ;;  %v10313_v33 = vsel %vm1390_vm0, %v1387_v62, 0  ;;  %v1370_v61 = vld [vmem:[%s10089_s29 + $0x60] sm:$0xff]  ;;  %v1371_v62 = vld [vmem:[%s10089_s29 + $0x68] sm:$0xff]  ;;  %p321_p9 = scmp.lt.s32.totalorder %s9995_s18, 1  ;;  %s20258_s19 = smov (!%p314_p8, %s9999_s19), 1 }
  0x27   : > { %18301 = vst [vmem:[#allocation12_spill] sm:$0xff] %v10277_v35  ;;  %v10285_v50 = vand.u32 4294901760, %v10277_v35  ;;  %v17304_v47 = vand.u32 4294901760, %v10304_v5  ;;  %v17301_v36 = vand.u32 4294901760, %v10307_v60  ;;  %v17303_v48 = vand.u32 4294901760, %v10310_v34  ;;  %18305 = vst [vmem:[#allocation16_spill] sm:$0xff] %v10331_v57 }
  0x28   : > { %18303 = vst [vmem:[#allocation14_spill] sm:$0xff] %v10293_v63  ;;  %18304 = vst [vmem:[#allocation15_spill] sm:$0xff] %v10301_v1  ;;  %v17302_v49 = vand.u32 4294901760, %v10313_v33  ;;  %v10336_v46 = vsub.f32 %v10098_v4, %v1635_v10  ;;  %v10351_v3 = vsel %vm1390_vm0, %v1370_v61, 0  ;;  %v10354_v4 = vsel %vm1390_vm0, %v1371_v62, 0  ;;  %s322_s27 = scalar_select %p321_p9, %s9995_s18, 1 }
  0x29   : > { %18302 = vst [vmem:[#allocation13_spill] sm:$0xff] %v10285_v50  ;;  %v1683_v0 = vsub.f32 %v10277_v35, %v10285_v50  ;;  %v10342_v45 = vpack.c.bf16 %v17301_v36, %v17304_v47  ;;  %v10357_v9 = vsel %vm1390_vm0, %v1388_v58, 0  ;;  %v1327_v36 = vld [vmem:[%s10233_s9 + $0x8] sm:$0xff]  ;;  %v1372_v47 = vld [vmem:[%s10089_s29 + $0x70] sm:$0xff]  ;;  %v10378_v30 = vsub.f32 %v10102_v6, %v1584_v12  ;;  %s7384_s30 = sshll.u32 %s20258_s19, 2  ;;  %p7749_p10 = scmp.ne.s32.totalorder %s9995_s18, 0 }
  0x2a   : > { %18306 = vst [vmem:[#allocation17_spill] sm:$0xff] %v10336_v46  ;;  %v10348_v44 = vpack.c.bf16 %v17302_v49, %v17303_v48  ;;  %v17311_v49 = vand.u32 4294901760, %v10351_v3  ;;  %v17310_v48 = vand.u32 4294901760, %v10354_v4  ;;  %v17315_v61 = vand.u32 4294901760, %v10357_v9 }
  0x2b   : > { %v10315_v59 = vand.u32 4294901760, %v1683_v0  ;;  %v1389_v0 = vld [vmem:[%s10089_s29 + $0xf8] sm:$0xff]  ;;  %18307 = vst [vmem:[#allocation18_spill] sm:$0xff] %v10342_v45  ;;  %v1395_v43 = vsel %vm1390_vm0, %v1327_v36, 0  ;;  %v10383_v29 = vsub.f32 %v10109_v11, %v1587_v14  ;;  %v10388_v58 = vsub.f32 %v10115_v15, %v1638_v23  ;;  %s7383_s29 = sshll.u32 %s322_s27, 1 }
  0x2c   : > { %18308 = vst [vmem:[#allocation19_spill] sm:$0xff] %v10348_v44  ;;  %v10360_v10 = vsel %vm1390_vm0, %v1389_v0, 0  ;;  %v17318_v0 = vand.u32 4294901760, %v10336_v46  ;;  %v10393_v36 = vsub.f32 %v10118_v16, %v1641_v24  ;;  %v10399_v6 = vpack.c.bf16 %v17310_v48, %v17311_v49  ;;  %v1329_v15 = vld [vmem:[%s10233_s9 + $0x18] sm:$0xff]  ;;  %s325_s6 = sadd.s32 %s7384_s30, %s7383_s29 }
  0x2d   : > { %8341 = vmatpush3.bf16.xpose.msra.mxu0 %v10208_v51  ;;  %7786 = vmatprep.mubr.f32.mxu0 %v10315_v59  ;;  %v17314_v62 = vand.u32 4294901760, %v10360_v10  ;;  %v10402_v12 = vsel %vm1390_vm0, %v1372_v47, 0  ;;  %v10404_v11 = vand.u32 4294901760, %v1395_v43  ;;  %v1398_v14 = vsel %vm1390_vm0, %v1328_v32, 0  ;;  %s7385_s7 = sshll.u32 %s325_s6, 3 }
  0x2e   : > { %8343 = vmatprep.subr.bf16.mxu0 %v10214_v52  ;;  %18309 = vst [vmem:[#allocation20_spill] sm:$0xff] %v10399_v6  ;;  %v10415_v23 = vsel %vm1390_vm0, %v1373_v31, 0  ;;  %v18311_v24 = vand.u32 4294901760, %v10331_v57  ;;  %v2155_v48 = vsub.f32 %v10336_v46, %v17318_v0  ;;  %v10425_v50 = vand.u32 4294901760, %v1398_v14  ;;  %s15483_s10 = scalar_lea.vmem %s17289_s5, %s7385_s7 }
  0x2f   : > { %v10412_v16 = vpack.c.bf16 %v17314_v62, %v17315_v61  ;;  %v1401_v62 = vsel %vm1390_vm0, %v1329_v15, 0  ;;  %v18313_v15 = vand.u32 4294901760, %v10130_v21  ;;  %v18317_v49 = vand.u32 4294901760, %v10142_v25 }
  0x30   : > { %v2148_v47 = vsub.f32 %v10331_v57, %v18311_v24  ;;  %v10432_v24 = vsub.f32 %v1395_v43, %v10404_v11  ;;  %v2156_v32 = vand.u32 4294901760, %v2155_v48  ;;  %v10443_v31 = vand.u32 4294901760, %v1401_v62 }
  0x31   : > { %18310 = vst [vmem:[#allocation21_spill] sm:$0xff] %v10412_v16  ;;  %v18314_v43 = vand.u32 4294901760, %v10378_v30  ;;  %v18343_v20 = vand.u32 4294901760, %v10217_v53 }
  0x32   : > { %18312 = vst [vmem:[#allocation22_spill] sm:$0xff] %v10432_v24  ;;  %v2149_v0 = vand.u32 4294901760, %v2148_v47  ;;  %v10452_v47 = vsub.f32 %v1398_v14, %v10425_v50  ;;  %v10472_v14 = vand.u32 4294901760, %v10432_v24 }
  0x33   : > { %v2036_v61 = vsub.f32 %v10378_v30, %v18314_v43  ;;  %v18319_v43 = vand.u32 4294901760, %v10402_v12 }
  0x34   : > { %18316 = vst [vmem:[#allocation23_spill] sm:$0xff] %v10452_v47  ;;  %18322 = vst [vmem:[#allocation25_spill] sm:$0xff] %v10472_v14 }
  0x35   : > { %8345 = vmatpush3.bf16.xpose.msra.mxu0 %v10250_v2  ;;  %v2037_v51 = vand.u32 4294901760, %v2036_v61 }
  0x36   : > { %8347 = vmatprep.subr.bf16.mxu0 %v10257_v7 }
  0x3d   : > { %8349 = vmatpush3.bf16.xpose.msra.mxu0 %v10293_v63  ;;  %v18320_v63 = vand.u32 4294901760, %v10415_v23 }
  0x3e   : > { %8351 = vmatprep.subr.bf16.mxu0 %v10301_v1 }
  0x45   : > { %8353 = vmatpush3.bf16.xpose.msra.mxu0 %v10342_v45 }
  0x46   : > { %8355 = vmatprep.subr.bf16.mxu0 %v10348_v44  ;;  %v1330_v44 = vld [vmem:[%s10233_s9 + $0x20] sm:$0xff] }
  0x47   : > { %v1404_v45 = vsel %vm1390_vm0, %v1330_v44, 0  ;;  %v18323_v44 = vand.u32 4294901760, %v10148_v27 }
  0x48   : > { %v10489_v52 = vand.u32 4294901760, %v1404_v45 }
  0x49   : > { %v10477_v7 = vsub.f32 %v10148_v27, %v18323_v44  ;;  %v10492_v27 = vand.u32 4294901760, %v10452_v47 }
  0x4a   : > { %18327 = vst [vmem:[#allocation27_spill] sm:$0xff] %v10489_v52 }
  0x4b   : > { %18328 = vst [vmem:[#allocation28_spill] sm:$0xff] %v10492_v27 }
  0x4d   : > { %8357 = vmatpush3.bf16.xpose.msra.mxu0 %v10399_v6  ;;  %v10441_v6 = vsub.f32 %v10130_v21, %v18313_v15  ;;  %v10458_v21 = vsub.f32 %v10142_v25, %v18317_v49  ;;  %v18318_v15 = vand.u32 4294901760, %v10145_v26  ;;  %v8362_v25 = vpack.c.bf16 %v2156_v32, %v2149_v0 }
  0x4e   : > { %8359 = vmatprep.subr.bf16.mxu0 %v10412_v16  ;;  %v18315_v16 = vand.u32 4294901760, %v10383_v29  ;;  %v18324_v49 = vand.u32 4294901760, %v10388_v58  ;;  %v1694_v0 = vsub.f32 %v10432_v24, %v10472_v14  ;;  %v18330_v32 = vand.u32 4294901760, %v10183_v40 }
  0x4f   : > { %v10463_v1 = vsub.f32 %v10145_v26, %v18318_v15  ;;  %v18325_v15 = vand.u32 4294901760, %v10393_v36  ;;  %v1410_v24 = vsel %vm1390_vm0, %v1332_v37, 0 }
  0x50   : > { %v2043_v48 = vsub.f32 %v10383_v29, %v18315_v16  ;;  %v10469_v16 = vpack.c.bf16 %v18320_v63, %v18319_v43  ;;  %v2162_v26 = vsub.f32 %v10388_v58, %v18324_v49  ;;  %v1331_v63 = vld [vmem:[%s10233_s9 + $0x28] sm:$0xff]  ;;  %v10487_v43 = vsub.f32 %v1401_v62, %v10443_v31 }
  0x51   : > { %v2169_v2 = vsub.f32 %v10393_v36, %v18325_v15  ;;  %v1407_v49 = vsel %vm1390_vm0, %v1331_v63, 0  ;;  %v10511_v44 = vsub.f32 %v10183_v40, %v18330_v32  ;;  %v1695_v40 = vand.u32 4294901760, %v1694_v0 }
  0x52   : > { %18321 = vst [vmem:[#allocation24_spill] sm:$0xff] %v10469_v16  ;;  %18326 = vst [vmem:[#allocation26_spill] sm:$0xff] %v10487_v43  ;;  %v2044_v38 = vand.u32 4294901760, %v2043_v48  ;;  %v2163_v62 = vand.u32 4294901760, %v2162_v26  ;;  %v18333_v26 = vand.u32 4294901760, %v10186_v41  ;;  %v18335_v32 = vand.u32 4294901760, %v10441_v6 }
  0x53   : > { %v2170_v15 = vand.u32 4294901760, %v2169_v2  ;;  %v10517_v2 = vsub.f32 %v1404_v45, %v10489_v52  ;;  %v18336_v45 = vand.u32 4294901760, %v10458_v21 }
  0x54   : > { %v10522_v63 = vsub.f32 %v10186_v41, %v18333_v26  ;;  %v8364_v48 = vpack.c.bf16 %v2044_v38, %v2037_v51  ;;  %v2050_v61 = vsub.f32 %v10441_v6, %v18335_v32  ;;  %v18337_v41 = vand.u32 4294901760, %v10189_v42  ;;  %v1333_v26 = vld [vmem:[%s10233_s9 + $0x38] sm:$0xff] }
  0x55   : > { %8361 = vmatpush3.bf16.xpose.msra.mxu0 %v10469_v16  ;;  %v18329_v16 = vand.u32 4294901760, %v10180_v39  ;;  %18332 = vst [vmem:[#allocation30_spill] sm:$0xff] %v10517_v2  ;;  %v2057_v14 = vsub.f32 %v10458_v21, %v18336_v45  ;;  %v8366_v51 = vpack.c.bf16 %v2170_v15, %v2163_v62  ;;  %v10550_v37 = vand.u32 4294901760, %v10517_v2 }
  0x56   : > { %8363 = vmatprep.subr.bf16.mxu0 %v8362_v25  ;;  %v10514_v25 = vand.u32 4294901760, %v10487_v43  ;;  %v10538_v38 = vsub.f32 %v10189_v42, %v18337_v41  ;;  %v10556_v15 = vand.u32 4294901760, %v1410_v24  ;;  %v1334_v41 = vld [vmem:[%s10233_s9 + $0x40] sm:$0xff] }
  0x57   : > { %v10506_v28 = vsub.f32 %v10180_v39, %v18329_v16  ;;  %v1705_v39 = vsub.f32 %v10452_v47, %v10492_v27  ;;  %v10526_v16 = vand.u32 4294901760, %v1407_v49  ;;  %v18338_v27 = vand.u32 4294901760, %v10463_v1  ;;  %18340 = vst [vmem:[#allocation32_spill] sm:$0xff] %v10550_v37 }
  0x58   : > { %18331 = vst [vmem:[#allocation29_spill] sm:$0xff] %v10514_v25  ;;  %v18339_v47 = vand.u32 4294901760, %v10477_v7  ;;  %v1716_v45 = vsub.f32 %v10487_v43, %v10514_v25  ;;  %18342 = vst [vmem:[#allocation34_spill] sm:$0xff] %v10556_v15  ;;  %v2058_v22 = vand.u32 4294901760, %v2057_v14  ;;  %v1413_v25 = vsel %vm1390_vm0, %v1333_v26, 0 }
  0x59   : > { %18334 = vst [vmem:[#allocation31_spill] sm:$0xff] %v10526_v16  ;;  %v2176_v0 = vsub.f32 %v10463_v1, %v18338_v27  ;;  %v1706_v42 = vand.u32 4294901760, %v1705_v39  ;;  %v10554_v62 = vsub.f32 %v1407_v49, %v10526_v16  ;;  %v17365_v27 = vand.u32 4294901760, %v10506_v28 }
  0x5a   : > { %v2183_v32 = vsub.f32 %v10477_v7, %v18339_v47  ;;  %v2051_v47 = vand.u32 4294901760, %v2050_v61  ;;  %v17368_v43 = vand.u32 4294901760, %v10511_v44  ;;  %v10567_v16 = vsub.f32 %v10217_v53, %v18343_v20 }
  0x5b   : > { %18341 = vst [vmem:[#allocation33_spill] sm:$0xff] %v10554_v62  ;;  %v2177_v35 = vand.u32 4294901760, %v2176_v0  ;;  %v1727_v61 = vsub.f32 %v10517_v2, %v10550_v37  ;;  %v10578_v26 = vand.u32 4294901760, %v10554_v62  ;;  %v10581_v0 = vsub.f32 %v1410_v24, %v10556_v15 }
  0x5c   : > { %7787 = vmatmul.mubr.f32.vlgmr.msra.gmra.mrb[0].mxu0 %v10315_v59  ;;  %v2184_v59 = vand.u32 4294901760, %v2183_v32  ;;  %v10583_v20 = vand.u32 4294901760, %v1413_v25  ;;  %v2064_v53 = vsub.f32 %v10506_v28, %v17365_v27  ;;  %v18349_v24 = vand.u32 4294901760, %v10226_v56  ;;  %v1335_v27 = vld [vmem:[%s10233_s9 + $0x48] sm:$0xff] }
  0x5d   : > { %8365 = vmatpush3.bf16.xpose.msra.mxu0 %v8364_v48  ;;  %7788 = vmatprep.mubr.f32.mxu0 %v1695_v40  ;;  %v18344_v48 = vand.u32 4294901760, %v10220_v54  ;;  %18345 = vst [vmem:[#allocation35_spill] sm:$0xff] %v10578_v26  ;;  %18346 = vst [vmem:[#allocation36_spill] sm:$0xff] %v10581_v0  ;;  %v18351_v37 = vand.u32 4294901760, %v10522_v63 }
  0x5e   : > { %8367 = vmatprep.subr.bf16.mxu0 %v8366_v51  ;;  %v1416_v51 = vsel %vm1390_vm0, %v1334_v41, 0  ;;  %18347 = vst [vmem:[#allocation37_spill] sm:$0xff] %v10583_v20  ;;  %v1717_v41 = vand.u32 4294901760, %v1716_v45  ;;  %v10599_v49 = vsub.f32 %v10226_v56, %v18349_v24  ;;  %v8370_v39 = vpack.c.bf16 %v2184_v59, %v2177_v35 }
  0x5f   : > { %v10572_v14 = vsub.f32 %v10220_v54, %v18344_v48  ;;  %v18348_v54 = vand.u32 4294901760, %v10223_v55  ;;  %v2071_v48 = vsub.f32 %v10511_v44, %v17368_v43  ;;  %v1728_v45 = vand.u32 4294901760, %v1727_v61 }
  0x60   : > { %7789 = vmatmul.mubr.f32.gmra.mrb[2].mxu0 %v1695_v40  ;;  %v8368_v40 = vpack.c.bf16 %v2058_v22, %v2051_v47  ;;  %18350 = vst [vmem:[#allocation38_spill] sm:$0xff] %v10599_v49  ;;  %v10608_v47 = vand.u32 4294901760, %v1416_v51  ;;  %v1738_v43 = vsub.f32 %v10554_v62, %v10578_v26  ;;  %v10613_v56 = vand.u32 4294901760, %v10581_v0  ;;  %v1337_v62 = vld [vmem:[%s10233_s9 + $0x58] sm:$0xff] }
  0x61   : > { %v10591_v32 = vsub.f32 %v10223_v55, %v18348_v54  ;;  %7790 = vmatprep.mubr.f32.mxu0 %v1706_v42  ;;  %v2190_v55 = vsub.f32 %v10522_v63, %v18351_v37  ;;  %v18352_v54 = vand.u32 4294901760, %v10538_v38  ;;  %v10616_v35 = vsub.f32 %v1413_v25, %v10583_v20 }
  0x62   : > { %18353 = vst [vmem:[#allocation39_spill] sm:$0xff] %v10608_v47  ;;  %18354 = vst [vmem:[#allocation40_spill] sm:$0xff] %v10613_v56  ;;  %v2065_v59 = vand.u32 4294901760, %v2064_v53  ;;  %v2072_v37 = vand.u32 4294901760, %v2071_v48  ;;  %v1419_v24 = vsel %vm1390_vm0, %v1335_v27, 0  ;;  %v17379_v61 = vand.u32 4294901760, %v10567_v16 }
  0x63   : > { %v2197_v22 = vsub.f32 %v10538_v38, %v18352_v54  ;;  %18355 = vst [vmem:[#allocation41_spill] sm:$0xff] %v10616_v35  ;;  %v1336_v54 = vld [vmem:[%s10233_s9 + $0x50] sm:$0xff]  ;;  %v2191_v2 = vand.u32 4294901760, %v2190_v55  ;;  %v18356_v53 = vand.u32 4294901760, %v10260_v8  ;;  %v18357_v27 = vand.u32 4294901760, %v10263_v13 }
  0x64   : > { %7791 = vmatmul.mubr.f32.gmra.mrb[4].mxu0 %v1706_v42  ;;  %v18358_v42 = vand.u32 4294901760, %v10266_v17  ;;  %v10640_v55 = vsub.f32 %v1416_v51, %v10608_v47  ;;  %v8372_v25 = vpack.c.bf16 %v2072_v37, %v2065_v59  ;;  %v18362_v51 = vand.u32 4294901760, %v10572_v14 }
  0x65   : > { %7792 = vmatprep.mubr.f32.mxu0 %v1717_v41  ;;  %8369 = vmatpush3.bf16.xpose.msra.mxu0 %v8368_v40  ;;  %v2198_v26 = vand.u32 4294901760, %v2197_v22  ;;  %v10627_v40 = vsub.f32 %v10260_v8, %v18356_v53  ;;  %v10632_v48 = vsub.f32 %v10263_v13, %v18357_v27  ;;  %v1749_v22 = vsub.f32 %v10581_v0, %v10613_v56 }
  0x66   : > { %8371 = vmatprep.subr.bf16.mxu0 %v8370_v39  ;;  %v10637_v39 = vsub.f32 %v10266_v17, %v18358_v42  ;;  %18359 = vst [vmem:[#allocation42_spill] sm:$0xff] %v10640_v55  ;;  %v10645_v8 = vand.u32 4294901760, %v10616_v35  ;;  %v10647_v53 = vand.u32 4294901760, %v1419_v24  ;;  %v1422_v13 = vsel %vm1390_vm0, %v1336_v54, 0 }
  0x67   : > { %v1739_v27 = vand.u32 4294901760, %v1738_v43  ;;  %v2078_v17 = vsub.f32 %v10567_v16, %v17379_v61  ;;  %v18363_v42 = vand.u32 4294901760, %v10269_v18  ;;  %v8374_v0 = vpack.c.bf16 %v2198_v26, %v2191_v2 }
  0x68   : > { %7793 = vmatmul.mubr.f32.gmra.mrb[6].mxu0 %v1717_v41  ;;  %18360 = vst [vmem:[#allocation43_spill] sm:$0xff] %v10645_v8  ;;  %18361 = vst [vmem:[#allocation44_spill] sm:$0xff] %v10647_v53  ;;  %v2085_v41 = vsub.f32 %v10572_v14, %v18362_v51  ;;  %v18364_v54 = vand.u32 4294901760, %v10591_v32  ;;  %v18365_v59 = vand.u32 4294901760, %v10599_v49  ;;  %v18366_v61 = vand.u32 4294901760, %v10304_v5 }
  0x69   : > { %7794 = vmatprep.mubr.f32.mxu0 %v1728_v45  ;;  %v10660_v56 = vsub.f32 %v10269_v18, %v18363_v42  ;;  %v10674_v51 = vand.u32 4294901760, %v10640_v55  ;;  %v10676_v20 = vand.u32 4294901760, %v1422_v13  ;;  %v1750_v18 = vand.u32 4294901760, %v1749_v22 }
  0x6a   : > { %v2204_v43 = vsub.f32 %v10591_v32, %v18364_v54  ;;  %v2211_v37 = vsub.f32 %v10599_v49, %v18365_v59  ;;  %v10671_v47 = vsub.f32 %v10304_v5, %v18366_v61  ;;  %v1760_v2 = vsub.f32 %v10616_v35, %v10645_v8  ;;  %v1338_v54 = vld [vmem:[%s10233_s9 + $0x60] sm:$0xff]  ;;  %v1339_v49 = vld [vmem:[%s10233_s9 + $0x68] sm:$0xff] }
  0x6b   : > { %18367 = vst [vmem:[#allocation45_spill] sm:$0xff] %v10674_v51  ;;  %18368 = vst [vmem:[#allocation46_spill] sm:$0xff] %v10676_v20  ;;  %v10681_v26 = vsub.f32 %v1419_v24, %v10647_v53  ;;  %v1425_v42 = vsel %vm1390_vm0, %v1337_v62, 0  ;;  %v2079_v5 = vand.u32 4294901760, %v2078_v17  ;;  %v2086_v61 = vand.u32 4294901760, %v2085_v41 }
  0x6c   : > { %7795 = vmatmul.mubr.f32.gmra.mrb[8].mxu0 %v1728_v45  ;;  %v17392_v59 = vand.u32 4294901760, %v10627_v40  ;;  %v2205_v45 = vand.u32 4294901760, %v2204_v43  ;;  %v2212_v22 = vand.u32 4294901760, %v2211_v37  ;;  %v18370_v35 = vand.u32 4294901760, %v10307_v60 }
  0x6d   : > { %18369 = vst [vmem:[#allocation47_spill] sm:$0xff] %v10681_v26  ;;  %7796 = vmatprep.mubr.f32.mxu0 %v1739_v27  ;;  %8373 = vmatpush3.bf16.xpose.msra.mxu0 %v8372_v25  ;;  %v1771_v25 = vsub.f32 %v10640_v55, %v10674_v51  ;;  %v10697_v17 = vsub.f32 %v1422_v13, %v10676_v20  ;;  %v10699_v41 = vand.u32 4294901760, %v1425_v42  ;;  %v18375_v37 = vand.u32 4294901760, %v10313_v33 }
  0x6e   : > { %8375 = vmatprep.subr.bf16.mxu0 %v8374_v0  ;;  %v10692_v62 = vsub.f32 %v10307_v60, %v18370_v35  ;;  %v18373_v0 = vand.u32 4294901760, %v10310_v34  ;;  %v10712_v60 = vand.u32 4294901760, %v10681_v26  ;;  %v1428_v35 = vsel %vm1390_vm0, %v1338_v54, 0 }
  0x6f   : > { %18371 = vst [vmem:[#allocation48_spill] sm:$0xff] %v10697_v17  ;;  %18372 = vst [vmem:[#allocation49_spill] sm:$0xff] %v10699_v41  ;;  %v10709_v24 = vsub.f32 %v10313_v33, %v18375_v37  ;;  %v1761_v13 = vand.u32 4294901760, %v1760_v2  ;;  %v8376_v8 = vpack.c.bf16 %v2086_v61, %v2079_v5  ;;  %v8378_v37 = vpack.c.bf16 %v2212_v22, %v2205_v45 }
  0x70   : > { %v10704_v43 = vsub.f32 %v10310_v34, %v18373_v0  ;;  %7797 = vmatmul.mubr.f32.gmra.mrb[10].mxu0 %v1739_v27  ;;  %18377 = vst [vmem:[#allocation52_spill] sm:$0xff] %v10712_v60  ;;  %v2092_v34 = vsub.f32 %v10627_v40, %v17392_v59  ;;  %v18378_v0 = vand.u32 4294901760, %v10632_v48  ;;  %v18379_v27 = vand.u32 4294901760, %v10637_v39 }
  0x71   : > { %18376 = vst [vmem:[#allocation51_spill] sm:$0xff] %v10709_v24  ;;  %7798 = vmatprep.mubr.f32.mxu0 %v1750_v18  ;;  %v18380_v54 = vand.u32 4294901760, %v10660_v56  ;;  %v1772_v5 = vand.u32 4294901760, %v1771_v25  ;;  %v10729_v61 = vand.u32 4294901760, %v10697_v17  ;;  %v10732_v59 = vsub.f32 %v1425_v42, %v10699_v41  ;;  %v1340_v25 = vld [vmem:[%s10233_s9 + $0x70] sm:$0xff]  ;;  %v1341_v42 = vld [vmem:[%s10233_s9 + $0x78] sm:$0xff] }
  0x72   : > { %18374 = vst [vmem:[#allocation50_spill] sm:$0xff] %v10704_v43  ;;  %v2099_v33 = vsub.f32 %v10632_v48, %v18378_v0  ;;  %v2218_v51 = vsub.f32 %v10637_v39, %v18379_v27  ;;  %v10734_v55 = vand.u32 4294901760, %v1428_v35  ;;  %v1782_v45 = vsub.f32 %v10681_v26, %v10712_v60 }
  0x73   : > { %v2225_v2 = vsub.f32 %v10660_v56, %v18380_v54  ;;  %18381 = vst [vmem:[#allocation53_spill] sm:$0xff] %v10729_v61  ;;  %18382 = vst [vmem:[#allocation54_spill] sm:$0xff] %v10732_v59  ;;  %v1431_v22 = vsel %vm1390_vm0, %v1339_v49, 0  ;;  %v2093_v54 = vand.u32 4294901760, %v2092_v34  ;;  %v18385_v27 = vand.u32 4294901760, %v10354_v4 }
  0x74   : > { %18383 = vst [vmem:[#allocation55_spill] sm:$0xff] %v10734_v55  ;;  %7799 = vmatmul.mubr.f32.gmra.mrb[12].mxu0 %v1750_v18  ;;  %v2100_v20 = vand.u32 4294901760, %v2099_v33  ;;  %v18384_v18 = vand.u32 4294901760, %v10351_v3  ;;  %v2219_v49 = vand.u32 4294901760, %v2218_v51  ;;  %v1793_v34 = vsub.f32 %v10697_v17, %v10729_v61 }
  0x75   : > { %7800 = vmatprep.mubr.f32.mxu0 %v1761_v13  ;;  %8377 = vmatpush3.bf16.xpose.msra.mxu0 %v8376_v8  ;;  %v2226_v0 = vand.u32 4294901760, %v2225_v2  ;;  %v10752_v8 = vsub.f32 %v10354_v4, %v18385_v27  ;;  %v10757_v33 = vand.u32 4294901760, %v10732_v59  ;;  %v10760_v41 = vsub.f32 %v1428_v35, %v10734_v55 }
  0x76   : > { %v10747_v60 = vsub.f32 %v10351_v3, %v18384_v18  ;;  %8379 = vmatprep.subr.bf16.mxu0 %v8378_v37  ;;  %v10762_v3 = vand.u32 4294901760, %v1431_v22  ;;  %v1434_v51 = vsel %vm1390_vm0, %v1340_v25, 0  ;;  %v18389_v37 = vand.u32 4294901760, %v10671_v47 }
  0x77   : > { %18386 = vst [vmem:[#allocation56_spill] sm:$0xff] %v10757_v33  ;;  %18387 = vst [vmem:[#allocation57_spill] sm:$0xff] %v10760_v41  ;;  %v18390_v4 = vand.u32 4294901760, %v10692_v62  ;;  %v1783_v18 = vand.u32 4294901760, %v1782_v45  ;;  %v8380_v61 = vpack.c.bf16 %v2100_v20, %v2093_v54  ;;  %v18391_v35 = vand.u32 4294901760, %v10704_v43 }
  0x78   : > { %7801 = vmatmul.mubr.f32.gmra.mrb[14].mxu0 %v1761_v13  ;;  %18388 = vst [vmem:[#allocation58_spill] sm:$0xff] %v10762_v3  ;;  %v2106_v2 = vsub.f32 %v10671_v47, %v18389_v37  ;;  %v18392_v17 = vand.u32 4294901760, %v10709_v24  ;;  %v18393_v26 = vand.u32 4294901760, %v10357_v9  ;;  %v8382_v20 = vpack.c.bf16 %v2226_v0, %v2219_v49 }
  0x79   : > { %v2113_v27 = vsub.f32 %v10692_v62, %v18390_v4  ;;  %7802 = vmatprep.mubr.f32.mxu0 %v1772_v5  ;;  %v2232_v13 = vsub.f32 %v10704_v43, %v18391_v35  ;;  %v18394_v4 = vand.u32 4294901760, %v10360_v10  ;;  %v1794_v54 = vand.u32 4294901760, %v1793_v34 }
  0x7a   : > { %v2239_v25 = vsub.f32 %v10709_v24, %v18392_v17  ;;  %v10781_v37 = vsub.f32 %v10357_v9, %v18393_v26  ;;  %v1804_v55 = vsub.f32 %v10732_v59, %v10757_v33  ;;  %v10791_v35 = vand.u32 4294901760, %v10760_v41 }
  0x7b   : > { %v10786_v45 = vsub.f32 %v10360_v10, %v18394_v4  ;;  %v10793_v43 = vand.u32 4294901760, %v1434_v51  ;;  %v10796_v17 = vsub.f32 %v1431_v22, %v10762_v3  ;;  %v1437_v9 = vsel %vm1390_vm0, %v1341_v42, 0  ;;  %v1342_v10 = vld [vmem:[%s10233_s9 + $0x80] sm:$0xff] }
  0x7c   : > { %18395 = vst [vmem:[#allocation59_spill] sm:$0xff] %v10791_v35  ;;  %7803 = vmatmul.mubr.f32.gmra.mrb[16].mxu0 %v1772_v5  ;;  %v2107_v26 = vand.u32 4294901760, %v2106_v2  ;;  %v2114_v24 = vand.u32 4294901760, %v2113_v27  ;;  %v2233_v0 = vand.u32 4294901760, %v2232_v13  ;;  %v2240_v49 = vand.u32 4294901760, %v2239_v25 }
  0x7d   : > { %18396 = vst [vmem:[#allocation60_spill] sm:$0xff] %v10793_v43  ;;  %18397 = vst [vmem:[#allocation61_spill] sm:$0xff] %v10796_v17  ;;  %7804 = vmatprep.mubr.f32.mxu0 %v1783_v18  ;;  %8381 = vmatpush3.bf16.xpose.msra.mxu0 %v8380_v61  ;;  %v17417_v34 = vand.u32 4294901760, %v10747_v60  ;;  %v17419_v4 = vand.u32 4294901760, %v10752_v8  ;;  %v17418_v33 = vand.u32 4294901760, %v10781_v37  ;;  %v18398_v2 = vand.u32 4294901760, %v10402_v12 }
  0x7e   : > { %8383 = vmatprep.subr.bf16.mxu0 %v8382_v20  ;;  %v18399_v27 = vand.u32 4294901760, %v10415_v23  ;;  %v10818_v25 = vand.u32 4294901760, %v1437_v9  ;;  %v1815_v20 = vsub.f32 %v10760_v41, %v10791_v35  ;;  %v10823_v22 = vand.u32 4294901760, %v10796_v17 }
  0x7f   : > { %v10811_v61 = vsub.f32 %v10402_v12, %v18398_v2  ;;  %v10826_v42 = vsub.f32 %v1434_v51, %v10793_v43  ;;  %v1440_v12 = vsel %vm1390_vm0, %v1342_v10, 0  ;;  %v1805_v2 = vand.u32 4294901760, %v1804_v55 }
  0x80   : > { %v10816_v13 = vsub.f32 %v10415_v23, %v18399_v27  ;;  %18400 = vst [vmem:[#allocation62_spill] sm:$0xff] %v10818_v25  ;;  %7805 = vmatmul.mubr.f32.gmra.mrb[18].mxu0 %v1783_v18  ;;  %18401 = vst [vmem:[#allocation63_spill] sm:$0xff] %v10823_v22  ;;  %v8384_v5 = vpack.c.bf16 %v2114_v24, %v2107_v26  ;;  %v2120_v23 = vsub.f32 %v10747_v60, %v17417_v34  ;;  %v1343_v26 = vld [vmem:[%s10233_s9 + $0x88] sm:$0xff] }
  0x81   : > { %18402 = vst [vmem:[#allocation64_spill] sm:$0xff] %v10826_v42  ;;  %7806 = vmatprep.mubr.f32.mxu0 %v1794_v54  ;;  %v2127_v18 = vsub.f32 %v10752_v8, %v17419_v4  ;;  %v8386_v27 = vpack.c.bf16 %v2240_v49, %v2233_v0  ;;  %v2246_v35 = vsub.f32 %v10781_v37, %v17418_v33  ;;  %v18403_v51 = vand.u32 4294901760, %v10786_v45  ;;  %v1345_v4 = vld [vmem:[%s10233_s9 + $0x98] sm:$0xff] }
  0x82   : > { %v10842_v55 = vsub.f32 %v1437_v9, %v10818_v25  ;;  %v10844_v24 = vand.u32 4294901760, %v1440_v12  ;;  %v1816_v34 = vand.u32 4294901760, %v1815_v20  ;;  %v1826_v0 = vsub.f32 %v10796_v17, %v10823_v22  ;;  %v1344_v17 = vld [vmem:[%s10233_s9 + $0x90] sm:$0xff] }
  0x83   : > { %v2253_v10 = vsub.f32 %v10786_v45, %v18403_v51  ;;  %v10850_v49 = vand.u32 4294901760, %v10826_v42  ;;  %v2121_v33 = vand.u32 4294901760, %v2120_v23  ;;  %v2128_v51 = vand.u32 4294901760, %v2127_v18 }
  0x84   : > { %18404 = vst [vmem:[#allocation65_spill] sm:$0xff] %v10842_v55  ;;  %18405 = vst [vmem:[#allocation66_spill] sm:$0xff] %v10844_v24  ;;  %7807 = vmatmul.mubr.f32.gmra.mrb[20].mxu0 %v1794_v54  ;;  %v17430_v9 = vand.u32 4294901760, %v10811_v61  ;;  %v1443_v41 = vsel %vm1390_vm0, %v1343_v26, 0  ;;  %v2247_v54 = vand.u32 4294901760, %v2246_v35  ;;  %v10856_v59 = vand.u32 4294901760, %v10842_v55 }
  0x85   : > { %18406 = vst [vmem:[#allocation67_spill] sm:$0xff] %v10850_v49  ;;  %7808 = vmatprep.mubr.f32.mxu0 %v1805_v2  ;;  %8385 = vmatpush3.bf16.xpose.msra.mxu0 %v8384_v5  ;;  %v2254_v20 = vand.u32 4294901760, %v2253_v10  ;;  %v10859_v22 = vsub.f32 %v1440_v12, %v10844_v24  ;;  %v1827_v5 = vand.u32 4294901760, %v1826_v0  ;;  %v1837_v23 = vsub.f32 %v10826_v42, %v10850_v49 }
  0x86   : > { %8387 = vmatprep.subr.bf16.mxu0 %v8386_v27  ;;  %18407 = vst [vmem:[#allocation68_spill] sm:$0xff] %v10856_v59  ;;  %v10864_v18 = vand.u32 4294901760, %v1443_v41  ;;  %v8388_v26 = vpack.c.bf16 %v2128_v51, %v2121_v33  ;;  %v2134_v35 = vsub.f32 %v10811_v61, %v17430_v9  ;;  %v18410_v27 = vand.u32 4294901760, %v10816_v13 }
  0x87   : > { %18408 = vst [vmem:[#allocation69_spill] sm:$0xff] %v10859_v22  ;;  %v8390_v10 = vpack.c.bf16 %v2254_v20, %v2247_v54  ;;  %v1848_v0 = vsub.f32 %v10842_v55, %v10856_v59  ;;  %v10877_v49 = vand.u32 4294901760, %v10859_v22  ;;  %v1838_v33 = vand.u32 4294901760, %v1837_v23  ;;  %v1351_v55 = vld [vmem:[%s10233_s9 + $0xc8] sm:$0xff] }
  0x88   : > { %7809 = vmatmul.mubr.f32.gmra.mrb[22].mxu0 %v1805_v2  ;;  %18409 = vst [vmem:[#allocation70_spill] sm:$0xff] %v10864_v18  ;;  %v2141_v12 = vsub.f32 %v10816_v13, %v18410_v27  ;;  %v1446_v2 = vsel %vm1390_vm0, %v1344_v17, 0  ;;  %v1449_v51 = vsel %vm1390_vm0, %v1345_v4, 0  ;;  %v10885_v17 = vsub.f32 %v1443_v41, %v10864_v18 }
  0x89   : > { %7810 = vmatprep.mubr.f32.mxu0 %v1816_v34  ;;  %18411 = vst [vmem:[#allocation71_spill] sm:$0xff] %v10877_v49  ;;  %v10887_v54 = vand.u32 4294901760, %v1446_v2  ;;  %v2135_v20 = vand.u32 4294901760, %v2134_v35  ;;  %v1849_v4 = vand.u32 4294901760, %v1848_v0  ;;  %v1859_v23 = vsub.f32 %v10859_v22, %v10877_v49 }
  0x8a   : > { %18412 = vst [vmem:[#allocation72_spill] sm:$0xff] %v10885_v17  ;;  %v2142_v59 = vand.u32 4294901760, %v2141_v12  ;;  %v10892_v9 = vand.u32 4294901760, %v1449_v51  ;;  %v10895_v27 = vand.u32 4294901760, %v10885_v17  ;;  %v1347_v12 = vld [vmem:[%s10233_s9 + $0xa8] sm:$0xff] }
  0x8b   : > { %18413 = vst [vmem:[#allocation73_spill] sm:$0xff] %v10887_v54  ;;  %v10898_v41 = vsub.f32 %v1446_v2, %v10887_v54  ;;  %v1860_v49 = vand.u32 4294901760, %v1859_v23 }
  0x8c   : > { %7811 = vmatmul.mubr.f32.gmra.mrb[24].mxu0 %v1816_v34  ;;  %v1346_v34 = vld [vmem:[%s10233_s9 + $0xa0] sm:$0xff]  ;;  %18414 = vst [vmem:[#allocation74_spill] sm:$0xff] %v10892_v9  ;;  %18415 = vst [vmem:[#allocation75_spill] sm:$0xff] %v10895_v27  ;;  %v8392_v35 = vpack.c.bf16 %v2142_v59, %v2135_v20  ;;  %v1870_v2 = vsub.f32 %v10885_v17, %v10895_v27  ;;  %v1455_v59 = vsel %vm1390_vm0, %v1347_v12, 0  ;;  %v1348_v20 = vld [vmem:[%s10233_s9 + $0xb0] sm:$0xff] }
  0x8d   : > { %7812 = vmatprep.mubr.f32.mxu0 %v1827_v5  ;;  %8389 = vmatpush3.bf16.xpose.msra.mxu0 %v8388_v26  ;;  %18416 = vst [vmem:[#allocation76_spill] sm:$0xff] %v10898_v41  ;;  %v1452_v26 = vsel %vm1390_vm0, %v1346_v34, 0  ;;  %v10912_v22 = vand.u32 4294901760, %v10898_v41  ;;  %v10924_v27 = vand.u32 4294901760, %v1455_v59  ;;  %v1349_v12 = vld [vmem:[%s10233_s9 + $0xb8] sm:$0xff] }
  0x8e   : > { %8391 = vmatprep.subr.bf16.mxu0 %v8390_v10  ;;  %v10905_v10 = vsub.f32 %v1449_v51, %v10892_v9  ;;  %v10907_v0 = vand.u32 4294901760, %v1452_v26  ;;  %v1871_v34 = vand.u32 4294901760, %v1870_v2 }
  0x8f   : > { %18419 = vst [vmem:[#allocation79_spill] sm:$0xff] %v10912_v22  ;;  %v1881_v23 = vsub.f32 %v10898_v41, %v10912_v22  ;;  %18422 = vst [vmem:[#allocation82_spill] sm:$0xff] %v10924_v27  ;;  %v10934_v2 = vsub.f32 %v1455_v59, %v10924_v27  ;;  %v1461_v22 = vsel %vm1390_vm0, %v1349_v12, 0  ;;  %v1350_v41 = vld [vmem:[%s10233_s9 + $0xc0] sm:$0xff] }
  0x90   : > { %7813 = vmatmul.mubr.f32.gmra.mrb[26].mxu0 %v1827_v5  ;;  %v8394_v5 = vpack.c.bf16 %v10336_v46, %v10331_v57  ;;  %18417 = vst [vmem:[#allocation77_spill] sm:$0xff] %v10905_v10  ;;  %18418 = vst [vmem:[#allocation78_spill] sm:$0xff] %v10907_v0  ;;  %v10920_v51 = vsub.f32 %v1452_v26, %v10907_v0  ;;  %v1352_v46 = vld [vmem:[%s10233_s9 + $0xd0] sm:$0xff]  ;;  %v1353_v57 = vld [vmem:[%s10233_s9 + $0xd8] sm:$0xff] }
  0x91   : > { %7814 = vmatprep.mubr.f32.mxu0 %v1838_v33  ;;  %v1882_v26 = vand.u32 4294901760, %v1881_v23  ;;  %18424 = vst [vmem:[#allocation84_spill] sm:$0xff] %v10934_v2  ;;  %v1464_v23 = vsel %vm1390_vm0, %v1350_v41, 0 }
  0x92   : > { %18421 = vst [vmem:[#allocation81_spill] sm:$0xff] %v10920_v51  ;;  %v10955_v12 = vand.u32 4294901760, %v1464_v23 }
  0x94   : > { %7815 = vmatmul.mubr.f32.gmra.mrb[28].mxu0 %v1838_v33  ;;  %v10917_v33 = vand.u32 4294901760, %v10905_v10  ;;  %18430 = vst [vmem:[#allocation90_spill] sm:$0xff] %v10955_v12 }
  0x95   : > { %7816 = vmatprep.mubr.f32.mxu0 %v1849_v4  ;;  %8393 = vmatpush3.bf16.xpose.msra.mxu0 %v8392_v35  ;;  %v1458_v35 = vsel %vm1390_vm0, %v1348_v20, 0 }
  0x96   : > { %8395 = vmatprep.subr.bf16.mxu0 %v8394_v5  ;;  %18420 = vst [vmem:[#allocation80_spill] sm:$0xff] %v10917_v33  ;;  %v10931_v5 = vand.u32 4294901760, %v10920_v51  ;;  %v10936_v17 = vand.u32 4294901760, %v1458_v35 }
  0x98   : > { %7817 = vmatmul.mubr.f32.gmra.mrb[30].mxu0 %v1849_v4  ;;  %v1892_v4 = vsub.f32 %v10905_v10, %v10917_v33  ;;  %18423 = vst [vmem:[#allocation83_spill] sm:$0xff] %v10931_v5  ;;  %18425 = vst [vmem:[#allocation85_spill] sm:$0xff] %v10936_v17  ;;  %v1903_v33 = vsub.f32 %v10920_v51, %v10931_v5  ;;  %v10945_v10 = vand.u32 4294901760, %v10934_v2 }
  0x99   : > { %7818 = vmatprep.mubr.f32.mxu0 %v1860_v49  ;;  %v10948_v59 = vsub.f32 %v1458_v35, %v10936_v17  ;;  %v1467_v35 = vsel %vm1390_vm0, %v1351_v55, 0 }
  0x9a   : > { %v1893_v20 = vand.u32 4294901760, %v1892_v4  ;;  %18427 = vst [vmem:[#allocation87_spill] sm:$0xff] %v10945_v10  ;;  %v1904_v4 = vand.u32 4294901760, %v1903_v33  ;;  %v1914_v5 = vsub.f32 %v10934_v2, %v10945_v10  ;;  %v10972_v10 = vand.u32 4294901760, %v1467_v35 }
  0x9b   : > { %18428 = vst [vmem:[#allocation88_spill] sm:$0xff] %v10948_v59  ;;  %v10960_v51 = vand.u32 4294901760, %v10948_v59  ;;  %v1470_v2 = vsel %vm1390_vm0, %v1352_v46, 0 }
  0x9c   : > { %7819 = vmatmul.mubr.f32.gmra.mrb[32].mxu0 %v1860_v49  ;;  %v10940_v49 = vand.u32 4294901760, %v1461_v22  ;;  %18434 = vst [vmem:[#allocation94_spill] sm:$0xff] %v10972_v10  ;;  %v10984_v42 = vand.u32 4294901760, %v1470_v2 }
  0x9d   : > { %7820 = vmatprep.mubr.f32.mxu0 %v1871_v34  ;;  %18431 = vst [vmem:[#allocation91_spill] sm:$0xff] %v10960_v51  ;;  %v1925_v33 = vsub.f32 %v10948_v59, %v10960_v51  ;;  %v1473_v51 = vsel %vm1390_vm0, %v1353_v57, 0  ;;  %v1354_v59 = vld [vmem:[%s10233_s9 + $0xe0] sm:$0xff] }
  0x9e   : > { %18426 = vst [vmem:[#allocation86_spill] sm:$0xff] %v10940_v49  ;;  %18437 = vst [vmem:[#allocation97_spill] sm:$0xff] %v10984_v42 }
  0xa0   : > { %7821 = vmatmul.mubr.f32.gmra.mrb[34].mxu0 %v1871_v34  ;;  %v10953_v34 = vsub.f32 %v1461_v22, %v10940_v49  ;;  %v10968_v22 = vsub.f32 %v1464_v23, %v10955_v12  ;;  %v1926_v23 = vand.u32 4294901760, %v1925_v33  ;;  %v10994_v33 = vsub.f32 %v1470_v2, %v10984_v42  ;;  %v1356_v42 = vld [vmem:[%s10233_s9 + $0xf0] sm:$0xff] }
  0xa1   : > { %7822 = vmatprep.mubr.f32.mxu0 %v1882_v26 }
  0xa2   : > { %18429 = vst [vmem:[#allocation89_spill] sm:$0xff] %v10953_v34  ;;  %v10965_v41 = vand.u32 4294901760, %v10953_v34  ;;  %18433 = vst [vmem:[#allocation93_spill] sm:$0xff] %v10968_v22 }
  0xa3   : > { %18439 = vst [vmem:[#allocation99_spill] sm:$0xff] %v10994_v33 }
  0xa4   : > { %7823 = vmatmul.mubr.f32.gmra.mrb[36].mxu0 %v1882_v26  ;;  %18432 = vst [vmem:[#allocation92_spill] sm:$0xff] %v10965_v41  ;;  %v1915_v26 = vand.u32 4294901760, %v1914_v5  ;;  %v1936_v55 = vsub.f32 %v10953_v34, %v10965_v41  ;;  %v10982_v5 = vsub.f32 %v1467_v35, %v10972_v10  ;;  %v10996_v35 = vand.u32 4294901760, %v1473_v51  ;;  %v1355_v10 = vld [vmem:[%s10233_s9 + $0xe8] sm:$0xff] }
  0xa5   : > { %7824 = vmatprep.mubr.f32.mxu0 %v1893_v20  ;;  %v1476_v34 = vsel %vm1390_vm0, %v1354_v59, 0 }
  0xa6   : > { %18436 = vst [vmem:[#allocation96_spill] sm:$0xff] %v10982_v5  ;;  %v1937_v46 = vand.u32 4294901760, %v1936_v55  ;;  %v10991_v41 = vand.u32 4294901760, %v10982_v5  ;;  %18440 = vst [vmem:[#allocation100_spill] sm:$0xff] %v10996_v35  ;;  %v11000_v57 = vand.u32 4294901760, %v1476_v34  ;;  %v11008_v2 = vsub.f32 %v1473_v51, %v10996_v35  ;;  %v1357_v35 = vld [vmem:[%s10233_s9 + $0xf8] sm:$0xff] }
  0xa7   : > { %v1482_v51 = vsel %vm1390_vm0, %v1356_v42, 0 }
  0xa8   : > { %7825 = vmatmul.mubr.f32.gmra.mrb[38].mxu0 %v1893_v20  ;;  %v10979_v20 = vand.u32 4294901760, %v10968_v22  ;;  %18438 = vst [vmem:[#allocation98_spill] sm:$0xff] %v10991_v41  ;;  %18441 = vst [vmem:[#allocation101_spill] sm:$0xff] %v11000_v57  ;;  %v1958_v55 = vsub.f32 %v10982_v5, %v10991_v41  ;;  %v11013_v59 = vsub.f32 %v1476_v34, %v11000_v57  ;;  %v11018_v41 = vand.u32 4294901760, %v11008_v2 }
  0xa9   : > { %7826 = vmatprep.mubr.f32.mxu0 %v1904_v4 }
  0xaa   : > { %18435 = vst [vmem:[#allocation95_spill] sm:$0xff] %v10979_v20  ;;  %18443 = vst [vmem:[#allocation103_spill] sm:$0xff] %v11013_v59 }
  0xab   : > { %18444 = vst [vmem:[#allocation104_spill] sm:$0xff] %v11018_v41 }
  0xac   : > { %7827 = vmatmul.mubr.f32.gmra.mrb[40].mxu0 %v1904_v4  ;;  %v1947_v4 = vsub.f32 %v10968_v22, %v10979_v20  ;;  %v11005_v20 = vand.u32 4294901760, %v10994_v33  ;;  %v1479_v22 = vsel %vm1390_vm0, %v1355_v10, 0  ;;  %v11025_v10 = vand.u32 4294901760, %v11013_v59 }
  0xad   : > { %7828 = vmatprep.mubr.f32.mxu0 %v1915_v26  ;;  %v11020_v5 = vand.u32 4294901760, %v1479_v22 }
  0xae   : > { %18442 = vst [vmem:[#allocation102_spill] sm:$0xff] %v11005_v20  ;;  %18446 = vst [vmem:[#allocation106_spill] sm:$0xff] %v11025_v10  ;;  %v1991_v42 = vsub.f32 %v11013_v59, %v11025_v10 }
  0xaf   : > { %18445 = vst [vmem:[#allocation105_spill] sm:$0xff] %v11020_v5 }
  0xb0   : > { %7829 = vmatmul.mubr.f32.gmra.mrb[42].mxu0 %v1915_v26  ;;  %v1948_v26 = vand.u32 4294901760, %v1947_v4  ;;  %v1969_v4 = vsub.f32 %v10994_v33, %v11005_v20  ;;  %v11032_v20 = vand.u32 4294901760, %v1482_v51  ;;  %v1485_v33 = vsel %vm1390_vm0, %v1357_v35, 0 }
  0xb1   : > { %7830 = vmatprep.mubr.f32.mxu0 %v1926_v23 }
  0xb2   : > { %v1970_v34 = vand.u32 4294901760, %v1969_v4  ;;  %18447 = vst [vmem:[#allocation107_spill] sm:$0xff] %v11032_v20  ;;  %v11041_v4 = vsub.f32 %v1482_v51, %v11032_v20 }
  0xb4   : > { %7831 = vmatmul.mubr.f32.gmra.mrb[44].mxu0 %v1926_v23  ;;  %v1959_v23 = vand.u32 4294901760, %v1958_v55  ;;  %v11030_v55 = vsub.f32 %v1479_v22, %v11020_v5  ;;  %v1992_v22 = vand.u32 4294901760, %v1991_v42 }
  0xb5   : > { %7832 = vmatprep.mubr.f32.mxu0 %v1937_v46 }
  0xb6   : > { %v11038_v57 = vand.u32 4294901760, %v11030_v55 }
  0xb8   : > { %7833 = vmatmul.mubr.f32.gmra.mrb[46].mxu0 %v1937_v46  ;;  %v1980_v46 = vsub.f32 %v11008_v2, %v11018_v41  ;;  %18448 = vst [vmem:[#allocation108_spill] sm:$0xff] %v11038_v57  ;;  %v11043_v41 = vand.u32 4294901760, %v1485_v33  ;;  %v2002_v35 = vsub.f32 %v11030_v55, %v11038_v57 }
  0xb9   : > { %7834 = vmatprep.mubr.f32.mxu0 %v1948_v26 }
  0xba   : > { %18449 = vst [vmem:[#allocation109_spill] sm:$0xff] %v11043_v41  ;;  %v11051_v10 = vsub.f32 %v1485_v33, %v11043_v41  ;;  %v8396_v33 = vpack.c.bf16 %v10383_v29, %v10378_v30 }
  0xbc   : > { %7835 = vmatmul.mubr.f32.gmra.mrb[48].mxu0 %v1948_v26  ;;  %v1981_v26 = vand.u32 4294901760, %v1980_v46  ;;  %v2003_v46 = vand.u32 4294901760, %v2002_v35  ;;  %v11056_v59 = vand.u32 4294901760, %v11051_v10  ;;  %v18451_v35 = vld [vmem:[#allocation31_spill] sm:$0xff] }
  0xbd   : > { %7836 = vmatprep.mubr.f32.mxu0 %v1959_v23 }
  0xbe   : > { %v2024_v42 = vsub.f32 %v11051_v10, %v11056_v59 }
  0xc0   : > { %7837 = vmatmul.mubr.f32.gmra.mrb[50].mxu0 %v1959_v23  ;;  %v11048_v23 = vand.u32 4294901760, %v11041_v4  ;;  %v2025_v57 = vand.u32 4294901760, %v2024_v42 }
  0xc1   : > { %7838 = vmatprep.mubr.f32.mxu0 %v1970_v34 }
  0xc2   : > { %v2013_v51 = vsub.f32 %v11041_v4, %v11048_v23 }
  0xc4   : > { %7839 = vmatmul.mubr.f32.gmra.mrb[52].mxu0 %v1970_v34  ;;  %v2014_v34 = vand.u32 4294901760, %v2013_v51  ;;  %v18453_v51 = vpack.c.bf16 %v10538_v38, %v10522_v63 }
  0xc5   : > { %7840 = vmatprep.mubr.f32.mxu0 %v1981_v26 }
  0xc8   : > { %7841 = vmatmul.mubr.f32.gmra.mrb[54].mxu0 %v1981_v26  ;;  %v8398_v26 = vpack.c.bf16 %v10393_v36, %v10388_v58 }
  0xc9   : > { %7842 = vmatprep.mubr.f32.mxu0 %v1992_v22 }
  0xcc   : > { %7843 = vmatmul.mubr.f32.gmra.mrb[56].mxu0 %v1992_v22  ;;  %v18450_v22 = vpack.c.bf16 %v10477_v7, %v10463_v1 }
  0xcd   : > { %7844 = vmatprep.mubr.f32.mxu0 %v2003_v46 }
  0xd0   : > { %7845 = vmatmul.mubr.f32.gmra.mrb[58].mxu0 %v2003_v46  ;;  %v18452_v46 = vpack.c.bf16 %v10511_v44, %v10506_v28 }
  0xd1   : > { %7846 = vmatprep.mubr.f32.mxu0 %v2014_v34 }
  0xd4   : > { %7847 = vmatmul.mubr.f32.gmra.mrb[60].mxu0 %v2014_v34  ;;  %v18454_v34 = vld [vmem:[#allocation38_spill] sm:$0xff] }
  0xd5   : > { %7848 = vmatprep.mubr.f32.mxu0 %v2025_v57  ;;  %v8410_v42 = vpack.c.bf16 %v18454_v34, %v10591_v32 }
  0xd8   : > { %7849 = vmatmul.mubr.f32.gmra.mrb[62].mxu0 %v2025_v57  ;;  %v8400_v57 = vpack.c.bf16 %v10458_v21, %v10441_v6 }
  0xd9   : > { %7882 = vmatprep.mubr.f32.mxu0 %v10271_v19 }
  0xdc   : > { %7883 = vmatmul.mubr.f32.vlgmr.msra.gmra.mrb[0].mxu0 %v10271_v19 }
  0xdd   : > { %8397 = vmatpush3.bf16.xpose.msra.mxu0 %v8396_v33  ;;  %7884 = vmatprep.mubr.f32.mxu0 %v10404_v11  ;;  %v18455_v33 = vld [vmem:[#allocation37_spill] sm:$0xff] }
  0xde   : > { %8399 = vmatprep.subr.bf16.mxu0 %v8398_v26  ;;  %v18456_v26 = vpack.c.bf16 %v10572_v14, %v10567_v16 }
  0xe0   : > { %7885 = vmatmul.mubr.f32.gmra.mrb[2].mxu0 %v10404_v11 }
  0xe1   : > { %7886 = vmatprep.mubr.f32.mxu0 %v10425_v50 }
  0xe4   : > { %7887 = vmatmul.mubr.f32.gmra.mrb[4].mxu0 %v10425_v50 }
  0xe5   : > { %7888 = vmatprep.mubr.f32.mxu0 %v10443_v31  ;;  %8401 = vmatpush3.bf16.xpose.msra.mxu0 %v8400_v57  ;;  %v18457_v57 = vld [vmem:[#allocation39_spill] sm:$0xff] }
  0xe6   : > { %8403 = vmatprep.subr.bf16.mxu0 %v18450_v22  ;;  %v8412_v22 = vpack.c.bf16 %v10632_v48, %v10627_v40 }
  0xe8   : > { %7889 = vmatmul.mubr.f32.gmra.mrb[6].mxu0 %v10443_v31 }
  0xe9   : > { %7890 = vmatprep.mubr.f32.mxu0 %v10489_v52 }
  0xec   : > { %7891 = vmatmul.mubr.f32.gmra.mrb[8].mxu0 %v10489_v52  ;;  %v18522_v52 = vand.u32 4294901760, %v10393_v36  ;;  %v18527_v36 = vand.u32 4294901760, %v10463_v1  ;;  %v18531_v1 = vand.u32 4294901760, %v10506_v28  ;;  %v11375_v28 = vld [vmem:[%s11171_s12 + $0x80] sm:$0xff] }
  0xed   : > { %7892 = vmatprep.mubr.f32.mxu0 %v18451_v35  ;;  %8405 = vmatpush3.bf16.xpose.msra.mxu0 %v18452_v46  ;;  %v8414_v46 = vpack.c.bf16 %v10660_v56, %v10637_v39 }
  0xee   : > { %8407 = vmatprep.subr.bf16.mxu0 %v18453_v51  ;;  %v18458_v51 = vld [vmem:[#allocation46_spill] sm:$0xff] }
  0xf0   : > { %7893 = vmatmul.mubr.f32.gmra.mrb[10].mxu0 %v18451_v35  ;;  %v18461_v35 = vld [vmem:[#allocation49_spill] sm:$0xff] }
  0xf1   : > { %7894 = vmatprep.mubr.f32.mxu0 %v10556_v15 }
  0xf4   : > { %7895 = vmatmul.mubr.f32.gmra.mrb[12].mxu0 %v10556_v15 }
  0xf5   : > { %7896 = vmatprep.mubr.f32.mxu0 %v18455_v33  ;;  %8409 = vmatpush3.bf16.xpose.msra.mxu0 %v18456_v26  ;;  %v18459_v26 = vld [vmem:[#allocation50_spill] sm:$0xff] }
  0xf6   : > { %8411 = vmatprep.subr.bf16.mxu0 %v8410_v42  ;;  %v8416_v42 = vpack.c.bf16 %v10692_v62, %v10671_v47 }
  0xf8   : > { %7897 = vmatmul.mubr.f32.gmra.mrb[14].mxu0 %v18455_v33  ;;  %v18460_v33 = vld [vmem:[#allocation51_spill] sm:$0xff] }
  0xf9   : > { %7898 = vmatprep.mubr.f32.mxu0 %v18457_v57  ;;  %v8418_v15 = vpack.c.bf16 %v18460_v33, %v18459_v26 }
  0xfc   : > { %7899 = vmatmul.mubr.f32.gmra.mrb[16].mxu0 %v18457_v57 }
  0xfd   : > { %7900 = vmatprep.mubr.f32.mxu0 %v10647_v53  ;;  %8413 = vmatpush3.bf16.xpose.msra.mxu0 %v8412_v22  ;;  %v18462_v22 = vld [vmem:[#allocation55_spill] sm:$0xff] }
  0xfe   : > { %8415 = vmatprep.subr.bf16.mxu0 %v8414_v46  ;;  %v8420_v46 = vpack.c.bf16 %v10752_v8, %v10747_v60 }
 0x100   : > { %7901 = vmatmul.mubr.f32.gmra.mrb[18].mxu0 %v10647_v53  ;;  %v8422_v53 = vpack.c.bf16 %v10786_v45, %v10781_v37 }
 0x101   : > { %7902 = vmatprep.mubr.f32.mxu0 %v18458_v51 }
 0x104   : > { %7903 = vmatmul.mubr.f32.gmra.mrb[20].mxu0 %v18458_v51  ;;  %v18492_v51 = vld [vmem:[#allocation19_spill] sm:$0xff] }
 0x105   : > { %7904 = vmatprep.mubr.f32.mxu0 %v18461_v35  ;;  %8417 = vmatpush3.bf16.xpose.msra.mxu0 %v8416_v42  ;;  %v18463_v42 = vld [vmem:[#allocation3_spill] sm:$0xff] }
 0x106   : > { %8419 = vmatprep.subr.bf16.mxu0 %v8418_v15  ;;  %v8424_v15 = vpack.c.bf16 %v10816_v13, %v10811_v61 }
 0x108   : > { %7905 = vmatmul.mubr.f32.gmra.mrb[22].mxu0 %v18461_v35  ;;  %v11215_v35 = vld [vmem:[%s11171_s12 + $0x28] sm:$0xff] }
 0x109   : > { %7906 = vmatprep.mubr.f32.mxu0 %v18462_v22 }
 0x10c   : > { %7907 = vmatmul.mubr.f32.gmra.mrb[24].mxu0 %v18462_v22  ;;  %v18488_v22 = vld [vmem:[#allocation15_spill] sm:$0xff] }
 0x10d   : > { %7908 = vmatprep.mubr.f32.mxu0 %v10762_v3  ;;  %8421 = vmatpush3.bf16.xpose.msra.mxu0 %v8420_v46  ;;  %v18465_v46 = vld [vmem:[#allocation97_spill] sm:$0xff] }
 0x10e   : > { %8423 = vmatprep.subr.bf16.mxu0 %v8422_v53  ;;  %v18464_v53 = vld [vmem:[#allocation94_spill] sm:$0xff] }
 0x110   : > { %7909 = vmatmul.mubr.f32.gmra.mrb[26].mxu0 %v10762_v3  ;;  %v18487_v3 = vld [vmem:[#allocation14_spill] sm:$0xff] }
 0x111   : > { %7910 = vmatprep.mubr.f32.mxu0 %v10793_v43 }
 0x114   : > { %7911 = vmatmul.mubr.f32.gmra.mrb[28].mxu0 %v10793_v43  ;;  %v18484_v43 = vmov 0  }
 0x115   : > { %7912 = vmatprep.mubr.f32.mxu0 %v10818_v25  ;;  %8425 = vmatpush3.bf16.xpose.msra.mxu0 %v8424_v15  ;;  %v18466_v15 = vld [vmem:[#allocation100_spill] sm:$0xff] }
 0x116   : > { %8427 = vmatprep.subr.bf16.mxu0 %v18463_v42 }
 0x118   : > { %7913 = vmatmul.mubr.f32.gmra.mrb[30].mxu0 %v10818_v25  ;;  %v11202_v25 = vld [vmem:[%s11171_s12 + $0x20] sm:$0xff] }
 0x119   : > { %7914 = vmatprep.mubr.f32.mxu0 %v10844_v24 }
 0x11c   : > { %7915 = vmatmul.mubr.f32.gmra.mrb[32].mxu0 %v10844_v24  ;;  %v18483_v24 = vld [vmem:[#allocation11_spill] sm:$0xff] }
 0x11d   : > { %7916 = vmatprep.mubr.f32.mxu0 %v10864_v18 }
 0x120   : > { %7917 = vmatmul.mubr.f32.gmra.mrb[34].mxu0 %v10864_v18  ;;  %v18482_v18 = vld [vmem:[#allocation10_spill] sm:$0xff] }
 0x121   : > { %7918 = vmatprep.mubr.f32.mxu0 %v10887_v54 }
 0x124   : > { %7919 = vmatmul.mubr.f32.gmra.mrb[36].mxu0 %v10887_v54  ;;  %v17543_v54 = vmov 1  }
 0x125   : > { %7920 = vmatprep.mubr.f32.mxu0 %v10892_v9  ;;  %9535 = vset.pattern.permute.xlu0 %v17543_v54 }
 0x128   : > { %7921 = vmatmul.mubr.f32.gmra.mrb[38].mxu0 %v10892_v9  ;;  %v18479_v9 = vld [vmem:[#allocation9_spill] sm:$0xff] }
 0x129   : > { %7922 = vmatprep.mubr.f32.mxu0 %v10907_v0 }
 0x12c   : > { %7923 = vmatmul.mubr.f32.gmra.mrb[40].mxu0 %v10907_v0  ;;  %v11189_v0 = vld [vmem:[%s11171_s12 + $0x8] sm:$0xff] }
 0x12d   : > { %7924 = vmatprep.mubr.f32.mxu0 %v10924_v27 }
 0x130   : > { %7925 = vmatmul.mubr.f32.gmra.mrb[42].mxu0 %v10924_v27  ;;  %v18476_v27 = vld [vmem:[#allocation30_spill] sm:$0xff] }
 0x131   : > { %7926 = vmatprep.mubr.f32.mxu0 %v10936_v17 }
 0x134   : > { %7927 = vmatmul.mubr.f32.gmra.mrb[44].mxu0 %v10936_v17  ;;  %v18467_v17 = vld [vmem:[#allocation101_spill] sm:$0xff] }
 0x135   : > { %7928 = vmatprep.mubr.f32.mxu0 %v10940_v49 }
 0x138   : > { %7929 = vmatmul.mubr.f32.gmra.mrb[46].mxu0 %v10940_v49  ;;  %v11181_v49 = vld [vmem:[%s11171_s12 + $0x18] sm:$0xff] }
 0x139   : > { %7930 = vmatprep.mubr.f32.mxu0 %v10955_v12 }
 0x13c   : > { %7931 = vmatmul.mubr.f32.gmra.mrb[48].mxu0 %v10955_v12  ;;  %v18475_v12 = vld [vmem:[#allocation7_spill] sm:$0xff] }
 0x13d   : > { %7932 = vmatprep.mubr.f32.mxu0 %v18464_v53 }
 0x140   : > { %7933 = vmatmul.mubr.f32.gmra.mrb[50].mxu0 %v18464_v53  ;;  %v18470_v53 = vld [vmem:[#allocation22_spill] sm:$0xff] }
 0x141   : > { %7934 = vmatprep.mubr.f32.mxu0 %v18465_v46 }
 0x144   : > { %7935 = vmatmul.mubr.f32.gmra.mrb[52].mxu0 %v18465_v46  ;;  %v18468_v46 = vld [vmem:[#allocation12_spill] sm:$0xff] }
 0x145   : > { %7936 = vmatprep.mubr.f32.mxu0 %v18466_v15 }
 0x148   : > { %7937 = vmatmul.mubr.f32.gmra.mrb[54].mxu0 %v18466_v15  ;;  %v18469_v15 = vld [vmem:[#allocation4_spill] sm:$0xff] }
 0x149   : > { %7938 = vmatprep.mubr.f32.mxu0 %v18467_v17 }
 0x14c   : > { %7939 = vmatmul.mubr.f32.gmra.mrb[56].mxu0 %v18467_v17  ;;  %v18471_v17 = vld [vmem:[#allocation5_spill] sm:$0xff] }
 0x14d   : > { %7940 = vmatprep.mubr.f32.mxu0 %v11020_v5 }
 0x150   : > { %7941 = vmatmul.mubr.f32.gmra.mrb[58].mxu0 %v11020_v5  ;;  %v18472_v5 = vld [vmem:[#allocation23_spill] sm:$0xff] }
 0x151   : > { %7942 = vmatprep.mubr.f32.mxu0 %v11032_v20 }
 0x154   : > { %7943 = vmatmul.mubr.f32.gmra.mrb[60].mxu0 %v11032_v20  ;;  %v18473_v20 = vld [vmem:[#allocation26_spill] sm:$0xff] }
 0x155   : > { %7944 = vmatprep.mubr.f32.mxu0 %v11043_v41 }
 0x158   : > { %7945 = vmatmul.mubr.f32.gmra.mrb[62].mxu0 %v11043_v41  ;;  %v330_v41 = vld [vmem:[%s11171_s12 + $0x10] sm:$0xff] }
 0x159   : > { %7978 = vmatprep.mubr.f32.mxu0 %v18468_v46 }
 0x15c   : > { %7979 = vmatmul.mubr.f32.vlgmr.msra.gmra.mrb[0].mxu0 %v18468_v46  ;;  %v17523_v46 = vmov 0  }
 0x15d   : > { %8429 = vmatpush3.bf16.xpose.msra.mxu0 %v18469_v15  ;;  %7980 = vmatprep.mubr.f32.mxu0 %v18470_v53 }
 0x15e   : > { %8431 = vmatprep.subr.bf16.mxu0 %v18471_v17  ;;  %9534 = vset.pattern.permute.xlu1 %v17523_v46  ;;  %v18478_v46 = vld [vmem:[#allocation8_spill] sm:$0xff] }
 0x15f   : > { %373 = vperm.xlu1 %9534, %v330_v41  }
 0x160   : > { %7981 = vmatmul.mubr.f32.gmra.mrb[2].mxu0 %v18470_v53  ;;  %v18474_v53 = vld [vmem:[#allocation6_spill] sm:$0xff] }
 0x161   : > { %7982 = vmatprep.mubr.f32.mxu0 %v18472_v5 }
 0x163   : > { %378 = vperm.xlu1 %9534, %v11181_v49  }
 0x164   : > { %7983 = vmatmul.mubr.f32.gmra.mrb[4].mxu0 %v18472_v5  ;;  %v18477_v5 = vld [vmem:[#allocation33_spill] sm:$0xff] }
 0x165   : > { %7984 = vmatprep.mubr.f32.mxu0 %v18473_v20  ;;  %8433 = vmatpush3.bf16.xpose.msra.mxu0 %v18474_v53  ;;  %v11337_v53 = vld [vmem:[%s11171_s12 + $0x70] sm:$0xff] }
 0x166   : > { %8435 = vmatprep.subr.bf16.mxu0 %v18475_v12 }
 0x167   : > { %9536 = vset.pattern.permute.xlu1 %v17543_v54 }
 0x168   : > { %7985 = vmatmul.mubr.f32.gmra.mrb[6].mxu0 %v18473_v20  ;;  %667 = vperm.xlu1 %9536, %v11189_v0   ;;  %v18480_v20 = vld [vmem:[#allocation36_spill] sm:$0xff] }
 0x169   : > { %7986 = vmatprep.mubr.f32.mxu0 %v18476_v27 }
 0x16c   : > { %7987 = vmatmul.mubr.f32.gmra.mrb[8].mxu0 %v18476_v27  ;;  %671 = vperm.xlu1 %9536, %v330_v41   ;;  %v18481_v27 = vld [vmem:[#allocation41_spill] sm:$0xff] }
 0x16d   : > { %7988 = vmatprep.mubr.f32.mxu0 %v18477_v5  ;;  %8437 = vmatpush3.bf16.xpose.msra.mxu0 %v18478_v46 }
 0x16e   : > { %8439 = vmatprep.subr.bf16.mxu0 %v18479_v9  ;;  %v18516_v9 = vld [vmem:[#allocation99_spill] sm:$0xff] }
 0x170   : > { %7989 = vmatmul.mubr.f32.gmra.mrb[10].mxu0 %v18477_v5  ;;  %9538 = vset.pattern.permute.xlu1 %v18484_v43  ;;  %v18485_v5 = vld [vmem:[#allocation42_spill] sm:$0xff] }
 0x171   : > { %7990 = vmatprep.mubr.f32.mxu0 %v18480_v20  ;;  %383 = vperm.xlu1 %9538, %v11202_v25  }
 0x174   : > { %7991 = vmatmul.mubr.f32.gmra.mrb[12].mxu0 %v18480_v20  ;;  %v18486_v20 = vld [vmem:[#allocation47_spill] sm:$0xff] }
 0x175   : > { %7992 = vmatprep.mubr.f32.mxu0 %v18481_v27  ;;  %8441 = vmatpush3.bf16.xpose.msra.mxu0 %v18482_v18  ;;  %v18503_v18 = vld [vmem:[#allocation65_spill] sm:$0xff] }
 0x176   : > { %8443 = vmatprep.subr.bf16.mxu0 %v18483_v24  ;;  %9539 = vset.pattern.permute.xlu1 %v17543_v54  ;;  %v18491_v54 = vld [vmem:[#allocation18_spill] sm:$0xff] }
 0x177   : > { %679 = vperm.xlu1 %9539, %v11202_v25  }
 0x178   : > { %7993 = vmatmul.mubr.f32.gmra.mrb[14].mxu0 %v18481_v27  ;;  %v18489_v27 = vld [vmem:[#allocation48_spill] sm:$0xff] }
 0x179   : > { %7994 = vmatprep.mubr.f32.mxu0 %v18485_v5 }
 0x17b   : > { %683 = vperm.xlu1 %9539, %v11215_v35  }
 0x17c   : > { %7995 = vmatmul.mubr.f32.gmra.mrb[16].mxu0 %v18485_v5  ;;  %v18490_v5 = vld [vmem:[#allocation54_spill] sm:$0xff] }
 0x17d   : > { %7996 = vmatprep.mubr.f32.mxu0 %v18486_v20  ;;  %8445 = vmatpush3.bf16.xpose.msra.mxu0 %v18487_v3  ;;  %v18494_v3 = vld [vmem:[#allocation61_spill] sm:$0xff] }
 0x17e   : > { %8447 = vmatprep.subr.bf16.mxu0 %v18488_v22  ;;  %v17546_v22 = vmov 2  }
 0x17f   : > { %9540 = vset.pattern.permute.xlu1 %v17546_v22 }
 0x180   : > { %7997 = vmatmul.mubr.f32.gmra.mrb[18].mxu0 %v18486_v20  ;;  %1000 = vperm.xlu1 %9540, %v11189_v0   ;;  %v18493_v20 = vld [vmem:[#allocation57_spill] sm:$0xff] }
 0x181   : > { %7998 = vmatprep.mubr.f32.mxu0 %v18489_v27 }
 0x184   : > { %7999 = vmatmul.mubr.f32.gmra.mrb[20].mxu0 %v18489_v27  ;;  %1004 = vperm.xlu1 %9540, %v330_v41   ;;  %v18495_v27 = vld [vmem:[#allocation20_spill] sm:$0xff] }
 0x185   : > { %8000 = vmatprep.mubr.f32.mxu0 %v18490_v5  ;;  %8449 = vmatpush3.bf16.xpose.msra.mxu0 %v18491_v54  ;;  %v11232_v54 = vld [vmem:[%s11171_s12 + $0x30] sm:$0xff]  ;;  %v18498_v41 = vld [vmem:[#allocation16_spill] sm:$0xff] }
 0x186   : > { %8451 = vmatprep.subr.bf16.mxu0 %v18492_v51  ;;  %v18496_v51 = vld [vmem:[#allocation21_spill] sm:$0xff]  ;;  %v18499_v22 = vand.u32 4294901760, %v18498_v41 }
 0x187   : > { %v18505_v41 = vld [vmem:[#allocation69_spill] sm:$0xff] }
 0x188   : > { %8001 = vmatmul.mubr.f32.gmra.mrb[22].mxu0 %v18490_v5  ;;  %9541 = vset.pattern.permute.xlu1 %v18484_v43  ;;  %v18497_v5 = vld [vmem:[#allocation64_spill] sm:$0xff] }
 0x189   : > { %8002 = vmatprep.mubr.f32.mxu0 %v18493_v20  ;;  %393 = vperm.xlu1 %9541, %v11232_v54  }
 0x18c   : > { %8003 = vmatmul.mubr.f32.gmra.mrb[24].mxu0 %v18493_v20  ;;  %v18500_v20 = vld [vmem:[#allocation17_spill] sm:$0xff] }
 0x18d   : > { %8004 = vmatprep.mubr.f32.mxu0 %v18494_v3  ;;  %8453 = vmatpush3.bf16.xpose.msra.mxu0 %v18495_v27  ;;  %v18501_v57 = vand.u32 4294901760, %v18500_v20  ;;  %v18502_v27 = vmov 1   ;;  %v18510_v20 = vld [vmem:[#allocation81_spill] sm:$0xff] }
 0x18e   : > { %8455 = vmatprep.subr.bf16.mxu0 %v18496_v51  ;;  %9542 = vset.pattern.permute.xlu1 %v18502_v27  ;;  %v18504_v51 = vld [vmem:[#allocation24_spill] sm:$0xff] }
 0x18f   : > { %v8458_v24 = vpack.c.bf16 %v18501_v57, %v18499_v22  ;;  %687 = vperm.xlu1 %9542, %v11232_v54   ;;  %v18506_v57 = vld [vmem:[#allocation72_spill] sm:$0xff]  ;;  %v18507_v22 = vmov 2  }
 0x190   : > { %8005 = vmatmul.mubr.f32.gmra.mrb[26].mxu0 %v18494_v3  ;;  %v11249_v3 = vld [vmem:[%s11171_s12 + $0x38] sm:$0xff] }
 0x191   : > { %8006 = vmatprep.mubr.f32.mxu0 %v18497_v5 }
 0x193   : > { %691 = vperm.xlu1 %9542, %v11249_v3  }
 0x194   : > { %8007 = vmatmul.mubr.f32.gmra.mrb[28].mxu0 %v18497_v5  ;;  %v11261_v5 = vld [vmem:[%s11171_s12 + $0x40] sm:$0xff] }
 0x195   : > { %8008 = vmatprep.mubr.f32.mxu0 %v18503_v18  ;;  %8457 = vmatpush3.bf16.xpose.msra.mxu0 %v18504_v51  ;;  %v18513_v51 = vld [vmem:[#allocation89_spill] sm:$0xff] }
 0x196   : > { %8459 = vmatprep.subr.bf16.mxu0 %v8458_v24  ;;  %v18508_v24 = vld [vmem:[#allocation76_spill] sm:$0xff] }
 0x197   : > { %9543 = vset.pattern.permute.xlu1 %v18507_v22 }
 0x198   : > { %8009 = vmatmul.mubr.f32.gmra.mrb[30].mxu0 %v18503_v18  ;;  %1016 = vperm.xlu1 %9543, %v11215_v35   ;;  %v18509_v18 = vld [vmem:[#allocation77_spill] sm:$0xff] }
 0x199   : > { %8010 = vmatprep.mubr.f32.mxu0 %v18505_v41 }
 0x19c   : > { %8011 = vmatmul.mubr.f32.gmra.mrb[32].mxu0 %v18505_v41  ;;  %9544 = vset.pattern.permute.xlu1 %v18484_v43  ;;  %v11272_v41 = vld [vmem:[%s11171_s12 + $0x48] sm:$0xff] }
 0x19d   : > { %8012 = vmatprep.mubr.f32.mxu0 %v18506_v57  ;;  %403 = vperm.xlu1 %9544, %v11261_v5  }
 0x1a0   : > { %8013 = vmatmul.mubr.f32.gmra.mrb[34].mxu0 %v18506_v57  ;;  %v18511_v57 = vld [vmem:[#allocation84_spill] sm:$0xff] }
 0x1a1   : > { %8014 = vmatprep.mubr.f32.mxu0 %v18508_v24  ;;  %9545 = vset.pattern.permute.xlu1 %v18502_v27 }
 0x1a2   : > { %695 = vperm.xlu1 %9545, %v11261_v5  }
 0x1a4   : > { %8015 = vmatmul.mubr.f32.gmra.mrb[36].mxu0 %v18508_v24  ;;  %v18512_v24 = vld [vmem:[#allocation88_spill] sm:$0xff] }
 0x1a5   : > { %8016 = vmatprep.mubr.f32.mxu0 %v18509_v18 }
 0x1a6   : > { %699 = vperm.xlu1 %9545, %v11272_v41  }
 0x1a8   : > { %8017 = vmatmul.mubr.f32.gmra.mrb[38].mxu0 %v18509_v18  ;;  %v11283_v18 = vld [vmem:[%s11171_s12 + $0x50] sm:$0xff] }
 0x1a9   : > { %8018 = vmatprep.mubr.f32.mxu0 %v18510_v20 }
 0x1aa   : > { %9546 = vset.pattern.permute.xlu1 %v18507_v22 }
 0x1ab   : > { %1024 = vperm.xlu1 %9546, %v11249_v3  }
 0x1ac   : > { %8019 = vmatmul.mubr.f32.gmra.mrb[40].mxu0 %v18510_v20  ;;  %v18514_v20 = vld [vmem:[#allocation93_spill] sm:$0xff] }
 0x1ad   : > { %8020 = vmatprep.mubr.f32.mxu0 %v18511_v57 }
 0x1af   : > { %9547 = vset.pattern.permute.xlu1 %v18484_v43 }
 0x1b0   : > { %8021 = vmatmul.mubr.f32.gmra.mrb[42].mxu0 %v18511_v57  ;;  %413 = vperm.xlu1 %9547, %v11283_v18   ;;  %v18515_v57 = vld [vmem:[#allocation96_spill] sm:$0xff] }
 0x1b1   : > { %8022 = vmatprep.mubr.f32.mxu0 %v18512_v24 }
 0x1b4   : > { %8023 = vmatmul.mubr.f32.gmra.mrb[44].mxu0 %v18512_v24  ;;  %9548 = vset.pattern.permute.xlu1 %v18502_v27  ;;  %v339_v24 = vld [vmem:[%s11171_s12 + $0x58] sm:$0xff] }
 0x1b5   : > { %8024 = vmatprep.mubr.f32.mxu0 %v18513_v51  ;;  %703 = vperm.xlu1 %9548, %v11283_v18  }
 0x1b8   : > { %8025 = vmatmul.mubr.f32.gmra.mrb[46].mxu0 %v18513_v51  ;;  %v11302_v51 = vld [vmem:[%s11171_s12 + $0x60] sm:$0xff] }
 0x1b9   : > { %8026 = vmatprep.mubr.f32.mxu0 %v18514_v20  ;;  %707 = vperm.xlu1 %9548, %v339_v24  }
 0x1bc   : > { %8027 = vmatmul.mubr.f32.gmra.mrb[48].mxu0 %v18514_v20  ;;  %v18517_v20 = vld [vmem:[#allocation103_spill] sm:$0xff] }
 0x1bd   : > { %8028 = vmatprep.mubr.f32.mxu0 %v18515_v57  ;;  %9549 = vset.pattern.permute.xlu1 %v18507_v22 }
 0x1be   : > { %1032 = vperm.xlu1 %9549, %v11272_v41  }
 0x1c0   : > { %8029 = vmatmul.mubr.f32.gmra.mrb[50].mxu0 %v18515_v57  ;;  %v18519_v57 = vand.u32 4294901760, %v10378_v30  ;;  %v18525_v30 = vand.u32 4294901760, %v10441_v6  ;;  %v18532_v6 = vand.u32 4294901760, %v10511_v44  ;;  %v18536_v44 = vld [vmem:[#allocation40_spill] sm:$0xff] }
 0x1c1   : > { %8030 = vmatprep.mubr.f32.mxu0 %v18516_v9 }
 0x1c2   : > { %9550 = vset.pattern.permute.xlu1 %v18484_v43 }
 0x1c3   : > { %423 = vperm.xlu1 %9550, %v11302_v51  }
 0x1c4   : > { %8031 = vmatmul.mubr.f32.gmra.mrb[52].mxu0 %v18516_v9  ;;  %v11311_v9 = vld [vmem:[%s11171_s12] sm:$0xff] }
 0x1c5   : > { %8032 = vmatprep.mubr.f32.mxu0 %v11008_v2  ;;  %663 = vperm.xlu0 %9535, %v11311_v9  }
 0x1c7   : > { %9551 = vset.pattern.permute.xlu1 %v18502_v27 }
 0x1c8   : > { %8033 = vmatmul.mubr.f32.gmra.mrb[54].mxu0 %v11008_v2  ;;  %711 = vperm.xlu1 %9551, %v11302_v51   ;;  %v341_v2 = vld [vmem:[%s11171_s12 + $0x68] sm:$0xff] }
 0x1c9   : > { %8034 = vmatprep.mubr.f32.mxu0 %v18517_v20  ;;  %675 = vperm.xlu0 %9535, %v11181_v49  }
 0x1cc   : > { %8035 = vmatmul.mubr.f32.gmra.mrb[56].mxu0 %v18517_v20  ;;  %715 = vperm.xlu1 %9551, %v341_v2   ;;  %v18520_v20 = vand.u32 4294901760, %v10383_v29  ;;  %v18524_v29 = vld [vmem:[#allocation28_spill] sm:$0xff] }
 0x1cd   : > { %8036 = vmatprep.mubr.f32.mxu0 %v11030_v55  ;;  %9537 = vset.pattern.permute.xlu0 %v18484_v43 }
 0x1ce   : > { %363 = vperm.xlu0 %9537, %v11311_v9   ;;  %v8460_v46 = vpack.c.bf16 %v18520_v20, %v18519_v57  ;;  %v18539_v20 = vand.u32 4294901760, %v10591_v32  ;;  %v18544_v32 = vand.u32 4294901760, %v10632_v48  ;;  %v18549_v48 = vand.u32 4294901760, %v10671_v47  ;;  %v18553_v47 = vld [vmem:[#allocation56_spill] sm:$0xff] }
 0x1d0   : > { %8037 = vmatmul.mubr.f32.gmra.mrb[58].mxu0 %v11030_v55  ;;  %9552 = vset.pattern.permute.xlu1 %v18507_v22  ;;  %v18518_v55 = vld [vmem:[#allocation13_spill] sm:$0xff] }
 0x1d1   : > { %8038 = vmatprep.mubr.f32.mxu0 %v11041_v4  ;;  %1040 = vperm.xlu1 %9552, %v339_v24  }
 0x1d2   : > { %368 = vperm.xlu0 %9537, %v11189_v0   ;;  %v18528_v0 = vand.u32 4294901760, %v10477_v7  ;;  %v18530_v7 = vld [vmem:[#allocation32_spill] sm:$0xff] }
 0x1d4   : > { %8039 = vmatmul.mubr.f32.gmra.mrb[60].mxu0 %v11041_v4  ;;  %v18521_v4 = vand.u32 4294901760, %v10388_v58 }
 0x1d5   : > { %8040 = vmatprep.mubr.f32.mxu0 %v11051_v10  ;;  %9553 = vset.pattern.permute.xlu1 %v18484_v43 }
 0x1d6   : > { %v8462_v12 = vpack.c.bf16 %v18522_v52, %v18521_v4  ;;  %433 = vperm.xlu1 %9553, %v11337_v53   ;;  %388 = vperm.xlu0 %9537, %v11215_v35   ;;  %v18526_v52 = vand.u32 4294901760, %v10458_v21  ;;  %v18529_v35 = vld [vmem:[#allocation29_spill] sm:$0xff]  ;;  %v8468_v21 = vpack.c.bf16 %v18532_v6, %v18531_v1  ;;  %v18540_v4 = vand.u32 4294901760, %v18454_v34  ;;  %v11426_v6 = vld [vmem:[%s11171_s12 + $0xb8] sm:$0xff] }
 0x1d8   : > { %8041 = vmatmul.mubr.f32.gmra.mrb[62].mxu0 %v11051_v10  ;;  %v18523_v10 = vld [vmem:[#allocation25_spill] sm:$0xff]  ;;  %v8464_v58 = vpack.c.bf16 %v18526_v52, %v18525_v30  ;;  %v18545_v30 = vand.u32 4294901760, %v10637_v39  ;;  %v18546_v52 = vand.u32 4294901760, %v10660_v56  ;;  %v18550_v39 = vand.u32 4294901760, %v10692_v62  ;;  %v11436_v62 = vld [vmem:[%s11171_s12 + $0xc8] sm:$0xff] }
 0x1d9   : > { %8074 = vmatprep.mubr.f32.mxu0 %v18518_v55  ;;  %v18548_v56 = vld [vmem:[#allocation53_spill] sm:$0xff] }
 0x1da   : > { %9554 = vset.pattern.permute.xlu1 %v18502_v27  ;;  %398 = vperm.xlu0 %9537, %v11249_v3   ;;  %v18533_v3 = vand.u32 4294901760, %v10522_v63  ;;  %v18537_v63 = vand.u32 4294901760, %v10567_v16  ;;  %v18542_v16 = vld [vmem:[#allocation45_spill] sm:$0xff] }
 0x1db   : > { %719 = vperm.xlu1 %9554, %v11337_v53  }
 0x1dc   : > { %8075 = vmatmul.mubr.f32.vlgmr.msra.gmra.mrb[0].mxu0 %v18518_v55  ;;  %v18534_v55 = vand.u32 4294901760, %v10538_v38  ;;  %v18538_v38 = vand.u32 4294901760, %v10572_v14  ;;  %v18543_v14 = vand.u32 4294901760, %v10627_v40  ;;  %v11411_v40 = vld [vmem:[%s11171_s12 + $0xa8] sm:$0xff] }
 0x1dd   : > { %8461 = vmatpush3.bf16.xpose.msra.mxu0 %v8460_v46  ;;  %8076 = vmatprep.mubr.f32.mxu0 %v18523_v10  ;;  %v8466_v46 = vpack.c.bf16 %v18528_v0, %v18527_v36  ;;  %v11405_v36 = vld [vmem:[%s11171_s12 + $0x98] sm:$0xff] }
 0x1de   : > { %8463 = vmatprep.subr.bf16.mxu0 %v8462_v12  ;;  %v343_v12 = vld [vmem:[%s11171_s12 + $0x78] sm:$0xff]  ;;  %408 = vperm.xlu0 %9537, %v11272_v41   ;;  %v8470_v57 = vpack.c.bf16 %v18534_v55, %v18533_v3  ;;  %v18535_v41 = vld [vmem:[#allocation35_spill] sm:$0xff]  ;;  %v8476_v34 = vpack.c.bf16 %v18544_v32, %v18543_v14  ;;  %v18557_v55 = vand.u32 4294901760, %v10781_v37  ;;  %v11463_v37 = vpop.permute.xlu1 %373 }
 0x1df   : > { %723 = vperm.xlu1 %9554, %v343_v12   ;;  %v18547_v0 = vld [vmem:[#allocation52_spill] sm:$0xff]  ;;  %v350_v14 = vld [vmem:[%s11171_s12 + $0xb0] sm:$0xff] }
 0x1e0   : > { %8077 = vmatmul.mubr.f32.gmra.mrb[2].mxu0 %v18523_v10  ;;  %v8474_v10 = vpack.c.bf16 %v18540_v4, %v18539_v20  ;;  %v11472_v20 = vld [vmem:[%s11171_s12 + $0xf8] sm:$0xff] }
 0x1e1   : > { %8078 = vmatprep.mubr.f32.mxu0 %v18524_v29  ;;  %v18563_v4 = vld [vmem:[#allocation68_spill] sm:$0xff] }
 0x1e2   : > { %418 = vperm.xlu0 %9537, %v339_v24   ;;  %v8472_v24 = vpack.c.bf16 %v18538_v38, %v18537_v63  ;;  %v18561_v63 = vand.u32 4294901760, %v10811_v61  ;;  %v18562_v38 = vand.u32 4294901760, %v10816_v13  ;;  %v348_v61 = vld [vmem:[%s11171_s12 + $0xa0] sm:$0xff]  ;;  %v18564_v13 = vld [vmem:[#allocation71_spill] sm:$0xff] }
 0x1e3   : > { %9555 = vset.pattern.permute.xlu1 %v18507_v22 }
 0x1e4   : > { %8079 = vmatmul.mubr.f32.gmra.mrb[4].mxu0 %v18524_v29  ;;  %1048 = vperm.xlu1 %9555, %v341_v2   ;;  %v345_v29 = vld [vmem:[%s11171_s12 + $0x88] sm:$0xff] }
 0x1e5   : > { %8080 = vmatprep.mubr.f32.mxu0 %v18529_v35  ;;  %8465 = vmatpush3.bf16.xpose.msra.mxu0 %v8464_v58  ;;  %v8478_v58 = vpack.c.bf16 %v18546_v52, %v18545_v30  ;;  %v18573_v52 = vld [vmem:[#allocation98_spill] sm:$0xff] }
 0x1e6   : > { %8467 = vmatprep.subr.bf16.mxu0 %v8466_v46  ;;  %428 = vperm.xlu0 %9537, %v341_v2   ;;  %v18541_v2 = vld [vmem:[#allocation43_spill] sm:$0xff]  ;;  %v8480_v46 = vpack.c.bf16 %v18550_v39, %v18549_v48  ;;  %v18580_v48 = vld [vmem:[#allocation108_spill] sm:$0xff] }
 0x1e7   : > { %v354_v39 = vld [vmem:[%s11171_s12 + $0xd0] sm:$0xff] }
 0x1e8   : > { %8081 = vmatmul.mubr.f32.gmra.mrb[6].mxu0 %v18529_v35  ;;  %9556 = vset.pattern.permute.xlu1 %v18484_v43  ;;  %v18551_v35 = vand.u32 4294901760, %v18459_v26  ;;  %v18555_v26 = vand.u32 4294901760, %v10747_v60  ;;  %v18559_v60 = vld [vmem:[#allocation63_spill] sm:$0xff] }
 0x1e9   : > { %8082 = vmatprep.mubr.f32.mxu0 %v18530_v7  ;;  %443 = vperm.xlu1 %9556, %v11375_v28  }
 0x1ea   : > { %438 = vperm.xlu0 %9537, %v343_v12  }
 0x1ec   : > { %8083 = vmatmul.mubr.f32.gmra.mrb[8].mxu0 %v18530_v7  ;;  %v18552_v7 = vand.u32 4294901760, %v18460_v33  ;;  %v18554_v33 = vld [vmem:[#allocation59_spill] sm:$0xff] }
 0x1ed   : > { %8084 = vmatprep.mubr.f32.mxu0 %v18535_v41  ;;  %8469 = vmatpush3.bf16.xpose.msra.mxu0 %v8468_v21  ;;  %v11430_v21 = vld [vmem:[%s11171_s12 + $0x90] sm:$0xff] }
 0x1ee   : > { %8471 = vmatprep.subr.bf16.mxu0 %v8470_v57  ;;  %9557 = vset.pattern.permute.xlu1 %v18502_v27  ;;  %v8482_v1 = vpack.c.bf16 %v18552_v7, %v18551_v35  ;;  %v18558_v57 = vand.u32 4294901760, %v10786_v45  ;;  %v18560_v45 = vld [vmem:[#allocation67_spill] sm:$0xff]  ;;  %v356_v7 = vld [vmem:[%s11171_s12 + $0xe0] sm:$0xff] }
 0x1ef   : > { %448 = vperm.xlu0 %9537, %v345_v29   ;;  %727 = vperm.xlu1 %9557, %v11375_v28  }
 0x1f0   : > { %8085 = vmatmul.mubr.f32.gmra.mrb[10].mxu0 %v18535_v41  ;;  %v8486_v41 = vpack.c.bf16 %v18558_v57, %v18557_v55  ;;  %v18590_v55 = vld [vmem:[#allocation34_spill] sm:$0xff] }
 0x1f1   : > { %8086 = vmatprep.mubr.f32.mxu0 %v18536_v44 }
 0x1f3   : > { %458 = vperm.xlu0 %9537, %v11405_v36   ;;  %731 = vperm.xlu1 %9557, %v345_v29  }
 0x1f4   : > { %8087 = vmatmul.mubr.f32.gmra.mrb[12].mxu0 %v18536_v44  ;;  %v11451_v44 = vld [vmem:[%s11171_s12 + $0xd8] sm:$0xff] }
 0x1f5   : > { %8088 = vmatprep.mubr.f32.mxu0 %v18541_v2  ;;  %8473 = vmatpush3.bf16.xpose.msra.mxu0 %v8472_v24  ;;  %v8488_v24 = vpack.c.bf16 %v18562_v38, %v18561_v63  ;;  %v18593_v63 = vld [vmem:[#allocation11_spill] sm:$0xff]  ;;  %v17551_v38 = vlaneseq }
 0x1f6   : > { %8475 = vmatprep.subr.bf16.mxu0 %v8474_v10  ;;  %v11478_v10 = vpop.permute.xlu1 %378 }
 0x1f7   : > { %468 = vperm.xlu0 %9537, %v11411_v40   ;;  %9558 = vset.pattern.permute.xlu1 %v18507_v22 }
 0x1f8   : > { %8089 = vmatmul.mubr.f32.gmra.mrb[14].mxu0 %v18541_v2  ;;  %1056 = vperm.xlu1 %9558, %v343_v12   ;;  %v18556_v12 = vand.u32 4294901760, %v10752_v8  ;;  %v11459_v8 = vld [vmem:[%s11171_s12 + $0xe8] sm:$0xff] }
 0x1f9   : > { %8090 = vmatprep.mubr.f32.mxu0 %v18542_v16 }
 0x1fa   : > { %v8484_v3 = vpack.c.bf16 %v18556_v12, %v18555_v26  ;;  %v11487_v2 = vpop.permute.xlu1 %667  ;;  %v18589_v12 = vld [vmem:[#allocation9_spill] sm:$0xff] }
 0x1fb   : > { %478 = vperm.xlu0 %9537, %v11426_v6  }
 0x1fc   : > { %8091 = vmatmul.mubr.f32.gmra.mrb[16].mxu0 %v18542_v16  ;;  %9559 = vset.pattern.permute.xlu1 %v18484_v43 }
 0x1fd   : > { %8092 = vmatprep.mubr.f32.mxu0 %v18547_v0  ;;  %8477 = vmatpush3.bf16.xpose.msra.mxu0 %v8476_v34 }
 0x1fe   : > { %8479 = vmatprep.subr.bf16.mxu0 %v8478_v58  ;;  %453 = vperm.xlu1 %9559, %v11430_v21  }
 0x1ff   : > { %488 = vperm.xlu0 %9537, %v11436_v62  }
 0x200   : > { %8093 = vmatmul.mubr.f32.gmra.mrb[18].mxu0 %v18547_v0 }
 0x201   : > { %8094 = vmatprep.mubr.f32.mxu0 %v18548_v56 }
 0x202   : > { %9560 = vset.pattern.permute.xlu1 %v18502_v27 }
 0x203   : > { %498 = vperm.xlu0 %9537, %v11451_v44   ;;  %735 = vperm.xlu1 %9560, %v11430_v21  }
 0x204   : > { %8095 = vmatmul.mubr.f32.gmra.mrb[20].mxu0 %v18548_v56 }
 0x205   : > { %8096 = vmatprep.mubr.f32.mxu0 %v18553_v47  ;;  %8481 = vmatpush3.bf16.xpose.msra.mxu0 %v8480_v46 }
 0x206   : > { %8483 = vmatprep.subr.bf16.mxu0 %v8482_v1 }
 0x207   : > { %508 = vperm.xlu0 %9537, %v11459_v8   ;;  %739 = vperm.xlu1 %9560, %v11405_v36  }
 0x208   : > { %8097 = vmatmul.mubr.f32.gmra.mrb[22].mxu0 %v18553_v47 }
 0x209   : > { %8098 = vmatprep.mubr.f32.mxu0 %v18554_v33 }
 0x20b   : > { %518 = vperm.xlu0 %9537, %v11472_v20   ;;  %9561 = vset.pattern.permute.xlu1 %v18507_v22 }
 0x20c   : > { %8099 = vmatmul.mubr.f32.gmra.mrb[24].mxu0 %v18554_v33  ;;  %1064 = vperm.xlu1 %9561, %v345_v29   ;;  %v18565_v29 = vld [vmem:[#allocation75_spill] sm:$0xff]  ;;  %v18588_v33 = vld [vmem:[#allocation8_spill] sm:$0xff] }
 0x20d   : > { %8100 = vmatprep.mubr.f32.mxu0 %v18559_v60  ;;  %8485 = vmatpush3.bf16.xpose.msra.mxu0 %v8484_v3 }
 0x20e   : > { %8487 = vmatprep.subr.bf16.mxu0 %v8486_v41  ;;  %v18591_v41 = vld [vmem:[#allocation37_spill] sm:$0xff] }
 0x20f   : > { %9578 = vset.pattern.permute.xlu0 %v18507_v22 }
 0x210   : > { %8101 = vmatmul.mubr.f32.gmra.mrb[26].mxu0 %v18559_v60  ;;  %996 = vperm.xlu0 %9578, %v11311_v9   ;;  %v11496_v9 = vpop.permute.xlu1 %671  ;;  %v18592_v60 = vld [vmem:[#allocation10_spill] sm:$0xff] }
 0x211   : > { %8102 = vmatprep.mubr.f32.mxu0 %v18560_v45  ;;  %9562 = vset.pattern.permute.xlu1 %v18484_v43 }
 0x212   : > { %463 = vperm.xlu1 %9562, %v348_v61  }
 0x214   : > { %8103 = vmatmul.mubr.f32.gmra.mrb[28].mxu0 %v18560_v45  ;;  %1008 = vperm.xlu0 %9578, %v11181_v49   ;;  %v18567_v49 = vld [vmem:[#allocation80_spill] sm:$0xff]  ;;  %v11502_v16 = vpop.permute.xlu1 %383 }
 0x215   : > { %8104 = vmatprep.mubr.f32.mxu0 %v18563_v4  ;;  %8489 = vmatpush3.bf16.xpose.msra.mxu0 %v8488_v24  ;;  %v18594_v24 = vld [vmem:[#allocation39_spill] sm:$0xff] }
 0x216   : > { %8491 = vmatprep.subr.bf16.mxu0 %v18463_v42  ;;  %9563 = vset.pattern.permute.xlu1 %v18502_v27  ;;  %v18566_v42 = vld [vmem:[#allocation79_spill] sm:$0xff] }
 0x217   : > { %743 = vperm.xlu1 %9563, %v348_v61  }
 0x218   : > { %8105 = vmatmul.mubr.f32.gmra.mrb[30].mxu0 %v18563_v4  ;;  %1012 = vperm.xlu0 %9578, %v11202_v25   ;;  %v18568_v25 = vld [vmem:[#allocation83_spill] sm:$0xff]  ;;  %v11513_v32 = vpop.permute.xlu1 %679 }
 0x219   : > { %8106 = vmatprep.mubr.f32.mxu0 %v18564_v13 }
 0x21b   : > { %747 = vperm.xlu1 %9563, %v11411_v40  }
 0x21c   : > { %8107 = vmatmul.mubr.f32.gmra.mrb[32].mxu0 %v18564_v13  ;;  %1020 = vperm.xlu0 %9578, %v11232_v54   ;;  %v18569_v54 = vld [vmem:[#allocation87_spill] sm:$0xff]  ;;  %v11520_v34 = vpop.permute.xlu1 %683 }
 0x21d   : > { %8108 = vmatprep.mubr.f32.mxu0 %v18565_v29 }
 0x21f   : > { %9564 = vset.pattern.permute.xlu1 %v18507_v22 }
 0x220   : > { %8109 = vmatmul.mubr.f32.gmra.mrb[34].mxu0 %v18565_v29  ;;  %1028 = vperm.xlu0 %9578, %v11261_v5   ;;  %v18570_v5 = vld [vmem:[#allocation91_spill] sm:$0xff]  ;;  %v11529_v30 = vpop.permute.xlu1 %1000  ;;  %v18596_v29 = vld [vmem:[#allocation44_spill] sm:$0xff] }
 0x221   : > { %8110 = vmatprep.mubr.f32.mxu0 %v18566_v42  ;;  %1072 = vperm.xlu1 %9564, %v11405_v36   ;;  %v18576_v36 = vld [vmem:[#allocation104_spill] sm:$0xff] }
 0x224   : > { %8111 = vmatmul.mubr.f32.gmra.mrb[36].mxu0 %v18566_v42  ;;  %1036 = vperm.xlu0 %9578, %v11283_v18   ;;  %v18571_v18 = vld [vmem:[#allocation92_spill] sm:$0xff]  ;;  %v11537_v58 = vpop.permute.xlu1 %1004  ;;  %v18597_v42 = vld [vmem:[#allocation14_spill] sm:$0xff] }
 0x225   : > { %8112 = vmatprep.mubr.f32.mxu0 %v18567_v49  ;;  %9565 = vset.pattern.permute.xlu1 %v18484_v43  ;;  %18574 = vst [vmem:[#allocation38_spill] sm:$0xff] %v11537_v58 }
 0x226   : > { %473 = vperm.xlu1 %9565, %v350_v14  }
 0x228   : > { %8113 = vmatmul.mubr.f32.gmra.mrb[38].mxu0 %v18567_v49  ;;  %1044 = vperm.xlu0 %9578, %v11302_v51   ;;  %v18572_v51 = vld [vmem:[#allocation95_spill] sm:$0xff]  ;;  %v11544_v0 = vpop.permute.xlu1 %393 }
 0x229   : > { %8114 = vmatprep.mubr.f32.mxu0 %v18568_v25  ;;  %18577 = vst [vmem:[#allocation50_spill] sm:$0xff] %v11544_v0 }
 0x22a   : > { %9566 = vset.pattern.permute.xlu1 %v18502_v27 }
 0x22b   : > { %751 = vperm.xlu1 %9566, %v350_v14  }
 0x22c   : > { %8115 = vmatmul.mubr.f32.gmra.mrb[40].mxu0 %v18568_v25  ;;  %1052 = vperm.xlu0 %9578, %v11337_v53   ;;  %v352_v53 = vld [vmem:[%s11171_s12 + $0xc0] sm:$0xff]  ;;  %v11550_v56 = vpop.permute.xlu1 %687 }
 0x22d   : > { %8116 = vmatprep.mubr.f32.mxu0 %v18569_v54  ;;  %18579 = vst [vmem:[#allocation51_spill] sm:$0xff] %v11550_v56 }
 0x22f   : > { %755 = vperm.xlu1 %9566, %v11426_v6  }
 0x230   : > { %8117 = vmatmul.mubr.f32.gmra.mrb[42].mxu0 %v18569_v54  ;;  %1060 = vperm.xlu0 %9578, %v11375_v28   ;;  %v18575_v28 = vld [vmem:[#allocation102_spill] sm:$0xff]  ;;  %v11559_v46 = vpop.permute.xlu1 %691  ;;  %v11646_v54 = vld [vmem:[%s11171_s12 + $0xf0] sm:$0xff]  ;;  %s7753_s12 = sshll.u32 %s20258_s19, 4 }
 0x231   : > { %8118 = vmatprep.mubr.f32.mxu0 %v18570_v5  ;;  %s17038_s15 = scalar_lea.vmem %s17288_s4, %s7753_s12 }
 0x233   : > { %9567 = vset.pattern.permute.xlu1 %v18507_v22 }
 0x234   : > { %8119 = vmatmul.mubr.f32.gmra.mrb[44].mxu0 %v18570_v5  ;;  %1080 = vperm.xlu1 %9567, %v11411_v40   ;;  %v18578_v40 = vld [vmem:[#allocation106_spill] sm:$0xff]  ;;  %v11564_v35 = vpop.permute.xlu1 %1016 }
 0x235   : > { %8120 = vmatprep.mubr.f32.mxu0 %v18571_v18  ;;  %1068 = vperm.xlu0 %9578, %v11430_v21   ;;  %18581 = vst [vmem:[#allocation3_spill] sm:$0xff] %v11564_v35  ;;  %v18586_v21 = vld [vmem:[#allocation27_spill] sm:$0xff]  ;;  %v360_v5 = vld [vmem:[%s11635_s17] ss:$8 sm:$0x3] }
 0x238   : > { %8121 = vmatmul.mubr.f32.gmra.mrb[46].mxu0 %v18571_v18  ;;  %9568 = vset.pattern.permute.xlu1 %v18484_v43  ;;  %v7386_v18 = vld [vmem:[%s11635_s17 + $0x1] ss:$8 sm:$0x3] }
 0x239   : > { %8122 = vmatprep.mubr.f32.mxu0 %v18572_v51  ;;  %483 = vperm.xlu1 %9568, %v352_v53  }
 0x23a   : > { %1076 = vperm.xlu0 %9578, %v348_v61   ;;  %v11625_v61 = vshrl.u32 %v17551_v38, 7 }
 0x23c   : > { %8123 = vmatmul.mubr.f32.gmra.mrb[48].mxu0 %v18572_v51  ;;  %18595 = vst [vmem:[#allocation22_spill] sm:$0xff] %v11625_v61  ;;  %v11639_v49 = vsub.s32 0, %v11625_v61  ;;  %v11642_v25 = vsub.s32 1, %v11625_v61  ;;  %v18601_v51 = vld [vmem:[#allocation46_spill] sm:$0xff] }
 0x23d   : > { %8124 = vmatprep.mubr.f32.mxu0 %v18573_v52  ;;  %9569 = vset.pattern.permute.xlu1 %v18502_v27 }
 0x23e   : > { %759 = vperm.xlu1 %9569, %v352_v53   ;;  %1084 = vperm.xlu0 %9578, %v350_v14   ;;  %18599 = vst [vmem:[#allocation5_spill] sm:$0xff] %v11639_v49  ;;  %18600 = vst [vmem:[#allocation23_spill] sm:$0xff] %v11642_v25 }
 0x240   : > { %8125 = vmatmul.mubr.f32.gmra.mrb[50].mxu0 %v18573_v52 }
 0x241   : > { %8126 = vmatprep.mubr.f32.mxu0 %v18575_v28 }
 0x242   : > { %763 = vperm.xlu1 %9569, %v11436_v62   ;;  %1092 = vperm.xlu0 %9578, %v352_v53   ;;  %v11656_v53 = vrot.slane %v360_v5, %v11639_v49 }
 0x244   : > { %8127 = vmatmul.mubr.f32.gmra.mrb[52].mxu0 %v18575_v28  ;;  %v11659_v28 = vrot.slane %v7386_v18, %v11639_v49 }
 0x245   : > { %8128 = vmatprep.mubr.f32.mxu0 %v18576_v36 }
 0x246   : > { %9570 = vset.pattern.permute.xlu1 %v18507_v22  ;;  %1100 = vperm.xlu0 %9578, %v354_v39  }
 0x247   : > { %1088 = vperm.xlu1 %9570, %v11426_v6  }
 0x248   : > { %8129 = vmatmul.mubr.f32.gmra.mrb[54].mxu0 %v18576_v36  ;;  %v18602_v36 = vld [vmem:[#allocation49_spill] sm:$0xff] }
 0x249   : > { %8130 = vmatprep.mubr.f32.mxu0 %v18578_v40 }
 0x24a   : > { %1108 = vperm.xlu0 %9578, %v356_v7  }
 0x24b   : > { %9571 = vset.pattern.permute.xlu1 %v18484_v43 }
 0x24c   : > { %8131 = vmatmul.mubr.f32.gmra.mrb[56].mxu0 %v18578_v40  ;;  %493 = vperm.xlu1 %9571, %v354_v39   ;;  %v18603_v40 = vld [vmem:[#allocation18_spill] sm:$0xff] }
 0x24d   : > { %8132 = vmatprep.mubr.f32.mxu0 %v18580_v48 }
 0x24e   : > { %1120 = vperm.xlu0 %9578, %v11472_v20  }
 0x250   : > { %8133 = vmatmul.mubr.f32.gmra.mrb[58].mxu0 %v18580_v48  ;;  %9572 = vset.pattern.permute.xlu1 %v18502_v27  ;;  %v11668_v48 = vrot.slane %v7386_v18, %v11642_v25 }
 0x251   : > { %8134 = vmatprep.mubr.f32.mxu0 %v11048_v23  ;;  %767 = vperm.xlu1 %9572, %v354_v39  }
 0x254   : > { %8135 = vmatmul.mubr.f32.gmra.mrb[60].mxu0 %v11048_v23  ;;  %v11572_v23 = vpop.permute.xlu1 %403 }
 0x255   : > { %8136 = vmatprep.mubr.f32.mxu0 %v11056_v59  ;;  %18582 = vst [vmem:[#allocation12_spill] sm:$0xff] %v11572_v23  ;;  %771 = vperm.xlu1 %9572, %v11451_v44  }
 0x258   : > { %8137 = vmatmul.mubr.f32.gmra.mrb[62].mxu0 %v11056_v59  ;;  %v11578_v59 = vpop.permute.xlu0 %663  ;;  %v11581_v1 = vpop.permute.xlu1 %695 }
 0x259   : > { %8170 = vmatprep.mubr.f32.mxu0 %v10271_v19  ;;  %18583 = vst [vmem:[#allocation4_spill] sm:$0xff] %v11581_v1  ;;  %9573 = vset.pattern.permute.xlu1 %v18507_v22 }
 0x25a   : > { %1096 = vperm.xlu1 %9573, %v11436_v62   ;;  %v18587_v62 = vld [vmem:[#allocation31_spill] sm:$0xff] }
 0x25c   : > { %8171 = vmatmul.mubr.f32.vlgmr.msra.gmra.mrb[0].mxu0 %v10271_v19  ;;  %v11589_v6 = vpop.permute.xlu0 %675  ;;  %v11595_v47 = vpop.permute.xlu1 %699 }
 0x25d   : > { %8493 = vmatpush3.bf16.xpose.msra.mxu0 %v18469_v15  ;;  %8172 = vmatprep.mubr.f32.mxu0 %v10404_v11  ;;  %v18585_v15 = vld [vmem:[#allocation7_spill] sm:$0xff] }
 0x25e   : > { %8495 = vmatprep.subr.bf16.mxu0 %v18471_v17  ;;  %v18584_v17 = vld [vmem:[#allocation6_spill] sm:$0xff]  ;;  %9574 = vset.pattern.permute.xlu1 %v18484_v43 }
 0x25f   : > { %503 = vperm.xlu1 %9574, %v356_v7  }
 0x260   : > { %8173 = vmatmul.mubr.f32.gmra.mrb[2].mxu0 %v10404_v11  ;;  %v11600_v26 = vpop.permute.xlu0 %363  ;;  %v11605_v3 = vpop.permute.xlu1 %1024 }
 0x261   : > { %8174 = vmatprep.mubr.f32.mxu0 %v10425_v50 }
 0x263   : > { %9575 = vset.pattern.permute.xlu1 %v18502_v27 }
 0x264   : > { %8175 = vmatmul.mubr.f32.gmra.mrb[4].mxu0 %v10425_v50  ;;  %775 = vperm.xlu1 %9575, %v356_v7   ;;  %v11609_v57 = vpop.permute.xlu0 %368  ;;  %v11615_v45 = vpop.permute.xlu1 %413 }
 0x265   : > { %8176 = vmatprep.mubr.f32.mxu0 %v10443_v31  ;;  %8497 = vmatpush3.bf16.xpose.msra.mxu0 %v18584_v17  ;;  %v815_v17 = vsub.f32 %v11559_v46, %v11659_v28 }
 0x266   : > { %8499 = vmatprep.subr.bf16.mxu0 %v18585_v15  ;;  %v18604_v15 = vld [vmem:[#allocation19_spill] sm:$0xff] }
 0x268   : > { %8177 = vmatmul.mubr.f32.gmra.mrb[6].mxu0 %v10443_v31  ;;  %779 = vperm.xlu1 %9575, %v11459_v8   ;;  %v11622_v4 = vpop.permute.xlu0 %388  ;;  %v11627_v13 = vpop.permute.xlu1 %703 }
 0x269   : > { %8178 = vmatprep.mubr.f32.mxu0 %v18586_v21 }
 0x26c   : > { %8179 = vmatmul.mubr.f32.gmra.mrb[8].mxu0 %v18586_v21  ;;  %9576 = vset.pattern.permute.xlu1 %v18507_v22  ;;  %v399_v14 = vpop.permute.xlu0 %398  ;;  %v11652_v52 = vpop.permute.xlu1 %707 }
 0x26d   : > { %8180 = vmatprep.mubr.f32.mxu0 %v18587_v62  ;;  %8501 = vmatpush3.bf16.xpose.msra.mxu0 %v18588_v33  ;;  %v546_v39 = vsub.f32 %v399_v14, %v11656_v53 }
 0x26e   : > { %8503 = vmatprep.subr.bf16.mxu0 %v18589_v12  ;;  %1104 = vperm.xlu1 %9576, %v11451_v44   ;;  %v18598_v44 = vld [vmem:[#allocation15_spill] sm:$0xff] }
 0x26f   : > { %v610_v18 = vmul.f32 %v546_v39, %v546_v39 }
 0x270   : > { %8181 = vmatmul.mubr.f32.gmra.mrb[10].mxu0 %v18587_v62  ;;  %v409_v7 = vpop.permute.xlu0 %408 }
 0x271   : > { %8182 = vmatprep.mubr.f32.mxu0 %v18590_v55  ;;  %v550_v33 = vsub.f32 %v409_v7, %v11656_v53 }
 0x272   : > { %9577 = vset.pattern.permute.xlu1 %v18484_v43  ;;  %v11663_v43 = vrot.slane %v360_v5, %v11642_v25  ;;  %v18605_v5 = vld [vmem:[#allocation55_spill] sm:$0xff] }
 0x273   : > { %513 = vperm.xlu1 %9577, %v11646_v54  }
 0x274   : > { %8183 = vmatmul.mubr.f32.gmra.mrb[12].mxu0 %v18590_v55  ;;  %v551_v12 = vsub.f32 %v409_v7, %v11663_v43 }
 0x275   : > { %8184 = vmatprep.mubr.f32.mxu0 %v18591_v41  ;;  %8505 = vmatpush3.bf16.xpose.msra.mxu0 %v18592_v60  ;;  %v547_v60 = vsub.f32 %v399_v14, %v11663_v43  ;;  %v820_v14 = vsub.f32 %v11595_v47, %v11668_v48 }
 0x276   : > { %8507 = vmatprep.subr.bf16.mxu0 %v18593_v63  ;;  %v816_v63 = vsub.f32 %v11559_v46, %v11668_v48  ;;  %v615_v7 = vmul.f32 %v551_v12, %v551_v12 }
 0x277   : > { %9579 = vset.pattern.permute.xlu1 %v18502_v27  ;;  %v819_v27 = vsub.f32 %v11595_v47, %v11659_v28  ;;  %v611_v46 = vmul.f32 %v547_v60, %v547_v60  ;;  %v884_v39 = vmul.f32 %v820_v14, %v820_v14 }
 0x278   : > { %8185 = vmatmul.mubr.f32.gmra.mrb[14].mxu0 %v18591_v41  ;;  %783 = vperm.xlu1 %9579, %v11646_v54   ;;  %v880_v1 = vmul.f32 %v816_v63, %v816_v63  ;;  %v18609_v63 = vld [vmem:[#allocation21_spill] sm:$0xff] }
 0x279   : > { %8186 = vmatprep.mubr.f32.mxu0 %v18594_v24  ;;  %v883_v23 = vmul.f32 %v819_v27, %v819_v27 }
 0x27a   : > { %v944_v0 = vadd.f32 %v880_v1, %v611_v46  ;;  %v553_v1 = vsub.f32 %v11615_v45, %v11663_v43  ;;  %v821_v46 = vsub.f32 %v11627_v13, %v11659_v28 }
 0x27c   : > { %8187 = vmatmul.mubr.f32.gmra.mrb[16].mxu0 %v18594_v24  ;;  %787 = vperm.xlu1 %9579, %v11472_v20  }
 0x27d   : > { %8188 = vmatprep.mubr.f32.mxu0 %v18596_v29  ;;  %8509 = vmatpush3.bf16.xpose.msra.mxu0 %v18597_v42  ;;  %v11680_v42 = vpop.permute.xlu1 %1032 }
 0x27e   : > { %8511 = vmatprep.subr.bf16.mxu0 %v18598_v44  ;;  %v7387_v44 = vld [vmem:[%s11635_s17 + $0x2] ss:$8 sm:$0x3] }
 0x27f   : > { %v11691_v38 = vrot.slane %v7387_v44, %v11639_v49  ;;  %v11698_v12 = vrot.slane %v7387_v44, %v11642_v25  ;;  %v948_v49 = vadd.f32 %v884_v39, %v615_v7  ;;  %v18610_v44 = vld [vmem:[#allocation60_spill] sm:$0xff]  ;;  %v617_v7 = vmul.f32 %v553_v1, %v553_v1 }
 0x280   : > { %8189 = vmatmul.mubr.f32.gmra.mrb[18].mxu0 %v18596_v29  ;;  %9580 = vset.pattern.permute.xlu1 %v18507_v22 }
 0x281   : > { %8190 = vmatprep.mubr.f32.mxu0 %v18601_v51  ;;  %v1148_v47 = vsub.f32 %v11605_v3, %v11691_v38  ;;  %v11702_v60 = vpop.permute.xlu1 %423  ;;  %v1149_v27 = vsub.f32 %v11605_v3, %v11698_v12  ;;  %1112 = vperm.xlu1 %9580, %v11459_v8  }
 0x282   : > { %18608 = vst [vmem:[#allocation26_spill] sm:$0xff] %v11702_v60 }
 0x283   : > { %v1212_v14 = vmul.f32 %v1148_v47, %v1148_v47 }
 0x284   : > { %8191 = vmatmul.mubr.f32.gmra.mrb[20].mxu0 %v18601_v51 }
 0x285   : > { %8192 = vmatprep.mubr.f32.mxu0 %v18602_v36  ;;  %8513 = vmatpush3.bf16.xpose.msra.mxu0 %v18603_v40  ;;  %v879_v40 = vmul.f32 %v815_v17, %v815_v17  ;;  %v18606_v17 = vld [vmem:[#allocation58_spill] sm:$0xff]  ;;  %v11719_v3 = vpop.permute.xlu1 %711 }
 0x286   : > { %8515 = vmatprep.subr.bf16.mxu0 %v18604_v15  ;;  %v614_v15 = vmul.f32 %v550_v33, %v550_v33  ;;  %v18607_v33 = vld [vmem:[#allocation20_spill] sm:$0xff]  ;;  %18613 = vst [vmem:[#allocation36_spill] sm:$0xff] %v11719_v3  ;;  %1116 = vperm.xlu1 %9580, %v11646_v54   ;;  %v1153_v3 = vsub.f32 %v11680_v42, %v11698_v12 }
 0x287   : > { %v943_v56 = vadd.f32 %v879_v40, %v610_v18  ;;  %v1213_v18 = vmul.f32 %v1149_v27, %v1149_v27  ;;  %v18616_v27 = vld [vmem:[#allocation66_spill] sm:$0xff] }
 0x288   : > { %8193 = vmatmul.mubr.f32.gmra.mrb[22].mxu0 %v18602_v36  ;;  %v947_v20 = vadd.f32 %v883_v23, %v614_v15  ;;  %v552_v23 = vsub.f32 %v11615_v45, %v11656_v53  ;;  %v822_v45 = vsub.f32 %v11627_v13, %v11668_v48 }
 0x289   : > { %8194 = vmatprep.mubr.f32.mxu0 %v18605_v5  ;;  %v11711_v40 = vadd.f32 %v1212_v14, %v943_v56  ;;  %v18614_v56 = vld [vmem:[#allocation62_spill] sm:$0xff]  ;;  %v885_v14 = vmul.f32 %v821_v46, %v821_v46 }
 0x28a   : > { %v616_v15 = vmul.f32 %v552_v23, %v552_v23  ;;  %v886_v54 = vmul.f32 %v822_v45, %v822_v45  ;;  %v716_v23 = vpop.permute.xlu1 %715  ;;  %v1152_v45 = vsub.f32 %v11680_v42, %v11691_v38 }
 0x28b   : > { %18611 = vst [vmem:[#allocation30_spill] sm:$0xff] %v11711_v40  ;;  %v18629_v40 = vld [vmem:[#allocation86_spill] sm:$0xff] }
 0x28c   : > { %8195 = vmatmul.mubr.f32.gmra.mrb[24].mxu0 %v18605_v5  ;;  %v11737_v1 = vadd.f32 %v885_v14, %v616_v15  ;;  %v18620_v15 = vld [vmem:[#allocation73_spill] sm:$0xff] }
 0x28d   : > { %8196 = vmatprep.mubr.f32.mxu0 %v18606_v17  ;;  %8517 = vmatpush3.bf16.xpose.msra.mxu0 %v18607_v33  ;;  %v419_v33 = vpop.permute.xlu0 %418 }
 0x28e   : > { %8519 = vmatprep.subr.bf16.mxu0 %v18609_v63  ;;  %v11713_v63 = vadd.f32 %v1213_v18, %v944_v0  ;;  %v554_v22 = vsub.f32 %v419_v33, %v11656_v53  ;;  %v555_v8 = vsub.f32 %v419_v33, %v11663_v43  ;;  %v18615_v0 = vld [vmem:[#allocation24_spill] sm:$0xff]  ;;  %v823_v18 = vsub.f32 %v11652_v52, %v11659_v28  ;;  %v1041_v60 = vpop.permute.xlu1 %1040 }
 0x28f   : > { %v824_v33 = vsub.f32 %v11652_v52, %v11668_v48  ;;  %18617 = vst [vmem:[#allocation41_spill] sm:$0xff] %v11737_v1  ;;  %v1216_v52 = vmul.f32 %v1152_v45, %v1152_v45 }
 0x290   : > { %8197 = vmatmul.mubr.f32.gmra.mrb[26].mxu0 %v18606_v17  ;;  %18612 = vst [vmem:[#allocation33_spill] sm:$0xff] %v11713_v63  ;;  %v618_v39 = vmul.f32 %v554_v22, %v554_v22  ;;  %v619_v47 = vmul.f32 %v555_v8, %v555_v8  ;;  %v887_v13 = vmul.f32 %v823_v18, %v823_v18  ;;  %v18619_v22 = vld [vmem:[#allocation70_spill] sm:$0xff]  ;;  %v18626_v63 = vld [vmem:[#allocation85_spill] sm:$0xff] }
 0x291   : > { %8198 = vmatprep.mubr.f32.mxu0 %v18610_v44  ;;  %v888_v25 = vmul.f32 %v824_v33, %v824_v33  ;;  %v11749_v14 = vadd.f32 %v1216_v52, %v947_v20  ;;  %v18624_v33 = vld [vmem:[#allocation78_spill] sm:$0xff]  ;;  %v828_v20 = vsub.f32 %v716_v23, %v11668_v48 }
 0x292   : > { %v951_v8 = vadd.f32 %v887_v13, %v618_v39  ;;  %v429_v39 = vpop.permute.xlu0 %428 }
 0x293   : > { %v952_v46 = vadd.f32 %v888_v25, %v619_v47  ;;  %18621 = vst [vmem:[#allocation47_spill] sm:$0xff] %v11749_v14  ;;  %v18623_v25 = vld [vmem:[#allocation74_spill] sm:$0xff]  ;;  %v434_v47 = vpop.permute.xlu1 %433  ;;  %v558_v18 = vsub.f32 %v429_v39, %v11656_v53  ;;  %v559_v42 = vsub.f32 %v429_v39, %v11663_v43  ;;  %v892_v52 = vmul.f32 %v828_v20, %v828_v20 }
 0x294   : > { %8199 = vmatmul.mubr.f32.gmra.mrb[28].mxu0 %v18610_v44  ;;  %v1156_v39 = vsub.f32 %v1041_v60, %v11691_v38  ;;  %v1157_v14 = vsub.f32 %v1041_v60, %v11698_v12 }
 0x295   : > { %8200 = vmatprep.mubr.f32.mxu0 %v18614_v56  ;;  %8521 = vmatpush3.bf16.xpose.msra.mxu0 %v18615_v0  ;;  %v11739_v0 = vadd.f32 %v886_v54, %v617_v7  ;;  %v1217_v7 = vmul.f32 %v1153_v3, %v1153_v3  ;;  %v827_v3 = vsub.f32 %v716_v23, %v11659_v28 }
 0x296   : > { %v622_v13 = vmul.f32 %v558_v18, %v558_v18  ;;  %v623_v45 = vmul.f32 %v559_v42, %v559_v42  ;;  %v1220_v23 = vmul.f32 %v1156_v39, %v1156_v39  ;;  %v1221_v42 = vmul.f32 %v1157_v14, %v1157_v14 }
 0x297   : > { %18618 = vst [vmem:[#allocation42_spill] sm:$0xff] %v11739_v0  ;;  %v11752_v54 = vadd.f32 %v1217_v7, %v948_v49  ;;  %v891_v49 = vmul.f32 %v827_v3, %v827_v3  ;;  %v720_v7 = vpop.permute.xlu1 %719  ;;  %v18625_v0 = vld [vmem:[#allocation82_spill] sm:$0xff] }
 0x298   : > { %8201 = vmatmul.mubr.f32.gmra.mrb[30].mxu0 %v18614_v56  ;;  %v11767_v3 = vadd.f32 %v1220_v23, %v951_v8  ;;  %v11770_v20 = vadd.f32 %v1221_v42, %v952_v46  ;;  %v18630_v8 = vld [vmem:[#allocation90_spill] sm:$0xff]  ;;  %v829_v46 = vsub.f32 %v720_v7, %v11659_v28  ;;  %v830_v42 = vsub.f32 %v720_v7, %v11668_v48 }
 0x299   : > { %8202 = vmatprep.mubr.f32.mxu0 %v18616_v27  ;;  %18622 = vst [vmem:[#allocation48_spill] sm:$0xff] %v11752_v54  ;;  %v955_v1 = vadd.f32 %v891_v49, %v622_v13  ;;  %v956_v54 = vadd.f32 %v892_v52, %v623_v45  ;;  %v439_v13 = vpop.permute.xlu0 %438  ;;  %v560_v45 = vsub.f32 %v434_v47, %v11656_v53 }
 0x29a   : > { %18627 = vst [vmem:[#allocation54_spill] sm:$0xff] %v11767_v3  ;;  %18628 = vst [vmem:[#allocation57_spill] sm:$0xff] %v11770_v20  ;;  %v561_v49 = vsub.f32 %v434_v47, %v11663_v43  ;;  %v562_v60 = vsub.f32 %v439_v13, %v11656_v53  ;;  %v563_v52 = vsub.f32 %v439_v13, %v11663_v43  ;;  %v18631_v13 = vld [vmem:[#allocation94_spill] sm:$0xff] }
 0x29b   : > { %v724_v18 = vpop.permute.xlu1 %723  ;;  %v624_v14 = vmul.f32 %v560_v45, %v560_v45  ;;  %v894_v35 = vmul.f32 %v830_v42, %v830_v42 }
 0x29c   : > { %8203 = vmatmul.mubr.f32.gmra.mrb[32].mxu0 %v18616_v27  ;;  %v625_v23 = vmul.f32 %v561_v49, %v561_v49  ;;  %v626_v20 = vmul.f32 %v562_v60, %v562_v60  ;;  %v627_v3 = vmul.f32 %v563_v52, %v563_v52  ;;  %v831_v47 = vsub.f32 %v724_v18, %v11659_v28 }
 0x29d   : > { %8204 = vmatprep.mubr.f32.mxu0 %v18619_v22 }
 0x29e   : > { %v11787_v45 = vadd.f32 %v894_v35, %v625_v23  ;;  %v895_v49 = vmul.f32 %v831_v47, %v831_v47 }
 0x29f   : > { %v1049_v39 = vpop.permute.xlu1 %1048 }
 0x2a0   : > { %8205 = vmatmul.mubr.f32.gmra.mrb[34].mxu0 %v18619_v22  ;;  %18633 = vst [vmem:[#allocation64_spill] sm:$0xff] %v11787_v45  ;;  %v1160_v7 = vsub.f32 %v1049_v39, %v11691_v38  ;;  %v1161_v60 = vsub.f32 %v1049_v39, %v11698_v12  ;;  %v11791_v52 = vadd.f32 %v895_v49, %v626_v20  ;;  %v18639_v20 = vld [vmem:[#allocation100_spill] sm:$0xff] }
 0x2a1   : > { %8206 = vmatprep.mubr.f32.mxu0 %v18620_v15 }
 0x2a2   : > { %18634 = vst [vmem:[#allocation16_spill] sm:$0xff] %v11791_v52  ;;  %v1225_v42 = vmul.f32 %v1161_v60, %v1161_v60 }
 0x2a3   : > { %v444_v58 = vpop.permute.xlu1 %443 }
 0x2a4   : > { %8207 = vmatmul.mubr.f32.gmra.mrb[36].mxu0 %v18620_v15  ;;  %v564_v35 = vsub.f32 %v444_v58, %v11656_v53 }
 0x2a5   : > { %8208 = vmatprep.mubr.f32.mxu0 %v18623_v25 }
 0x2a7   : > { %v728_v23 = vpop.permute.xlu1 %727 }
 0x2a8   : > { %8209 = vmatmul.mubr.f32.gmra.mrb[38].mxu0 %v18623_v25  ;;  %v833_v47 = vsub.f32 %v728_v23, %v11659_v28  ;;  %v834_v49 = vsub.f32 %v728_v23, %v11668_v48 }
 0x2a9   : > { %8210 = vmatprep.mubr.f32.mxu0 %v18624_v33 }
 0x2aa   : > { %v898_v60 = vmul.f32 %v834_v49, %v834_v49  ;;  %v18643_v49 = vld [vmem:[#allocation105_spill] sm:$0xff] }
 0x2ac   : > { %8211 = vmatmul.mubr.f32.gmra.mrb[40].mxu0 %v18624_v33 }
 0x2ad   : > { %8212 = vmatprep.mubr.f32.mxu0 %v18625_v0 }
 0x2b0   : > { %8213 = vmatmul.mubr.f32.gmra.mrb[42].mxu0 %v18625_v0  ;;  %v832_v0 = vsub.f32 %v724_v18, %v11668_v48  ;;  %v1224_v18 = vmul.f32 %v1160_v7, %v1160_v7 }
 0x2b1   : > { %8214 = vmatprep.mubr.f32.mxu0 %v18626_v63 }
 0x2b2   : > { %v896_v33 = vmul.f32 %v832_v0, %v832_v0  ;;  %v11799_v0 = vadd.f32 %v1224_v18, %v955_v1  ;;  %v897_v1 = vmul.f32 %v833_v47, %v833_v47 }
 0x2b4   : > { %8215 = vmatmul.mubr.f32.gmra.mrb[44].mxu0 %v18626_v63  ;;  %v893_v63 = vmul.f32 %v829_v46, %v829_v46  ;;  %v11793_v46 = vadd.f32 %v896_v33, %v627_v3  ;;  %18637 = vst [vmem:[#allocation65_spill] sm:$0xff] %v11799_v0  ;;  %v449_v33 = vpop.permute.xlu0 %448  ;;  %v628_v3 = vmul.f32 %v564_v35, %v564_v35  ;;  %v732_v35 = vpop.permute.xlu1 %731 }
 0x2b5   : > { %8216 = vmatprep.mubr.f32.mxu0 %v18629_v40  ;;  %v566_v7 = vsub.f32 %v449_v33, %v11656_v53  ;;  %v836_v23 = vsub.f32 %v732_v35, %v11668_v48 }
 0x2b6   : > { %18635 = vst [vmem:[#allocation17_spill] sm:$0xff] %v11793_v46  ;;  %v11811_v18 = vadd.f32 %v897_v1, %v628_v3  ;;  %v18645_v3 = vld [vmem:[#allocation107_spill] sm:$0xff]  ;;  %v535_v1 = vsub.f32 %v11609_v57, %v11663_v43 }
 0x2b7   : > { %v900_v47 = vmul.f32 %v836_v23, %v836_v23 }
 0x2b8   : > { %8217 = vmatmul.mubr.f32.gmra.mrb[46].mxu0 %v18629_v40  ;;  %v11785_v40 = vadd.f32 %v893_v63, %v624_v14  ;;  %v565_v63 = vsub.f32 %v444_v58, %v11663_v43  ;;  %v11801_v14 = vadd.f32 %v1225_v42, %v956_v54  ;;  %v567_v58 = vsub.f32 %v449_v33, %v11663_v43  ;;  %v18640_v54 = vld [vmem:[#allocation101_spill] sm:$0xff] }
 0x2b9   : > { %8218 = vmatprep.mubr.f32.mxu0 %v18630_v8  ;;  %18641 = vst [vmem:[#allocation72_spill] sm:$0xff] %v11811_v18 }
 0x2ba   : > { %18632 = vst [vmem:[#allocation61_spill] sm:$0xff] %v11785_v40  ;;  %18638 = vst [vmem:[#allocation69_spill] sm:$0xff] %v11801_v14  ;;  %v629_v39 = vmul.f32 %v565_v63, %v565_v63  ;;  %v630_v63 = vmul.f32 %v566_v7, %v566_v7  ;;  %v631_v45 = vmul.f32 %v567_v58, %v567_v58 }
 0x2bb   : > { %v835_v40 = vsub.f32 %v732_v35, %v11659_v28  ;;  %v534_v58 = vsub.f32 %v11609_v57, %v11656_v53  ;;  %v11907_v57 = vpop.permute.xlu1 %1056 }
 0x2bc   : > { %8219 = vmatmul.mubr.f32.gmra.mrb[48].mxu0 %v18630_v8  ;;  %v18636_v8 = vld [vmem:[#allocation97_spill] sm:$0xff]  ;;  %v11813_v42 = vadd.f32 %v898_v60, %v629_v39  ;;  %v11821_v52 = vadd.f32 %v900_v47, %v631_v45  ;;  %v18647_v60 = vlaneseq }
 0x2bd   : > { %8220 = vmatprep.mubr.f32.mxu0 %v18631_v13  ;;  %v899_v33 = vmul.f32 %v835_v40, %v835_v40  ;;  %v18646_v39 = vld [vmem:[#allocation109_spill] sm:$0xff] }
 0x2be   : > { %18642 = vst [vmem:[#allocation76_spill] sm:$0xff] %v11813_v42  ;;  %18644 = vst [vmem:[#allocation77_spill] sm:$0xff] %v11821_v52  ;;  %v4698_v35 = vand.u32 127, %v18647_v60  ;;  %v18667_v60 = vmov 0.0   ;;  %v4608_v42 = vadd.s32 72, %v11625_v61 }
 0x2bf   : > { %v11819_v46 = vadd.f32 %v899_v33, %v630_v63 }
 0x2c0   : > { %8221 = vmatmul.mubr.f32.gmra.mrb[50].mxu0 %v18631_v13 }
 0x2c1   : > { %8222 = vmatprep.mubr.f32.mxu0 %v18636_v8 }
 0x2c4   : > { %8223 = vmatmul.mubr.f32.gmra.mrb[52].mxu0 %v18636_v8 }
 0x2c5   : > { %8224 = vmatprep.mubr.f32.mxu0 %v18639_v20 }
 0x2c8   : > { %8225 = vmatmul.mubr.f32.gmra.mrb[54].mxu0 %v18639_v20 }
 0x2c9   : > { %8226 = vmatprep.mubr.f32.mxu0 %v18640_v54 }
 0x2cc   : > { %8227 = vmatmul.mubr.f32.gmra.mrb[56].mxu0 %v18640_v54 }
 0x2cd   : > { %8228 = vmatprep.mubr.f32.mxu0 %v18643_v49 }
 0x2d0   : > { %8229 = vmatmul.mubr.f32.gmra.mrb[58].mxu0 %v18643_v49 }
 0x2d1   : > { %8230 = vmatprep.mubr.f32.mxu0 %v18645_v3 }
 0x2d4   : > { %8231 = vmatmul.mubr.f32.gmra.mrb[60].mxu0 %v18645_v3 }
 0x2d5   : > { %8232 = vmatprep.mubr.f32.mxu0 %v18646_v39 }
 0x2d8   : > { %8233 = vmatmul.mubr.f32.gmra.mrb[62].mxu0 %v18646_v39 }
 0x2d9   : > { %8266 = vmatprep.mubr.f32.mxu0 %v10271_v19 }
 0x2dc   : > { %8267 = vmatmul.mubr.f32.vlgmr.msra.gmra.mrb[0].mxu0 %v10271_v19  ;;  %v11857_v19 = vpop.permute.xlu0 %458 }
 0x2dd   : > { %8268 = vmatprep.mubr.f32.mxu0 %v10404_v11 }
 0x2e0   : > { %8269 = vmatmul.mubr.f32.gmra.mrb[2].mxu0 %v10404_v11  ;;  %v537_v11 = vsub.f32 %v11463_v37, %v11663_v43 }
 0x2e1   : > { %8270 = vmatprep.mubr.f32.mxu0 %v10425_v50 }
 0x2e4   : > { %8271 = vmatmul.mubr.f32.gmra.mrb[4].mxu0 %v10425_v50  ;;  %v536_v50 = vsub.f32 %v11463_v37, %v11656_v53  ;;  %v801_v37 = vsub.f32 %v11578_v59, %v11659_v28 }
 0x2e5   : > { %8272 = vmatprep.mubr.f32.mxu0 %v10443_v31 }
 0x2e8   : > { %8273 = vmatmul.mubr.f32.gmra.mrb[6].mxu0 %v10443_v31  ;;  %v538_v31 = vsub.f32 %v11478_v10, %v11656_v53 }
 0x2e9   : > { %8274 = vmatprep.mubr.f32.mxu0 %v18586_v21 }
 0x2ec   : > { %8275 = vmatmul.mubr.f32.gmra.mrb[8].mxu0 %v18586_v21  ;;  %v807_v21 = vsub.f32 %v11589_v6, %v11659_v28 }
 0x2ed   : > { %8276 = vmatprep.mubr.f32.mxu0 %v18587_v62 }
 0x2f0   : > { %8277 = vmatmul.mubr.f32.gmra.mrb[10].mxu0 %v18587_v62  ;;  %v539_v62 = vsub.f32 %v11478_v10, %v11663_v43  ;;  %v803_v10 = vsub.f32 %v11487_v2, %v11659_v28 }
 0x2f1   : > { %8278 = vmatprep.mubr.f32.mxu0 %v18590_v55 }
 0x2f2   : > { %v603_v40 = vmul.f32 %v539_v62, %v539_v62  ;;  %v867_v63 = vmul.f32 %v803_v10, %v803_v10 }
 0x2f4   : > { %8279 = vmatmul.mubr.f32.gmra.mrb[12].mxu0 %v18590_v55  ;;  %v808_v55 = vsub.f32 %v11589_v6, %v11668_v48  ;;  %v804_v6 = vsub.f32 %v11487_v2, %v11668_v48  ;;  %v865_v2 = vmul.f32 %v801_v37, %v801_v37  ;;  %v809_v37 = vsub.f32 %v11513_v32, %v11659_v28 }
 0x2f5   : > { %8280 = vmatprep.mubr.f32.mxu0 %v18591_v41 }
 0x2f6   : > { %v868_v23 = vmul.f32 %v804_v6, %v804_v6  ;;  %v11922_v6 = vstv %s7388_s25 }
 0x2f8   : > { %8281 = vmatmul.mubr.f32.gmra.mrb[14].mxu0 %v18591_v41  ;;  %v805_v41 = vsub.f32 %v11496_v9, %v11659_v28 }
 0x2f9   : > { %8282 = vmatprep.mubr.f32.mxu0 %v18594_v24 }
 0x2fa   : > { %v869_v45 = vmul.f32 %v805_v41, %v805_v41  ;;  %v598_v41 = vmul.f32 %v534_v58, %v534_v58 }
 0x2fc   : > { %8283 = vmatmul.mubr.f32.gmra.mrb[16].mxu0 %v18594_v24  ;;  %v806_v24 = vsub.f32 %v11496_v9, %v11668_v48  ;;  %v601_v9 = vmul.f32 %v537_v11, %v537_v11  ;;  %v540_v11 = vsub.f32 %v11502_v16, %v11656_v53 }
 0x2fd   : > { %8284 = vmatprep.mubr.f32.mxu0 %v18596_v29 }
 0x2fe   : > { %v870_v7 = vmul.f32 %v806_v24, %v806_v24  ;;  %v599_v24 = vmul.f32 %v535_v1, %v535_v1  ;;  %v11942_v1 = vpop.permute.xlu1 %453 }
 0x300   : > { %8285 = vmatmul.mubr.f32.gmra.mrb[18].mxu0 %v18596_v29  ;;  %v802_v29 = vsub.f32 %v11578_v59, %v11668_v48  ;;  %v533_v59 = vsub.f32 %v11600_v26, %v11663_v43  ;;  %v11913_v62 = vadd.f32 %v870_v7, %v601_v9  ;;  %v1137_v9 = vsub.f32 %v11529_v30, %v11698_v12 }
 0x301   : > { %8286 = vmatprep.mubr.f32.mxu0 %v18601_v51 }
 0x304   : > { %8287 = vmatmul.mubr.f32.gmra.mrb[20].mxu0 %v18601_v51  ;;  %v600_v51 = vmul.f32 %v536_v50, %v536_v50  ;;  %v597_v50 = vmul.f32 %v533_v59, %v533_v59 }
 0x305   : > { %8288 = vmatprep.mubr.f32.mxu0 %v18602_v36 }
 0x308   : > { %8289 = vmatmul.mubr.f32.gmra.mrb[22].mxu0 %v18602_v36  ;;  %v532_v36 = vsub.f32 %v11600_v26, %v11656_v53  ;;  %v866_v26 = vmul.f32 %v802_v29, %v802_v29  ;;  %v4699_v29 = vadd.s32 128, %v4698_v35 }
 0x309   : > { %8290 = vmatprep.mubr.f32.mxu0 %v18605_v5 }
 0x30a   : > { %v596_v33 = vmul.f32 %v532_v36, %v532_v36  ;;  %v4700_v36 = vstv %s7389_s26 }
 0x30b   : > { %v4701_v7 = vadd.s32 %v4700_v36, %v4698_v35  ;;  %v4702_v58 = vadd.s32 %v4700_v36, %v4699_v29  ;;  %v18648_v35 = vld [vmem:[#allocation38_spill] sm:$0xff] }
 0x30c   : > { %8291 = vmatmul.mubr.f32.gmra.mrb[24].mxu0 %v18605_v5  ;;  %v602_v5 = vmul.f32 %v538_v31, %v538_v31  ;;  %v4600_v31 = vadd.s32 8, %v11625_v61 }
 0x30d   : > { %8292 = vmatprep.mubr.f32.mxu0 %v18606_v17  ;;  %vm4703_vm2 = vcmp.lt.s32.totalorder %v4701_v7, 380  ;;  %vm4704_vm3 = vcmp.lt.s32.totalorder %v4702_v58, 380  ;;  %v18654_v7 = vld [vmem:[#allocation82_spill] sm:$0xff] }
 0x30e   : > { %v4633_v59 = vadd.s32 %v11922_v6, %v4600_v31  ;;  %v812_v31 = vsub.f32 %v11520_v34, %v11668_v48 }
 0x310   : > { %8293 = vmatmul.mubr.f32.gmra.mrb[26].mxu0 %v18606_v17  ;;  %v871_v17 = vmul.f32 %v807_v21, %v807_v21  ;;  %vm4665_vm1 = vcmp.lt.s32.totalorder %v4633_v59, 300 }
 0x311   : > { %8294 = vmatprep.mubr.f32.mxu0 %v18610_v44 }
 0x312   : > { %v11900_v47 = vadd.f32 %v871_v17, %v602_v5  ;;  %v11931_v5 = vadd.f32 %v866_v26, %v597_v50  ;;  %v604_v17 = vmul.f32 %v540_v11, %v540_v11  ;;  %v931_v26 = vadd.f32 %v867_v63, %v598_v41 }
 0x313   : > { %v1201_v11 = vmul.f32 %v1137_v9, %v1137_v9  ;;  %v18651_v9 = vld [vmem:[#allocation78_spill] sm:$0xff] }
 0x314   : > { %8295 = vmatmul.mubr.f32.gmra.mrb[28].mxu0 %v18610_v44  ;;  %v11891_v44 = vpop.permute.xlu0 %468 }
 0x315   : > { %8296 = vmatprep.mubr.f32.mxu0 %v18614_v56 }
 0x318   : > { %8297 = vmatmul.mubr.f32.gmra.mrb[30].mxu0 %v18614_v56  ;;  %v872_v56 = vmul.f32 %v808_v55, %v808_v55  ;;  %v541_v55 = vsub.f32 %v11502_v16, %v11663_v43  ;;  %v11919_v10 = vpop.permute.xlu0 %478  ;;  %v11929_v16 = vadd.f32 %v865_v2, %v596_v33  ;;  %v4601_v2 = vadd.s32 16, %v11625_v61 }
 0x319   : > { %8298 = vmatprep.mubr.f32.mxu0 %v18616_v27  ;;  %v932_v33 = vadd.f32 %v868_v23, %v599_v24  ;;  %v1139_v23 = vsub.f32 %v18648_v35, %v11698_v12 }
 0x31a   : > { %v11909_v21 = vadd.f32 %v872_v56, %v603_v40  ;;  %v605_v40 = vmul.f32 %v541_v55, %v541_v55  ;;  %v542_v56 = vsub.f32 %v11622_v4, %v11656_v53  ;;  %v1138_v55 = vsub.f32 %v18648_v35, %v11691_v38  ;;  %v11966_v35 = vpop.permute.xlu1 %735 }
 0x31b   : > { %v4634_v41 = vadd.s32 %v11922_v6, %v4601_v2  ;;  %v11960_v36 = vadd.f32 %v1201_v11, %v932_v33  ;;  %v1203_v33 = vmul.f32 %v1139_v23, %v1139_v23 }
 0x31c   : > { %8299 = vmatmul.mubr.f32.gmra.mrb[32].mxu0 %v18616_v27  ;;  %v11911_v27 = vadd.f32 %v869_v45, %v600_v51  ;;  %v1136_v51 = vsub.f32 %v11529_v30, %v11691_v38  ;;  %v811_v45 = vsub.f32 %v11520_v34, %v11659_v28  ;;  %v873_v30 = vmul.f32 %v809_v37, %v809_v37  ;;  %v11951_v37 = vpop.permute.xlu0 %488 }
 0x31d   : > { %8300 = vmatprep.mubr.f32.mxu0 %v18619_v22  ;;  %v606_v29 = vmul.f32 %v542_v56, %v542_v56  ;;  %18650 = vst [vmem:[#allocation84_spill] sm:$0xff] %v11960_v36  ;;  %v876_v56 = vmul.f32 %v812_v31, %v812_v31  ;;  %vm4666_vm4 = vcmp.lt.s32.totalorder %v4634_v41, 300  ;;  %vm18018_vm6 = vcmp.lt.f32.partialorder %v11960_v36, 0.011025  ;;  %v18656_v31 = vld [vmem:[#allocation3_spill] sm:$0xff] }
 0x31e   : > { %v1200_v50 = vmul.f32 %v1136_v51, %v1136_v51  ;;  %v875_v63 = vmul.f32 %v811_v45, %v811_v45  ;;  %v4604_v51 = vadd.s32 40, %v11625_v61  ;;  %v11964_v59 = vadd.f32 %v873_v30, %v604_v17 }
 0x31f   : > { %v1202_v45 = vmul.f32 %v1138_v55, %v1138_v55  ;;  %vm17625_vm8 = vcmp.gt.f32.partialorder %v11960_v36, 0.02405601  ;;  %v1144_v55 = vsub.f32 %v18656_v31, %v11691_v38  ;;  %v1145_v41 = vsub.f32 %v18656_v31, %v11698_v12  ;;  %v18664_v31 = vld [vmem:[#allocation85_spill] sm:$0xff] }
 0x320   : > { %8301 = vmatmul.mubr.f32.gmra.mrb[34].mxu0 %v18619_v22  ;;  %v810_v22 = vsub.f32 %v11513_v32, %v11668_v48  ;;  %v543_v32 = vsub.f32 %v11622_v4, %v11663_v43  ;;  %v17576_v4 = vmov 0.0   ;;  %v11958_v24 = vadd.f32 %v1200_v50, %v931_v26  ;;  %v11984_v11 = vpop.permute.xlu0 %498 }
 0x321   : > { %8302 = vmatprep.mubr.f32.mxu0 %v18620_v15  ;;  %v7391_v34 = vsel %vm4665_vm1, 1.0, %v17576_v4  ;;  %v11976_v26 = vsel %vm4704_vm3, 1.0, %v17576_v4  ;;  %v939_v50 = vadd.f32 %v875_v63, %v606_v29  ;;  %v12000_v29 = vadd.f32 %v1203_v33, %v11913_v62  ;;  %v18658_v63 = vld [vmem:[#allocation50_spill] sm:$0xff] }
 0x322   : > { %18649 = vst [vmem:[#allocation81_spill] sm:$0xff] %v11958_v24  ;;  %v11982_v30 = vmul.f32 %v11976_v26, %v7391_v34  ;;  %vm18016_vm5 = vcmp.lt.f32.partialorder %v11958_v24, 0.011025  ;;  %vm17623_vm7 = vcmp.gt.f32.partialorder %v11958_v24, 0.02405601  ;;  %v544_v23 = vsub.f32 %v18658_v63, %v11656_v53 }
 0x323   : > { %18657 = vst [vmem:[#allocation96_spill] sm:$0xff] %v12000_v29  ;;  %v1208_v24 = vmul.f32 %v1144_v55, %v1144_v55  ;;  %vm18015_vm11 = vcmp.lt.f32.partialorder %v12000_v29, 0.011025  ;;  %vm17612_vm13 = vcmp.gt.f32.partialorder %v12000_v29, 0.02405601  ;;  %v570_v55 = vsub.f32 %v11857_v19, %v11656_v53  ;;  %v18678_v29 = vld [vmem:[#allocation4_spill] sm:$0xff] }
 0x324   : > { %8303 = vmatmul.mubr.f32.gmra.mrb[36].mxu0 %v18620_v15  ;;  %v874_v15 = vmul.f32 %v810_v22, %v810_v22  ;;  %v607_v22 = vmul.f32 %v543_v32, %v543_v32  ;;  %18653 = vst [vmem:[#allocation89_spill] sm:$0xff] %v11982_v30  ;;  %v11994_v32 = vadd.f32 %v1202_v45, %v11911_v27  ;;  %v12014_v27 = vsel %vm18018_vm6, %v11982_v30, 0.0  ;;  %v12043_v36 = vpop.permute.xlu0 %508 }
 0x325   : > { %8304 = vmatprep.mubr.f32.mxu0 %v18623_v25  ;;  %18660 = vst [vmem:[#allocation103_spill] sm:$0xff] %v12014_v27  ;;  %v545_v45 = vsub.f32 %v18658_v63, %v11663_v43  ;;  %v608_v63 = vmul.f32 %v544_v23, %v544_v23  ;;  %v571_v27 = vsub.f32 %v11857_v19, %v11663_v43 }
 0x326   : > { %v11968_v2 = vadd.f32 %v874_v15, %v605_v40  ;;  %v4637_v40 = vadd.s32 %v11922_v6, %v4604_v51  ;;  %v940_v58 = vadd.f32 %v876_v56, %v607_v22  ;;  %18655 = vst [vmem:[#allocation93_spill] sm:$0xff] %v11994_v32  ;;  %v7392_v15 = vsel %vm4666_vm4, 1.0, %v17576_v4  ;;  %v18662_v51 = vld [vmem:[#allocation51_spill] sm:$0xff]  ;;  %v12024_v22 = vpop.permute.xlu1 %739 }
 0x327   : > { %v12029_v56 = vsel %vm17625_vm8, %v11982_v30, 0.0  ;;  %v814_v33 = vsub.f32 %v18662_v51, %v11668_v48  ;;  %vm17858_vm10 = vcmp.lt.f32.partialorder %v11994_v32, 0.011025  ;;  %vm17611_vm12 = vcmp.gt.f32.partialorder %v11994_v32, 0.02405601 }
 0x328   : > { %8305 = vmatmul.mubr.f32.gmra.mrb[38].mxu0 %v18623_v25  ;;  %v11972_v25 = vsel %vm4703_vm2, 1.0, %v17576_v4  ;;  %18663 = vst [vmem:[#allocation25_spill] sm:$0xff] %v12029_v56  ;;  %vm4669_vm9 = vcmp.lt.s32.totalorder %v4637_v40, 300  ;;  %v4606_v30 = vadd.s32 56, %v11625_v61 }
 0x329   : > { %8306 = vmatprep.mubr.f32.mxu0 %v18651_v9  ;;  %v11979_v17 = vmul.f32 %v11972_v25, %v7391_v34  ;;  %v12037_v4 = vmul.f32 %v11972_v25, %v7392_v15  ;;  %v878_v56 = vmul.f32 %v814_v33, %v814_v33 }
 0x32b   : > { %18652 = vst [vmem:[#allocation88_spill] sm:$0xff] %v11979_v17  ;;  %v12009_v34 = vsel %vm18016_vm5, %v11979_v17, 0.0  ;;  %v12019_v62 = vsel %vm17623_vm7, %v11979_v17, 0.0  ;;  %18665 = vst [vmem:[#allocation28_spill] sm:$0xff] %v12037_v4  ;;  %v7395_v17 = vsel %vm4669_vm9, 1.0, %v18667_v60  ;;  %v12059_v23 = vsel %vm17858_vm10, %v12037_v4, 0.0 }
 0x32c   : > { %8307 = vmatmul.mubr.f32.gmra.mrb[40].mxu0 %v18651_v9  ;;  %18659 = vst [vmem:[#allocation99_spill] sm:$0xff] %v12009_v34  ;;  %18661 = vst [vmem:[#allocation13_spill] sm:$0xff] %v12019_v62  ;;  %v813_v9 = vsub.f32 %v18662_v51, %v11659_v28  ;;  %v1209_v51 = vmul.f32 %v1145_v41, %v1145_v41  ;;  %v18668_v62 = vld [vmem:[#allocation86_spill] sm:$0xff]  ;;  %v12064_v41 = vsel %vm17611_vm12, %v12037_v4, 0.0 }
 0x32d   : > { %8308 = vmatprep.mubr.f32.mxu0 %v18654_v7  ;;  %18669 = vst [vmem:[#allocation32_spill] sm:$0xff] %v12059_v23  ;;  %18670 = vst [vmem:[#allocation35_spill] sm:$0xff] %v12064_v41  ;;  %v12078_v34 = vmul.f32 %v11972_v25, %v7395_v17  ;;  %v12092_v4 = vmul.f32 %v11976_v26, %v7395_v17  ;;  %v12095_v41 = vpop.permute.xlu0 %518 }
 0x32e   : > { %v877_v40 = vmul.f32 %v813_v9, %v813_v9  ;;  %v12066_v9 = vadd.f32 %v1208_v24, %v939_v50  ;;  %v12080_v23 = vadd.f32 %v1209_v51, %v940_v58  ;;  %v12100_v51 = vmul.f32 %v570_v55, %v570_v55 }
 0x32f   : > { %18674 = vst [vmem:[#allocation45_spill] sm:$0xff] %v12078_v34  ;;  %18677 = vst [vmem:[#allocation56_spill] sm:$0xff] %v12092_v4 }
 0x330   : > { %8309 = vmatmul.mubr.f32.gmra.mrb[42].mxu0 %v18654_v7  ;;  %v12040_v7 = vmul.f32 %v11976_v26, %v7392_v15  ;;  %v609_v15 = vmul.f32 %v545_v45, %v545_v45  ;;  %18671 = vst [vmem:[#allocation40_spill] sm:$0xff] %v12066_v9  ;;  %v18672_v45 = vld [vmem:[#allocation12_spill] sm:$0xff]  ;;  %18675 = vst [vmem:[#allocation52_spill] sm:$0xff] %v12080_v23  ;;  %v12089_v50 = vadd.f32 %v877_v40, %v608_v63  ;;  %v18679_v63 = vld [vmem:[#allocation90_spill] sm:$0xff] }
 0x331   : > { %8310 = vmatprep.mubr.f32.mxu0 %v18664_v31  ;;  %v548_v33 = vsub.f32 %v18672_v45, %v11656_v53  ;;  %v549_v32 = vsub.f32 %v18672_v45, %v11663_v43  ;;  %v12102_v45 = vmul.f32 %v571_v27, %v571_v27  ;;  %vm17651_vm14 = vcmp.lt.f32.partialorder %v12066_v9, 0.011025 }
 0x332   : > { %18666 = vst [vmem:[#allocation29_spill] sm:$0xff] %v12040_v7  ;;  %v12075_v19 = vsel %vm18015_vm11, %v12040_v7, 0.0  ;;  %v12087_v24 = vsel %vm17612_vm13, %v12040_v7, 0.0  ;;  %v12098_v58 = vadd.f32 %v878_v56, %v609_v15  ;;  %v817_v7 = vsub.f32 %v18678_v29, %v11659_v28 }
 0x333   : > { %18673 = vst [vmem:[#allocation43_spill] sm:$0xff] %v12075_v19  ;;  %18676 = vst [vmem:[#allocation53_spill] sm:$0xff] %v12087_v24  ;;  %v4639_v19 = vadd.s32 %v11922_v6, %v4606_v30  ;;  %vm17603_vm15 = vcmp.gt.f32.partialorder %v12066_v9, 0.02405601  ;;  %v612_v17 = vmul.f32 %v548_v33, %v548_v33  ;;  %v818_v30 = vsub.f32 %v18678_v29, %v11668_v48 }
 0x334   : > { %8311 = vmatmul.mubr.f32.gmra.mrb[44].mxu0 %v18664_v31  ;;  %v12070_v31 = vpop.permute.xlu1 %1064  ;;  %vm17849_vm0 = vcmp.lt.f32.partialorder %v12080_v23, 0.011025  ;;  %v12115_v27 = vsel %vm17651_vm14, %v12078_v34, 0.0  ;;  %v574_v56 = vsub.f32 %v11891_v44, %v11656_v53  ;;  %vm17610_vm1 = vcmp.gt.f32.partialorder %v12080_v23, 0.02405601 }
 0x335   : > { %8312 = vmatprep.mubr.f32.mxu0 %v18668_v62  ;;  %18680 = vst [vmem:[#allocation59_spill] sm:$0xff] %v12115_v27  ;;  %v12122_v40 = vsel %vm17849_vm0, %v12092_v4, 0.0  ;;  %v12128_v29 = vsel %vm17603_vm15, %v12078_v34, 0.0  ;;  %vm4671_vm2 = vcmp.lt.s32.totalorder %v4639_v19, 300  ;;  %v881_v55 = vmul.f32 %v817_v7, %v817_v7 }
 0x336   : > { %18681 = vst [vmem:[#allocation63_spill] sm:$0xff] %v12122_v40  ;;  %18682 = vst [vmem:[#allocation67_spill] sm:$0xff] %v12128_v29  ;;  %v578_v33 = vsub.f32 %v11919_v10, %v11656_v53  ;;  %v579_v40 = vsub.f32 %v11919_v10, %v11663_v43  ;;  %v882_v9 = vmul.f32 %v818_v30, %v818_v30  ;;  %v7397_v7 = vsel %vm4671_vm2, 1.0, %v18667_v60 }
 0x337   : > { %v582_v19 = vsub.f32 %v11951_v37, %v11656_v53  ;;  %v4632_v34 = vadd.s32 %v11922_v6, %v11625_v61  ;;  %v586_v29 = vsub.f32 %v11984_v11, %v11656_v53  ;;  %v587_v10 = vsub.f32 %v11984_v11, %v11663_v43 }
 0x338   : > { %8313 = vmatmul.mubr.f32.gmra.mrb[46].mxu0 %v18668_v62  ;;  %v613_v62 = vmul.f32 %v549_v32, %v549_v32  ;;  %v12131_v15 = vpop.permute.xlu1 %463  ;;  %v575_v32 = vsub.f32 %v11891_v44, %v11663_v43  ;;  %v997_v44 = vpop.permute.xlu0 %996  ;;  %v12155_v27 = vsel %vm17610_vm1, %v12092_v4, 0.0  ;;  %v12166_v11 = vmul.f32 %v578_v33, %v578_v33 }
 0x339   : > { %8314 = vmatprep.mubr.f32.mxu0 %v18679_v63  ;;  %18683 = vst [vmem:[#allocation68_spill] sm:$0xff] %v12131_v15  ;;  %v1134_v30 = vsub.f32 %v997_v44, %v11691_v38  ;;  %18684 = vst [vmem:[#allocation71_spill] sm:$0xff] %v12155_v27  ;;  %v1135_v24 = vsub.f32 %v997_v44, %v11698_v12  ;;  %v12164_v15 = vadd.f32 %v881_v55, %v612_v17 }
 0x33a   : > { %v12162_v18 = vmul.f32 %v575_v32, %v575_v32  ;;  %v12168_v52 = vmul.f32 %v579_v40, %v579_v40  ;;  %v12171_v23 = vadd.f32 %v882_v9, %v613_v62  ;;  %v12176_v44 = vmul.f32 %v11972_v25, %v7397_v7 }
 0x33b   : > { %vm4664_vm3 = vcmp.lt.s32.totalorder %v4632_v34, 300  ;;  %v12182_v17 = vmul.f32 %v586_v29, %v586_v29  ;;  %v12184_v32 = vmul.f32 %v587_v10, %v587_v10  ;;  %v1198_v40 = vmul.f32 %v1134_v30, %v1134_v30  ;;  %v18688_v34 = vld [vmem:[#allocation30_spill] sm:$0xff] }
 0x33c   : > { %8315 = vmatmul.mubr.f32.gmra.mrb[48].mxu0 %v18679_v63  ;;  %v583_v63 = vsub.f32 %v11951_v37, %v11663_v43  ;;  %v12157_v37 = vmul.f32 %v574_v56, %v574_v56  ;;  %v12173_v56 = vmul.f32 %v582_v19, %v582_v19  ;;  %18685 = vst [vmem:[#allocation75_spill] sm:$0xff] %v12176_v44  ;;  %v12178_v4 = vpop.permute.xlu1 %743  ;;  %v4602_v33 = vadd.s32 24, %v11625_v61 }
 0x33d   : > { %8316 = vmatprep.mubr.f32.mxu0 %v18631_v13  ;;  %18686 = vst [vmem:[#allocation79_spill] sm:$0xff] %v12184_v32  ;;  %v12187_v55 = vmul.f32 %v11976_v26, %v7397_v7  ;;  %v1199_v9 = vmul.f32 %v1135_v24, %v1135_v24  ;;  %v4641_v62 = vadd.s32 %v11922_v6, %v4608_v42  ;;  %vm17627_vm4 = vcmp.lt.f32.partialorder %v18688_v34, 0.011025  ;;  %v1009_v7 = vpop.permute.xlu0 %1008 }
 0x33e   : > { %vm17607_vm9 = vcmp.gt.f32.partialorder %v18688_v34, 0.02405601  ;;  %v590_v29 = vsub.f32 %v12043_v36, %v11656_v53  ;;  %v7390_v19 = vsel %vm4664_vm3, 1.0, %v18667_v60  ;;  %v12202_v42 = vsel %vm17627_vm4, %v12176_v44, 0.0 }
 0x33f   : > { %18687 = vst [vmem:[#allocation80_spill] sm:$0xff] %v12187_v55  ;;  %18690 = vst [vmem:[#allocation83_spill] sm:$0xff] %v12202_v42  ;;  %v594_v24 = vsub.f32 %v12095_v41, %v11656_v53  ;;  %v12212_v10 = vsel %vm17607_vm9, %v12176_v44, 0.0  ;;  %v595_v30 = vsub.f32 %v12095_v41, %v11663_v43  ;;  %v12217_v27 = vadd.f32 %v1198_v40, %v11929_v16 }
 0x340   : > { %8317 = vmatmul.mubr.f32.gmra.mrb[50].mxu0 %v18631_v13  ;;  %v12180_v13 = vmul.f32 %v583_v63, %v583_v63  ;;  %v18689_v63 = vld [vmem:[#allocation33_spill] sm:$0xff]  ;;  %18691 = vst [vmem:[#allocation87_spill] sm:$0xff] %v12212_v10  ;;  %v12220_v42 = vmul.f32 %v11972_v25, %v7390_v19  ;;  %vm4673_vm3 = vcmp.lt.s32.totalorder %v4641_v62, 300  ;;  %v4635_v32 = vadd.s32 %v11922_v6, %v4602_v33  ;;  %v12227_v34 = vpop.permute.xlu1 %747  ;;  %v18709_v10 = vld [vmem:[#allocation26_spill] sm:$0xff] }
 0x341   : > { %8318 = vmatprep.mubr.f32.mxu0 %v18636_v8  ;;  %vm17630_vm2 = vcmp.lt.f32.partialorder %v18689_v63, 0.011025  ;;  %vm17609_vm15 = vcmp.gt.f32.partialorder %v18689_v63, 0.02405601  ;;  %18692 = vst [vmem:[#allocation91_spill] sm:$0xff] %v12217_v27  ;;  %v1140_v40 = vsub.f32 %v1009_v7, %v11691_v38  ;;  %v12248_v62 = vmul.f32 %v594_v24, %v594_v24 }
 0x342   : > { %18693 = vst [vmem:[#allocation92_spill] sm:$0xff] %v12220_v42  ;;  %v12232_v41 = vsel %vm17630_vm2, %v12187_v55, 0.0  ;;  %v12237_v16 = vsel %vm17609_vm15, %v12187_v55, 0.0  ;;  %v1141_v33 = vsub.f32 %v1009_v7, %v11698_v12  ;;  %v12251_v44 = vmul.f32 %v595_v30, %v595_v30  ;;  %v18706_v30 = vld [vmem:[#allocation47_spill] sm:$0xff] }
 0x343   : > { %18695 = vst [vmem:[#allocation98_spill] sm:$0xff] %v12232_v41  ;;  %18696 = vst [vmem:[#allocation102_spill] sm:$0xff] %v12237_v16  ;;  %vm18017_vm9 = vcmp.lt.f32.partialorder %v12217_v27, 0.011025  ;;  %v7399_v63 = vsel %vm4673_vm3, 1.0, %v18667_v60  ;;  %vm4667_vm12 = vcmp.lt.s32.totalorder %v4635_v32, 300  ;;  %v1204_v7 = vmul.f32 %v1140_v40, %v1140_v40 }
 0x344   : > { %8319 = vmatmul.mubr.f32.gmra.mrb[52].mxu0 %v18636_v8  ;;  %v591_v8 = vsub.f32 %v12043_v36, %v11663_v43  ;;  %v12223_v36 = vadd.f32 %v1199_v9, %v11931_v5  ;;  %v12240_v5 = vmul.f32 %v11976_v26, %v7390_v19  ;;  %18699 = vst [vmem:[#allocation108_spill] sm:$0xff] %v12248_v62  ;;  %18700 = vst [vmem:[#allocation6_spill] sm:$0xff] %v12251_v44  ;;  %v12285_v16 = vpop.permute.xlu1 %1072 }
 0x345   : > { %8320 = vmatprep.mubr.f32.mxu0 %v18639_v20  ;;  %v4610_v19 = vadd.s32 88, %v11625_v61  ;;  %vm17624_vm1 = vcmp.gt.f32.partialorder %v12217_v27, 0.02405601  ;;  %vm17628_vm13 = vcmp.lt.f32.partialorder %v18706_v30, 0.011025  ;;  %v1205_v55 = vmul.f32 %v1141_v33, %v1141_v33 }
 0x346   : > { %18694 = vst [vmem:[#allocation95_spill] sm:$0xff] %v12223_v36  ;;  %18697 = vst [vmem:[#allocation104_spill] sm:$0xff] %v12240_v5  ;;  %v12246_v9 = vmul.f32 %v591_v8, %v591_v8  ;;  %vm18024_vm15 = vcmp.lt.f32.partialorder %v12223_v36, 0.011025  ;;  %vm17626_vm3 = vcmp.gt.f32.partialorder %v12223_v36, 0.02405601  ;;  %v12288_v27 = vmul.f32 %v11976_v26, %v7399_v63  ;;  %v1013_v36 = vpop.permute.xlu0 %1012 }
 0x347   : > { %v12267_v8 = vsel %vm18024_vm15, %v12240_v5, 0.0  ;;  %v12273_v24 = vsel %vm17624_vm1, %v12220_v42, 0.0  ;;  %v12279_v32 = vsel %vm17626_vm3, %v12240_v5, 0.0  ;;  %v7393_v40 = vsel %vm4667_vm12, 1.0, %v18667_v60  ;;  %v18708_v5 = vld [vmem:[#allocation48_spill] sm:$0xff] }
 0x348   : > { %8321 = vmatmul.mubr.f32.gmra.mrb[54].mxu0 %v18639_v20  ;;  %v12244_v20 = vmul.f32 %v590_v29, %v590_v29  ;;  %18698 = vst [vmem:[#allocation106_spill] sm:$0xff] %v12246_v9  ;;  %v12260_v29 = vsel %vm18017_vm9, %v12220_v42, 0.0  ;;  %18702 = vst [vmem:[#allocation27_spill] sm:$0xff] %v12267_v8  ;;  %v4643_v42 = vadd.s32 %v11922_v6, %v4610_v19  ;;  %v4603_v41 = vadd.s32 32, %v11625_v61  ;;  %v18711_v19 = vld [vmem:[#allocation36_spill] sm:$0xff]  ;;  %v12333_v9 = vpop.permute.xlu1 %473 }
 0x349   : > { %8322 = vmatprep.mubr.f32.mxu0 %v18640_v54  ;;  %18701 = vst [vmem:[#allocation7_spill] sm:$0xff] %v12260_v29  ;;  %18703 = vst [vmem:[#allocation31_spill] sm:$0xff] %v12273_v24  ;;  %vm17629_vm7 = vcmp.lt.f32.partialorder %v18708_v5, 0.011025  ;;  %vm17639_vm1 = vcmp.gt.f32.partialorder %v18706_v30, 0.02405601  ;;  %v557_v33 = vsub.f32 %v18709_v10, %v11663_v43  ;;  %v825_v24 = vsub.f32 %v18711_v19, %v11659_v28 }
 0x34a   : > { %18704 = vst [vmem:[#allocation8_spill] sm:$0xff] %v12279_v32  ;;  %18707 = vst [vmem:[#allocation34_spill] sm:$0xff] %v12288_v27  ;;  %v556_v32 = vsub.f32 %v18709_v10, %v11656_v53  ;;  %vm17642_vm8 = vcmp.gt.f32.partialorder %v18708_v5, 0.02405601  ;;  %v826_v8 = vsub.f32 %v18711_v19, %v11668_v48  ;;  %v12310_v29 = vmul.f32 %v11972_v25, %v7393_v40 }
 0x34b   : > { %v12313_v10 = vmul.f32 %v11976_v26, %v7393_v40  ;;  %vm4675_vm12 = vcmp.lt.s32.totalorder %v4643_v42, 300  ;;  %v1143_v44 = vsub.f32 %v1013_v36, %v11698_v12  ;;  %v4612_v19 = vadd.s32 104, %v11625_v61 }
 0x34c   : > { %8323 = vmatmul.mubr.f32.gmra.mrb[56].mxu0 %v18640_v54  ;;  %v12282_v54 = vmul.f32 %v11972_v25, %v7399_v63  ;;  %v12302_v63 = vadd.f32 %v1204_v7, %v11900_v47  ;;  %18712 = vst [vmem:[#allocation10_spill] sm:$0xff] %v12310_v29  ;;  %v1142_v47 = vsub.f32 %v1013_v36, %v11691_v38  ;;  %v12330_v40 = vsel %vm17629_vm7, %v12288_v27, 0.0 }
 0x34d   : > { %8324 = vmatprep.mubr.f32.mxu0 %v18643_v49  ;;  %18713 = vst [vmem:[#allocation11_spill] sm:$0xff] %v12313_v10  ;;  %v4636_v7 = vadd.s32 %v11922_v6, %v4603_v41  ;;  %18716 = vst [vmem:[#allocation14_spill] sm:$0xff] %v12330_v40  ;;  %v889_v36 = vmul.f32 %v825_v24, %v825_v24  ;;  %v890_v41 = vmul.f32 %v826_v8, %v826_v8 }
 0x34e   : > { %18705 = vst [vmem:[#allocation9_spill] sm:$0xff] %v12282_v54  ;;  %18710 = vst [vmem:[#allocation37_spill] sm:$0xff] %v12302_v63  ;;  %v12325_v62 = vsel %vm17628_vm13, %v12282_v54, 0.0  ;;  %vm17857_vm3 = vcmp.lt.f32.partialorder %v12302_v63, 0.011025  ;;  %v4645_v24 = vadd.s32 %v11922_v6, %v4612_v19  ;;  %v12351_v8 = vsel %vm17642_vm8, %v12288_v27, 0.0 }
 0x34f   : > { %18715 = vst [vmem:[#allocation44_spill] sm:$0xff] %v12325_v62  ;;  %vm17643_vm4 = vcmp.gt.f32.partialorder %v12302_v63, 0.02405601  ;;  %v12341_v62 = vsel %vm17639_vm1, %v12282_v54, 0.0  ;;  %vm4668_vm2 = vcmp.lt.s32.totalorder %v4636_v7, 300  ;;  %18718 = vst [vmem:[#allocation46_spill] sm:$0xff] %v12351_v8 }
 0x350   : > { %8325 = vmatmul.mubr.f32.gmra.mrb[58].mxu0 %v18643_v49  ;;  %v12316_v49 = vadd.f32 %v1205_v55, %v11909_v21  ;;  %v620_v21 = vmul.f32 %v556_v32, %v556_v32  ;;  %v621_v55 = vmul.f32 %v557_v33, %v557_v33  ;;  %18717 = vst [vmem:[#allocation15_spill] sm:$0xff] %v12341_v62  ;;  %v12356_v30 = vsel %vm17857_vm3, %v12310_v29, 0.0 }
 0x351   : > { %8326 = vmatprep.mubr.f32.mxu0 %v18645_v3  ;;  %v1206_v32 = vmul.f32 %v1142_v47, %v1142_v47  ;;  %v1207_v33 = vmul.f32 %v1143_v44, %v1143_v44  ;;  %v12361_v42 = vsel %vm17643_vm4, %v12310_v29, 0.0  ;;  %v4605_v47 = vadd.s32 48, %v11625_v61  ;;  %v1021_v44 = vpop.permute.xlu0 %1020  ;;  %v18724_v29 = vld [vmem:[#allocation57_spill] sm:$0xff] }
 0x352   : > { %18714 = vst [vmem:[#allocation39_spill] sm:$0xff] %v12316_v49  ;;  %vm17865_vm13 = vcmp.lt.f32.partialorder %v12316_v49, 0.011025  ;;  %vm17648_vm7 = vcmp.gt.f32.partialorder %v12316_v49, 0.02405601  ;;  %v12365_v7 = vadd.f32 %v889_v36, %v620_v21  ;;  %v12367_v19 = vadd.f32 %v890_v41, %v621_v55  ;;  %v12389_v55 = vpop.permute.xlu1 %751  ;;  %v18722_v36 = vld [vmem:[#allocation54_spill] sm:$0xff] }
 0x353   : > { %v12378_v63 = vsel %vm17865_vm13, %v12313_v10, 0.0  ;;  %v12383_v27 = vsel %vm17648_vm7, %v12313_v10, 0.0  ;;  %v12387_v21 = vadd.f32 %v1206_v32, %v11964_v59  ;;  %v12393_v41 = vadd.f32 %v1207_v33, %v11968_v2 }
 0x354   : > { %8327 = vmatmul.mubr.f32.gmra.mrb[60].mxu0 %v18645_v3  ;;  %v7401_v3 = vsel %vm4675_vm12, 1.0, %v18667_v60  ;;  %vm17649_vm12 = vcmp.lt.f32.partialorder %v18722_v36, 0.011025  ;;  %vm4677_vm1 = vcmp.lt.s32.totalorder %v4645_v24, 300  ;;  %vm17650_vm8 = vcmp.lt.f32.partialorder %v18724_v29, 0.011025 }
 0x355   : > { %8328 = vmatprep.mubr.f32.mxu0 %v18646_v39  ;;  %v12370_v5 = vmul.f32 %v11972_v25, %v7401_v3  ;;  %v12373_v54 = vmul.f32 %v11976_v26, %v7401_v3  ;;  %18721 = vst [vmem:[#allocation19_spill] sm:$0xff] %v12387_v21  ;;  %18723 = vst [vmem:[#allocation55_spill] sm:$0xff] %v12393_v41  ;;  %v1146_v3 = vsub.f32 %v1021_v44, %v11691_v38 }
 0x356   : > { %vm17658_vm4 = vcmp.gt.f32.partialorder %v18722_v36, 0.02405601  ;;  %v4638_v49 = vadd.s32 %v11922_v6, %v4605_v47  ;;  %v1147_v10 = vsub.f32 %v1021_v44, %v11698_v12  ;;  %vm17661_vm7 = vcmp.lt.f32.partialorder %v12387_v21, 0.011025  ;;  %v12433_v8 = vpop.permute.xlu1 %755 }
 0x357   : > { %18719 = vst [vmem:[#allocation49_spill] sm:$0xff] %v12370_v5  ;;  %18720 = vst [vmem:[#allocation18_spill] sm:$0xff] %v12373_v54  ;;  %v12403_v59 = vsel %vm17649_vm12, %v12370_v5, 0.0  ;;  %v12408_v2 = vsel %vm17650_vm8, %v12373_v54, 0.0  ;;  %v7403_v24 = vsel %vm4677_vm1, 1.0, %v18667_v60  ;;  %v4614_v47 = vadd.s32 120, %v11625_v61 }
 0x358   : > { %8329 = vmatmul.mubr.f32.gmra.mrb[62].mxu0 %v18646_v39  ;;  %v7394_v39 = vsel %vm4668_vm2, 1.0, %v18667_v60  ;;  %18725 = vst [vmem:[#allocation58_spill] sm:$0xff] %v12403_v59  ;;  %18726 = vst [vmem:[#allocation20_spill] sm:$0xff] %v12408_v2  ;;  %vm17659_vm2 = vcmp.gt.f32.partialorder %v18724_v29, 0.02405601  ;;  %v12423_v44 = vsel %vm17658_vm4, %v12370_v5, 0.0  ;;  %v1210_v2 = vmul.f32 %v1146_v3, %v1146_v3 }
 0x359   : > { %v12412_v32 = vmul.f32 %v11972_v25, %v7394_v39  ;;  %v12415_v33 = vmul.f32 %v11976_v26, %v7394_v39  ;;  %18729 = vst [vmem:[#allocation62_spill] sm:$0xff] %v12423_v44  ;;  %vm17850_vm12 = vcmp.lt.f32.partialorder %v12393_v41, 0.011025  ;;  %vm17660_vm8 = vcmp.gt.f32.partialorder %v12387_v21, 0.02405601 }
 0x35a   : > { %v12430_v39 = vsel %vm17659_vm2, %v12373_v54, 0.0  ;;  %vm17673_vm14 = vcmp.gt.f32.partialorder %v12393_v41, 0.02405601  ;;  %vm4670_vm1 = vcmp.lt.s32.totalorder %v4638_v49, 300  ;;  %v1211_v59 = vmul.f32 %v1147_v10, %v1147_v10 }
 0x35b   : > { %18727 = vst [vmem:[#allocation21_spill] sm:$0xff] %v12412_v32  ;;  %18728 = vst [vmem:[#allocation60_spill] sm:$0xff] %v12415_v33  ;;  %v12438_v36 = vsel %vm17661_vm7, %v12412_v32, 0.0  ;;  %v12441_v5 = vmul.f32 %v11972_v25, %v7403_v24  ;;  %v12444_v3 = vmul.f32 %v11976_v26, %v7403_v24  ;;  %v1164_v29 = vsub.f32 %v11907_v57, %v11691_v38 }
 0x35c   : > { %18730 = vst [vmem:[#allocation24_spill] sm:$0xff] %v12430_v39  ;;  %18731 = vst [vmem:[#allocation66_spill] sm:$0xff] %v12438_v36  ;;  %v12451_v10 = vsel %vm17850_vm12, %v12415_v33, 0.0  ;;  %v12456_v49 = vsel %vm17660_vm8, %v12412_v32, 0.0  ;;  %v4647_v54 = vadd.s32 %v11922_v6, %v4614_v47  ;;  %v1165_v39 = vsub.f32 %v11907_v57, %v11698_v12  ;;  %v1029_v32 = vpop.permute.xlu0 %1028 }
 0x35d   : > { %18732 = vst [vmem:[#allocation70_spill] sm:$0xff] %v12441_v5  ;;  %18733 = vst [vmem:[#allocation73_spill] sm:$0xff] %v12444_v3  ;;  %v12464_v24 = vsel %vm17673_vm14, %v12415_v33, 0.0  ;;  %vm17674_vm4 = vcmp.lt.f32.partialorder %v11799_v0, 0.011025  ;;  %v7396_v44 = vsel %vm4670_vm1, 1.0, %v18667_v60  ;;  %v12469_v40 = vadd.f32 %v1210_v2, %v12089_v50  ;;  %v12496_v33 = vpop.permute.xlu1 %1080 }
 0x35e   : > { %18734 = vst [vmem:[#allocation74_spill] sm:$0xff] %v12451_v10  ;;  %18735 = vst [vmem:[#allocation94_spill] sm:$0xff] %v12456_v49  ;;  %vm17675_vm2 = vcmp.lt.f32.partialorder %v11801_v14, 0.011025  ;;  %vm17672_vm8 = vcmp.gt.f32.partialorder %v11799_v0, 0.02405601  ;;  %v12475_v57 = vadd.f32 %v1211_v59, %v12098_v58  ;;  %v1228_v2 = vmul.f32 %v1164_v29, %v1164_v29 }
 0x35f   : > { %18736 = vst [vmem:[#allocation97_spill] sm:$0xff] %v12464_v24  ;;  %18737 = vst [vmem:[#allocation100_spill] sm:$0xff] %v12469_v40  ;;  %vm17688_vm7 = vcmp.gt.f32.partialorder %v11801_v14, 0.02405601  ;;  %v12480_v47 = vsel %vm17674_vm4, %v12441_v5, 0.0  ;;  %v12485_v21 = vsel %vm17675_vm2, %v12444_v3, 0.0  ;;  %v12493_v41 = vmul.f32 %v11972_v25, %v7396_v44 }
 0x360   : > { %18738 = vst [vmem:[#allocation101_spill] sm:$0xff] %v12475_v57  ;;  %18739 = vst [vmem:[#allocation105_spill] sm:$0xff] %v12480_v47  ;;  %v12490_v50 = vsel %vm17672_vm8, %v12441_v5, 0.0  ;;  %vm4679_vm1 = vcmp.lt.s32.totalorder %v4647_v54, 300  ;;  %v1229_v58 = vmul.f32 %v1165_v39, %v1165_v39  ;;  %v4607_v59 = vadd.s32 64, %v11625_v61  ;;  %v18745_v14 = vld [vmem:[#allocation16_spill] sm:$0xff] }
 0x361   : > { %18740 = vst [vmem:[#allocation107_spill] sm:$0xff] %v12485_v21  ;;  %18741 = vst [vmem:[#allocation109_spill] sm:$0xff] %v12490_v50  ;;  %v12501_v21 = vsel %vm17688_vm7, %v12444_v3, 0.0  ;;  %v12504_v0 = vmul.f32 %v11976_v26, %v7396_v44  ;;  %vm17691_vm8 = vcmp.lt.f32.partialorder %v12469_v40, 0.011025  ;;  %v568_v29 = vsub.f32 %v11942_v1, %v11656_v53  ;;  %v18748_v50 = vld [vmem:[#allocation17_spill] sm:$0xff]  ;;  %v12552_v24 = vpop.permute.xlu1 %483 }
 0x362   : > { %18742 = vst [vmem:[#allocation38_spill] sm:$0xff] %v12493_v41  ;;  %18743 = vst [vmem:[#allocation78_spill] sm:$0xff] %v12501_v21  ;;  %vm17761_vm14 = vcmp.lt.f32.partialorder %v12475_v57, 0.011025  ;;  %vm17689_vm4 = vcmp.gt.f32.partialorder %v12469_v40, 0.02405601  ;;  %v569_v54 = vsub.f32 %v11942_v1, %v11663_v43  ;;  %v12516_v5 = vadd.f32 %v1228_v2, %v18745_v14 }
 0x363   : > { %18744 = vst [vmem:[#allocation82_spill] sm:$0xff] %v12504_v0  ;;  %vm17690_vm2 = vcmp.gt.f32.partialorder %v12475_v57, 0.02405601  ;;  %v7405_v39 = vsel %vm4679_vm1, 1.0, %v18667_v60  ;;  %v1150_v44 = vsub.f32 %v1029_v32, %v11691_v38  ;;  %v1151_v3 = vsub.f32 %v1029_v32, %v11698_v12 }
 0x364   : > { %18746 = vst [vmem:[#allocation3_spill] sm:$0xff] %v12516_v5  ;;  %v12523_v21 = vsel %vm17691_vm8, %v12493_v41, 0.0  ;;  %v12526_v47 = vadd.f32 %v1229_v58, %v18748_v50  ;;  %v4640_v62 = vadd.s32 %v11922_v6, %v4607_v59  ;;  %v4616_v1 = vadd.s32 136, %v11625_v61 }
 0x365   : > { %18747 = vst [vmem:[#allocation50_spill] sm:$0xff] %v12523_v21  ;;  %v12533_v14 = vsel %vm17761_vm14, %v12504_v0, 0.0  ;;  %v12538_v32 = vsel %vm17689_vm4, %v12493_v41, 0.0  ;;  %v12543_v2 = vsel %vm17690_vm2, %v12504_v0, 0.0  ;;  %v632_v50 = vmul.f32 %v568_v29, %v568_v29 }
 0x366   : > { %18749 = vst [vmem:[#allocation51_spill] sm:$0xff] %v12526_v47  ;;  %18750 = vst [vmem:[#allocation85_spill] sm:$0xff] %v12533_v14  ;;  %v12546_v58 = vmul.f32 %v11972_v25, %v7405_v39  ;;  %v633_v59 = vmul.f32 %v569_v54, %v569_v54  ;;  %v837_v21 = vsub.f32 %v11966_v35, %v11659_v28  ;;  %vm17694_vm1 = vcmp.lt.f32.partialorder %v12516_v5, 0.011025 }
 0x367   : > { %18751 = vst [vmem:[#allocation86_spill] sm:$0xff] %v12538_v32  ;;  %18752 = vst [vmem:[#allocation12_spill] sm:$0xff] %v12543_v2  ;;  %v838_v14 = vsub.f32 %v11966_v35, %v11668_v48  ;;  %v12555_v40 = vmul.f32 %v11976_v26, %v7405_v39  ;;  %v1214_v57 = vmul.f32 %v1150_v44, %v1150_v44  ;;  %vm17699_vm7 = vcmp.lt.f32.partialorder %v12526_v47, 0.011025  ;;  %v12593_v32 = vpop.permute.xlu1 %759 }
 0x368   : > { %18753 = vst [vmem:[#allocation4_spill] sm:$0xff] %v12546_v58  ;;  %v1215_v41 = vmul.f32 %v1151_v3, %v1151_v3  ;;  %v839_v29 = vsub.f32 %v12024_v22, %v11659_v28  ;;  %vm4672_vm4 = vcmp.lt.s32.totalorder %v4640_v62, 300  ;;  %v4649_v54 = vadd.s32 %v11922_v6, %v4616_v1 }
 0x369   : > { %18754 = vst [vmem:[#allocation90_spill] sm:$0xff] %v12555_v40  ;;  %vm17697_vm2 = vcmp.gt.f32.partialorder %v12516_v5, 0.02405601  ;;  %v840_v35 = vsub.f32 %v12024_v22, %v11668_v48  ;;  %v1168_v39 = vsub.f32 %v12070_v31, %v11691_v38  ;;  %v1169_v44 = vsub.f32 %v12070_v31, %v11698_v12 }
 0x36a   : > { %v12572_v3 = vsel %vm17694_vm1, %v12546_v58, 0.0  ;;  %vm17698_vm8 = vcmp.gt.f32.partialorder %v12526_v47, 0.02405601  ;;  %v901_v62 = vmul.f32 %v837_v21, %v837_v21  ;;  %v902_v1 = vmul.f32 %v838_v14, %v838_v14 }
 0x36b   : > { %18755 = vst [vmem:[#allocation26_spill] sm:$0xff] %v12572_v3  ;;  %v12578_v0 = vsel %vm17699_vm7, %v12555_v40, 0.0  ;;  %v7398_v22 = vsel %vm4672_vm4, 1.0, %v18667_v60  ;;  %v12582_v2 = vadd.f32 %v1214_v57, %v12164_v15  ;;  %v12585_v31 = vadd.f32 %v1215_v41, %v12171_v23 }
 0x36c   : > { %18756 = vst [vmem:[#allocation36_spill] sm:$0xff] %v12578_v0  ;;  %v12590_v3 = vsel %vm17697_vm2, %v12546_v58, 0.0  ;;  %v903_v21 = vmul.f32 %v839_v29, %v839_v29  ;;  %vm4681_vm1 = vcmp.lt.s32.totalorder %v4649_v54, 300  ;;  %v4618_v14 = vadd.s32 152, %v11625_v61 }
 0x36d   : > { %18757 = vst [vmem:[#allocation16_spill] sm:$0xff] %v12582_v2  ;;  %18758 = vst [vmem:[#allocation17_spill] sm:$0xff] %v12585_v31  ;;  %v12598_v0 = vsel %vm17698_vm8, %v12555_v40, 0.0  ;;  %v904_v15 = vmul.f32 %v840_v35, %v840_v35  ;;  %v1232_v57 = vmul.f32 %v1168_v39, %v1168_v39  ;;  %v1233_v23 = vmul.f32 %v1169_v44, %v1169_v44 }
 0x36e   : > { %18759 = vst [vmem:[#allocation110_spill] sm:$0xff] %v12590_v3  ;;  %18760 = vst [vmem:[#allocation111_spill] sm:$0xff] %v12598_v0  ;;  %v12600_v41 = vadd.f32 %v901_v62, %v632_v50  ;;  %v12602_v10 = vadd.f32 %v902_v1, %v633_v59  ;;  %v12605_v5 = vmul.f32 %v11972_v25, %v7398_v22  ;;  %vm17704_vm4 = vcmp.lt.f32.partialorder %v12582_v2, 0.011025  ;;  %v18764_v1 = vld [vmem:[#allocation77_spill] sm:$0xff] }
 0x36f   : > { %v12608_v29 = vmul.f32 %v11976_v26, %v7398_v22  ;;  %vm17711_vm2 = vcmp.lt.f32.partialorder %v12585_v31, 0.011025  ;;  %v7407_v54 = vsel %vm4681_vm1, 1.0, %v18667_v60  ;;  %v1172_v35 = vsub.f32 %v12285_v16, %v11691_v38 }
 0x370   : > { %18761 = vst [vmem:[#allocation112_spill] sm:$0xff] %v12605_v5  ;;  %v967_v50 = vadd.f32 %v903_v21, %v12100_v51  ;;  %vm17709_vm8 = vcmp.gt.f32.partialorder %v12582_v2, 0.02405601  ;;  %v4651_v59 = vadd.s32 %v11922_v6, %v4618_v14  ;;  %v1173_v39 = vsub.f32 %v12285_v16, %v11698_v12 }
 0x371   : > { %18762 = vst [vmem:[#allocation113_spill] sm:$0xff] %v12608_v29  ;;  %v968_v44 = vadd.f32 %v904_v15, %v12102_v45  ;;  %vm17710_vm7 = vcmp.gt.f32.partialorder %v12585_v31, 0.02405601  ;;  %v12623_v62 = vadd.f32 %v1232_v57, %v11819_v46  ;;  %v12626_v22 = vadd.f32 %v1233_v23, %v18764_v1  ;;  %v12644_v46 = vpop.permute.xlu1 %763  ;;  %v18771_v15 = vld [vmem:[#allocation68_spill] sm:$0xff] }
 0x372   : > { %v12631_v51 = vsel %vm17704_vm4, %v12605_v5, 0.0  ;;  %v12636_v21 = vsel %vm17711_vm2, %v12608_v29, 0.0  ;;  %v12639_v45 = vmul.f32 %v11972_v25, %v7407_v54  ;;  %v12642_v16 = vmul.f32 %v11976_v26, %v7407_v54 }
 0x373   : > { %18763 = vst [vmem:[#allocation114_spill] sm:$0xff] %v12623_v62  ;;  %18765 = vst [vmem:[#allocation77_spill] sm:$0xff] %v12626_v22  ;;  %v12649_v14 = vsel %vm17709_vm8, %v12605_v5, 0.0  ;;  %v572_v57 = vsub.f32 %v18771_v15, %v11656_v53  ;;  %v841_v23 = vsub.f32 %v12178_v4, %v11659_v28  ;;  %v1236_v1 = vmul.f32 %v1172_v35, %v1172_v35 }
 0x374   : > { %18766 = vst [vmem:[#allocation115_spill] sm:$0xff] %v12631_v51  ;;  %18767 = vst [vmem:[#allocation116_spill] sm:$0xff] %v12636_v21  ;;  %v12658_v47 = vsel %vm17710_vm7, %v12608_v29, 0.0  ;;  %vm4683_vm1 = vcmp.lt.s32.totalorder %v4651_v59, 300  ;;  %v1237_v54 = vmul.f32 %v1173_v39, %v1173_v39  ;;  %v4609_v58 = vadd.s32 80, %v11625_v61  ;;  %v1037_v29 = vpop.permute.xlu0 %1036 }
 0x375   : > { %18768 = vst [vmem:[#allocation117_spill] sm:$0xff] %v12639_v45  ;;  %18769 = vst [vmem:[#allocation118_spill] sm:$0xff] %v12642_v16  ;;  %vm17718_vm4 = vcmp.lt.f32.partialorder %v12623_v62, 0.011025  ;;  %v573_v2 = vsub.f32 %v18771_v15, %v11663_v43  ;;  %v842_v40 = vsub.f32 %v12178_v4, %v11668_v48  ;;  %v843_v35 = vsub.f32 %v12227_v34, %v11659_v28  ;;  %v12681_v21 = vpop.permute.xlu1 %1088 }
 0x376   : > { %18770 = vst [vmem:[#allocation119_spill] sm:$0xff] %v12649_v14  ;;  %18772 = vst [vmem:[#allocation68_spill] sm:$0xff] %v12658_v47  ;;  %vm17727_vm8 = vcmp.lt.f32.partialorder %v12626_v22, 0.011025  ;;  %vm17719_vm7 = vcmp.gt.f32.partialorder %v12623_v62, 0.02405601  ;;  %v844_v59 = vsub.f32 %v12227_v34, %v11668_v48  ;;  %v636_v39 = vmul.f32 %v572_v57, %v572_v57 }
 0x377   : > { %vm17726_vm2 = vcmp.gt.f32.partialorder %v12626_v22, 0.02405601  ;;  %v905_v31 = vmul.f32 %v841_v23, %v841_v23  ;;  %v7409_v5 = vsel %vm4683_vm1, 1.0, %v18667_v60  ;;  %v12674_v15 = vadd.f32 %v1236_v1, %v967_v50 }
 0x378   : > { %v12676_v4 = vadd.f32 %v1237_v54, %v968_v44  ;;  %v4642_v0 = vadd.s32 %v11922_v6, %v4609_v58  ;;  %v1154_v3 = vsub.f32 %v1037_v29, %v11691_v38  ;;  %v1155_v47 = vsub.f32 %v1037_v29, %v11698_v12 }
 0x379   : > { %18773 = vst [vmem:[#allocation120_spill] sm:$0xff] %v12674_v15  ;;  %v12686_v34 = vsel %vm17718_vm4, %v12639_v45, 0.0  ;;  %v637_v57 = vmul.f32 %v573_v2, %v573_v2  ;;  %v906_v23 = vmul.f32 %v842_v40, %v842_v40  ;;  %v907_v50 = vmul.f32 %v843_v35, %v843_v35 }
 0x37a   : > { %18774 = vst [vmem:[#allocation121_spill] sm:$0xff] %v12676_v4  ;;  %18775 = vst [vmem:[#allocation122_spill] sm:$0xff] %v12686_v34  ;;  %v12691_v44 = vsel %vm17727_vm8, %v12642_v16, 0.0  ;;  %v12696_v58 = vsel %vm17719_vm7, %v12639_v45, 0.0  ;;  %v908_v29 = vmul.f32 %v844_v59, %v844_v59  ;;  %v12699_v1 = vmul.f32 %v11972_v25, %v7409_v5 }
 0x37b   : > { %18776 = vst [vmem:[#allocation123_spill] sm:$0xff] %v12691_v44  ;;  %18777 = vst [vmem:[#allocation124_spill] sm:$0xff] %v12696_v58  ;;  %v12704_v2 = vsel %vm17726_vm2, %v12642_v16, 0.0  ;;  %v12706_v40 = vadd.f32 %v905_v31, %v636_v39  ;;  %v12709_v54 = vmul.f32 %v11976_v26, %v7409_v5  ;;  %vm17740_vm1 = vcmp.lt.f32.partialorder %v12674_v15, 0.011025 }
 0x37c   : > { %18778 = vst [vmem:[#allocation125_spill] sm:$0xff] %v12699_v1  ;;  %18779 = vst [vmem:[#allocation126_spill] sm:$0xff] %v12704_v2  ;;  %vm17741_vm4 = vcmp.lt.f32.partialorder %v12676_v4, 0.011025  ;;  %vm4674_vm7 = vcmp.lt.s32.totalorder %v4642_v0, 300  ;;  %v1218_v35 = vmul.f32 %v1154_v3, %v1154_v3  ;;  %v1219_v59 = vmul.f32 %v1155_v47, %v1155_v47  ;;  %v12727_v0 = vpop.permute.xlu1 %493 }
 0x37d   : > { %18780 = vst [vmem:[#allocation127_spill] sm:$0xff] %v12709_v54  ;;  %v12713_v62 = vadd.f32 %v906_v23, %v637_v57  ;;  %v971_v45 = vadd.f32 %v907_v50, %v12157_v37  ;;  %v576_v22 = vsub.f32 %v12333_v9, %v11656_v53  ;;  %v4620_v31 = vadd.s32 168, %v11625_v61  ;;  %v18783_v57 = vld [vmem:[#allocation41_spill] sm:$0xff]  ;;  %v18785_v50 = vld [vmem:[#allocation42_spill] sm:$0xff] }
 0x37e   : > { %v972_v39 = vadd.f32 %v908_v29, %v12162_v18  ;;  %v12723_v5 = vsel %vm17740_vm1, %v12699_v1, 0.0  ;;  %vm17738_vm2 = vcmp.gt.f32.partialorder %v12674_v15, 0.02405601  ;;  %vm17739_vm8 = vcmp.gt.f32.partialorder %v12676_v4, 0.02405601 }
 0x37f   : > { %18781 = vst [vmem:[#allocation128_spill] sm:$0xff] %v12723_v5  ;;  %v12732_v37 = vsel %vm17741_vm4, %v12709_v54, 0.0  ;;  %v7400_v47 = vsel %vm4674_vm7, 1.0, %v18667_v60  ;;  %v577_v18 = vsub.f32 %v12333_v9, %v11663_v43  ;;  %v845_v3 = vsub.f32 %v12389_v55, %v11659_v28 }
 0x380   : > { %18782 = vst [vmem:[#allocation129_spill] sm:$0xff] %v12732_v37  ;;  %v12740_v23 = vadd.f32 %v1218_v35, %v18783_v57  ;;  %v12743_v29 = vadd.f32 %v1219_v59, %v18785_v50  ;;  %v1176_v16 = vsub.f32 %v12496_v33, %v11691_v38  ;;  %v1177_v37 = vsub.f32 %v12496_v33, %v11698_v12  ;;  %v12775_v34 = vpop.permute.xlu1 %767 }
 0x381   : > { %v12752_v5 = vsel %vm17738_vm2, %v12699_v1, 0.0  ;;  %v12757_v9 = vsel %vm17739_vm8, %v12709_v54, 0.0  ;;  %v640_v35 = vmul.f32 %v576_v22, %v576_v22  ;;  %v4653_v59 = vadd.s32 %v11922_v6, %v4620_v31 }
 0x382   : > { %18784 = vst [vmem:[#allocation41_spill] sm:$0xff] %v12740_v23  ;;  %18786 = vst [vmem:[#allocation42_spill] sm:$0xff] %v12743_v29  ;;  %v12761_v57 = vmul.f32 %v11972_v25, %v7400_v47  ;;  %v846_v50 = vsub.f32 %v12389_v55, %v11668_v48  ;;  %v847_v33 = vsub.f32 %v12433_v8, %v11659_v28  ;;  %v4611_v22 = vadd.s32 96, %v11625_v61  ;;  %v1045_v55 = vpop.permute.xlu0 %1044 }
 0x383   : > { %18787 = vst [vmem:[#allocation130_spill] sm:$0xff] %v12752_v5  ;;  %18788 = vst [vmem:[#allocation131_spill] sm:$0xff] %v12757_v9  ;;  %v848_v15 = vsub.f32 %v12433_v8, %v11668_v48  ;;  %v12770_v1 = vmul.f32 %v11976_v26, %v7400_v47  ;;  %v641_v4 = vmul.f32 %v577_v18, %v577_v18  ;;  %vm17748_vm7 = vcmp.lt.f32.partialorder %v12740_v23, 0.011025 }
 0x384   : > { %18789 = vst [vmem:[#allocation132_spill] sm:$0xff] %v12761_v57  ;;  %v909_v54 = vmul.f32 %v845_v3, %v845_v3  ;;  %vm17760_vm2 = vcmp.lt.f32.partialorder %v12743_v29, 0.011025  ;;  %v1240_v31 = vmul.f32 %v1176_v16, %v1176_v16  ;;  %v1241_v44 = vmul.f32 %v1177_v37, %v1177_v37 }
 0x385   : > { %18790 = vst [vmem:[#allocation133_spill] sm:$0xff] %v12770_v1  ;;  %vm17746_vm8 = vcmp.gt.f32.partialorder %v12740_v23, 0.02405601  ;;  %vm17747_vm1 = vcmp.gt.f32.partialorder %v12743_v29, 0.02405601  ;;  %vm4685_vm4 = vcmp.lt.s32.totalorder %v4653_v59, 300  ;;  %v1158_v8 = vsub.f32 %v1045_v55, %v11691_v38 }
 0x386   : > { %v910_v47 = vmul.f32 %v846_v50, %v846_v50  ;;  %v911_v18 = vmul.f32 %v847_v33, %v847_v33  ;;  %v912_v3 = vmul.f32 %v848_v15, %v848_v15  ;;  %v1159_v9 = vsub.f32 %v1045_v55, %v11698_v12 }
 0x387   : > { %v12784_v16 = vsel %vm17748_vm7, %v12761_v57, 0.0  ;;  %v12789_v37 = vsel %vm17760_vm2, %v12770_v1, 0.0  ;;  %v580_v59 = vsub.f32 %v12552_v24, %v11656_v53  ;;  %v4644_v5 = vadd.s32 %v11922_v6, %v4611_v22 }
 0x388   : > { %18791 = vst [vmem:[#allocation134_spill] sm:$0xff] %v12784_v16  ;;  %18792 = vst [vmem:[#allocation135_spill] sm:$0xff] %v12789_v37  ;;  %v7411_v50 = vsel %vm4685_vm4, 1.0, %v18667_v60  ;;  %v12795_v15 = vadd.f32 %v1240_v31, %v971_v45  ;;  %v12797_v33 = vadd.f32 %v1241_v44, %v972_v39  ;;  %v581_v55 = vsub.f32 %v12552_v24, %v11663_v43  ;;  %v12817_v31 = vpop.permute.xlu1 %771 }
 0x389   : > { %v12804_v2 = vsel %vm17746_vm8, %v12761_v57, 0.0  ;;  %v12809_v58 = vsel %vm17747_vm1, %v12770_v1, 0.0  ;;  %v12811_v22 = vadd.f32 %v909_v54, %v640_v35  ;;  %v1222_v37 = vmul.f32 %v1158_v8, %v1158_v8 }
 0x38a   : > { %18793 = vst [vmem:[#allocation136_spill] sm:$0xff] %v12795_v15  ;;  %18794 = vst [vmem:[#allocation137_spill] sm:$0xff] %v12797_v33  ;;  %v12813_v45 = vadd.f32 %v910_v47, %v641_v4  ;;  %v975_v44 = vadd.f32 %v911_v18, %v12166_v11  ;;  %v976_v39 = vadd.f32 %v912_v3, %v12168_v52  ;;  %vm4676_vm4 = vcmp.lt.s32.totalorder %v4644_v5, 300 }
 0x38b   : > { %18795 = vst [vmem:[#allocation138_spill] sm:$0xff] %v12804_v2  ;;  %18796 = vst [vmem:[#allocation139_spill] sm:$0xff] %v12809_v58  ;;  %v1223_v24 = vmul.f32 %v1159_v9, %v1159_v9  ;;  %v12820_v23 = vmul.f32 %v11972_v25, %v7411_v50  ;;  %v12823_v57 = vmul.f32 %v11976_v26, %v7411_v50  ;;  %v4622_v54 = vadd.s32 184, %v11625_v61 }
 0x38c   : > { %vm17749_vm8 = vcmp.lt.f32.partialorder %v12795_v15, 0.011025  ;;  %vm17753_vm1 = vcmp.lt.f32.partialorder %v12797_v33, 0.011025  ;;  %v644_v4 = vmul.f32 %v580_v59, %v580_v59  ;;  %v645_v11 = vmul.f32 %v581_v55, %v581_v55  ;;  %v1097_v55 = vpop.permute.xlu1 %1096 }
 0x38d   : > { %18797 = vst [vmem:[#allocation140_spill] sm:$0xff] %v12820_v23  ;;  %18798 = vst [vmem:[#allocation141_spill] sm:$0xff] %v12823_v57  ;;  %vm17752_vm7 = vcmp.gt.f32.partialorder %v12795_v15, 0.02405601  ;;  %v12830_v52 = vadd.f32 %v1222_v37, %v12365_v7  ;;  %v849_v9 = vsub.f32 %v12593_v32, %v11659_v28  ;;  %v1180_v35 = vsub.f32 %v12681_v21, %v11691_v38 }
 0x38e   : > { %v7402_v5 = vsel %vm4676_vm4, 1.0, %v18667_v60  ;;  %v12838_v8 = vadd.f32 %v1223_v24, %v12367_v19  ;;  %v1181_v47 = vsub.f32 %v12681_v21, %v11698_v12  ;;  %v4613_v18 = vadd.s32 112, %v11625_v61 }
 0x38f   : > { %18799 = vst [vmem:[#allocation142_spill] sm:$0xff] %v12830_v52  ;;  %v12846_v7 = vsel %vm17749_vm8, %v12820_v23, 0.0  ;;  %v12851_v3 = vsel %vm17753_vm1, %v12823_v57, 0.0  ;;  %vm17762_vm4 = vcmp.gt.f32.partialorder %v12797_v33, 0.02405601  ;;  %v4655_v19 = vadd.s32 %v11922_v6, %v4622_v54 }
 0x390   : > { %18800 = vst [vmem:[#allocation143_spill] sm:$0xff] %v12838_v8  ;;  %18801 = vst [vmem:[#allocation144_spill] sm:$0xff] %v12846_v7  ;;  %v12858_v21 = vsel %vm17752_vm7, %v12820_v23, 0.0  ;;  %v850_v37 = vsub.f32 %v12593_v32, %v11668_v48  ;;  %v851_v59 = vsub.f32 %v12644_v46, %v11659_v28  ;;  %v852_v50 = vsub.f32 %v12644_v46, %v11668_v48  ;;  %v1053_v23 = vpop.permute.xlu0 %1052  ;;  %v12904_v33 = vpop.permute.xlu1 %503 }
 0x391   : > { %18802 = vst [vmem:[#allocation145_spill] sm:$0xff] %v12851_v3  ;;  %18803 = vst [vmem:[#allocation146_spill] sm:$0xff] %v12858_v21  ;;  %v12867_v24 = vmul.f32 %v11972_v25, %v7402_v5  ;;  %v12870_v54 = vmul.f32 %v11976_v26, %v7402_v5  ;;  %vm17777_vm8 = vcmp.lt.f32.partialorder %v12830_v52, 0.011025  ;;  %v1244_v15 = vmul.f32 %v1180_v35, %v1180_v35 }
 0x392   : > { %vm17802_vm7 = vcmp.lt.f32.partialorder %v12838_v8, 0.011025  ;;  %vm17775_vm1 = vcmp.gt.f32.partialorder %v12830_v52, 0.02405601  ;;  %v1245_v32 = vmul.f32 %v1181_v47, %v1181_v47  ;;  %v4646_v29 = vadd.s32 %v11922_v6, %v4613_v18 }
 0x393   : > { %18804 = vst [vmem:[#allocation147_spill] sm:$0xff] %v12867_v24  ;;  %18805 = vst [vmem:[#allocation148_spill] sm:$0xff] %v12870_v54  ;;  %v12879_v46 = vsel %vm17762_vm4, %v12823_v57, 0.0  ;;  %v913_v1 = vmul.f32 %v849_v9, %v849_v9  ;;  %vm4687_vm2 = vcmp.lt.s32.totalorder %v4655_v19, 300  ;;  %v1162_v5 = vsub.f32 %v1053_v23, %v11691_v38 }
 0x394   : > { %18806 = vst [vmem:[#allocation149_spill] sm:$0xff] %v12879_v46  ;;  %vm17776_vm14 = vcmp.gt.f32.partialorder %v12838_v8, 0.02405601  ;;  %v914_v35 = vmul.f32 %v850_v37, %v850_v37  ;;  %v915_v3 = vmul.f32 %v851_v59, %v851_v59  ;;  %v916_v7 = vmul.f32 %v852_v50, %v852_v50 }
 0x395   : > { %v12886_v47 = vsel %vm17777_vm8, %v12867_v24, 0.0  ;;  %v12891_v18 = vsel %vm17802_vm7, %v12870_v54, 0.0  ;;  %v12896_v9 = vsel %vm17775_vm1, %v12867_v24, 0.0  ;;  %v12898_v19 = vadd.f32 %v1244_v15, %v975_v44 }
 0x396   : > { %18807 = vst [vmem:[#allocation150_spill] sm:$0xff] %v12886_v47  ;;  %18808 = vst [vmem:[#allocation151_spill] sm:$0xff] %v12891_v18  ;;  %v7413_v37 = vsel %vm4687_vm2, 1.0, %v18667_v60  ;;  %v12901_v59 = vadd.f32 %v1245_v32, %v976_v39  ;;  %vm4678_vm4 = vcmp.lt.s32.totalorder %v4646_v29, 300  ;;  %v1163_v50 = vsub.f32 %v1053_v23, %v11698_v12 }
 0x397   : > { %18809 = vst [vmem:[#allocation152_spill] sm:$0xff] %v12896_v9  ;;  %18810 = vst [vmem:[#allocation153_spill] sm:$0xff] %v12898_v19  ;;  %v12909_v57 = vsel %vm17776_vm14, %v12870_v54, 0.0  ;;  %v584_v52 = vsub.f32 %v12727_v0, %v11656_v53  ;;  %v585_v15 = vsub.f32 %v12727_v0, %v11663_v43  ;;  %v1226_v44 = vmul.f32 %v1162_v5, %v1162_v5 }
 0x398   : > { %18811 = vst [vmem:[#allocation154_spill] sm:$0xff] %v12901_v59  ;;  %18812 = vst [vmem:[#allocation155_spill] sm:$0xff] %v12909_v57  ;;  %v12915_v24 = vadd.f32 %v913_v1, %v644_v4  ;;  %v12917_v39 = vadd.f32 %v914_v35, %v645_v11  ;;  %v979_v23 = vadd.f32 %v915_v3, %v12173_v56  ;;  %v7404_v54 = vsel %vm4678_vm4, 1.0, %v18667_v60  ;;  %v18815_v4 = vld [vmem:[#allocation61_spill] sm:$0xff]  ;;  %v776_v35 = vpop.permute.xlu1 %775  ;;  %v1061_v57 = vpop.permute.xlu0 %1060 }
 0x399   : > { %v980_v29 = vadd.f32 %v916_v7, %v12180_v13  ;;  %v12922_v32 = vmul.f32 %v11972_v25, %v7413_v37  ;;  %v12925_v8 = vmul.f32 %v11976_v26, %v7413_v37  ;;  %v4624_v46 = vadd.s32 200, %v11625_v61 }
 0x39a   : > { %vm17784_vm2 = vcmp.lt.f32.partialorder %v12898_v19, 0.011025  ;;  %vm17785_vm1 = vcmp.lt.f32.partialorder %v12901_v59, 0.011025  ;;  %v1227_v1 = vmul.f32 %v1163_v50, %v1163_v50  ;;  %v853_v56 = vsub.f32 %v12775_v34, %v11659_v28 }
 0x39b   : > { %18813 = vst [vmem:[#allocation156_spill] sm:$0xff] %v12922_v32  ;;  %18814 = vst [vmem:[#allocation157_spill] sm:$0xff] %v12925_v8  ;;  %vm17778_vm14 = vcmp.gt.f32.partialorder %v12898_v19, 0.02405601  ;;  %v648_v13 = vmul.f32 %v584_v52, %v584_v52  ;;  %v649_v0 = vmul.f32 %v585_v15, %v585_v15  ;;  %v12935_v11 = vadd.f32 %v1226_v44, %v18815_v4  ;;  %v18821_v44 = vld [vmem:[#allocation64_spill] sm:$0xff] }
 0x39c   : > { %vm17781_vm8 = vcmp.gt.f32.partialorder %v12901_v59, 0.02405601  ;;  %v12939_v7 = vmul.f32 %v11972_v25, %v7404_v54  ;;  %v1184_v3 = vsub.f32 %v1097_v55, %v11691_v38  ;;  %v1185_v5 = vsub.f32 %v1097_v55, %v11698_v12 }
 0x39d   : > { %18816 = vst [vmem:[#allocation61_spill] sm:$0xff] %v12935_v11  ;;  %v12946_v37 = vsel %vm17784_vm2, %v12922_v32, 0.0  ;;  %v12951_v52 = vsel %vm17785_vm1, %v12925_v8, 0.0  ;;  %v854_v50 = vsub.f32 %v12775_v34, %v11668_v48  ;;  %v4657_v15 = vadd.s32 %v11922_v6, %v4624_v46 }
 0x39e   : > { %18817 = vst [vmem:[#allocation158_spill] sm:$0xff] %v12939_v7  ;;  %18818 = vst [vmem:[#allocation159_spill] sm:$0xff] %v12946_v37  ;;  %v12959_v55 = vsel %vm17778_vm14, %v12922_v32, 0.0  ;;  %v12962_v4 = vadd.f32 %v1227_v1, %v18821_v44  ;;  %v917_v21 = vmul.f32 %v853_v56, %v853_v56  ;;  %v855_v37 = vsub.f32 %v12817_v31, %v11659_v28 }
 0x39f   : > { %18819 = vst [vmem:[#allocation160_spill] sm:$0xff] %v12951_v52  ;;  %18820 = vst [vmem:[#allocation161_spill] sm:$0xff] %v12959_v55  ;;  %v12969_v52 = vsel %vm17781_vm8, %v12925_v8, 0.0  ;;  %v12972_v34 = vmul.f32 %v11976_v26, %v7404_v54  ;;  %vm17800_vm4 = vcmp.lt.f32.partialorder %v12935_v11, 0.011025  ;;  %v856_v46 = vsub.f32 %v12817_v31, %v11668_v48  ;;  %v780_v8 = vpop.permute.xlu1 %779 }
 0x3a0   : > { %18822 = vst [vmem:[#allocation64_spill] sm:$0xff] %v12962_v4  ;;  %18823 = vst [vmem:[#allocation162_spill] sm:$0xff] %v12969_v52  ;;  %v12980_v1 = vsel %vm17800_vm4, %v12939_v7, 0.0  ;;  %vm17798_vm14 = vcmp.gt.f32.partialorder %v12935_v11, 0.02405601  ;;  %v1248_v56 = vmul.f32 %v1184_v3, %v1184_v3  ;;  %v1249_v44 = vmul.f32 %v1185_v5, %v1185_v5 }
 0x3a1   : > { %18824 = vst [vmem:[#allocation163_spill] sm:$0xff] %v12972_v34  ;;  %18825 = vst [vmem:[#allocation164_spill] sm:$0xff] %v12980_v1  ;;  %v12986_v19 = vsel %vm17798_vm14, %v12939_v7, 0.0  ;;  %v918_v54 = vmul.f32 %v854_v50, %v854_v50  ;;  %vm4689_vm8 = vcmp.lt.s32.totalorder %v4657_v15, 300  ;;  %v4615_v59 = vadd.s32 128, %v11625_v61 }
 0x3a2   : > { %18826 = vst [vmem:[#allocation165_spill] sm:$0xff] %v12986_v19  ;;  %vm17801_vm2 = vcmp.lt.f32.partialorder %v12962_v4, 0.011025  ;;  %vm17799_vm1 = vcmp.gt.f32.partialorder %v12962_v4, 0.02405601  ;;  %v12991_v31 = vadd.f32 %v917_v21, %v648_v13  ;;  %v919_v32 = vmul.f32 %v855_v37, %v855_v37  ;;  %v1069_v13 = vpop.permute.xlu0 %1068 }
 0x3a3   : > { %v12996_v3 = vsel %vm17801_vm2, %v12972_v34, 0.0  ;;  %v920_v5 = vmul.f32 %v856_v46, %v856_v46  ;;  %v588_v50 = vsub.f32 %v12904_v33, %v11656_v53  ;;  %v857_v15 = vsub.f32 %v776_v35, %v11659_v28 }
 0x3a4   : > { %18827 = vst [vmem:[#allocation166_spill] sm:$0xff] %v12996_v3  ;;  %v7415_v11 = vsel %vm4689_vm8, 1.0, %v18667_v60  ;;  %v13002_v7 = vadd.f32 %v1248_v56, %v979_v23  ;;  %v13004_v52 = vadd.f32 %v1249_v44, %v980_v29  ;;  %v1166_v21 = vsub.f32 %v1061_v57, %v11691_v38  ;;  %v18831_v44 = vld [vmem:[#allocation79_spill] sm:$0xff] }
 0x3a5   : > { %v13010_v37 = vsel %vm17799_vm1, %v12972_v34, 0.0  ;;  %v13012_v46 = vadd.f32 %v918_v54, %v649_v0  ;;  %v4648_v55 = vadd.s32 %v11922_v6, %v4615_v59  ;;  %v4617_v19 = vadd.s32 144, %v11625_v61 }
 0x3a6   : > { %18828 = vst [vmem:[#allocation167_spill] sm:$0xff] %v13002_v7  ;;  %18829 = vst [vmem:[#allocation168_spill] sm:$0xff] %v13004_v52  ;;  %v13017_v3 = vadd.f32 %v919_v32, %v12182_v17  ;;  %v589_v23 = vsub.f32 %v12904_v33, %v11663_v43  ;;  %v858_v29 = vsub.f32 %v776_v35, %v11668_v48  ;;  %vm17813_vm8 = vcmp.lt.f32.partialorder %v13002_v7, 0.011025  ;;  %v1105_v33 = vpop.permute.xlu1 %1104 }
 0x3a7   : > { %18830 = vst [vmem:[#allocation169_spill] sm:$0xff] %v13010_v37  ;;  %v1167_v56 = vsub.f32 %v1061_v57, %v11698_v12  ;;  %v13024_v4 = vadd.f32 %v920_v5, %v18831_v44  ;;  %v13027_v0 = vmul.f32 %v11972_v25, %v7415_v11  ;;  %v652_v54 = vmul.f32 %v588_v50, %v588_v50  ;;  %v1077_v37 = vpop.permute.xlu0 %1076 }
 0x3a8   : > { %v921_v59 = vmul.f32 %v857_v15, %v857_v15  ;;  %v13030_v34 = vmul.f32 %v11976_v26, %v7415_v11  ;;  %vm17814_vm14 = vcmp.lt.f32.partialorder %v13004_v52, 0.011025  ;;  %v1230_v17 = vmul.f32 %v1166_v21, %v1166_v21 }
 0x3a9   : > { %18832 = vst [vmem:[#allocation79_spill] sm:$0xff] %v13027_v0  ;;  %vm4680_vm1 = vcmp.lt.s32.totalorder %v4648_v55, 300  ;;  %v4650_v57 = vadd.s32 %v11922_v6, %v4617_v19  ;;  %v1170_v32 = vsub.f32 %v1069_v13, %v11691_v38  ;;  %v1171_v35 = vsub.f32 %v1069_v13, %v11698_v12 }
 0x3aa   : > { %18833 = vst [vmem:[#allocation170_spill] sm:$0xff] %v13030_v34  ;;  %v653_v50 = vmul.f32 %v589_v23, %v589_v23  ;;  %v922_v15 = vmul.f32 %v858_v29, %v858_v29  ;;  %v1231_v44 = vmul.f32 %v1167_v56, %v1167_v56  ;;  %v859_v11 = vsub.f32 %v780_v8, %v11659_v28  ;;  %v18836_v56 = vld [vmem:[#allocation72_spill] sm:$0xff] }
 0x3ab   : > { %vm17809_vm4 = vcmp.gt.f32.partialorder %v13002_v7, 0.02405601  ;;  %vm17810_vm2 = vcmp.gt.f32.partialorder %v13004_v52, 0.02405601  ;;  %v13044_v21 = vadd.f32 %v921_v59, %v652_v54  ;;  %v860_v19 = vsub.f32 %v780_v8, %v11668_v48 }
 0x3ac   : > { %v13050_v13 = vsel %vm17813_vm8, %v13027_v0, 0.0  ;;  %v13055_v23 = vsel %vm17814_vm14, %v13030_v34, 0.0  ;;  %v7406_v29 = vsel %vm4680_vm1, 1.0, %v18667_v60  ;;  %v13060_v9 = vadd.f32 %v1230_v17, %v18836_v56 }
 0x3ad   : > { %18834 = vst [vmem:[#allocation171_spill] sm:$0xff] %v13050_v13  ;;  %18835 = vst [vmem:[#allocation172_spill] sm:$0xff] %v13055_v23  ;;  %vm4682_vm7 = vcmp.lt.s32.totalorder %v4650_v57, 300  ;;  %v1234_v54 = vmul.f32 %v1170_v32, %v1170_v32  ;;  %v1235_v59 = vmul.f32 %v1171_v35, %v1171_v35  ;;  %v4626_v8 = vadd.s32 216, %v11625_v61  ;;  %v18840_v23 = vld [vmem:[#allocation76_spill] sm:$0xff]  ;;  %v514_v32 = vpop.permute.xlu1 %513 }
 0x3ae   : > { %18837 = vst [vmem:[#allocation72_spill] sm:$0xff] %v13060_v9  ;;  %v13068_v13 = vsel %vm17809_vm4, %v13027_v0, 0.0  ;;  %v13073_v55 = vsel %vm17810_vm2, %v13030_v34, 0.0  ;;  %v13076_v17 = vadd.f32 %v1231_v44, %v18840_v23  ;;  %v923_v56 = vmul.f32 %v859_v11, %v859_v11  ;;  %v1085_v23 = vpop.permute.xlu0 %1084 }
 0x3af   : > { %v13037_v5 = vpop.f32.mrb[0].mxu0  ;;  %18838 = vst [vmem:[#allocation173_spill] sm:$0xff] %v13068_v13  ;;  %18839 = vst [vmem:[#allocation174_spill] sm:$0xff] %v13073_v55  ;;  %v13080_v47 = vadd.f32 %v922_v15, %v653_v50  ;;  %v13083_v58 = vmul.f32 %v11972_v25, %v7406_v29  ;;  %v13086_v7 = vmul.f32 %v11976_v26, %v7406_v29  ;;  %vm17815_vm1 = vcmp.lt.f32.partialorder %v13060_v9, 0.011025 }
 0x3b0   : > { %v13040_v1 = vpop.f32.mrb[1].mxu0  ;;  %18841 = vst [vmem:[#allocation76_spill] sm:$0xff] %v13076_v17  ;;  %v924_v0 = vmul.f32 %v860_v19, %v860_v19  ;;  %v7408_v52 = vsel %vm4682_vm7, 1.0, %v18667_v60  ;;  %v1188_v44 = vsub.f32 %v1105_v33, %v11691_v38  ;;  %v1189_v11 = vsub.f32 %v1105_v33, %v11698_v12 }
 0x3b1   : > { %18842 = vst [vmem:[#allocation175_spill] sm:$0xff] %v13083_v58  ;;  %18843 = vst [vmem:[#allocation176_spill] sm:$0xff] %v13086_v7  ;;  %vm17816_vm4 = vcmp.gt.f32.partialorder %v13060_v9, 0.02405601  ;;  %v13095_v50 = vadd.f32 %v1234_v54, %v12600_v41  ;;  %v13098_v15 = vadd.f32 %v1235_v59, %v12602_v10  ;;  %v4659_v19 = vadd.s32 %v11922_v6, %v4626_v8  ;;  %v18847_v41 = vld [vmem:[#allocation106_spill] sm:$0xff] }
 0x3b2   : > { %vm17817_vm2 = vcmp.lt.f32.partialorder %v13076_v17, 0.011025  ;;  %vm17846_vm7 = vcmp.gt.f32.partialorder %v13076_v17, 0.02405601  ;;  %v13106_v57 = vadd.f32 %v923_v56, %v12244_v20  ;;  %v1174_v33 = vsub.f32 %v1077_v37, %v11691_v38 }
 0x3b3   : > { %v13063_v18 = vpop.f32.mrb[2].mxu0  ;;  %18844 = vst [vmem:[#allocation177_spill] sm:$0xff] %v13095_v50  ;;  %18845 = vst [vmem:[#allocation178_spill] sm:$0xff] %v13098_v15  ;;  %v13114_v10 = vsel %vm17815_vm1, %v13083_v58, 0.0  ;;  %v13117_v54 = vadd.f32 %v924_v0, %v18847_v41  ;;  %v13120_v59 = vmul.f32 %v11972_v25, %v7408_v52  ;;  %v13123_v8 = vmul.f32 %v11976_v26, %v7408_v52  ;;  %v784_v0 = vpop.permute.xlu1 %783 }
 0x3b4   : > { %v13078_v35 = vpop.f32.mrb[3].mxu0  ;;  %18846 = vst [vmem:[#allocation179_spill] sm:$0xff] %v13114_v10  ;;  %v13128_v20 = vsel %vm17817_vm2, %v13086_v7, 0.0  ;;  %v13133_v56 = vsel %vm17816_vm4, %v13083_v58, 0.0  ;;  %v1252_v10 = vmul.f32 %v1188_v44, %v1188_v44  ;;  %v1253_v55 = vmul.f32 %v1189_v11, %v1189_v11  ;;  %v1093_v11 = vpop.permute.xlu0 %1092 }
 0x3b5   : > { %18848 = vst [vmem:[#allocation106_spill] sm:$0xff] %v13120_v59  ;;  %18849 = vst [vmem:[#allocation180_spill] sm:$0xff] %v13123_v8  ;;  %vm17847_vm8 = vcmp.lt.f32.partialorder %v13095_v50, 0.011025  ;;  %vm17848_vm14 = vcmp.lt.f32.partialorder %v13098_v15, 0.011025  ;;  %v1175_v52 = vsub.f32 %v1077_v37, %v11698_v12  ;;  %v1238_v44 = vmul.f32 %v1174_v33, %v1174_v33 }
 0x3b6   : > { %18850 = vst [vmem:[#allocation181_spill] sm:$0xff] %v13128_v20  ;;  %18851 = vst [vmem:[#allocation182_spill] sm:$0xff] %v13133_v56  ;;  %vm4691_vm1 = vcmp.lt.s32.totalorder %v4659_v19, 300  ;;  %v13143_v20 = vsel %vm17846_vm7, %v13086_v7, 0.0  ;;  %vm17834_vm4 = vcmp.gt.f32.partialorder %v13095_v50, 0.02405601  ;;  %v13171_v7 = vadd.f32 %v1252_v10, %v13017_v3 }
 0x3b7   : > { %v13101_v29 = vpop.f32.mrb[4].mxu0  ;;  %18852 = vst [vmem:[#allocation183_spill] sm:$0xff] %v13143_v20  ;;  %vm17845_vm2 = vcmp.gt.f32.partialorder %v13098_v15, 0.02405601  ;;  %v13152_v19 = vsel %vm17847_vm8, %v13120_v59, 0.0  ;;  %v13157_v37 = vsel %vm17848_vm14, %v13123_v8, 0.0  ;;  %v1239_v13 = vmul.f32 %v1175_v52, %v1175_v52 }
 0x3b8   : > { %v13109_v34 = vpop.f32.mrb[5].mxu0  ;;  %18853 = vst [vmem:[#allocation184_spill] sm:$0xff] %v13152_v19  ;;  %18854 = vst [vmem:[#allocation185_spill] sm:$0xff] %v13157_v37  ;;  %v13162_v17 = vsel %vm17834_vm4, %v13120_v59, 0.0  ;;  %v13167_v33 = vsel %vm17845_vm2, %v13123_v8, 0.0  ;;  %v7417_v58 = vsel %vm4691_vm1, 1.0, %v18667_v60  ;;  %v13174_v19 = vadd.f32 %v1253_v55, %v13024_v4  ;;  %v788_v55 = vpop.permute.xlu1 %787 }
 0x3b9   : > { %18855 = vst [vmem:[#allocation186_spill] sm:$0xff] %v13162_v17  ;;  %18856 = vst [vmem:[#allocation187_spill] sm:$0xff] %v13167_v33  ;;  %v1178_v37 = vsub.f32 %v1085_v23, %v11691_v38  ;;  %v592_v50 = vsub.f32 %v514_v32, %v11656_v53  ;;  %v1179_v59 = vsub.f32 %v1085_v23, %v11698_v12  ;;  %v3957_v8 = vmul.f32 2.0, %v13037_v5 }
 0x3ba   : > { %18857 = vst [vmem:[#allocation188_spill] sm:$0xff] %v13171_v7  ;;  %18858 = vst [vmem:[#allocation189_spill] sm:$0xff] %v13174_v19  ;;  %v861_v17 = vsub.f32 %v784_v0, %v11659_v28  ;;  %v593_v33 = vsub.f32 %v514_v32, %v11663_v43  ;;  %v862_v3 = vsub.f32 %v784_v0, %v11668_v48  ;;  %v3958_v5 = vmul.f32 2.0, %v13040_v1  ;;  %v1101_v0 = vpop.permute.xlu0 %1100 }
 0x3bb   : > { %v13138_v41 = vpop.f32.mrb[6].mxu0  ;;  %v1182_v4 = vsub.f32 %v1093_v11, %v11691_v38  ;;  %v13189_v52 = vmul.f32 %v11972_v25, %v7417_v58  ;;  %v13192_v53 = vmul.f32 %v11976_v26, %v7417_v58  ;;  %v13195_v23 = vadd.f32 %v1238_v44, %v12706_v40 }
 0x3bc   : > { %v13147_v9 = vpop.f32.mrb[7].mxu0  ;;  %vm17843_vm1 = vcmp.gt.f32.partialorder %v13171_v7, 0.02405601  ;;  %vm17844_vm4 = vcmp.gt.f32.partialorder %v13174_v19, 0.02405601  ;;  %v1242_v43 = vmul.f32 %v1178_v37, %v1178_v37  ;;  %v1183_v32 = vsub.f32 %v1093_v11, %v11698_v12 }
 0x3bd   : > { %18859 = vst [vmem:[#allocation190_spill] sm:$0xff] %v13189_v52  ;;  %18860 = vst [vmem:[#allocation191_spill] sm:$0xff] %v13192_v53  ;;  %v656_v20 = vmul.f32 %v592_v50, %v592_v50  ;;  %v1243_v56 = vmul.f32 %v1179_v59, %v1179_v59  ;;  %v925_v2 = vmul.f32 %v861_v17, %v861_v17  ;;  %v4021_v14 = vsub.f32 2.0, %v3957_v8 }
 0x3be   : > { %18861 = vst [vmem:[#allocation192_spill] sm:$0xff] %v13195_v23  ;;  %v863_v16 = vsub.f32 %v788_v55, %v11659_v28  ;;  %v657_v40 = vmul.f32 %v593_v33, %v593_v33  ;;  %v926_v44 = vmul.f32 %v862_v3, %v862_v3  ;;  %v1246_v51 = vmul.f32 %v1182_v4, %v1182_v4  ;;  %v1113_v3 = vpop.permute.xlu1 %1112 }
 0x3bf   : > { %v13180_v15 = vpop.f32.mrb[8].mxu0  ;;  %v13209_v37 = vsel %vm17843_vm1, %v13189_v52, 0.0  ;;  %v13212_v11 = vadd.f32 %v1239_v13, %v12713_v62  ;;  %v4022_v50 = vsub.f32 2.0, %v3958_v5  ;;  %v4628_v17 = vadd.s32 232, %v11625_v61 }
 0x3c0   : > { %v13186_v10 = vpop.f32.mrb[9].mxu0  ;;  %18862 = vst [vmem:[#allocation193_spill] sm:$0xff] %v13209_v37  ;;  %v13218_v28 = vsel %vm17844_vm4, %v13192_v53, 0.0  ;;  %v13221_v59 = vadd.f32 %v1242_v43, %v12811_v22  ;;  %v1247_v8 = vmul.f32 %v1183_v32, %v1183_v32  ;;  %v864_v33 = vsub.f32 %v788_v55, %v11668_v48  ;;  %v1109_v55 = vpop.permute.xlu0 %1108 }
 0x3c1   : > { %18863 = vst [vmem:[#allocation194_spill] sm:$0xff] %v13212_v11  ;;  %18864 = vst [vmem:[#allocation195_spill] sm:$0xff] %v13218_v28  ;;  %v13225_v4 = vadd.f32 %v1243_v56, %v12813_v45  ;;  %v13227_v62 = vadd.f32 %v925_v2, %v656_v20  ;;  %v927_v13 = vmul.f32 %v863_v16, %v863_v16  ;;  %v13232_v19 = vmax.f32 %v4021_v14, 0.0 }
 0x3c2   : > { %18865 = vst [vmem:[#allocation196_spill] sm:$0xff] %v13221_v59  ;;  %v1186_v5 = vsub.f32 %v1101_v0, %v11691_v38  ;;  %v13234_v53 = vadd.f32 %v926_v44, %v657_v40  ;;  %v13237_v22 = vadd.f32 %v1246_v51, %v12915_v24  ;;  %v1192_v48 = vsub.f32 %v1113_v3, %v11691_v38  ;;  %v1117_v7 = vpop.permute.xlu1 %1116 }
 0x3c3   : > { %v13202_v58 = vpop.f32.mrb[10].mxu0  ;;  %18866 = vst [vmem:[#allocation197_spill] sm:$0xff] %v13225_v4  ;;  %v13242_v45 = vmax.f32 %v4022_v50, 0.0  ;;  %v3959_v2 = vmul.f32 2.0, %v13063_v18  ;;  %v1187_v16 = vsub.f32 %v1101_v0, %v11698_v12  ;;  %v4661_v20 = vadd.s32 %v11922_v6, %v4628_v17  ;;  %v18870_v0 = vld [vmem:[#allocation108_spill] sm:$0xff] }
 0x3c4   : > { %v13204_v1 = vpop.f32.mrb[11].mxu0  ;;  %18867 = vst [vmem:[#allocation198_spill] sm:$0xff] %v13234_v53  ;;  %18868 = vst [vmem:[#allocation199_spill] sm:$0xff] %v13237_v22  ;;  %v4619_v14 = vadd.s32 160, %v11625_v61  ;;  %v928_v56 = vmul.f32 %v864_v33, %v864_v33  ;;  %v1193_v32 = vsub.f32 %v1113_v3, %v11698_v12  ;;  %v1190_v51 = vsub.f32 %v1109_v55, %v11691_v38 }
 0x3c5   : > { %v3960_v24 = vmul.f32 2.0, %v13078_v35  ;;  %v13252_v40 = vadd.f32 %v1247_v8, %v12917_v39  ;;  %v1250_v44 = vmul.f32 %v1186_v5, %v1186_v5  ;;  %v1191_v50 = vsub.f32 %v1109_v55, %v11698_v12  ;;  %v18872_v5 = vld [vmem:[#allocation6_spill] sm:$0xff] }
 0x3c6   : > { %9581 = vrsqrt.f32 %v13232_v19  ;;  %v13259_v17 = vadd.f32 %v927_v13, %v18870_v0  ;;  %v1256_v33 = vmul.f32 %v1192_v48, %v1192_v48  ;;  %v4630_v3 = vadd.s32 248, %v11625_v61  ;;  %v1121_v13 = vpop.permute.xlu0 %1120 }
 0x3c7   : > { %v13230_v52 = vpop.f32.mrb[12].mxu0  ;;  %18869 = vst [vmem:[#allocation200_spill] sm:$0xff] %v13252_v40  ;;  %9583 = vrsqrt.f32 %v13242_v45  ;;  %v4023_v39 = vsub.f32 2.0, %v3959_v2  ;;  %v1251_v35 = vmul.f32 %v1187_v16, %v1187_v16  ;;  %vm4693_vm1 = vcmp.lt.s32.totalorder %v4661_v20, 300 }
 0x3c8   : > { %v13240_v43 = vpop.f32.mrb[13].mxu0  ;;  %v4652_v8 = vadd.s32 %v11922_v6, %v4619_v14  ;;  %v13267_v55 = vadd.f32 %v928_v56, %v18872_v5  ;;  %v1257_v37 = vmul.f32 %v1193_v32, %v1193_v32  ;;  %v1254_v53 = vmul.f32 %v1190_v51, %v1190_v51 }
 0x3c9   : > { %v4024_v0 = vsub.f32 2.0, %v3960_v24  ;;  %v13270_v48 = vadd.f32 %v1250_v44, %v12991_v31  ;;  %v1255_v49 = vmul.f32 %v1191_v50, %v1191_v50  ;;  %v4621_v2 = vadd.s32 176, %v11625_v61 }
 0x3ca   : > { %v7419_v16 = vsel %vm4693_vm1, 1.0, %v18667_v60  ;;  %v13278_v20 = vadd.f32 %v1256_v33, %v13106_v57  ;;  %v4663_v14 = vadd.s32 %v11922_v6, %v4630_v3  ;;  %v13283_v32 = vmax.f32 %v4023_v39, 0.0 }
 0x3cb   : > { %v13255_v18 = vpop.f32.mrb[14].mxu0  ;;  %18873 = vst [vmem:[#allocation6_spill] sm:$0xff] %v13270_v48  ;;  %v13286_v31 = vadd.f32 %v1251_v35, %v13012_v46  ;;  %v1195_v51 = vsub.f32 %v1117_v7, %v11698_v12  ;;  %v1196_v24 = vsub.f32 %v1121_v13, %v11691_v38  ;;  %vm4684_vm4 = vcmp.lt.s32.totalorder %v4652_v8, 300 }
 0x3cc   : > { %v13262_v28 = vpop.f32.mrb[15].mxu0  ;;  %18874 = vst [vmem:[#allocation201_spill] sm:$0xff] %v13278_v20  ;;  %v13291_v44 = vadd.f32 %v1257_v37, %v13117_v54  ;;  %v13294_v57 = vadd.f32 %v1254_v53, %v13044_v21  ;;  %v1197_v50 = vsub.f32 %v1121_v13, %v11698_v12  ;;  %vm17859_vm1 = vcmp.lt.f32.partialorder %v13195_v23, 0.011025 }
 0x3cd   : > { %18871 = vst [vmem:[#allocation108_spill] sm:$0xff] %v13262_v28  ;;  %v1194_v28 = vsub.f32 %v1117_v7, %v11691_v38  ;;  %18875 = vst [vmem:[#allocation202_spill] sm:$0xff] %v13286_v31  ;;  %vm17864_vm2 = vcmp.lt.f32.partialorder %v13212_v11, 0.011025  ;;  %v13299_v33 = vmax.f32 %v4024_v0, 0.0  ;;  %v3961_v46 = vmul.f32 2.0, %v13101_v29 }
 0x3ce   : > { %18876 = vst [vmem:[#allocation203_spill] sm:$0xff] %v13291_v44  ;;  %18877 = vst [vmem:[#allocation204_spill] sm:$0xff] %v13294_v57  ;;  %v13303_v7 = vmul.f32 %v11972_v25, %v7419_v16  ;;  %v13306_v38 = vadd.f32 %v1255_v49, %v13080_v47  ;;  %v4654_v21 = vadd.s32 %v11922_v6, %v4621_v2  ;;  %vm17851_vm7 = vcmp.gt.f32.partialorder %v13278_v20, 0.02405601 }
 0x3cf   : > { %v13273_v36 = vpop.f32.mrb[16].mxu0  ;;  %v13312_v12 = vmul.f32 %v11976_v26, %v7419_v16  ;;  %vm4695_vm8 = vcmp.lt.s32.totalorder %v4663_v14, 300  ;;  %v7410_v29 = vsel %vm4684_vm4, 1.0, %v18667_v60  ;;  %9585 = vrsqrt.f32 %v13283_v32 }
 0x3d0   : > { %v13281_v56 = vpop.f32.mrb[17].mxu0  ;;  %18878 = vst [vmem:[#allocation205_spill] sm:$0xff] %v13303_v7  ;;  %18879 = vst [vmem:[#allocation206_spill] sm:$0xff] %v13306_v38  ;;  %v3962_v49 = vmul.f32 2.0, %v13109_v34  ;;  %v1260_v47 = vmul.f32 %v1196_v24, %v1196_v24  ;;  %v9582_v37 = vpop.eup %9581  ;;  %vm17854_vm14 = vcmp.gt.f32.partialorder %v13291_v44, 0.02405601  ;;  %v1258_v3 = vmul.f32 %v1194_v28, %v1194_v28 }
 0x3d1   : > { %18880 = vst [vmem:[#allocation207_spill] sm:$0xff] %v13312_v12  ;;  %v13322_v39 = vmul.f32 %v1195_v51, %v1195_v51  ;;  %v1261_v35 = vmul.f32 %v1197_v50, %v1197_v50  ;;  %v9584_v5 = vpop.eup %9583  ;;  %9587 = vrsqrt.f32 %v13299_v33  ;;  %v4025_v13 = vsub.f32 2.0, %v3961_v46 }
 0x3d2   : > { %v4623_v0 = vadd.s32 192, %v11625_v61  ;;  %v7421_v8 = vsel %vm4695_vm8, 1.0, %v18667_v60  ;;  %v13330_v34 = vmul.f32 %v11972_v25, %v7410_v29  ;;  %v13333_v16 = vmul.f32 %v11976_v26, %v7410_v29 }
 0x3d3   : > { %v13308_v54 = vpop.f32.mrb[18].mxu0  ;;  %vm17943_vm4 = vcmp.gt.f32.partialorder %v13195_v23, 0.02405601  ;;  %vm17944_vm0 = vcmp.gt.f32.partialorder %v13212_v11, 0.02405601  ;;  %vm4686_vm12 = vcmp.lt.s32.totalorder %v4654_v21, 300  ;;  %v4150_v51 = vmul.f32 %v9582_v37, %v13232_v19 }
 0x3d4   : > { %v13315_v53 = vpop.f32.mrb[19].mxu0  ;;  %18881 = vst [vmem:[#allocation208_spill] sm:$0xff] %v13330_v34  ;;  %18882 = vst [vmem:[#allocation209_spill] sm:$0xff] %v13333_v16  ;;  %v13340_v28 = vsel %vm17851_vm7, %v13303_v7, 0.0  ;;  %v4026_v24 = vsub.f32 2.0, %v3962_v49  ;;  %v13348_v50 = vsel %vm17854_vm14, %v13312_v12, 0.0  ;;  %v13351_v46 = vadd.f32 %v1260_v47, %v13259_v17 }
 0x3d5   : > { %18883 = vst [vmem:[#allocation210_spill] sm:$0xff] %v13340_v28  ;;  %18884 = vst [vmem:[#allocation211_spill] sm:$0xff] %v13348_v50  ;;  %v4157_v21 = vmul.f32 %v9584_v5, %v13242_v45  ;;  %vm18013_vm8 = vcmp.lt.f32.partialorder %v13221_v59, 0.011025  ;;  %vm18014_vm7 = vcmp.lt.f32.partialorder %v13225_v4, 0.011025  ;;  %v13357_v29 = vadd.f32 %v1258_v3, %v13227_v62 }
 0x3d6   : > { %18885 = vst [vmem:[#allocation212_spill] sm:$0xff] %v13351_v46  ;;  %v13360_v37 = vmul.f32 %v11972_v25, %v7421_v8  ;;  %v13363_v49 = vadd.f32 %v1261_v35, %v13267_v55  ;;  %v7412_v12 = vsel %vm4686_vm12, 1.0, %v18667_v60  ;;  %vm17903_vm14 = vcmp.gt.f32.partialorder %v13221_v59, 0.02405601 }
 0x3d7   : > { %v13327_v2 = vpop.f32.mrb[20].mxu0  ;;  %18886 = vst [vmem:[#allocation213_spill] sm:$0xff] %v13357_v29  ;;  %v13367_v17 = vmax.f32 %v4025_v13, 0.0  ;;  %v4656_v47 = vadd.s32 %v11922_v6, %v4623_v0  ;;  %v13371_v5 = vmul.f32 %v11976_v26, %v7421_v8  ;;  %vm4151_vm3 = vcmp.eq.f32.partialorder %v13232_v19, inf }
 0x3d8   : > { %v13342_v14 = vpop.f32.mrb[21].mxu0  ;;  %18887 = vst [vmem:[#allocation214_spill] sm:$0xff] %v13360_v37  ;;  %18888 = vst [vmem:[#allocation215_spill] sm:$0xff] %v13363_v49  ;;  %v13379_v62 = vsel %vm17859_vm1, %v13330_v34, 0.0  ;;  %v13384_v55 = vsel %vm17864_vm2, %v13333_v16, 0.0  ;;  %v3963_v3 = vmul.f32 2.0, %v13138_v41  ;;  %v4152_v13 = vsel %vm4151_vm3, %v13232_v19, %v4150_v51 }
 0x3d9   : > { %18889 = vst [vmem:[#allocation216_spill] sm:$0xff] %v13371_v5  ;;  %18890 = vst [vmem:[#allocation217_spill] sm:$0xff] %v13379_v62  ;;  %vm4158_vm12 = vcmp.eq.f32.partialorder %v13242_v45, inf  ;;  %vm17915_vm10 = vcmp.gt.f32.partialorder %v13225_v4, 0.02405601  ;;  %v13392_v0 = vmax.f32 %v4026_v24, 0.0  ;;  %v13398_v20 = vmul.f32 %v11972_v25, %v7412_v12 }
 0x3da   : > { %18891 = vst [vmem:[#allocation218_spill] sm:$0xff] %v13384_v55  ;;  %vm17890_vm1 = vcmp.gt.f32.partialorder %v13351_v46, 0.02405601  ;;  %v4154_v8 = vand.u32 2147483648, %v13232_v19  ;;  %v4159_v44 = vsel %vm4158_vm12, %v13242_v45, %v4157_v21  ;;  %v13401_v41 = vmul.f32 %v11976_v26, %v7412_v12  ;;  %v9586_v55 = vpop.eup %9585 }
 0x3db   : > { %v13373_v7 = vpop.f32.mrb[22].mxu0  ;;  %18892 = vst [vmem:[#allocation219_spill] sm:$0xff] %v13398_v20  ;;  %vm4153_vm3 = vcmp.eq.f32.partialorder %v13232_v19, 0.0  ;;  %v4161_v51 = vand.u32 2147483648, %v13242_v45  ;;  %9589 = vrsqrt.f32 %v13367_v17  ;;  %vm4688_vm2 = vcmp.lt.s32.totalorder %v4656_v47, 300  ;;  %v9588_v12 = vpop.eup %9587 }
 0x3dc   : > { %v13387_v35 = vpop.f32.mrb[23].mxu0  ;;  %18893 = vst [vmem:[#allocation220_spill] sm:$0xff] %v13401_v41  ;;  %v13408_v62 = vsel %vm4153_vm3, %v4154_v8, %v4152_v13  ;;  %vm4160_vm12 = vcmp.eq.f32.partialorder %v13242_v45, 0.0  ;;  %v4027_v21 = vsub.f32 2.0, %v3963_v3  ;;  %vm17891_vm13 = vcmp.gt.f32.partialorder %v13363_v49, 0.02405601 }
 0x3dd   : > { %v13417_v19 = vsel %vm17943_vm4, %v13330_v34, 0.0  ;;  %v13422_v47 = vsel %vm17944_vm0, %v13333_v16, 0.0  ;;  %v13424_v13 = vsel %vm4160_vm12, %v4161_v51, %v4159_v44  ;;  %9591 = vrsqrt.f32 %v13392_v0 }
 0x3de   : > { %18896 = vst [vmem:[#allocation223_spill] sm:$0xff] %v13417_v19  ;;  %18897 = vst [vmem:[#allocation224_spill] sm:$0xff] %v13422_v47  ;;  %v4164_v45 = vmul.f32 %v9586_v55, %v13283_v32  ;;  %v7414_v3 = vsel %vm4688_vm2, 1.0, %v18667_v60  ;;  %v13430_v8 = vadd.s32 208, %v11625_v61  ;;  %v13435_v23 = vsel %vm17890_vm1, %v13360_v37, 0.0  ;;  %v18910_v19 = vld [vmem:[#allocation7_spill] sm:$0xff] }
 0x3df   : > { %v13406_v24 = vpop.f32.mrb[24].mxu0  ;;  %18898 = vst [vmem:[#allocation225_spill] sm:$0xff] %v13435_v23  ;;  %v7424_v11 = vadd.f32 -0.1, %v13408_v62  ;;  %v13441_v44 = vsel %vm18013_vm8, %v13398_v20, 0.0  ;;  %v13446_v55 = vsel %vm18014_vm7, %v13401_v41, 0.0  ;;  %v4171_v46 = vmul.f32 %v9588_v12, %v13299_v33 }
 0x3e0   : > { %18894 = vst [vmem:[#allocation221_spill] sm:$0xff] %v13406_v24  ;;  %v13412_v50 = vpop.f32.mrb[25].mxu0  ;;  %18899 = vst [vmem:[#allocation226_spill] sm:$0xff] %v13441_v44  ;;  %v13451_v51 = vsel %vm17891_vm13, %v13371_v5, 0.0  ;;  %v7425_v16 = vadd.f32 -0.1, %v13424_v13  ;;  %v13480_v12 = vmul.f32 %v11976_v26, %v7414_v3 }
 0x3e1   : > { %18895 = vst [vmem:[#allocation222_spill] sm:$0xff] %v13412_v50  ;;  %18900 = vst [vmem:[#allocation227_spill] sm:$0xff] %v13446_v55  ;;  %v13459_v37 = vsel %vm17903_vm14, %v13398_v20, 0.0  ;;  %v13462_v44 = vmax.f32 %v4027_v21, 0.0  ;;  %v5285_v55 = vsub.f32 1.4, %v13408_v62  ;;  %v13477_v21 = vmul.f32 %v11972_v25, %v7414_v3 }
 0x3e2   : > { %18901 = vst [vmem:[#allocation228_spill] sm:$0xff] %v13451_v51  ;;  %18903 = vst [vmem:[#allocation230_spill] sm:$0xff] %v13459_v37  ;;  %v5286_v5 = vsub.f32 1.4, %v13424_v13  ;;  %vm4165_vm2 = vcmp.eq.f32.partialorder %v13283_v32, inf  ;;  %v3964_v49 = vmul.f32 2.0, %v13147_v9 }
 0x3e3   : > { %v13453_v34 = vpop.f32.mrb[26].mxu0  ;;  %v4166_v51 = vsel %vm4165_vm2, %v13283_v32, %v4164_v45  ;;  %v13474_v59 = vsel %vm17915_vm10, %v13401_v41, 0.0  ;;  %18906 = vst [vmem:[#allocation233_spill] sm:$0xff] %v13477_v21  ;;  %18907 = vst [vmem:[#allocation234_spill] sm:$0xff] %v13480_v12  ;;  %v5157_v62 = vmax.f32 %v7424_v11, 0.0  ;;  %vm4167_vm3 = vcmp.eq.f32.partialorder %v13283_v32, 0.0 }
 0x3e4   : > { %18902 = vst [vmem:[#allocation229_spill] sm:$0xff] %v13453_v34  ;;  %v13464_v23 = vpop.f32.mrb[27].mxu0  ;;  %18905 = vst [vmem:[#allocation232_spill] sm:$0xff] %v13474_v59  ;;  %v4168_v13 = vand.u32 2147483648, %v13283_v32  ;;  %vm4172_vm12 = vcmp.eq.f32.partialorder %v13299_v33, inf  ;;  %v5158_v45 = vmax.f32 %v7425_v16, 0.0  ;;  %9593 = vrsqrt.f32 %v13462_v44 }
 0x3e5   : > { %18904 = vst [vmem:[#allocation231_spill] sm:$0xff] %v13464_v23  ;;  %v4173_v4 = vsel %vm4172_vm12, %v13299_v33, %v4171_v46  ;;  %v4175_v20 = vand.u32 2147483648, %v13299_v33  ;;  %v9590_v3 = vpop.eup %9589  ;;  %v5349_v28 = vmax.f32 %v5285_v55, 0.0  ;;  %v5350_v59 = vmax.f32 %v5286_v5, 0.0 }
 0x3e6   : > { %v4169_v37 = vsel %vm4167_vm3, %v4168_v13, %v4166_v51  ;;  %v4028_v47 = vsub.f32 2.0, %v3964_v49  ;;  %vm4174_vm2 = vcmp.eq.f32.partialorder %v13299_v33, 0.0  ;;  %vm4179_vm1 = vcmp.eq.f32.partialorder %v13367_v17, inf  ;;  %v18912_v49 = vld [vmem:[#allocation27_spill] sm:$0xff] }
 0x3e7   : > { %v13485_v9 = vpop.f32.mrb[28].mxu0  ;;  %vm4181_vm13 = vcmp.eq.f32.partialorder %v13367_v17, 0.0  ;;  %v3965_v32 = vmul.f32 2.0, %v13180_v15  ;;  %v9592_v46 = vpop.eup %9591  ;;  %v5221_v29 = vmul.f32 %v5157_v62, %v18910_v19  ;;  %v3966_v23 = vmul.f32 2.0, %v13186_v10  ;;  %v18914_v15 = vld [vmem:[#allocation31_spill] sm:$0xff]  ;;  %v18915_v19 = vld [vmem:[#allocation8_spill] sm:$0xff] }
 0x3e8   : > { %18908 = vst [vmem:[#allocation235_spill] sm:$0xff] %v13485_v9  ;;  %v13490_v41 = vpop.f32.mrb[29].mxu0  ;;  %v13497_v9 = vsel %vm4174_vm2, %v4175_v20, %v4173_v4  ;;  %v5222_v51 = vmul.f32 %v5158_v45, %v18912_v49  ;;  %v7426_v33 = vadd.f32 -0.1, %v4169_v37  ;;  %v5287_v13 = vsub.f32 1.4, %v4169_v37 }
 0x3e9   : > { %18909 = vst [vmem:[#allocation236_spill] sm:$0xff] %v13490_v41  ;;  %v4182_v41 = vand.u32 2147483648, %v13367_v17  ;;  %v4178_v57 = vmul.f32 %v9590_v3, %v13367_v17  ;;  %v5413_v34 = vmul.f32 %v5349_v28, %v18914_v15  ;;  %v5477_v50 = vmul.f32 16.0, %v7424_v11 }
 0x3ea   : > { %v5414_v4 = vmul.f32 %v5350_v59, %v18915_v19  ;;  %v13509_v20 = vmax.f32 %v4028_v47, 0.0  ;;  %v5478_v62 = vmul.f32 16.0, %v7425_v16  ;;  %v7427_v10 = vadd.f32 -0.1, %v13497_v9 }
 0x3eb   : > { %v13501_v38 = vpop.f32.mrb[30].mxu0  ;;  %v4029_v24 = vsub.f32 2.0, %v3965_v32  ;;  %v13513_v45 = vmul.f32 %v5477_v50, %v5221_v29  ;;  %v5605_v37 = vmul.f32 16.0, %v5285_v55  ;;  %v5606_v49 = vmul.f32 16.0, %v5286_v5 }
 0x3ec   : > { %18911 = vst [vmem:[#allocation7_spill] sm:$0xff] %v13501_v38  ;;  %v13505_v31 = vpop.f32.mrb[31].mxu0  ;;  %v4185_v38 = vmul.f32 %v9592_v46, %v13392_v0  ;;  %v5288_v3 = vsub.f32 1.4, %v13497_v9  ;;  %v13518_v28 = vmul.f32 %v5478_v62, %v5222_v51  ;;  %v5159_v11 = vmax.f32 %v7426_v33, 0.0 }
 0x3ed   : > { %18913 = vst [vmem:[#allocation27_spill] sm:$0xff] %v13505_v31  ;;  %18916 = vst [vmem:[#allocation31_spill] sm:$0xff] %v13513_v45  ;;  %v5351_v59 = vmax.f32 %v5287_v13, 0.0  ;;  %v4180_v16 = vsel %vm4179_vm1, %v13367_v17, %v4178_v57  ;;  %v13525_v46 = vmul.f32 %v5605_v37, %v5413_v34  ;;  %v13527_v50 = vmul.f32 %v5606_v49, %v5414_v4  ;;  %v18921_v4 = vld [vmem:[#allocation99_spill] sm:$0xff]  ;;  %v18922_v37 = vld [vmem:[#allocation13_spill] sm:$0xff] }
 0x3ee   : > { %18917 = vst [vmem:[#allocation8_spill] sm:$0xff] %v13518_v28  ;;  %vm4186_vm3 = vcmp.eq.f32.partialorder %v13392_v0, inf  ;;  %vm4188_vm12 = vcmp.eq.f32.partialorder %v13392_v0, 0.0  ;;  %v9594_v29 = vpop.eup %9593  ;;  %v5160_v5 = vmax.f32 %v7427_v10, 0.0  ;;  %v4189_v9 = vand.u32 2147483648, %v13392_v0 }
 0x3ef   : > { %v13516_v31 = vpop.f32.mrb[32].mxu0  ;;  %18918 = vst [vmem:[#allocation237_spill] sm:$0xff] %v13525_v46  ;;  %18919 = vst [vmem:[#allocation238_spill] sm:$0xff] %v13527_v50  ;;  %v4187_v55 = vsel %vm4186_vm3, %v13392_v0, %v4185_v38  ;;  %9595 = vrsqrt.f32 %v13509_v20  ;;  %v5352_v32 = vmax.f32 %v5288_v3, 0.0  ;;  %v4183_v57 = vsel %vm4181_vm13, %v4182_v41, %v4180_v16 }
 0x3f0   : > { %v13523_v47 = vpop.f32.mrb[33].mxu0  ;;  %v13536_v34 = vmax.f32 %v4029_v24, 0.0  ;;  %v4030_v51 = vsub.f32 2.0, %v3966_v23  ;;  %v5733_v19 = vmax.f32 %v13513_v45, %v13518_v28  ;;  %v5223_v62 = vmul.f32 %v5159_v11, %v18921_v4  ;;  %v18924_v4 = vld [vmem:[#allocation103_spill] sm:$0xff]  ;;  %v18925_v45 = vld [vmem:[#allocation25_spill] sm:$0xff] }
 0x3f1   : > { %v5415_v38 = vmul.f32 %v5351_v59, %v18922_v37  ;;  %vm17945_vm1 = vcmp.lt.f32.partialorder %v13237_v22, 0.011025  ;;  %vm4193_vm2 = vcmp.eq.f32.partialorder %v13462_v44, inf  ;;  %v5805_v17 = vmax.f32 %v13525_v46, %v13527_v50 }
 0x3f2   : > { %v4190_v23 = vsel %vm4188_vm12, %v4189_v9, %v4187_v55  ;;  %v4192_v41 = vmul.f32 %v9594_v29, %v13462_v44  ;;  %v3967_v24 = vmul.f32 2.0, %v13202_v58  ;;  %v5479_v16 = vmul.f32 16.0, %v7426_v33 }
 0x3f3   : > { %v13538_v15 = vpop.f32.mrb[34].mxu0  ;;  %v5607_v11 = vmul.f32 16.0, %v5287_v13  ;;  %v5224_v59 = vmul.f32 %v5160_v5, %v18924_v4  ;;  %v7428_v37 = vadd.f32 -0.1, %v4183_v57  ;;  %v5416_v28 = vmul.f32 %v5352_v32, %v18925_v45 }
 0x3f4   : > { %18920 = vst [vmem:[#allocation239_spill] sm:$0xff] %v13538_v15  ;;  %v13546_v49 = vpop.f32.mrb[35].mxu0  ;;  %v5289_v15 = vsub.f32 1.4, %v4183_v57  ;;  %9597 = vrsqrt.f32 %v13536_v34  ;;  %v13561_v0 = vmul.f32 %v5479_v16, %v5223_v62  ;;  %v5480_v29 = vmul.f32 16.0, %v7427_v10 }
 0x3f5   : > { %18923 = vst [vmem:[#allocation99_spill] sm:$0xff] %v13546_v49  ;;  %v13557_v49 = vmax.f32 %v4030_v51, 0.0  ;;  %v13563_v55 = vmul.f32 %v5607_v11, %v5415_v38  ;;  %v7429_v58 = vadd.f32 -0.1, %v4190_v23  ;;  %v5608_v13 = vmul.f32 16.0, %v5288_v3 }
 0x3f6   : > { %18926 = vst [vmem:[#allocation13_spill] sm:$0xff] %v13561_v0  ;;  %v5290_v5 = vsub.f32 1.4, %v4190_v23  ;;  %v4194_v45 = vsel %vm4193_vm2, %v13462_v44, %v4192_v41  ;;  %v4031_v9 = vsub.f32 2.0, %v3967_v24  ;;  %v5161_v32 = vmax.f32 %v7428_v37, 0.0 }
 0x3f7   : > { %v13559_v46 = vpop.f32.mrb[36].mxu0  ;;  %18927 = vst [vmem:[#allocation103_spill] sm:$0xff] %v13563_v55  ;;  %vm4195_vm13 = vcmp.eq.f32.partialorder %v13462_v44, 0.0  ;;  %v4196_v57 = vand.u32 2147483648, %v13462_v44  ;;  %v3968_v51 = vmul.f32 2.0, %v13204_v1  ;;  %v13573_v62 = vmul.f32 %v5480_v29, %v5224_v59 }
 0x3f8   : > { %v13565_v33 = vpop.f32.mrb[37].mxu0  ;;  %v13575_v10 = vmul.f32 %v5608_v13, %v5416_v28  ;;  %v5353_v38 = vmax.f32 %v5289_v15, 0.0  ;;  %vm17992_vm3 = vcmp.lt.f32.partialorder %v13252_v40, 0.011025  ;;  %9599 = vrsqrt.f32 %v13557_v49 }
 0x3f9   : > { %18928 = vst [vmem:[#allocation25_spill] sm:$0xff] %v13565_v33  ;;  %18929 = vst [vmem:[#allocation240_spill] sm:$0xff] %v13573_v62  ;;  %v9596_v23 = vpop.eup %9595  ;;  %v5734_v41 = vmax.f32 %v13561_v0, %v5733_v19  ;;  %v5806_v24 = vmax.f32 %v13563_v55, %v5805_v17  ;;  %v5162_v16 = vmax.f32 %v7429_v58, 0.0  ;;  %v13583_v44 = vsel %vm4195_vm13, %v4196_v57, %v4194_v45  ;;  %v18934_v19 = vld [vmem:[#allocation32_spill] sm:$0xff]  ;;  %v18935_v57 = vld [vmem:[#allocation35_spill] sm:$0xff] }
 0x3fa   : > { %18930 = vst [vmem:[#allocation241_spill] sm:$0xff] %v13575_v10  ;;  %v13588_v1 = vsel %vm17945_vm1, %v13477_v21, 0.0  ;;  %v5354_v28 = vmax.f32 %v5290_v5, 0.0  ;;  %v13592_v11 = vadd.s32 %v11922_v6, %v13430_v8  ;;  %v13594_v4 = vmax.f32 %v4031_v9, 0.0 }
 0x3fb   : > { %v13579_v3 = vpop.f32.mrb[38].mxu0  ;;  %18932 = vst [vmem:[#allocation243_spill] sm:$0xff] %v13588_v1  ;;  %v5225_v29 = vmul.f32 %v5161_v32, %v18934_v19  ;;  %v5481_v17 = vmul.f32 16.0, %v7428_v37  ;;  %v4032_v13 = vsub.f32 2.0, %v3968_v51  ;;  %v3969_v45 = vmul.f32 2.0, %v13230_v52  ;;  %v18937_v51 = vld [vmem:[#allocation53_spill] sm:$0xff] }
 0x3fc   : > { %18931 = vst [vmem:[#allocation242_spill] sm:$0xff] %v13579_v3  ;;  %v13596_v59 = vpop.f32.mrb[39].mxu0  ;;  %v5417_v55 = vmul.f32 %v5353_v38, %v18935_v57  ;;  %v5609_v50 = vmul.f32 16.0, %v5289_v15  ;;  %v7430_v0 = vadd.f32 -0.1, %v13583_v44  ;;  %v4199_v1 = vmul.f32 %v9596_v23, %v13509_v20 }
 0x3fd   : > { %18933 = vst [vmem:[#allocation244_spill] sm:$0xff] %v13596_v59  ;;  %v5735_v8 = vmax.f32 %v13573_v62, %v5734_v41  ;;  %v5807_v9 = vmax.f32 %v13575_v10, %v5806_v24  ;;  %v18936_v59 = vld [vmem:[#allocation43_spill] sm:$0xff]  ;;  %v5291_v37 = vsub.f32 1.4, %v13583_v44  ;;  %v5418_v38 = vmul.f32 %v5354_v28, %v18937_v51 }
 0x3fe   : > { %v5226_v33 = vmul.f32 %v5162_v16, %v18936_v59  ;;  %v9598_v52 = vpop.eup %9597  ;;  %v5482_v15 = vmul.f32 16.0, %v7429_v58  ;;  %v5610_v19 = vmul.f32 16.0, %v5290_v5  ;;  %9601 = vrsqrt.f32 %v13594_v4 }
 0x3ff   : > { %v13603_v3 = vpop.f32.mrb[40].mxu0  ;;  %v13613_v23 = vmul.f32 %v5481_v17, %v5225_v29  ;;  %vm4200_vm12 = vcmp.eq.f32.partialorder %v13509_v20, inf  ;;  %v13616_v41 = vmax.f32 %v4032_v13, 0.0  ;;  %v4033_v24 = vsub.f32 2.0, %v3969_v45 }
 0x400   : > { %v13609_v32 = vpop.f32.mrb[41].mxu0  ;;  %v13618_v57 = vmul.f32 %v5609_v50, %v5417_v55  ;;  %v5163_v16 = vmax.f32 %v7430_v0, 0.0  ;;  %v4201_v44 = vsel %vm4200_vm12, %v13509_v20, %v4199_v1  ;;  %v3970_v59 = vmul.f32 2.0, %v13240_v43 }
 0x401   : > { %18938 = vst [vmem:[#allocation32_spill] sm:$0xff] %v13613_v23  ;;  %v13627_v58 = vsel %vm17992_vm3, %v13480_v12, 0.0  ;;  %vm17914_vm2 = vcmp.gt.f32.partialorder %v13237_v22, 0.02405601  ;;  %v5355_v5 = vmax.f32 %v5291_v37, 0.0  ;;  %v4203_v28 = vand.u32 2147483648, %v13509_v20 }
 0x402   : > { %18939 = vst [vmem:[#allocation35_spill] sm:$0xff] %v13618_v57  ;;  %18940 = vst [vmem:[#allocation43_spill] sm:$0xff] %v13627_v58  ;;  %v4206_v50 = vmul.f32 %v9598_v52, %v13536_v34  ;;  %v9600_v29 = vpop.eup %9599  ;;  %v13634_v1 = vmul.f32 %v5482_v15, %v5226_v33  ;;  %v13636_v43 = vmul.f32 %v5610_v19, %v5418_v38  ;;  %vm4690_vm13 = vcmp.lt.s32.totalorder %v13592_v11, 300  ;;  %v18953_v58 = vld [vmem:[#allocation108_spill] sm:$0xff] }
 0x403   : > { %v13622_v10 = vpop.f32.mrb[42].mxu0  ;;  %vm4202_vm12 = vcmp.eq.f32.partialorder %v13509_v20, 0.0  ;;  %v5736_v17 = vmax.f32 %v13613_v23, %v5735_v8  ;;  %9603 = vrsqrt.f32 %v13616_v41  ;;  %v13642_v45 = vmax.f32 %v4033_v24, 0.0 }
 0x404   : > { %v13632_v55 = vpop.f32.mrb[43].mxu0  ;;  %18941 = vst [vmem:[#allocation53_spill] sm:$0xff] %v13634_v1  ;;  %18942 = vst [vmem:[#allocation245_spill] sm:$0xff] %v13636_v43  ;;  %v4204_v13 = vsel %vm4202_vm12, %v4203_v28, %v4201_v44  ;;  %v5808_v52 = vmax.f32 %v13618_v57, %v5807_v9  ;;  %v5227_v51 = vmul.f32 %v5163_v16, %v12356_v30  ;;  %vm4207_vm14 = vcmp.eq.f32.partialorder %v13536_v34, inf }
 0x405   : > { %v4034_v33 = vsub.f32 2.0, %v3970_v59  ;;  %v5419_v15 = vmul.f32 %v5355_v5, %v12361_v42  ;;  %v4208_v20 = vsel %vm4207_vm14, %v13536_v34, %v4206_v50  ;;  %v4213_v8 = vmul.f32 %v9600_v29, %v13557_v49 }
 0x406   : > { %v3971_v19 = vmul.f32 2.0, %v13255_v18  ;;  %v5483_v24 = vmul.f32 16.0, %v7430_v0  ;;  %v7431_v28 = vadd.f32 -0.1, %v4204_v13  ;;  %v5292_v9 = vsub.f32 1.4, %v4204_v13 }
 0x407   : > { %v13647_v38 = vpop.f32.mrb[44].mxu0  ;;  %v4210_v30 = vand.u32 2147483648, %v13536_v34  ;;  %v5737_v16 = vmax.f32 %v13634_v1, %v5736_v17  ;;  %v5611_v59 = vmul.f32 16.0, %v5291_v37  ;;  %vm4209_vm12 = vcmp.eq.f32.partialorder %v13536_v34, 0.0 }
 0x408   : > { %v13653_v44 = vpop.f32.mrb[45].mxu0  ;;  %9605 = vrsqrt.f32 %v13642_v45  ;;  %v9602_v42 = vpop.eup %9601  ;;  %v13659_v5 = vmul.f32 %v5483_v24, %v5227_v51  ;;  %vm4214_vm14 = vcmp.eq.f32.partialorder %v13557_v49, inf  ;;  %v13664_v18 = vmax.f32 %v4034_v33, 0.0 }
 0x409   : > { %v13661_v50 = vsel %vm4209_vm12, %v4210_v30, %v4208_v20  ;;  %v5809_v29 = vmax.f32 %v13636_v43, %v5808_v52  ;;  %v13669_v13 = vmul.f32 %v5611_v59, %v5419_v15  ;;  %v4215_v37 = vsel %vm4214_vm14, %v13557_v49, %v4213_v8 }
 0x40a   : > { %18943 = vst [vmem:[#allocation246_spill] sm:$0xff] %v13659_v5  ;;  %v4035_v34 = vsub.f32 2.0, %v3971_v19  ;;  %v13677_v51 = vsel %vm17914_vm2, %v13477_v21, 0.0  ;;  %v5164_v20 = vmax.f32 %v7431_v28, 0.0  ;;  %v5356_v24 = vmax.f32 %v5292_v9, 0.0 }
 0x40b   : > { %v13666_v0 = vpop.f32.mrb[46].mxu0  ;;  %18944 = vst [vmem:[#allocation247_spill] sm:$0xff] %v13669_v13  ;;  %18945 = vst [vmem:[#allocation248_spill] sm:$0xff] %v13677_v51  ;;  %v4217_v33 = vand.u32 2147483648, %v13557_v49  ;;  %v13683_v52 = vsel %vm4690_vm13, 1.0, %v18667_v60  ;;  %vm4216_vm12 = vcmp.eq.f32.partialorder %v13557_v49, 0.0  ;;  %v4220_v8 = vmul.f32 %v9602_v42, %v13594_v4 }
 0x40c   : > { %v13672_v17 = vpop.f32.mrb[47].mxu0  ;;  %v7432_v15 = vadd.f32 -0.1, %v13661_v50  ;;  %v13689_v19 = vmax.f32 %v13659_v5, %v5737_v16  ;;  %v5293_v30 = vsub.f32 1.4, %v13661_v50  ;;  %9607 = vrsqrt.f32 %v13664_v18 }
 0x40d   : > { %v13692_v59 = vsel %vm4216_vm12, %v4217_v33, %v4215_v37  ;;  %v9604_v11 = vpop.eup %9603  ;;  %v13698_v57 = vmax.f32 %v13669_v13, %v5809_v29  ;;  %vm4221_vm13 = vcmp.eq.f32.partialorder %v13594_v4, inf  ;;  %vm4223_vm14 = vcmp.eq.f32.partialorder %v13594_v4, 0.0 }
 0x40e   : > { %v13702_v49 = vmax.f32 %v4035_v34, 0.0  ;;  %v5228_v42 = vmul.f32 %v5164_v20, %v12378_v63  ;;  %v5420_v50 = vmul.f32 %v5356_v24, %v12383_v27  ;;  %v4224_v37 = vand.u32 2147483648, %v13594_v4 }
 0x40f   : > { %v13695_v22 = vpop.f32.mrb[48].mxu0  ;;  %vm4228_vm12 = vcmp.eq.f32.partialorder %v13616_v41, inf  ;;  %v5484_v33 = vmul.f32 16.0, %v7431_v28  ;;  %v5165_v43 = vmax.f32 %v7432_v15, 0.0  ;;  %v7433_v29 = vadd.f32 -0.1, %v13692_v59 }
 0x410   : > { %18946 = vst [vmem:[#allocation249_spill] sm:$0xff] %v13695_v22  ;;  %v13704_v16 = vpop.f32.mrb[49].mxu0  ;;  %v4222_v13 = vsel %vm4221_vm13, %v13594_v4, %v4220_v8  ;;  %v5612_v21 = vmul.f32 16.0, %v5292_v9  ;;  %v5357_v5 = vmax.f32 %v5293_v30, 0.0  ;;  %v5294_v34 = vsub.f32 1.4, %v13692_v59 }
 0x411   : > { %18947 = vst [vmem:[#allocation250_spill] sm:$0xff] %v13704_v16  ;;  %v4227_v23 = vmul.f32 %v9604_v11, %v13616_v41  ;;  %vm4230_vm2 = vcmp.eq.f32.partialorder %v13616_v41, 0.0  ;;  %v4231_v27 = vand.u32 2147483648, %v13616_v41  ;;  %vm4235_vm10 = vcmp.eq.f32.partialorder %v13642_v45, inf  ;;  %v18952_v8 = vld [vmem:[#allocation66_spill] sm:$0xff] }
 0x412   : > { %v9606_v63 = vpop.eup %9605  ;;  %9609 = vrsqrt.f32 %v13702_v49  ;;  %v13722_v20 = vmul.f32 %v5484_v33, %v5228_v42  ;;  %v13724_v9 = vmul.f32 %v5612_v21, %v5420_v50  ;;  %v4225_v24 = vsel %vm4223_vm14, %v4224_v37, %v4222_v13  ;;  %v18956_v37 = vld [vmem:[#allocation198_spill] sm:$0xff] }
 0x413   : > { %v13714_v1 = vpop.f32.mrb[50].mxu0  ;;  %vm4237_vm13 = vcmp.eq.f32.partialorder %v13642_v45, 0.0  ;;  %v5229_v59 = vmul.f32 %v5165_v43, %v18952_v8  ;;  %v5166_v11 = vmax.f32 %v7433_v29, 0.0  ;;  %v4238_v62 = vand.u32 2147483648, %v13642_v45 }
 0x414   : > { %18948 = vst [vmem:[#allocation251_spill] sm:$0xff] %v13714_v1  ;;  %v13720_v28 = vpop.f32.mrb[51].mxu0  ;;  %18950 = vst [vmem:[#allocation253_spill] sm:$0xff] %v13722_v20  ;;  %v3972_v51 = vmul.f32 2.0, %v18953_v58  ;;  %v18954_v1 = vld [vmem:[#allocation94_spill] sm:$0xff]  ;;  %v5358_v22 = vmax.f32 %v5294_v34, 0.0  ;;  %v4229_v21 = vsel %vm4228_vm12, %v13616_v41, %v4227_v23  ;;  %v4234_v42 = vmul.f32 %v9606_v63, %v13642_v45 }
 0x415   : > { %18949 = vst [vmem:[#allocation252_spill] sm:$0xff] %v13720_v28  ;;  %18951 = vst [vmem:[#allocation254_spill] sm:$0xff] %v13724_v9  ;;  %v5421_v16 = vmul.f32 %v5357_v5, %v18954_v1  ;;  %vm4242_vm14 = vcmp.eq.f32.partialorder %v13664_v18, inf  ;;  %v5485_v13 = vmul.f32 16.0, %v7432_v15  ;;  %v7434_v43 = vadd.f32 -0.1, %v4225_v24 }
 0x416   : > { %v5295_v50 = vsub.f32 1.4, %v4225_v24  ;;  %v13742_v33 = vadd.f32 %v13322_v39, %v18956_v37  ;;  %v9608_v1 = vpop.eup %9607  ;;  %v5739_v5 = vmax.f32 %v13722_v20, %v13689_v19  ;;  %v5811_v23 = vmax.f32 %v13724_v9, %v13698_v57  ;;  %v18960_v15 = vld [vmem:[#allocation74_spill] sm:$0xff]  ;;  %v18962_v28 = vld [vmem:[#allocation97_spill] sm:$0xff]  ;;  %v18967_v20 = vld [vmem:[#allocation59_spill] sm:$0xff] }
 0x417   : > { %v13738_v4 = vpop.f32.mrb[52].mxu0  ;;  %v5613_v63 = vmul.f32 16.0, %v5293_v30  ;;  %v4245_v8 = vand.u32 2147483648, %v13664_v18  ;;  %v5230_v24 = vmul.f32 %v5166_v11, %v18960_v15  ;;  %v4232_v39 = vsel %vm4230_vm2, %v4231_v27, %v4229_v21 }
 0x418   : > { %18955 = vst [vmem:[#allocation66_spill] sm:$0xff] %v13738_v4  ;;  %18957 = vst [vmem:[#allocation108_spill] sm:$0xff] %v13742_v33  ;;  %v13744_v58 = vpop.f32.mrb[53].mxu0  ;;  %v13751_v4 = vmul.f32 %v5485_v13, %v5229_v59  ;;  %vm4244_vm12 = vcmp.eq.f32.partialorder %v13664_v18, 0.0  ;;  %v4036_v37 = vsub.f32 2.0, %v3972_v51  ;;  %v5422_v19 = vmul.f32 %v5358_v22, %v18962_v28 }
 0x419   : > { %18958 = vst [vmem:[#allocation94_spill] sm:$0xff] %v13744_v58  ;;  %v13757_v58 = vmul.f32 %v5613_v63, %v5421_v16  ;;  %v4236_v57 = vsel %vm4235_vm10, %v13642_v45, %v4234_v42  ;;  %v3973_v30 = vmul.f32 2.0, %v13273_v36  ;;  %v5486_v13 = vmul.f32 16.0, %v7433_v29 }
 0x41a   : > { %18959 = vst [vmem:[#allocation198_spill] sm:$0xff] %v13751_v4  ;;  %v5167_v11 = vmax.f32 %v7434_v43, 0.0  ;;  %v5359_v15 = vmax.f32 %v5295_v50, 0.0  ;;  %v4241_v41 = vmul.f32 %v9608_v1, %v13664_v18  ;;  %v5614_v51 = vmul.f32 16.0, %v5294_v34 }
 0x41b   : > { %18961 = vst [vmem:[#allocation74_spill] sm:$0xff] %v13757_v58  ;;  %v13764_v59 = vpop.f32.mrb[54].mxu0  ;;  %v7435_v16 = vadd.f32 -0.1, %v4232_v39  ;;  %v5296_v21 = vsub.f32 1.4, %v4232_v39  ;;  %v5740_v28 = vmax.f32 %v13751_v4, %v5739_v5  ;;  %v13771_v42 = vmul.f32 %v5486_v13, %v5230_v24 }
 0x41c   : > { %18963 = vst [vmem:[#allocation97_spill] sm:$0xff] %v13764_v59  ;;  %v13767_v27 = vpop.f32.mrb[55].mxu0  ;;  %vm4249_vm2 = vcmp.eq.f32.partialorder %v13702_v49, inf  ;;  %v9610_v22 = vpop.eup %9609  ;;  %v13775_v36 = vsel %vm4237_vm13, %v4238_v62, %v4236_v57  ;;  %v13777_v29 = vmax.f32 %v4036_v37, 0.0  ;;  %v5812_v1 = vmax.f32 %v13757_v58, %v5811_v23  ;;  %v18968_v59 = vld [vmem:[#allocation67_spill] sm:$0xff]  ;;  %v18979_v4 = vld [vmem:[#allocation86_spill] sm:$0xff] }
 0x41d   : > { %18964 = vst [vmem:[#allocation255_spill] sm:$0xff] %v13767_v27  ;;  %18965 = vst [vmem:[#allocation256_spill] sm:$0xff] %v13771_v42  ;;  %v13780_v63 = vmul.f32 %v5614_v51, %v5422_v19  ;;  %v5487_v34 = vmul.f32 16.0, %v7434_v43  ;;  %v4037_v9 = vsub.f32 2.0, %v3973_v30  ;;  %v5231_v27 = vmul.f32 %v5167_v11, %v18967_v20  ;;  %v18973_v58 = vld [vmem:[#allocation71_spill] sm:$0xff] }
 0x41e   : > { %v5423_v5 = vmul.f32 %v5359_v15, %v18968_v59  ;;  %v4243_v45 = vsel %vm4242_vm14, %v13664_v18, %v4241_v41  ;;  %v3974_v62 = vmul.f32 2.0, %v13281_v56  ;;  %v5168_v37 = vmax.f32 %v7435_v16, 0.0 }
 0x41f   : > { %18966 = vst [vmem:[#allocation257_spill] sm:$0xff] %v13780_v63  ;;  %v13782_v39 = vpop.f32.mrb[56].mxu0  ;;  %v5360_v23 = vmax.f32 %v5296_v21, 0.0  ;;  %v7436_v19 = vadd.f32 -0.1, %v13775_v36  ;;  %v4248_v43 = vmul.f32 %v9610_v22, %v13702_v49  ;;  %v5741_v57 = vmax.f32 %v13771_v42, %v5740_v28 }
 0x420   : > { %v13790_v24 = vpop.f32.mrb[57].mxu0  ;;  %v5615_v30 = vmul.f32 16.0, %v5295_v50  ;;  %v5297_v20 = vsub.f32 1.4, %v13775_v36  ;;  %9611 = vrsqrt.f32 %v13777_v29  ;;  %v5813_v59 = vmax.f32 %v13780_v63, %v5812_v1  ;;  %v18972_v36 = vld [vmem:[#allocation63_spill] sm:$0xff] }
 0x421   : > { %v13800_v56 = vsel %vm4244_vm12, %v4245_v8, %v4243_v45  ;;  %v13802_v13 = vmax.f32 %v4037_v9, 0.0  ;;  %v3975_v11 = vmul.f32 2.0, %v13308_v54  ;;  %v13807_v41 = vmul.f32 %v5487_v34, %v5231_v27 }
 0x422   : > { %v13809_v51 = vmul.f32 %v5615_v30, %v5423_v5  ;;  %v5488_v50 = vmul.f32 16.0, %v7435_v16  ;;  %v4038_v22 = vsub.f32 2.0, %v3974_v62  ;;  %v5232_v1 = vmul.f32 %v5168_v37, %v18972_v36  ;;  %v18978_v36 = vld [vmem:[#allocation50_spill] sm:$0xff] }
 0x423   : > { %v13805_v15 = vpop.f32.mrb[58].mxu0  ;;  %18969 = vst [vmem:[#allocation59_spill] sm:$0xff] %v13807_v41  ;;  %v5424_v18 = vmul.f32 %v5360_v23, %v18973_v58  ;;  %v5169_v8 = vmax.f32 %v7436_v19, 0.0  ;;  %v4250_v9 = vsel %vm4249_vm2, %v13702_v49, %v4248_v43  ;;  %v5361_v54 = vmax.f32 %v5297_v20, 0.0 }
 0x424   : > { %18970 = vst [vmem:[#allocation67_spill] sm:$0xff] %v13809_v51  ;;  %v13811_v28 = vpop.f32.mrb[59].mxu0  ;;  %v7437_v45 = vadd.f32 -0.1, %v13800_v56  ;;  %v5298_v27 = vsub.f32 1.4, %v13800_v56  ;;  %9613 = vrsqrt.f32 %v13802_v13  ;;  %v5742_v37 = vmax.f32 %v13807_v41, %v5741_v57 }
 0x425   : > { %18971 = vst [vmem:[#allocation258_spill] sm:$0xff] %v13811_v28  ;;  %v4252_v34 = vand.u32 2147483648, %v13702_v49  ;;  %vm17942_vm10 = vcmp.gt.f32.partialorder %v13252_v40, 0.02405601  ;;  %v5616_v16 = vmul.f32 16.0, %v5296_v21  ;;  %vm4251_vm13 = vcmp.eq.f32.partialorder %v13702_v49, 0.0 }
 0x426   : > { %v4039_v58 = vsub.f32 2.0, %v3975_v11  ;;  %vm17928_vm14 = vcmp.gt.f32.partialorder %v13270_v48, 0.02405601  ;;  %v4627_v62 = vadd.s32 224, %v11625_v61  ;;  %v13829_v43 = vmax.f32 %v4038_v22, 0.0  ;;  %v19075_v48 = vld [vmem:[#allocation166_spill] sm:$0xff] }
 0x427   : > { %v13824_v5 = vpop.f32.mrb[60].mxu0  ;;  %v4253_v23 = vsel %vm4251_vm13, %v4252_v34, %v4250_v9  ;;  %v5814_v21 = vmax.f32 %v13809_v51, %v5813_v59  ;;  %v13834_v56 = vmul.f32 %v5488_v50, %v5232_v1  ;;  %v13836_v49 = vmul.f32 %v5616_v16, %v5424_v18  ;;  %v18984_v51 = vld [vmem:[#allocation85_spill] sm:$0xff] }
 0x428   : > { %18974 = vst [vmem:[#allocation63_spill] sm:$0xff] %v13824_v5  ;;  %v13831_v30 = vpop.f32.mrb[61].mxu0  ;;  %v3976_v11 = vmul.f32 2.0, %v13315_v53  ;;  %v5233_v63 = vmul.f32 %v5169_v8, %v18978_v36  ;;  %v5425_v42 = vmul.f32 %v5361_v54, %v18979_v4  ;;  %v5170_v5 = vmax.f32 %v7437_v45, 0.0 }
 0x429   : > { %18975 = vst [vmem:[#allocation71_spill] sm:$0xff] %v13831_v30  ;;  %18976 = vst [vmem:[#allocation259_spill] sm:$0xff] %v13834_v56  ;;  %v5362_v28 = vmax.f32 %v5298_v27, 0.0  ;;  %v13843_v57 = vmul.f32 %v11972_v25, %v13683_v52  ;;  %v7438_v22 = vadd.f32 -0.1, %v4253_v23  ;;  %v13845_v34 = vmax.f32 %v4039_v58, 0.0 }
 0x42a   : > { %18977 = vst [vmem:[#allocation260_spill] sm:$0xff] %v13836_v49  ;;  %v5299_v9 = vsub.f32 1.4, %v4253_v23  ;;  %v9612_v50 = vpop.eup %9611  ;;  %v5489_v1 = vmul.f32 16.0, %v7436_v19  ;;  %v5617_v18 = vmul.f32 16.0, %v5297_v20  ;;  %9615 = vrsqrt.f32 %v13829_v43  ;;  %v18985_v20 = vld [vmem:[#allocation12_spill] sm:$0xff] }
 0x42b   : > { %18980 = vst [vmem:[#allocation50_spill] sm:$0xff] %v13843_v57  ;;  %v13847_v59 = vpop.f32.mrb[62].mxu0  ;;  %v3977_v53 = vmul.f32 2.0, %v13327_v2  ;;  %v4660_v8 = vadd.s32 %v11922_v6, %v4627_v62  ;;  %v5743_v54 = vmax.f32 %v13834_v56, %v5742_v37  ;;  %v5815_v16 = vmax.f32 %v13836_v49, %v5814_v21 }
 0x42c   : > { %18981 = vst [vmem:[#allocation86_spill] sm:$0xff] %v13847_v59  ;;  %v13851_v4 = vpop.f32.mrb[63].mxu0  ;;  %v4040_v23 = vsub.f32 2.0, %v3976_v11  ;;  %v13856_v58 = vmul.f32 %v5489_v1, %v5233_v63  ;;  %v13858_v36 = vmul.f32 %v5617_v18, %v5425_v42  ;;  %v5234_v19 = vmul.f32 %v5170_v5, %v18984_v51 }
 0x42d   : > { %v5426_v41 = vmul.f32 %v5362_v28, %v18985_v20  ;;  %v5171_v59 = vmax.f32 %v7438_v22, 0.0  ;;  %v5363_v30 = vmax.f32 %v5299_v9, 0.0  ;;  %v4255_v2 = vmul.f32 %v9612_v50, %v13777_v29 }
 0x42e   : > { %18982 = vst [vmem:[#allocation261_spill] sm:$0xff] %v13856_v58  ;;  %18983 = vst [vmem:[#allocation262_spill] sm:$0xff] %v13858_v36  ;;  %9617 = vrsqrt.f32 %v13845_v34  ;;  %v13867_v62 = vsel %vm17942_vm10, %v13480_v12, 0.0  ;;  %v13871_v63 = vmul.f32 %v11976_v26, %v13683_v52  ;;  %v5490_v42 = vmul.f32 16.0, %v7437_v45  ;;  %v9614_v51 = vpop.eup %9613  ;;  %v18991_v45 = vld [vmem:[#allocation83_spill] sm:$0xff] }
 0x42f   : > { %18986 = vst [vmem:[#allocation85_spill] sm:$0xff] %v13867_v62  ;;  %v4041_v37 = vsub.f32 2.0, %v3977_v53  ;;  %v13876_v28 = vsel %vm17928_vm14, %v13843_v57, 0.0  ;;  %vm4692_vm12 = vcmp.lt.s32.totalorder %v4660_v8, 300  ;;  %v5618_v5 = vmul.f32 16.0, %v5298_v27  ;;  %v18992_v53 = vld [vmem:[#allocation87_spill] sm:$0xff] }
 0x430   : > { %18987 = vst [vmem:[#allocation12_spill] sm:$0xff] %v13871_v63  ;;  %18988 = vst [vmem:[#allocation263_spill] sm:$0xff] %v13876_v28  ;;  %v13878_v21 = vmax.f32 %v4040_v23, 0.0  ;;  %v5744_v11 = vmax.f32 %v13856_v58, %v5743_v54  ;;  %v5816_v50 = vmax.f32 %v13858_v36, %v5815_v16  ;;  %v13882_v1 = vmul.f32 %v5490_v42, %v5234_v19 }
 0x431   : > { %vm4256_vm2 = vcmp.eq.f32.partialorder %v13777_v29, inf  ;;  %v13885_v52 = vmul.f32 %v5618_v5, %v5426_v41  ;;  %v5235_v18 = vmul.f32 %v5171_v59, %v18991_v45  ;;  %v5427_v20 = vmul.f32 %v5363_v30, %v18992_v53 }
 0x432   : > { %18989 = vst [vmem:[#allocation264_spill] sm:$0xff] %v13882_v1  ;;  %v4257_v40 = vsel %vm4256_vm2, %v13777_v29, %v4255_v2  ;;  %v4259_v27 = vand.u32 2147483648, %v13777_v29  ;;  %v4262_v23 = vmul.f32 %v9614_v51, %v13802_v13  ;;  %v13892_v49 = vmax.f32 %v4041_v37, 0.0 }
 0x433   : > { %18990 = vst [vmem:[#allocation265_spill] sm:$0xff] %v13885_v52  ;;  %v3978_v54 = vmul.f32 2.0, %v13342_v14  ;;  %v5491_v16 = vmul.f32 16.0, %v7438_v22  ;;  %v5619_v19 = vmul.f32 16.0, %v5299_v9  ;;  %vm4258_vm13 = vcmp.eq.f32.partialorder %v13777_v29, 0.0 }
 0x434   : > { %9619 = vrsqrt.f32 %v13878_v21  ;;  %v9616_v41 = vpop.eup %9615  ;;  %v7418_v30 = vsel %vm4692_vm12, 1.0, %v18667_v60  ;;  %v4629_v59 = vadd.s32 240, %v11625_v61  ;;  %v5745_v2 = vmax.f32 %v13882_v1, %v5744_v11 }
 0x435   : > { %v4260_v42 = vsel %vm4258_vm13, %v4259_v27, %v4257_v40  ;;  %v5817_v37 = vmax.f32 %v13885_v52, %v5816_v50  ;;  %v13902_v51 = vmul.f32 %v5491_v16, %v5235_v18  ;;  %v13904_v14 = vmul.f32 %v5619_v19, %v5427_v20  ;;  %v19001_v52 = vld [vmem:[#allocation102_spill] sm:$0xff] }
 0x436   : > { %vm4263_vm2 = vcmp.eq.f32.partialorder %v13802_v13, inf  ;;  %9621 = vrsqrt.f32 %v13892_v49  ;;  %v4042_v22 = vsub.f32 2.0, %v3978_v54  ;;  %v3979_v9 = vmul.f32 2.0, %v13373_v7 }
 0x437   : > { %18993 = vst [vmem:[#allocation83_spill] sm:$0xff] %v13902_v51  ;;  %18994 = vst [vmem:[#allocation87_spill] sm:$0xff] %v13904_v14  ;;  %v4264_v29 = vsel %vm4263_vm2, %v13802_v13, %v4262_v23  ;;  %v7439_v5 = vadd.f32 -0.1, %v4260_v42  ;;  %v5300_v45 = vsub.f32 1.4, %v4260_v42  ;;  %v4269_v11 = vmul.f32 %v9616_v41, %v13829_v43 }
 0x438   : > { %v9618_v8 = vpop.eup %9617  ;;  %v4266_v40 = vand.u32 2147483648, %v13802_v13  ;;  %v13913_v50 = vmul.f32 %v11972_v25, %v7418_v30  ;;  %v13916_v18 = vmul.f32 %v11976_v26, %v7418_v30  ;;  %v13919_v53 = vadd.s32 %v11922_v6, %v4629_v59 }
 0x439   : > { %vm4265_vm12 = vcmp.eq.f32.partialorder %v13802_v13, 0.0  ;;  %v13923_v7 = vmax.f32 %v13902_v51, %v5745_v2  ;;  %v13926_v20 = vmax.f32 %v13904_v14, %v5817_v37  ;;  %vm4270_vm13 = vcmp.eq.f32.partialorder %v13829_v43, inf  ;;  %v19000_v14 = vld [vmem:[#allocation98_spill] sm:$0xff] }
 0x43a   : > { %18995 = vst [vmem:[#allocation266_spill] sm:$0xff] %v13913_v50  ;;  %18996 = vst [vmem:[#allocation267_spill] sm:$0xff] %v13916_v18  ;;  %v4267_v27 = vsel %vm4265_vm12, %v4266_v40, %v4264_v29  ;;  %vm4272_vm2 = vcmp.eq.f32.partialorder %v13829_v43, 0.0  ;;  %v4276_v23 = vmul.f32 %v9618_v8, %v13845_v34  ;;  %v13931_v54 = vmax.f32 %v4042_v22, 0.0  ;;  %v18997_v29 = vld [vmem:[#allocation221_spill] sm:$0xff] }
 0x43b   : > { %v4043_v16 = vsub.f32 2.0, %v3979_v9  ;;  %v5172_v6 = vmax.f32 %v7439_v5, 0.0  ;;  %v5364_v19 = vmax.f32 %v5300_v45, 0.0  ;;  %v4271_v13 = vsel %vm4270_vm13, %v13829_v43, %v4269_v11  ;;  %v18998_v9 = vld [vmem:[#allocation222_spill] sm:$0xff] }
 0x43c   : > { %v3980_v41 = vmul.f32 2.0, %v13387_v35  ;;  %v7440_v30 = vadd.f32 -0.1, %v4267_v27  ;;  %v5301_v59 = vsub.f32 1.4, %v4267_v27  ;;  %v4273_v2 = vand.u32 2147483648, %v13829_v43 }
 0x43d   : > { %vm4277_vm12 = vcmp.eq.f32.partialorder %v13845_v34, inf  ;;  %vm4279_vm14 = vcmp.eq.f32.partialorder %v13845_v34, 0.0  ;;  %v4280_v37 = vand.u32 2147483648, %v13845_v34  ;;  %v13940_v22 = vmul.f32 2.0, %v18997_v29  ;;  %v18999_v27 = vld [vmem:[#allocation229_spill] sm:$0xff] }
 0x43e   : > { %v9620_v42 = vpop.eup %9619  ;;  %v13943_v8 = vmul.f32 2.0, %v18998_v9  ;;  %v4274_v35 = vsel %vm4272_vm2, %v4273_v2, %v4271_v13  ;;  %v4278_v40 = vsel %vm4277_vm12, %v13845_v34, %v4276_v23  ;;  %v13948_v11 = vmax.f32 %v4043_v16, 0.0  ;;  %v19005_v34 = vld [vmem:[#allocation119_spill] sm:$0xff] }
 0x43f   : > { %v13951_v61 = vmul.f32 2.0, %v18999_v27  ;;  %v5236_v36 = vmul.f32 %v5172_v6, %v19000_v14  ;;  %v5428_v12 = vmul.f32 %v5364_v19, %v19001_v52  ;;  %9623 = vrsqrt.f32 %v13931_v54  ;;  %v19004_v19 = vld [vmem:[#allocation115_spill] sm:$0xff] }
 0x440   : > { %v4044_v29 = vsub.f32 2.0, %v3980_v41  ;;  %v9622_v51 = vpop.eup %9621  ;;  %v5492_v9 = vmul.f32 16.0, %v7439_v5  ;;  %v5173_v58 = vmax.f32 %v7440_v30, 0.0  ;;  %v5365_v1 = vmax.f32 %v5301_v59, 0.0 }
 0x441   : > { %v4283_v43 = vmul.f32 %v9620_v42, %v13878_v21  ;;  %v5620_v13 = vmul.f32 16.0, %v5300_v45  ;;  %v7441_v23 = vadd.f32 -0.1, %v4274_v35  ;;  %v5302_v16 = vsub.f32 1.4, %v4274_v35 }
 0x442   : > { %v4281_v2 = vsel %vm4279_vm14, %v4280_v37, %v4278_v40  ;;  %vm4284_vm13 = vcmp.eq.f32.partialorder %v13878_v21, inf  ;;  %vm4286_vm2 = vcmp.eq.f32.partialorder %v13878_v21, 0.0  ;;  %v4287_v52 = vand.u32 2147483648, %v13878_v21 }
 0x443   : > { %9625 = vrsqrt.f32 %v13948_v11  ;;  %v13963_v14 = vmul.f32 %v5492_v9, %v5236_v36  ;;  %v13965_v5 = vmul.f32 %v5620_v13, %v5428_v12  ;;  %v4290_v6 = vmul.f32 %v9622_v51, %v13892_v49 }
 0x444   : > { %v13968_v45 = vmax.f32 %v4044_v29, 0.0  ;;  %v5237_v41 = vmul.f32 %v5173_v58, %v19004_v19  ;;  %v5429_v42 = vmul.f32 %v5365_v1, %v19005_v34  ;;  %v7442_v37 = vadd.f32 -0.1, %v4281_v2 }
 0x445   : > { %19002 = vst [vmem:[#allocation221_spill] sm:$0xff] %v13963_v14  ;;  %19003 = vst [vmem:[#allocation222_spill] sm:$0xff] %v13965_v5  ;;  %v4285_v35 = vsel %vm4284_vm13, %v13878_v21, %v4283_v43  ;;  %v5174_v40 = vmax.f32 %v7441_v23, 0.0  ;;  %v5366_v27 = vmax.f32 %v5302_v16, 0.0  ;;  %v5303_v56 = vsub.f32 1.4, %v4281_v2 }
 0x446   : > { %vm4291_vm14 = vcmp.eq.f32.partialorder %v13892_v49, inf  ;;  %v5493_v36 = vmul.f32 16.0, %v7440_v30  ;;  %v5621_v9 = vmul.f32 16.0, %v5301_v59  ;;  %vm4293_vm12 = vcmp.eq.f32.partialorder %v13892_v49, 0.0  ;;  %v19008_v2 = vld [vmem:[#allocation116_spill] sm:$0xff] }
 0x447   : > { %v4294_v12 = vand.u32 2147483648, %v13892_v49  ;;  %v5747_v51 = vmax.f32 %v13963_v14, %v13923_v7  ;;  %v13980_v58 = vsel %vm4286_vm2, %v4287_v52, %v4285_v35  ;;  %v4292_v1 = vsel %vm4291_vm14, %v13892_v49, %v4290_v6  ;;  %v19009_v7 = vld [vmem:[#allocation68_spill] sm:$0xff] }
 0x448   : > { %9627 = vrsqrt.f32 %v13968_v45  ;;  %v5819_v29 = vmax.f32 %v13965_v5, %v13926_v20  ;;  %v13986_v30 = vmul.f32 %v5493_v36, %v5237_v41  ;;  %v13988_v59 = vmul.f32 %v5621_v9, %v5429_v42 }
 0x449   : > { %v5175_v43 = vmax.f32 %v7442_v37, 0.0  ;;  %v9624_v13 = vpop.eup %9623  ;;  %v5238_v19 = vmul.f32 %v5174_v40, %v19008_v2  ;;  %v5430_v34 = vmul.f32 %v5366_v27, %v19009_v7  ;;  %v5367_v21 = vmax.f32 %v5303_v56, 0.0  ;;  %v19010_v7 = vld [vmem:[#allocation44_spill] sm:$0xff] }
 0x44a   : > { %19006 = vst [vmem:[#allocation229_spill] sm:$0xff] %v13986_v30  ;;  %19007 = vst [vmem:[#allocation98_spill] sm:$0xff] %v13988_v59  ;;  %vm4298_vm13 = vcmp.eq.f32.partialorder %v13931_v54, inf  ;;  %v7443_v52 = vadd.f32 -0.1, %v13980_v58  ;;  %v4295_v6 = vsel %vm4293_vm12, %v4294_v12, %v4292_v1  ;;  %vm4300_vm2 = vcmp.eq.f32.partialorder %v13931_v54, 0.0 }
 0x44b   : > { %v4301_v20 = vand.u32 2147483648, %v13931_v54  ;;  %v4045_v41 = vsub.f32 2.0, %v13940_v22  ;;  %v5494_v42 = vmul.f32 16.0, %v7441_v23  ;;  %v5622_v35 = vmul.f32 16.0, %v5302_v16  ;;  %v19013_v22 = vld [vmem:[#allocation15_spill] sm:$0xff] }
 0x44c   : > { %v5304_v40 = vsub.f32 1.4, %v13980_v58  ;;  %v4046_v27 = vsub.f32 2.0, %v13943_v8  ;;  %v5748_v9 = vmax.f32 %v13986_v30, %v5747_v51  ;;  %v5820_v2 = vmax.f32 %v13988_v59, %v5819_v29 }
 0x44d   : > { %v9626_v36 = vpop.eup %9625  ;;  %v5239_v49 = vmul.f32 %v5175_v43, %v19010_v7  ;;  %v4297_v12 = vmul.f32 %v9624_v13, %v13931_v54  ;;  %v14005_v1 = vmul.f32 %v5494_v42, %v5238_v19  ;;  %v14007_v5 = vmul.f32 %v5622_v35, %v5430_v34  ;;  %v19017_v35 = vld [vmem:[#allocation202_spill] sm:$0xff] }
 0x44e   : > { %v5431_v23 = vmul.f32 %v5367_v21, %v19013_v22  ;;  %v7444_v16 = vadd.f32 -0.1, %v4295_v6  ;;  %v5495_v14 = vmul.f32 16.0, %v7442_v37  ;;  %v5176_v58 = vmax.f32 %v7443_v52, 0.0 }
 0x44f   : > { %19011 = vst [vmem:[#allocation102_spill] sm:$0xff] %v14005_v1  ;;  %19012 = vst [vmem:[#allocation115_spill] sm:$0xff] %v14007_v5  ;;  %vm4305_vm14 = vcmp.eq.f32.partialorder %v13948_v11, inf  ;;  %v14011_v8 = vmax.f32 %v4045_v41, 0.0  ;;  %v5623_v51 = vmul.f32 16.0, %v5303_v56  ;;  %v5368_v30 = vmax.f32 %v5304_v40, 0.0 }
 0x450   : > { %v5305_v29 = vsub.f32 1.4, %v4295_v6  ;;  %v4304_v43 = vmul.f32 %v9626_v36, %v13948_v11  ;;  %v14014_v7 = vmul.f32 %v5495_v14, %v5239_v49  ;;  %v4299_v13 = vsel %vm4298_vm13, %v13931_v54, %v4297_v12  ;;  %v19016_v41 = vld [vmem:[#allocation14_spill] sm:$0xff]  ;;  %v19018_v36 = vld [vmem:[#allocation204_spill] sm:$0xff] }
 0x451   : > { %vm4307_vm12 = vcmp.eq.f32.partialorder %v13948_v11, 0.0  ;;  %v4308_v37 = vand.u32 2147483648, %v13948_v11  ;;  %v5749_v34 = vmax.f32 %v14005_v1, %v5748_v9  ;;  %v5821_v21 = vmax.f32 %v14007_v5, %v5820_v2  ;;  %v19019_v9 = vld [vmem:[#allocation46_spill] sm:$0xff] }
 0x452   : > { %19014 = vst [vmem:[#allocation119_spill] sm:$0xff] %v14014_v7  ;;  %v9628_v19 = vpop.eup %9627  ;;  %v14023_v56 = vmul.f32 %v5623_v51, %v5431_v23  ;;  %v5177_v6 = vmax.f32 %v7444_v16, 0.0  ;;  %v5240_v42 = vmul.f32 %v5176_v58, %v19016_v41  ;;  %vm4312_vm10 = vcmp.eq.f32.partialorder %v13968_v45, inf  ;;  %v19020_v23 = vld [vmem:[#allocation206_spill] sm:$0xff]  ;;  %v19021_v41 = vld [vmem:[#allocation231_spill] sm:$0xff] }
 0x453   : > { %9629 = vrsqrt.f32 %v14011_v8  ;;  %v14028_v14 = vmax.f32 %v4046_v27, 0.0  ;;  %vm17988_vm13 = vcmp.gt.f32.partialorder %v19017_v35, 0.02405601  ;;  %vm17979_vm4 = vcmp.gt.f32.partialorder %v19018_v36, 0.02405601  ;;  %v19022_v54 = vld [vmem:[#allocation134_spill] sm:$0xff] }
 0x454   : > { %19015 = vst [vmem:[#allocation116_spill] sm:$0xff] %v14023_v56  ;;  %vm4694_vm0 = vcmp.lt.s32.totalorder %v13919_v53, 300  ;;  %v5432_v49 = vmul.f32 %v5368_v30, %v19019_v9  ;;  %v5369_v2 = vmax.f32 %v5305_v29, 0.0  ;;  %v4302_v12 = vsel %vm4300_vm2, %v4301_v20, %v4299_v13 }
 0x455   : > { %v4306_v22 = vsel %vm4305_vm14, %v13948_v11, %v4304_v43  ;;  %vm17987_vm1 = vcmp.gt.f32.partialorder %v19020_v23, 0.02405601  ;;  %v5496_v27 = vmul.f32 16.0, %v7443_v52  ;;  %v4311_v58 = vmul.f32 %v9628_v19, %v13968_v45 }
 0x456   : > { %v4047_v51 = vsub.f32 2.0, %v13951_v61  ;;  %v3984_v59 = vmul.f32 2.0, %v19021_v41  ;;  %v5750_v5 = vmax.f32 %v14014_v7, %v5749_v34  ;;  %v5822_v30 = vmax.f32 %v14023_v56, %v5821_v21  ;;  %v19025_v61 = vld [vmem:[#allocation138_spill] sm:$0xff] }
 0x457   : > { %v5624_v9 = vmul.f32 16.0, %v5304_v40  ;;  %v5241_v20 = vmul.f32 %v5177_v6, %v19022_v54  ;;  %v14046_v13 = vmul.f32 %v5496_v27, %v5240_v42  ;;  %v7445_v1 = vadd.f32 -0.1, %v4302_v12 }
 0x458   : > { %v4309_v43 = vsel %vm4307_vm12, %v4308_v37, %v4306_v22  ;;  %9631 = vrsqrt.f32 %v14028_v14  ;;  %v5433_v19 = vmul.f32 %v5369_v2, %v19025_v61  ;;  %v5497_v41 = vmul.f32 16.0, %v7444_v16  ;;  %v19026_v37 = vld [vmem:[#allocation235_spill] sm:$0xff] }
 0x459   : > { %19023 = vst [vmem:[#allocation68_spill] sm:$0xff] %v14046_v13  ;;  %v14051_v52 = vmul.f32 %v5624_v9, %v5432_v49  ;;  %v5306_v57 = vsub.f32 1.4, %v4302_v12  ;;  %v5625_v34 = vmul.f32 16.0, %v5305_v29  ;;  %v4313_v40 = vsel %vm4312_vm10, %v13968_v45, %v4311_v58 }
 0x45a   : > { %v14057_v21 = vmax.f32 %v4047_v51, 0.0  ;;  %v4048_v6 = vsub.f32 2.0, %v3984_v59  ;;  %v7446_v42 = vadd.f32 -0.1, %v4309_v43  ;;  %v5307_v27 = vsub.f32 1.4, %v4309_v43 }
 0x45b   : > { %19024 = vst [vmem:[#allocation44_spill] sm:$0xff] %v14051_v52  ;;  %v4315_v11 = vand.u32 2147483648, %v13968_v45  ;;  %v3985_v22 = vmul.f32 2.0, %v19026_v37  ;;  %v5751_v49 = vmax.f32 %v14046_v13, %v5750_v5  ;;  %v14062_v9 = vmul.f32 %v5497_v41, %v5241_v20  ;;  %v19032_v41 = vld [vmem:[#allocation135_spill] sm:$0xff] }
 0x45c   : > { %v5178_v16 = vmax.f32 %v7445_v1, 0.0  ;;  %vm4314_vm2 = vcmp.eq.f32.partialorder %v13968_v45, 0.0  ;;  %v5823_v29 = vmax.f32 %v14051_v52, %v5822_v30  ;;  %v14066_v2 = vmul.f32 %v5625_v34, %v5433_v19 }
 0x45d   : > { %19027 = vst [vmem:[#allocation15_spill] sm:$0xff] %v14062_v9  ;;  %v5370_v12 = vmax.f32 %v5306_v57, 0.0  ;;  %v4316_v58 = vsel %vm4314_vm2, %v4315_v11, %v4313_v40  ;;  %v9630_v59 = vpop.eup %9629  ;;  %v14071_v51 = vsel %vm17988_vm13, %v13871_v63, 0.0  ;;  %v14076_v5 = vsel %vm17979_vm4, %v13913_v50, 0.0  ;;  %v19033_v11 = vld [vmem:[#allocation139_spill] sm:$0xff] }
 0x45e   : > { %19028 = vst [vmem:[#allocation14_spill] sm:$0xff] %v14066_v2  ;;  %19029 = vst [vmem:[#allocation46_spill] sm:$0xff] %v14071_v51  ;;  %9633 = vrsqrt.f32 %v14057_v21  ;;  %v14079_v45 = vmax.f32 %v4048_v6, 0.0  ;;  %v14084_v30 = vsel %vm17987_vm1, %v13916_v18, 0.0  ;;  %v5179_v54 = vmax.f32 %v7446_v42, 0.0 }
 0x45f   : > { %19030 = vst [vmem:[#allocation231_spill] sm:$0xff] %v14076_v5  ;;  %19031 = vst [vmem:[#allocation134_spill] sm:$0xff] %v14084_v30  ;;  %v5371_v20 = vmax.f32 %v5307_v27, 0.0  ;;  %v4049_v43 = vsub.f32 2.0, %v3985_v22  ;;  %v7420_v61 = vsel %vm4694_vm0, 1.0, %v18667_v60  ;;  %v5752_v19 = vmax.f32 %v14062_v9, %v5751_v49  ;;  %v19034_v22 = vld [vmem:[#allocation236_spill] sm:$0xff] }
 0x460   : > { %v5242_v34 = vmul.f32 %v5178_v16, %v19032_v41  ;;  %v7447_v40 = vadd.f32 -0.1, %v4316_v58  ;;  %v5824_v6 = vmax.f32 %v14066_v2, %v5823_v29  ;;  %v5434_v37 = vmul.f32 %v5370_v12, %v19033_v11  ;;  %v19035_v60 = vld [vmem:[#allocation58_spill] sm:$0xff] }
 0x461   : > { %v5308_v56 = vsub.f32 1.4, %v4316_v58  ;;  %v4318_v52 = vmul.f32 %v9630_v59, %v14011_v8  ;;  %v5498_v13 = vmul.f32 16.0, %v7445_v1  ;;  %v5626_v18 = vmul.f32 16.0, %v5306_v57  ;;  %v19036_v49 = vld [vmem:[#allocation62_spill] sm:$0xff] }
 0x462   : > { %v9632_v7 = vpop.eup %9631  ;;  %9635 = vrsqrt.f32 %v14079_v45  ;;  %v3986_v53 = vmul.f32 2.0, %v19034_v22  ;;  %v5243_v50 = vmul.f32 %v5179_v54, %v19035_v60  ;;  %v5435_v9 = vmul.f32 %v5371_v20, %v19036_v49  ;;  %v19040_v20 = vld [vmem:[#allocation7_spill] sm:$0xff] }
 0x463   : > { %v5499_v16 = vmul.f32 16.0, %v7446_v42  ;;  %v14098_v41 = vmax.f32 %v4049_v43, 0.0  ;;  %v14100_v29 = vmul.f32 %v5498_v13, %v5242_v34  ;;  %v5627_v12 = vmul.f32 16.0, %v5307_v27  ;;  %v19041_v43 = vld [vmem:[#allocation213_spill] sm:$0xff]  ;;  %v19046_v49 = vld [vmem:[#allocation27_spill] sm:$0xff] }
 0x464   : > { %v5180_v58 = vmax.f32 %v7447_v40, 0.0  ;;  %vm4319_vm0 = vcmp.eq.f32.partialorder %v14011_v8, inf  ;;  %v14103_v59 = vmul.f32 %v5626_v18, %v5434_v37  ;;  %v5372_v57 = vmax.f32 %v5308_v56, 0.0 }
 0x465   : > { %19037 = vst [vmem:[#allocation138_spill] sm:$0xff] %v14100_v29  ;;  %v4320_v1 = vsel %vm4319_vm0, %v14011_v8, %v4318_v52  ;;  %v4325_v11 = vmul.f32 %v9632_v7, %v14028_v14  ;;  %v14108_v60 = vmul.f32 %v11972_v25, %v7420_v61  ;;  %v4322_v42 = vand.u32 2147483648, %v14011_v8  ;;  %v19044_v52 = vld [vmem:[#allocation20_spill] sm:$0xff] }
 0x466   : > { %19038 = vst [vmem:[#allocation235_spill] sm:$0xff] %v14103_v59  ;;  %v4050_v54 = vsub.f32 2.0, %v3986_v53  ;;  %v3987_v13 = vmul.f32 2.0, %v19040_v20  ;;  %vm17963_vm10 = vcmp.gt.f32.partialorder %v19041_v43, 0.02405601  ;;  %v14114_v27 = vmul.f32 %v5499_v16, %v5243_v50  ;;  %v19045_v53 = vld [vmem:[#allocation24_spill] sm:$0xff] }
 0x467   : > { %19039 = vst [vmem:[#allocation135_spill] sm:$0xff] %v14108_v60  ;;  %vm17965_vm14 = vcmp.gt.f32.partialorder %v13742_v33, 0.02405601  ;;  %v14116_v18 = vmul.f32 %v5627_v12, %v5435_v9  ;;  %vm4321_vm12 = vcmp.eq.f32.partialorder %v14011_v8, 0.0  ;;  %9637 = vrsqrt.f32 %v14098_v41  ;;  %v19058_v43 = vld [vmem:[#allocation105_spill] sm:$0xff] }
 0x468   : > { %19042 = vst [vmem:[#allocation139_spill] sm:$0xff] %v14114_v27  ;;  %v9634_v7 = vpop.eup %9633  ;;  %v5753_v25 = vmax.f32 %v14100_v29, %v5752_v19  ;;  %v5244_v34 = vmul.f32 %v5180_v58, %v19044_v52  ;;  %v14122_v37 = vsel %vm4321_vm12, %v4322_v42, %v4320_v1  ;;  %vm4326_vm2 = vcmp.eq.f32.partialorder %v14028_v14, inf }
 0x469   : > { %19043 = vst [vmem:[#allocation236_spill] sm:$0xff] %v14116_v18  ;;  %v5825_v22 = vmax.f32 %v14103_v59, %v5824_v6  ;;  %v5436_v50 = vmul.f32 %v5372_v57, %v19045_v53  ;;  %v4327_v9 = vsel %vm4326_vm2, %v14028_v14, %v4325_v11  ;;  %v3988_v16 = vmul.f32 2.0, %v19046_v49 }
 0x46a   : > { %v5500_v8 = vmul.f32 16.0, %v7447_v40  ;;  %v4329_v12 = vand.u32 2147483648, %v14028_v14  ;;  %v14130_v20 = vmax.f32 %v4050_v54, 0.0  ;;  %v4051_v19 = vsub.f32 2.0, %v3987_v13 }
 0x46b   : > { %v5628_v2 = vmul.f32 16.0, %v5308_v56  ;;  %v7448_v58 = vadd.f32 -0.1, %v14122_v37  ;;  %vm4328_vm0 = vcmp.eq.f32.partialorder %v14028_v14, 0.0  ;;  %v4332_v1 = vmul.f32 %v9634_v7, %v14057_v21 }
 0x46c   : > { %v9636_v6 = vpop.eup %9635  ;;  %v14136_v57 = vmul.f32 %v11976_v26, %v7420_v61  ;;  %v14139_v11 = vmax.f32 %v14114_v27, %v5753_v25  ;;  %v14141_v40 = vmul.f32 %v5500_v8, %v5244_v34  ;;  %v14143_v42 = vsel %vm4328_vm0, %v4329_v12, %v4327_v9  ;;  %v19052_v12 = vld [vmem:[#allocation150_spill] sm:$0xff] }
 0x46d   : > { %v14146_v54 = vmax.f32 %v14116_v18, %v5825_v22  ;;  %v14148_v56 = vmul.f32 %v5628_v2, %v5436_v50  ;;  %v4052_v13 = vsub.f32 2.0, %v3988_v16  ;;  %v3989_v14 = vmul.f32 2.0, %v13516_v31 }
 0x46e   : > { %19047 = vst [vmem:[#allocation58_spill] sm:$0xff] %v14136_v57  ;;  %19048 = vst [vmem:[#allocation62_spill] sm:$0xff] %v14141_v40  ;;  %vm4333_vm12 = vcmp.eq.f32.partialorder %v14057_v21, inf  ;;  %9639 = vrsqrt.f32 %v14130_v20  ;;  %v14153_v26 = vmax.f32 %v4051_v19, 0.0  ;;  %v14156_v61 = vmul.f32 2.0, %v13523_v47 }
 0x46f   : > { %19049 = vst [vmem:[#allocation7_spill] sm:$0xff] %v14148_v56  ;;  %v5181_v7 = vmax.f32 %v7448_v58, 0.0  ;;  %v7449_v25 = vadd.f32 -0.1, %v14143_v42  ;;  %v4334_v52 = vsel %vm4333_vm12, %v14057_v21, %v4332_v1  ;;  %v4339_v2 = vmul.f32 %v9636_v6, %v14079_v45 }
 0x470   : > { %v14164_v31 = vsel %vm17963_vm10, %v14108_v60, 0.0  ;;  %v14169_v34 = vsel %vm17965_vm14, %v14136_v57, 0.0  ;;  %v5755_v47 = vmax.f32 %v14141_v40, %v14139_v11  ;;  %v4336_v22 = vand.u32 2147483648, %v14057_v21  ;;  %v19053_v11 = vld [vmem:[#allocation239_spill] sm:$0xff]  ;;  %v19057_v40 = vld [vmem:[#allocation152_spill] sm:$0xff] }
 0x471   : > { %19050 = vst [vmem:[#allocation20_spill] sm:$0xff] %v14164_v31  ;;  %19051 = vst [vmem:[#allocation24_spill] sm:$0xff] %v14169_v34  ;;  %v9638_v53 = vpop.eup %9637  ;;  %vm4335_vm2 = vcmp.eq.f32.partialorder %v14057_v21, 0.0  ;;  %v14177_v9 = vmax.f32 %v4052_v13, 0.0  ;;  %v4053_v49 = vsub.f32 2.0, %v3989_v14  ;;  %vm4340_vm0 = vcmp.eq.f32.partialorder %v14079_v45, inf }
 0x472   : > { %v4337_v16 = vsel %vm4335_vm2, %v4336_v22, %v4334_v52  ;;  %9641 = vrsqrt.f32 %v14153_v26  ;;  %v4054_v8 = vsub.f32 2.0, %v14156_v61  ;;  %v5245_v19 = vmul.f32 %v5181_v7, %v19052_v12  ;;  %v19055_v12 = vld [vmem:[#allocation151_spill] sm:$0xff]  ;;  %v19083_v31 = vld [vmem:[#allocation26_spill] sm:$0xff] }
 0x473   : > { %v5182_v1 = vmax.f32 %v7449_v25, 0.0  ;;  %v4341_v6 = vsel %vm4340_vm0, %v14079_v45, %v4339_v2  ;;  %v14185_v18 = vmul.f32 2.0, %v19053_v11  ;;  %v5309_v21 = vsub.f32 1.4, %v14122_v37 }
 0x474   : > { %vm4342_vm12 = vcmp.eq.f32.partialorder %v14079_v45, 0.0  ;;  %v4343_v13 = vand.u32 2147483648, %v14079_v45  ;;  %v4346_v14 = vmul.f32 %v9638_v53, %v14098_v41  ;;  %v5501_v52 = vmul.f32 16.0, %v7448_v58 }
 0x475   : > { %v7450_v22 = vadd.f32 -0.1, %v4337_v16  ;;  %vm4347_vm2 = vcmp.eq.f32.partialorder %v14098_v41, inf  ;;  %v14192_v61 = vmax.f32 %v4053_v49, 0.0  ;;  %v5310_v7 = vsub.f32 1.4, %v14143_v42 }
 0x476   : > { %v4344_v2 = vsel %vm4342_vm12, %v4343_v13, %v4341_v6  ;;  %vm4349_vm0 = vcmp.eq.f32.partialorder %v14098_v41, 0.0  ;;  %9643 = vrsqrt.f32 %v14177_v9  ;;  %v14197_v37 = vmul.f32 %v5501_v52, %v5245_v19 }
 0x477   : > { %v5246_v11 = vmul.f32 %v5182_v1, %v19055_v12  ;;  %v4350_v45 = vand.u32 2147483648, %v14098_v41  ;;  %vm4354_vm10 = vcmp.eq.f32.partialorder %v14130_v20, inf  ;;  %v5373_v53 = vmax.f32 %v5309_v21, 0.0 }
 0x478   : > { %19054 = vst [vmem:[#allocation27_spill] sm:$0xff] %v14197_v37  ;;  %v9640_v58 = vpop.eup %9639  ;;  %v5311_v50 = vsub.f32 1.4, %v4337_v16  ;;  %v4348_v49 = vsel %vm4347_vm2, %v14098_v41, %v4346_v14  ;;  %v4357_v42 = vand.u32 2147483648, %v14130_v20  ;;  %v5502_v6 = vmul.f32 16.0, %v7449_v25 }
 0x479   : > { %v5183_v13 = vmax.f32 %v7450_v22, 0.0  ;;  %v7451_v59 = vadd.f32 -0.1, %v4344_v2  ;;  %vm4356_vm12 = vcmp.eq.f32.partialorder %v14130_v20, 0.0  ;;  %9645 = vrsqrt.f32 %v14192_v61 }
 0x47a   : > { %v5374_v19 = vmax.f32 %v5310_v7, 0.0  ;;  %vm4361_vm14 = vcmp.eq.f32.partialorder %v14153_v26, inf  ;;  %v4364_v1 = vand.u32 2147483648, %v14153_v26  ;;  %v5756_v16 = vmax.f32 %v14197_v37, %v5755_v47  ;;  %v19063_v37 = vld [vmem:[#allocation107_spill] sm:$0xff] }
 0x47b   : > { %v14210_v12 = vmul.f32 %v5502_v6, %v5246_v11  ;;  %v4351_v25 = vsel %vm4349_vm0, %v4350_v45, %v4348_v49  ;;  %v4353_v14 = vmul.f32 %v9640_v58, %v14130_v20  ;;  %v14216_v29 = vmul.f32 %v5373_v53, %v19057_v40  ;;  %v19059_v11 = vld [vmem:[#allocation155_spill] sm:$0xff]  ;;  %v19060_v49 = vld [vmem:[#allocation109_spill] sm:$0xff] }
 0x47c   : > { %v9642_v27 = vpop.eup %9641  ;;  %v14218_v57 = vmul.f32 16.0, %v5309_v21  ;;  %v5375_v60 = vmax.f32 %v5311_v50, 0.0  ;;  %v5312_v33 = vsub.f32 1.4, %v4344_v2  ;;  %v5247_v23 = vmul.f32 %v5183_v13, %v19058_v43 }
 0x47d   : > { %19056 = vst [vmem:[#allocation150_spill] sm:$0xff] %v14210_v12  ;;  %v5184_v52 = vmax.f32 %v7451_v59, 0.0  ;;  %vm4363_vm2 = vcmp.eq.f32.partialorder %v14153_v26, 0.0  ;;  %v14222_v47 = vmax.f32 %v4054_v8, 0.0  ;;  %v4055_v41 = vsub.f32 2.0, %v14185_v18 }
 0x47e   : > { %v14226_v45 = vmul.f32 %v5374_v19, %v19059_v11  ;;  %v14228_v58 = vmul.f32 16.0, %v5310_v7  ;;  %v5503_v40 = vmul.f32 16.0, %v7450_v22  ;;  %v7452_v53 = vadd.f32 -0.1, %v4351_v25  ;;  %v19061_v22 = vld [vmem:[#allocation99_spill] sm:$0xff] }
 0x47f   : > { %vm4368_vm0 = vcmp.eq.f32.partialorder %v14177_v9, inf  ;;  %v5757_v21 = vmax.f32 %v14210_v12, %v5756_v16  ;;  %v14232_v2 = vmul.f32 16.0, %v5311_v50  ;;  %v4355_v43 = vsel %vm4354_vm10, %v14130_v20, %v4353_v14 }
 0x480   : > { %v4360_v8 = vmul.f32 %v9642_v27, %v14153_v26  ;;  %v9644_v18 = vpop.eup %9643  ;;  %v14239_v6 = vmul.f32 %v5375_v60, %v19060_v49  ;;  %v5376_v7 = vmax.f32 %v5312_v33, 0.0  ;;  %v5313_v13 = vsub.f32 1.4, %v4351_v25 }
 0x481   : > { %v3992_v19 = vmul.f32 2.0, %v19061_v22  ;;  %v14242_v11 = vmul.f32 %v5503_v40, %v5247_v23  ;;  %v5248_v16 = vmul.f32 %v5184_v52, %v19063_v37  ;;  %v5504_v50 = vmul.f32 16.0, %v7451_v59  ;;  %v19065_v40 = vld [vmem:[#allocation78_spill] sm:$0xff] }
 0x482   : > { %v14245_v12 = vmul.f32 16.0, %v5312_v33  ;;  %vm4370_vm4 = vcmp.eq.f32.partialorder %v14177_v9, 0.0  ;;  %v5185_v14 = vmax.f32 %v7452_v53, 0.0  ;;  %v4358_v27 = vsel %vm4356_vm12, %v4357_v42, %v4355_v43  ;;  %v19064_v33 = vld [vmem:[#allocation25_spill] sm:$0xff] }
 0x483   : > { %19062 = vst [vmem:[#allocation239_spill] sm:$0xff] %v14242_v11  ;;  %9647 = vrsqrt.f32 %v14222_v47  ;;  %v3993_v60 = vmul.f32 2.0, %v13559_v46  ;;  %v9646_v25 = vpop.eup %9645  ;;  %v4362_v23 = vsel %vm4361_vm14, %v14153_v26, %v4360_v8  ;;  %v4367_v37 = vmul.f32 %v9644_v18, %v14177_v9  ;;  %v19072_v26 = vld [vmem:[#allocation244_spill] sm:$0xff] }
 0x484   : > { %v14256_v59 = vmax.f32 %v4055_v41, 0.0  ;;  %v3994_v52 = vmul.f32 2.0, %v19064_v33  ;;  %v14260_v49 = vmul.f32 %v5376_v7, %v19065_v40  ;;  %v14262_v20 = vmax.f32 %v5313_v13, 0.0 }
 0x485   : > { %v14264_v42 = vmul.f32 16.0, %v7452_v53  ;;  %v4056_v43 = vsub.f32 2.0, %v3992_v19  ;;  %v14267_v46 = vmax.f32 %v14242_v11, %v5757_v21  ;;  %v14269_v22 = vmul.f32 %v5504_v50, %v5248_v16  ;;  %v19069_v19 = vld [vmem:[#allocation242_spill] sm:$0xff]  ;;  %v19070_v50 = vld [vmem:[#allocation164_spill] sm:$0xff] }
 0x486   : > { %v7453_v8 = vadd.f32 -0.1, %v4358_v27  ;;  %v5314_v36 = vsub.f32 1.4, %v4358_v27  ;;  %v14271_v18 = vmul.f32 16.0, %v5313_v13  ;;  %v4365_v41 = vsel %vm4363_vm2, %v4364_v1, %v4362_v23 }
 0x487   : > { %19066 = vst [vmem:[#allocation151_spill] sm:$0xff] %v14264_v42  ;;  %19067 = vst [vmem:[#allocation152_spill] sm:$0xff] %v14267_v46  ;;  %v4374_v7 = vmul.f32 %v9646_v25, %v14192_v61  ;;  %v4057_v33 = vsub.f32 2.0, %v3993_v60  ;;  %v4369_v53 = vsel %vm4368_vm0, %v14177_v9, %v4367_v37  ;;  %9649 = vrsqrt.f32 %v14256_v59 }
 0x488   : > { %19068 = vst [vmem:[#allocation105_spill] sm:$0xff] %v14269_v22  ;;  %v4058_v21 = vsub.f32 2.0, %v3994_v52  ;;  %v3995_v16 = vmul.f32 2.0, %v19069_v19  ;;  %v14282_v40 = vmul.f32 %v5185_v14, %v19070_v50  ;;  %vm4375_vm10 = vcmp.eq.f32.partialorder %v14192_v61, inf }
 0x489   : > { %v14285_v13 = vmax.f32 %v4056_v43, 0.0  ;;  %v3996_v1 = vmul.f32 2.0, %v19072_v26  ;;  %v5186_v60 = vmax.f32 %v7453_v8, 0.0  ;;  %v14290_v25 = vmax.f32 %v5314_v36, 0.0 }
 0x48a   : > { %19071 = vst [vmem:[#allocation155_spill] sm:$0xff] %v14282_v40  ;;  %vm4377_vm14 = vcmp.eq.f32.partialorder %v14192_v61, 0.0  ;;  %v14293_v23 = vmul.f32 16.0, %v7453_v8  ;;  %v7454_v37 = vadd.f32 -0.1, %v4365_v41  ;;  %v19074_v14 = vand.u32 2147483648, %v14177_v9 }
 0x48b   : > { %v14299_v43 = vmax.f32 %v4057_v33, 0.0  ;;  %v4376_v19 = vsel %vm4375_vm10, %v14192_v61, %v4374_v7  ;;  %v14302_v50 = vmax.f32 %v4058_v21, 0.0  ;;  %v4059_v26 = vsub.f32 2.0, %v3995_v16 }
 0x48c   : > { %19073 = vst [vmem:[#allocation109_spill] sm:$0xff] %v14293_v23  ;;  %v4372_v52 = vsel %vm4370_vm4, %v19074_v14, %v4369_v53  ;;  %v3997_v27 = vmul.f32 2.0, %v13603_v3  ;;  %v5315_v63 = vsub.f32 1.4, %v4365_v41  ;;  %v4378_v8 = vand.u32 2147483648, %v14192_v61 }
 0x48d   : > { %v9648_v11 = vpop.eup %9647  ;;  %9651 = vrsqrt.f32 %v14285_v13  ;;  %v4060_v35 = vsub.f32 2.0, %v3996_v1  ;;  %v14308_v34 = vmul.f32 %v5186_v60, %v19075_v48  ;;  %v14310_v9 = vmul.f32 16.0, %v5314_v36 }
 0x48e   : > { %v7455_v33 = vadd.f32 -0.1, %v4372_v52  ;;  %v5316_v53 = vsub.f32 1.4, %v4372_v52  ;;  %v5187_v7 = vmax.f32 %v7454_v37, 0.0  ;;  %v14314_v21 = vsel %vm4377_vm14, %v4378_v8, %v4376_v19 }
 0x48f   : > { %19076 = vst [vmem:[#allocation99_spill] sm:$0xff] %v14308_v34  ;;  %19077 = vst [vmem:[#allocation107_spill] sm:$0xff] %v14314_v21  ;;  %9653 = vrsqrt.f32 %v14299_v43  ;;  %v3998_v3 = vmul.f32 2.0, %v13609_v32  ;;  %v4381_v41 = vmul.f32 %v9648_v11, %v14222_v47  ;;  %v14320_v16 = vmax.f32 %v4059_v26, 0.0 }
 0x490   : > { %9655 = vrsqrt.f32 %v14302_v50  ;;  %v4061_v48 = vsub.f32 2.0, %v3997_v27  ;;  %v14322_v36 = vmax.f32 %v5315_v63, 0.0  ;;  %v14324_v1 = vmul.f32 16.0, %v7454_v37 }
 0x491   : > { %v14326_v60 = vmul.f32 16.0, %v5315_v63  ;;  %v14328_v61 = vmax.f32 %v4060_v35, 0.0  ;;  %v9650_v14 = vpop.eup %9649  ;;  %v5188_v52 = vmax.f32 %v7455_v33, 0.0  ;;  %v14330_v19 = vmax.f32 %v5316_v53, 0.0 }
 0x492   : > { %19078 = vst [vmem:[#allocation25_spill] sm:$0xff] %v14324_v1  ;;  %v14333_v32 = vadd.f32 -0.1, %v14314_v21  ;;  %v14336_v26 = vmul.f32 16.0, %v7455_v33  ;;  %v14338_v27 = vmul.f32 16.0, %v5316_v53  ;;  %vm4382_vm4 = vcmp.eq.f32.partialorder %v14222_v47, inf }
 0x493   : > { %19079 = vst [vmem:[#allocation78_spill] sm:$0xff] %v14326_v60  ;;  %v3999_v63 = vmul.f32 2.0, %v13622_v10  ;;  %v4383_v35 = vsel %vm4382_vm4, %v14222_v47, %v4381_v41  ;;  %9657 = vrsqrt.f32 %v14320_v16  ;;  %v14344_v37 = vmax.f32 %v4061_v48, 0.0  ;;  %v19085_v53 = vld [vmem:[#allocation36_spill] sm:$0xff] }
 0x494   : > { %19080 = vst [vmem:[#allocation242_spill] sm:$0xff] %v14333_v32  ;;  %19081 = vst [vmem:[#allocation164_spill] sm:$0xff] %v14336_v26  ;;  %v4062_v8 = vsub.f32 2.0, %v3998_v3  ;;  %v14347_v30 = vmul.f32 %v5187_v7, %v19083_v31  ;;  %v4385_v11 = vand.u32 2147483648, %v14222_v47  ;;  %v4388_v33 = vmul.f32 %v9650_v14, %v14256_v59 }
 0x495   : > { %19082 = vst [vmem:[#allocation244_spill] sm:$0xff] %v14338_v27  ;;  %9659 = vrsqrt.f32 %v14328_v61  ;;  %v14353_v26 = vmul.f32 %v5188_v52, %v19085_v53  ;;  %v19087_v41 = vsub.f32 1.4, %v14314_v21  ;;  %vm4384_vm12 = vcmp.eq.f32.partialorder %v14222_v47, 0.0 }
 0x496   : > { %19084 = vst [vmem:[#allocation166_spill] sm:$0xff] %v14347_v30  ;;  %v14362_v31 = vmul.f32 16.0, %v14333_v32  ;;  %v14364_v7 = vsel %vm4384_vm12, %v4385_v11, %v4383_v35  ;;  %vm4389_vm2 = vcmp.eq.f32.partialorder %v14256_v59, inf  ;;  %vm4391_vm0 = vcmp.eq.f32.partialorder %v14256_v59, 0.0 }
 0x497   : > { %19086 = vst [vmem:[#allocation26_spill] sm:$0xff] %v14353_v26  ;;  %v14358_v5 = vmax.f32 %v19087_v41, 0.0  ;;  %v9652_v3 = vpop.eup %9651  ;;  %19089 = vst [vmem:[#allocation268_spill] sm:$0xff] %v14364_v7  ;;  %v4392_v48 = vand.u32 2147483648, %v14256_v59  ;;  %9661 = vrsqrt.f32 %v14344_v37  ;;  %v14370_v14 = vmax.f32 %v4062_v8, 0.0 }
 0x498   : > { %19088 = vst [vmem:[#allocation36_spill] sm:$0xff] %v14362_v31  ;;  %v4063_v52 = vsub.f32 2.0, %v3999_v63  ;;  %v4390_v47 = vsel %vm4389_vm2, %v14256_v59, %v4388_v33  ;;  %vm4396_vm10 = vcmp.eq.f32.partialorder %v14285_v13, inf  ;;  %vm4398_vm14 = vcmp.eq.f32.partialorder %v14285_v13, 0.0 }
 0x499   : > { %v9654_v53 = vpop.eup %9653  ;;  %v4399_v11 = vand.u32 2147483648, %v14285_v13  ;;  %v14377_v41 = vadd.f32 -0.1, %v14364_v7  ;;  %v4395_v10 = vmul.f32 %v9652_v3, %v14285_v13  ;;  %vm4403_vm4 = vcmp.eq.f32.partialorder %v14299_v43, inf }
 0x49a   : > { %v9656_v35 = vpop.eup %9655  ;;  %v4000_v8 = vmul.f32 2.0, %v13632_v55  ;;  %vm4405_vm12 = vcmp.eq.f32.partialorder %v14299_v43, 0.0  ;;  %v4406_v33 = vand.u32 2147483648, %v14299_v43  ;;  %vm4410_vm2 = vcmp.eq.f32.partialorder %v14302_v50, inf }
 0x49b   : > { %19090 = vst [vmem:[#allocation269_spill] sm:$0xff] %v14377_v41  ;;  %v14388_v31 = vsel %vm4391_vm0, %v4392_v48, %v4390_v47  ;;  %v4402_v26 = vmul.f32 %v9654_v53, %v14299_v43  ;;  %9663 = vrsqrt.f32 %v14370_v14  ;;  %v14392_v3 = vmax.f32 %v4063_v52, 0.0 }
 0x49c   : > { %19091 = vst [vmem:[#allocation270_spill] sm:$0xff] %v14388_v31  ;;  %v4409_v55 = vmul.f32 %v9656_v35, %v14302_v50  ;;  %vm4412_vm1 = vcmp.eq.f32.partialorder %v14302_v50, 0.0  ;;  %v4413_v63 = vand.u32 2147483648, %v14302_v50  ;;  %vm4417_vm13 = vcmp.eq.f32.partialorder %v14320_v16, inf }
 0x49d   : > { %v9658_v1 = vpop.eup %9657  ;;  %v4397_v59 = vsel %vm4396_vm10, %v14285_v13, %v4395_v10  ;;  %v4420_v48 = vand.u32 2147483648, %v14320_v16  ;;  %v4064_v53 = vsub.f32 2.0, %v4000_v8  ;;  %v19092_v47 = vsub.f32 1.4, %v14364_v7 }
 0x49e   : > { %v14408_v46 = vmul.f32 16.0, %v14377_v41  ;;  %v14411_v22 = vadd.f32 -0.1, %v14388_v31  ;;  %vm4419_vm0 = vcmp.eq.f32.partialorder %v14320_v16, 0.0  ;;  %vm4424_vm3 = vcmp.eq.f32.partialorder %v14328_v61, inf }
 0x49f   : > { %v9660_v52 = vpop.eup %9659  ;;  %v14405_v35 = vmax.f32 %v19092_v47, 0.0  ;;  %v4404_v8 = vsel %vm4403_vm4, %v14299_v43, %v4402_v26  ;;  %vm4426_vm10 = vcmp.eq.f32.partialorder %v14328_v61, 0.0  ;;  %9665 = vrsqrt.f32 %v14392_v3 }
 0x4a0   : > { %19094 = vst [vmem:[#allocation272_spill] sm:$0xff] %v14408_v46  ;;  %19095 = vst [vmem:[#allocation273_spill] sm:$0xff] %v14411_v22  ;;  %v14423_v47 = vsel %vm4398_vm14, %v4399_v11, %v4397_v59  ;;  %v4411_v30 = vsel %vm4410_vm2, %v14302_v50, %v4409_v55  ;;  %v4416_v46 = vmul.f32 %v9658_v1, %v14320_v16  ;;  %v4427_v10 = vand.u32 2147483648, %v14328_v61 }
 0x4a1   : > { %19093 = vst [vmem:[#allocation271_spill] sm:$0xff] %v14405_v35  ;;  %19096 = vst [vmem:[#allocation274_spill] sm:$0xff] %v14423_v47  ;;  %v9662_v41 = vpop.eup %9661  ;;  %v4423_v32 = vmul.f32 %v9660_v52, %v14328_v61  ;;  %vm4431_vm4 = vcmp.eq.f32.partialorder %v14344_v37, inf  ;;  %v4434_v26 = vand.u32 2147483648, %v14344_v37  ;;  %v14433_v23 = vmax.f32 %v4064_v53, 0.0 }
 0x4a2   : > { %v14438_v11 = vsel %vm4405_vm12, %v4406_v33, %v4404_v8  ;;  %vm4433_vm14 = vcmp.eq.f32.partialorder %v14344_v37, 0.0  ;;  %v4441_v1 = vand.u32 2147483648, %v14370_v14  ;;  %v4001_v55 = vmul.f32 2.0, %v13647_v38 }
 0x4a3   : > { %19097 = vst [vmem:[#allocation275_spill] sm:$0xff] %v14438_v11  ;;  %v19098_v59 = vsub.f32 1.4, %v14388_v31  ;;  %v14448_v34 = vadd.f32 -0.1, %v14423_v47  ;;  %v14453_v43 = vsel %vm4412_vm1, %v4413_v63, %v4411_v30  ;;  %vm4438_vm12 = vcmp.eq.f32.partialorder %v14370_v14, inf }
 0x4a4   : > { %19101 = vst [vmem:[#allocation278_spill] sm:$0xff] %v14453_v43  ;;  %v14457_v33 = vmul.f32 16.0, %v14411_v22  ;;  %v4418_v38 = vsel %vm4417_vm13, %v14320_v16, %v4416_v46  ;;  %v4430_v8 = vmul.f32 %v9662_v41, %v14344_v37  ;;  %v14465_v53 = vadd.f32 -0.1, %v14438_v11  ;;  %v19114_v16 = vld [vmem:[#allocation251_spill] sm:$0xff] }
 0x4a5   : > { %v14445_v52 = vmax.f32 %v19098_v59, 0.0  ;;  %19100 = vst [vmem:[#allocation277_spill] sm:$0xff] %v14448_v34  ;;  %v9664_v13 = vpop.eup %9663  ;;  %v4425_v30 = vsel %vm4424_vm3, %v14328_v61, %v4423_v32  ;;  %9667 = vrsqrt.f32 %v14433_v23  ;;  %v4002_v50 = vmul.f32 2.0, %v13653_v44 }
 0x4a6   : > { %19102 = vst [vmem:[#allocation279_spill] sm:$0xff] %v14457_v33  ;;  %19103 = vst [vmem:[#allocation280_spill] sm:$0xff] %v14465_v53  ;;  %v14474_v46 = vadd.f32 -0.1, %v14453_v43  ;;  %vm4440_vm1 = vcmp.eq.f32.partialorder %v14370_v14, 0.0  ;;  %v4065_v41 = vsub.f32 2.0, %v4001_v55  ;;  %v14488_v44 = vsel %vm4419_vm0, %v4420_v48, %v4418_v38 }
 0x4a7   : > { %19099 = vst [vmem:[#allocation276_spill] sm:$0xff] %v14445_v52  ;;  %v4003_v59 = vmul.f32 2.0, %v13666_v0  ;;  %v19105_v22 = vsub.f32 1.4, %v14423_v47  ;;  %v14484_v32 = vmul.f32 16.0, %v14448_v34  ;;  %19108 = vst [vmem:[#allocation284_spill] sm:$0xff] %v14488_v44  ;;  %v14493_v55 = vsel %vm4426_vm10, %v4427_v10, %v4425_v30 }
 0x4a8   : > { %19104 = vst [vmem:[#allocation281_spill] sm:$0xff] %v14474_v46  ;;  %vm4445_vm3 = vcmp.eq.f32.partialorder %v14392_v3, inf  ;;  %19109 = vst [vmem:[#allocation285_spill] sm:$0xff] %v14493_v55  ;;  %v4432_v0 = vsel %vm4431_vm4, %v14344_v37, %v4430_v8  ;;  %v4004_v33 = vmul.f32 2.0, %v13672_v17  ;;  %v4066_v48 = vsub.f32 2.0, %v4002_v50  ;;  %v19110_v38 = vld [vmem:[#allocation249_spill] sm:$0xff] }
 0x4a9   : > { %v14481_v42 = vmax.f32 %v19105_v22, 0.0  ;;  %19107 = vst [vmem:[#allocation283_spill] sm:$0xff] %v14484_v32  ;;  %v4437_v22 = vmul.f32 %v9664_v13, %v14370_v14  ;;  %v9666_v63 = vpop.eup %9665  ;;  %v4005_v34 = vmul.f32 2.0, %v19110_v38  ;;  %v14505_v10 = vadd.f32 -0.1, %v14488_v44  ;;  %v19113_v50 = vld [vmem:[#allocation250_spill] sm:$0xff] }
 0x4aa   : > { %v14507_v30 = vmax.f32 %v4065_v41, 0.0  ;;  %v4067_v8 = vsub.f32 2.0, %v4003_v59  ;;  %v14511_v17 = vadd.f32 -0.1, %v14493_v55  ;;  %v14515_v32 = vsel %vm4433_vm14, %v4434_v26, %v4432_v0  ;;  %v19115_v26 = vld [vmem:[#allocation252_spill] sm:$0xff]  ;;  %v19130_v47 = vld [vmem:[#allocation86_spill] sm:$0xff] }
 0x4ab   : > { %19106 = vst [vmem:[#allocation282_spill] sm:$0xff] %v14481_v42  ;;  %19111 = vst [vmem:[#allocation249_spill] sm:$0xff] %v14505_v10  ;;  %vm4447_vm13 = vcmp.eq.f32.partialorder %v14392_v3, 0.0  ;;  %v4006_v38 = vmul.f32 2.0, %v19113_v50  ;;  %v4439_v61 = vsel %vm4438_vm12, %v14370_v14, %v4437_v22  ;;  %v4444_v41 = vmul.f32 %v9666_v63, %v14392_v3  ;;  %v19117_v22 = vld [vmem:[#allocation66_spill] sm:$0xff] }
 0x4ac   : > { %19112 = vst [vmem:[#allocation286_spill] sm:$0xff] %v14511_v17  ;;  %v4068_v59 = vsub.f32 2.0, %v4004_v33  ;;  %v4007_v13 = vmul.f32 2.0, %v19114_v16  ;;  %v14525_v53 = vmax.f32 %v4066_v48, 0.0  ;;  %v4069_v37 = vsub.f32 2.0, %v4005_v34  ;;  %v19118_v34 = vld [vmem:[#allocation94_spill] sm:$0xff] }
 0x4ad   : > { %v4008_v0 = vmul.f32 2.0, %v19115_v26  ;;  %v14529_v40 = vadd.f32 -0.1, %v14515_v32  ;;  %9669 = vrsqrt.f32 %v14507_v30  ;;  %v14532_v50 = vmax.f32 %v4067_v8, 0.0  ;;  %v19128_v17 = vld [vmem:[#allocation71_spill] sm:$0xff] }
 0x4ae   : > { %v4009_v51 = vmul.f32 2.0, %v19117_v22  ;;  %v14537_v33 = vsel %vm4440_vm1, %v4441_v1, %v4439_v61  ;;  %vm4452_vm2 = vcmp.eq.f32.partialorder %v14433_v23, inf  ;;  %v4070_v16 = vsub.f32 2.0, %v4006_v38  ;;  %v19120_v1 = vld [vmem:[#allocation255_spill] sm:$0xff] }
 0x4af   : > { %19116 = vst [vmem:[#allocation250_spill] sm:$0xff] %v14529_v40  ;;  %v9668_v63 = vpop.eup %9667  ;;  %v4010_v48 = vmul.f32 2.0, %v19118_v34  ;;  %v4446_v26 = vsel %vm4445_vm3, %v14392_v3, %v4444_v41  ;;  %v14544_v46 = vmax.f32 %v4068_v59, 0.0  ;;  %v4071_v8 = vsub.f32 2.0, %v4007_v13  ;;  %v19119_v40 = vld [vmem:[#allocation97_spill] sm:$0xff] }
 0x4b0   : > { %v4011_v28 = vmul.f32 2.0, %v19119_v40  ;;  %9671 = vrsqrt.f32 %v14525_v53  ;;  %v14548_v22 = vmax.f32 %v4069_v37, 0.0  ;;  %v4072_v14 = vsub.f32 2.0, %v4008_v0 }
 0x4b1   : > { %v4012_v61 = vmul.f32 2.0, %v19120_v1  ;;  %v4451_v38 = vmul.f32 %v9668_v63, %v14433_v23  ;;  %9673 = vrsqrt.f32 %v14532_v50  ;;  %v4073_v34 = vsub.f32 2.0, %v4009_v51 }
 0x4b2   : > { %v4013_v62 = vmul.f32 2.0, %v13782_v39  ;;  %v14555_v41 = vadd.f32 -0.1, %v14537_v33  ;;  %vm4454_vm0 = vcmp.eq.f32.partialorder %v14433_v23, 0.0  ;;  %v14558_v40 = vmax.f32 %v4070_v16, 0.0 }
 0x4b3   : > { %v4074_v13 = vsub.f32 2.0, %v4010_v48  ;;  %v19122_v59 = vand.u32 2147483648, %v14392_v3  ;;  %9675 = vrsqrt.f32 %v14544_v46  ;;  %v14567_v0 = vmax.f32 %v4071_v8, 0.0 }
 0x4b4   : > { %19121 = vst [vmem:[#allocation251_spill] sm:$0xff] %v14555_v41  ;;  %v4075_v51 = vsub.f32 2.0, %v4011_v28  ;;  %v4455_v39 = vand.u32 2147483648, %v14433_v23  ;;  %9677 = vrsqrt.f32 %v14548_v22  ;;  %v14571_v63 = vmax.f32 %v4072_v14, 0.0 }
 0x4b5   : > { %v14564_v37 = vsel %vm4447_vm13, %v19122_v59, %v4446_v26  ;;  %v4076_v16 = vsub.f32 2.0, %v4012_v61  ;;  %v4453_v48 = vsel %vm4452_vm2, %v14433_v23, %v4451_v38  ;;  %vm4459_vm10 = vcmp.eq.f32.partialorder %v14507_v30, inf }
 0x4b6   : > { %19123 = vst [vmem:[#allocation252_spill] sm:$0xff] %v14564_v37  ;;  %v14577_v3 = vmax.f32 %v4073_v34, 0.0  ;;  %v4077_v26 = vsub.f32 2.0, %v4013_v62  ;;  %v4014_v8 = vmul.f32 2.0, %v13790_v24  ;;  %v14581_v28 = vadd.f32 -0.1, %v14564_v37 }
 0x4b7   : > { %9679 = vrsqrt.f32 %v14558_v40  ;;  %v14584_v1 = vmax.f32 %v4074_v13, 0.0  ;;  %v4015_v14 = vmul.f32 2.0, %v13805_v15  ;;  %v9670_v61 = vpop.eup %9669  ;;  %v14589_v38 = vmax.f32 %v4075_v51, 0.0  ;;  %v19125_v34 = vld [vmem:[#allocation258_spill] sm:$0xff] }
 0x4b8   : > { %19124 = vst [vmem:[#allocation66_spill] sm:$0xff] %v14581_v28  ;;  %9681 = vrsqrt.f32 %v14567_v0  ;;  %v4016_v62 = vmul.f32 2.0, %v19125_v34  ;;  %v14594_v24 = vsel %vm4454_vm0, %v4455_v39, %v4453_v48  ;;  %v14598_v13 = vmax.f32 %v4076_v16, 0.0  ;;  %v19127_v34 = vld [vmem:[#allocation63_spill] sm:$0xff] }
 0x4b9   : > { %19126 = vst [vmem:[#allocation94_spill] sm:$0xff] %v14594_v24  ;;  %9683 = vrsqrt.f32 %v14571_v63  ;;  %vm4466_vm4 = vcmp.eq.f32.partialorder %v14525_v53, inf  ;;  %vm4473_vm14 = vcmp.eq.f32.partialorder %v14532_v50, inf  ;;  %v14603_v15 = vmax.f32 %v4077_v26, 0.0 }
 0x4ba   : > { %9685 = vrsqrt.f32 %v14577_v3  ;;  %v4078_v51 = vsub.f32 2.0, %v4014_v8  ;;  %v4017_v59 = vmul.f32 2.0, %v19127_v34  ;;  %v9672_v23 = vpop.eup %9671  ;;  %v4458_v39 = vmul.f32 %v9670_v61, %v14507_v30 }
 0x4bb   : > { %9687 = vrsqrt.f32 %v14584_v1  ;;  %v4079_v16 = vsub.f32 2.0, %v4015_v14  ;;  %v9674_v28 = vpop.eup %9673  ;;  %vm4480_vm12 = vcmp.eq.f32.partialorder %v14544_v46, inf  ;;  %v4080_v26 = vsub.f32 2.0, %v4016_v62 }
 0x4bc   : > { %9689 = vrsqrt.f32 %v14589_v38  ;;  %v4018_v8 = vmul.f32 2.0, %v19128_v17  ;;  %v14614_v34 = vadd.f32 -0.1, %v14594_v24  ;;  %vm4487_vm1 = vcmp.eq.f32.partialorder %v14548_v22, inf }
 0x4bd   : > { %9691 = vrsqrt.f32 %v14598_v13  ;;  %v9676_v14 = vpop.eup %9675  ;;  %v14621_v41 = vmax.f32 %v4078_v51, 0.0  ;;  %v4081_v10 = vsub.f32 2.0, %v4017_v59  ;;  %v14626_v17 = vsel %vm4459_vm10, %v14507_v30, %v4458_v39 }
 0x4be   : > { %19129 = vst [vmem:[#allocation97_spill] sm:$0xff] %v14614_v34  ;;  %9693 = vrsqrt.f32 %v14603_v15  ;;  %v9678_v62 = vpop.eup %9677  ;;  %v4465_v34 = vmul.f32 %v9672_v23, %v14525_v53  ;;  %v4472_v61 = vmul.f32 %v9674_v28, %v14532_v50  ;;  %vm4494_vm3 = vcmp.eq.f32.partialorder %v14558_v40, inf }
 0x4bf   : > { %v14631_v55 = vmax.f32 %v4079_v16, 0.0  ;;  %vm4501_vm13 = vcmp.eq.f32.partialorder %v14567_v0, inf  ;;  %v14635_v48 = vmax.f32 %v4080_v26, 0.0  ;;  %v4082_v59 = vsub.f32 2.0, %v4018_v8 }
 0x4c0   : > { %v4019_v44 = vmul.f32 2.0, %v19130_v47  ;;  %vm4461_vm2 = vcmp.eq.f32.partialorder %v14507_v30, 0.0  ;;  %vm4468_vm0 = vcmp.eq.f32.partialorder %v14525_v53, 0.0  ;;  %vm4475_vm10 = vcmp.eq.f32.partialorder %v14532_v50, 0.0 }
 0x4c1   : > { %v9680_v31 = vpop.eup %9679  ;;  %v4479_v28 = vmul.f32 %v9676_v14, %v14544_v46  ;;  %vm4508_vm8 = vcmp.eq.f32.partialorder %v14571_v63, inf  ;;  %v4020_v39 = vmul.f32 2.0, %v13851_v4  ;;  %vm4482_vm7 = vcmp.eq.f32.partialorder %v14544_v46, 0.0 }
 0x4c2   : > { %v9682_v16 = vpop.eup %9681  ;;  %v4486_v47 = vmul.f32 %v9678_v62, %v14548_v22  ;;  %vm4515_vm11 = vcmp.eq.f32.partialorder %v14577_v3, inf  ;;  %9695 = vrsqrt.f32 %v14621_v41  ;;  %v14649_v26 = vmax.f32 %v4081_v10, 0.0 }
 0x4c3   : > { %v9684_v8 = vpop.eup %9683  ;;  %v4467_v14 = vsel %vm4466_vm4, %v14525_v53, %v4465_v34  ;;  %v4474_v4 = vsel %vm4473_vm14, %v14532_v50, %v4472_v61  ;;  %vm4489_vm5 = vcmp.eq.f32.partialorder %v14548_v22, 0.0  ;;  %vm4496_vm9 = vcmp.eq.f32.partialorder %v14558_v40, 0.0 }
 0x4c4   : > { %vm4503_vm6 = vcmp.eq.f32.partialorder %v14567_v0, 0.0  ;;  %v4518_v62 = vand.u32 2147483648, %v14577_v3  ;;  %9697 = vrsqrt.f32 %v14631_v55  ;;  %v9686_v10 = vpop.eup %9685  ;;  %v4493_v23 = vmul.f32 %v9680_v31, %v14558_v40 }
 0x4c5   : > { %9699 = vrsqrt.f32 %v14635_v48  ;;  %v14664_v34 = vmax.f32 %v4082_v59, 0.0  ;;  %v4083_v51 = vsub.f32 2.0, %v4019_v44  ;;  %v9688_v43 = vpop.eup %9687  ;;  %v4481_v61 = vsel %vm4480_vm12, %v14544_v46, %v4479_v28 }
 0x4c6   : > { %v4500_v42 = vmul.f32 %v9682_v16, %v14567_v0  ;;  %vm4510_vm4 = vcmp.eq.f32.partialorder %v14571_v63, 0.0  ;;  %vm4522_vm14 = vcmp.eq.f32.partialorder %v14584_v1, inf  ;;  %v4084_v7 = vsub.f32 2.0, %v4020_v39  ;;  %v9690_v11 = vpop.eup %9689 }
 0x4c7   : > { %v4488_v31 = vsel %vm4487_vm1, %v14548_v22, %v4486_v47  ;;  %v4507_v59 = vmul.f32 %v9684_v8, %v14571_v63  ;;  %v4525_v44 = vand.u32 2147483648, %v14584_v1  ;;  %9701 = vrsqrt.f32 %v14649_v26  ;;  %v9692_v52 = vpop.eup %9691 }
 0x4c8   : > { %v4514_v28 = vmul.f32 %v9686_v10, %v14577_v3  ;;  %vm4529_vm12 = vcmp.eq.f32.partialorder %v14589_v38, inf  ;;  %v4532_v16 = vand.u32 2147483648, %v14589_v38  ;;  %vm4536_vm15 = vcmp.eq.f32.partialorder %v14598_v13, inf  ;;  %v9694_v39 = vpop.eup %9693 }
 0x4c9   : > { %v4495_v47 = vsel %vm4494_vm3, %v14558_v40, %v4493_v23  ;;  %v4539_v8 = vand.u32 2147483648, %v14598_v13  ;;  %9703 = vrsqrt.f32 %v14664_v34  ;;  %v14687_v27 = vmax.f32 %v4083_v51, 0.0 }
 0x4ca   : > { %v4502_v10 = vsel %vm4501_vm13, %v14567_v0, %v4500_v42  ;;  %v4521_v21 = vmul.f32 %v9688_v43, %v14584_v1  ;;  %v4528_v35 = vmul.f32 %v9690_v11, %v14589_v38  ;;  %v14694_v60 = vmax.f32 %v4084_v7, 0.0 }
 0x4cb   : > { %v4509_v23 = vsel %vm4508_vm8, %v14571_v63, %v4507_v59  ;;  %v19131_v24 = vand.u32 2147483648, %v14507_v30  ;;  %v19132_v37 = vand.u32 2147483648, %v14525_v53  ;;  %v19133_v7 = vand.u32 2147483648, %v14532_v50 }
 0x4cc   : > { %v4535_v43 = vmul.f32 %v9692_v52, %v14598_v13  ;;  %v4542_v59 = vmul.f32 %v9694_v39, %v14603_v15  ;;  %v19134_v30 = vand.u32 2147483648, %v14544_v46  ;;  %v4516_v53 = vsel %vm4515_vm11, %v14577_v3, %v4514_v28 }
 0x4cd   : > { %v14704_v51 = vsel %vm4461_vm2, %v19131_v24, %v14626_v17  ;;  %v14710_v42 = vsel %vm4468_vm0, %v19132_v37, %v4467_v14  ;;  %v14716_v11 = vsel %vm4475_vm10, %v19133_v7, %v4474_v4  ;;  %v9696_v37 = vpop.eup %9695  ;;  %9705 = vrsqrt.f32 %v14687_v27 }
 0x4ce   : > { %v14724_v24 = vsel %vm4482_vm7, %v19134_v30, %v4481_v61  ;;  %v19135_v50 = vand.u32 2147483648, %v14548_v22  ;;  %v19136_v17 = vand.u32 2147483648, %v14558_v40  ;;  %v19137_v14 = vand.u32 2147483648, %v14567_v0  ;;  %v9698_v61 = vpop.eup %9697 }
 0x4cf   : > { %9707 = vrsqrt.f32 %v14694_v60  ;;  %vm4517_vm11 = vcmp.eq.f32.partialorder %v14577_v3, 0.0  ;;  %v4523_v22 = vsel %vm4522_vm14, %v14584_v1, %v4521_v21  ;;  %v4530_v40 = vsel %vm4529_vm12, %v14589_v38, %v4528_v35 }
 0x4d0   : > { %v14734_v52 = vsel %vm4489_vm5, %v19135_v50, %v4488_v31  ;;  %v14740_v46 = vsel %vm4496_vm9, %v19136_v17, %v4495_v47  ;;  %v14746_v4 = vsel %vm4503_vm6, %v19137_v14, %v4502_v10  ;;  %v9700_v31 = vpop.eup %9699  ;;  %v19138_v28 = vand.u32 2147483648, %v14571_v63 }
 0x4d1   : > { %v14762_v39 = vsel %vm4517_vm11, %v4518_v62, %v4516_v53  ;;  %vm4524_vm5 = vcmp.eq.f32.partialorder %v14584_v1, 0.0  ;;  %vm4543_vm6 = vcmp.eq.f32.partialorder %v14603_v15, inf  ;;  %v4549_v3 = vmul.f32 %v9696_v37, %v14621_v41  ;;  %v9702_v47 = vpop.eup %9701 }
 0x4d2   : > { %v14760_v0 = vsel %vm4510_vm4, %v19138_v28, %v4509_v23  ;;  %vm4531_vm9 = vcmp.eq.f32.partialorder %v14589_v38, 0.0  ;;  %v4537_v21 = vsel %vm4536_vm15, %v14598_v13, %v4535_v43  ;;  %v4544_v35 = vsel %vm4543_vm6, %v14603_v15, %v4542_v59 }
 0x4d3   : > { %v4556_v63 = vmul.f32 %v9698_v61, %v14631_v55  ;;  %v14773_v10 = vsel %vm4524_vm5, %v4525_v44, %v4523_v22  ;;  %v14775_v62 = vsel %vm4531_vm9, %v4532_v16, %v4530_v40  ;;  %v4546_v1 = vand.u32 2147483648, %v14603_v15  ;;  %v9704_v7 = vpop.eup %9703  ;;  %v19142_v22 = vld [vmem:[#allocation165_spill] sm:$0xff] }
 0x4d4   : > { %v4563_v23 = vmul.f32 %v9700_v31, %v14635_v48  ;;  %vm4538_vm7 = vcmp.eq.f32.partialorder %v14598_v13, 0.0  ;;  %vm4545_vm8 = vcmp.eq.f32.partialorder %v14603_v15, 0.0  ;;  %v14783_v38 = vmul.f32 %v14218_v57, %v14216_v29 }
 0x4d5   : > { %v14785_v43 = vsel %vm4538_vm7, %v4539_v8, %v4537_v21  ;;  %v14787_v59 = vsel %vm4545_vm8, %v4546_v1, %v4544_v35  ;;  %vm4550_vm15 = vcmp.eq.f32.partialorder %v14621_v41, inf  ;;  %vm4552_vm1 = vcmp.eq.f32.partialorder %v14621_v41, 0.0 }
 0x4d6   : > { %19139 = vst [vmem:[#allocation255_spill] sm:$0xff] %v14783_v38  ;;  %v4551_v44 = vsel %vm4550_vm15, %v14621_v41, %v4549_v3  ;;  %v4553_v16 = vand.u32 2147483648, %v14621_v41  ;;  %vm4557_vm3 = vcmp.eq.f32.partialorder %v14631_v55, inf  ;;  %v4570_v13 = vmul.f32 %v9702_v47, %v14649_v26  ;;  %v19144_v47 = vld [vmem:[#allocation169_spill] sm:$0xff] }
 0x4d7   : > { %v4558_v29 = vsel %vm4557_vm3, %v14631_v55, %v4556_v63  ;;  %vm4559_vm13 = vcmp.eq.f32.partialorder %v14631_v55, 0.0  ;;  %v4560_v57 = vand.u32 2147483648, %v14631_v55  ;;  %vm4564_vm2 = vcmp.eq.f32.partialorder %v14635_v48, inf  ;;  %v9706_v37 = vpop.eup %9705 }
 0x4d8   : > { %v4565_v15 = vsel %vm4564_vm2, %v14635_v48, %v4563_v23  ;;  %v4577_v8 = vmul.f32 %v9704_v7, %v14664_v34  ;;  %v19140_v30 = vmax.f32 %v14148_v56, %v14146_v54  ;;  %v14807_v53 = vmul.f32 %v14228_v58, %v14226_v45  ;;  %v19146_v7 = vld [vmem:[#allocation110_spill] sm:$0xff] }
 0x4d9   : > { %v14809_v50 = vsel %vm4552_vm1, %v4553_v16, %v4551_v44  ;;  %vm4566_vm0 = vcmp.eq.f32.partialorder %v14635_v48, 0.0  ;;  %v4567_v55 = vand.u32 2147483648, %v14635_v48  ;;  %vm4571_vm10 = vcmp.eq.f32.partialorder %v14649_v26, inf  ;;  %v9708_v17 = vpop.eup %9707 }
 0x4da   : > { %v5828_v41 = vmax.f32 %v14783_v38, %v19140_v30  ;;  %19141 = vst [vmem:[#allocation258_spill] sm:$0xff] %v14807_v53  ;;  %v14814_v14 = vsel %vm4559_vm13, %v4560_v57, %v4558_v29  ;;  %v4572_v54 = vsel %vm4571_vm10, %v14649_v26, %v4570_v13  ;;  %vm4573_vm4 = vcmp.eq.f32.partialorder %v14649_v26, 0.0 }
 0x4db   : > { %v4574_v61 = vand.u32 2147483648, %v14649_v26  ;;  %v14819_v45 = vsel %vm4566_vm0, %v4567_v55, %v4565_v15  ;;  %vm4578_vm14 = vcmp.eq.f32.partialorder %v14664_v34, inf  ;;  %vm4580_vm12 = vcmp.eq.f32.partialorder %v14664_v34, 0.0  ;;  %v19169_v55 = vld [vmem:[#allocation275_spill] sm:$0xff] }
 0x4dc   : > { %v4581_v58 = vand.u32 2147483648, %v14664_v34  ;;  %v4579_v48 = vsel %vm4578_vm14, %v14664_v34, %v4577_v8  ;;  %v5441_v40 = vmul.f32 %v14262_v20, %v19142_v22  ;;  %v5829_v31 = vmax.f32 %v14807_v53, %v5828_v41  ;;  %v19171_v34 = vld [vmem:[#allocation268_spill] sm:$0xff] }
 0x4dd   : > { %v14830_v28 = vmul.f32 %v14232_v2, %v14239_v6  ;;  %v4591_v26 = vmul.f32 %v9708_v17, %v14694_v60  ;;  %v14833_v3 = vsel %vm4573_vm4, %v4574_v61, %v4572_v54  ;;  %v4584_v21 = vmul.f32 %v9706_v37, %v14687_v27  ;;  %v19156_v17 = vld [vmem:[#allocation182_spill] sm:$0xff]  ;;  %v19157_v61 = vld [vmem:[#allocation252_spill] sm:$0xff] }
 0x4de   : > { %vm4585_vm11 = vcmp.eq.f32.partialorder %v14687_v27, inf  ;;  %v14840_v20 = vadd.f32 -0.1, %v14704_v51  ;;  %v5442_v63 = vmul.f32 %v14290_v25, %v19144_v47  ;;  %v14844_v2 = vsel %vm4580_vm12, %v4581_v58, %v4579_v48  ;;  %v19167_v58 = vld [vmem:[#allocation124_spill] sm:$0xff]  ;;  %v19174_v47 = vld [vmem:[#allocation126_spill] sm:$0xff] }
 0x4df   : > { %19143 = vst [vmem:[#allocation63_spill] sm:$0xff] %v14830_v28  ;;  %19145 = vst [vmem:[#allocation71_spill] sm:$0xff] %v14844_v2  ;;  %v14847_v6 = vadd.f32 -0.1, %v14710_v42  ;;  %v14850_v1 = vadd.f32 -0.1, %v14716_v11  ;;  %v5443_v44 = vmul.f32 %v14322_v36, %v19146_v7  ;;  %v5830_v16 = vmax.f32 %v14830_v28, %v5829_v31 }
 0x4e0   : > { %v14853_v23 = vadd.f32 -0.1, %v14724_v24  ;;  %v14860_v13 = vmul.f32 %v14245_v12, %v14260_v49  ;;  %v14863_v25 = vmul.f32 %v14271_v18, %v5441_v40  ;;  %v4586_v29 = vsel %vm4585_vm11, %v14687_v27, %v4584_v21  ;;  %v19153_v12 = vld [vmem:[#allocation111_spill] sm:$0xff]  ;;  %v19175_v31 = vld [vmem:[#allocation282_spill] sm:$0xff]  ;;  %v19200_v21 = vld [vmem:[#allocation249_spill] sm:$0xff] }
 0x4e1   : > { %v14867_v57 = vadd.f32 -0.1, %v14734_v52  ;;  %v14870_v15 = vadd.f32 -0.1, %v14740_v46  ;;  %v14873_v8 = vadd.f32 -0.1, %v14746_v4  ;;  %v5444_v49 = vmul.f32 %v14330_v19, %v19153_v12 }
 0x4e2   : > { %19147 = vst [vmem:[#allocation86_spill] sm:$0xff] %v14860_v13  ;;  %19148 = vst [vmem:[#allocation165_spill] sm:$0xff] %v14863_v25  ;;  %vm4592_vm5 = vcmp.eq.f32.partialorder %v14694_v60, inf  ;;  %v14877_v36 = vadd.f32 -0.1, %v14760_v0  ;;  %v5831_v18 = vmax.f32 %v14860_v13, %v5830_v16  ;;  %v14883_v30 = vmul.f32 %v14310_v9, %v5442_v63  ;;  %v19158_v19 = vld [vmem:[#allocation94_spill] sm:$0xff] }
 0x4e3   : > { %19149 = vst [vmem:[#allocation169_spill] sm:$0xff] %v14867_v57  ;;  %19150 = vst [vmem:[#allocation110_spill] sm:$0xff] %v14870_v15  ;;  %v14886_v41 = vadd.f32 -0.1, %v14762_v39  ;;  %v5445_v54 = vmul.f32 %v14358_v5, %v19156_v17  ;;  %vm4587_vm6 = vcmp.eq.f32.partialorder %v14687_v27, 0.0  ;;  %v19159_v9 = vld [vmem:[#allocation78_spill] sm:$0xff] }
 0x4e4   : > { %19151 = vst [vmem:[#allocation287_spill] sm:$0xff] %v14873_v8  ;;  %19152 = vst [vmem:[#allocation288_spill] sm:$0xff] %v14877_v36  ;;  %v5832_v22 = vmax.f32 %v14863_v25, %v5831_v18  ;;  %v14897_v40 = vmul.f32 %v19159_v9, %v5443_v44  ;;  %v19161_v63 = vld [vmem:[#allocation183_spill] sm:$0xff]  ;;  %vm4594_vm9 = vcmp.eq.f32.partialorder %v14694_v60, 0.0  ;;  %v19165_v44 = vld [vmem:[#allocation244_spill] sm:$0xff]  ;;  %v5448_v25 = vmul.f32 %v19175_v31, %v19174_v47 }
 0x4e5   : > { %19154 = vst [vmem:[#allocation111_spill] sm:$0xff] %v14883_v30  ;;  %19155 = vst [vmem:[#allocation289_spill] sm:$0xff] %v14886_v41  ;;  %v19162_v7 = vld [vmem:[#allocation271_spill] sm:$0xff]  ;;  %v14910_v9 = vmul.f32 %v19165_v44, %v5444_v49  ;;  %v19170_v37 = vsub.f32 1.4, %v19169_v55  ;;  %v19181_v44 = vld [vmem:[#allocation284_spill] sm:$0xff] }
 0x4e6   : > { %19160 = vst [vmem:[#allocation182_spill] sm:$0xff] %v14897_v40  ;;  %v5446_v5 = vmul.f32 %v19162_v7, %v19161_v63  ;;  %v19163_v12 = vld [vmem:[#allocation107_spill] sm:$0xff]  ;;  %v5833_v18 = vmax.f32 %v14883_v30, %v5832_v22  ;;  %v19168_v63 = vld [vmem:[#allocation276_spill] sm:$0xff]  ;;  %v19182_v31 = vsub.f32 1.4, %v19181_v44  ;;  %v19183_v49 = vld [vmem:[#allocation186_spill] sm:$0xff] }
 0x4e7   : > { %v19164_v17 = vsub.f32 1.4, %v19163_v12  ;;  %19166 = vst [vmem:[#allocation252_spill] sm:$0xff] %v14910_v9  ;;  %v5447_v7 = vmul.f32 %v19168_v63, %v19167_v58  ;;  %v5385_v16 = vmax.f32 %v19170_v37, 0.0  ;;  %v19172_v12 = vsub.f32 1.4, %v19171_v34 }
 0x4e8   : > { %v5834_v22 = vmax.f32 %v14897_v40, %v5833_v18  ;;  %v19176_v58 = vld [vmem:[#allocation278_spill] sm:$0xff]  ;;  %v5387_v47 = vmax.f32 %v19182_v31, 0.0  ;;  %v19189_v31 = vld [vmem:[#allocation285_spill] sm:$0xff] }
 0x4e9   : > { %v5637_v48 = vmul.f32 16.0, %v19164_v17  ;;  %v5638_v17 = vmul.f32 16.0, %v19172_v12  ;;  %v19177_v63 = vsub.f32 1.4, %v19176_v58  ;;  %v19178_v37 = vld [vmem:[#allocation270_spill] sm:$0xff] }
 0x4ea   : > { %v19179_v28 = vsub.f32 1.4, %v19178_v37  ;;  %v5835_v12 = vmax.f32 %v14910_v9, %v5834_v22  ;;  %v19184_v40 = vld [vmem:[#allocation274_spill] sm:$0xff]  ;;  %v19190_v9 = vsub.f32 1.4, %v19189_v31 }
 0x4eb   : > { %v14922_v35 = vmul.f32 %v5637_v48, %v5445_v54  ;;  %v5386_v30 = vmax.f32 %v19177_v63, 0.0  ;;  %v14934_v18 = vmul.f32 %v5638_v17, %v5446_v5  ;;  %v4593_v54 = vsel %vm4592_vm5, %v14694_v60, %v4591_v26  ;;  %v19247_v15 = vld [vmem:[#allocation162_spill] sm:$0xff] }
 0x4ec   : > { %v5639_v34 = vmul.f32 16.0, %v19179_v28  ;;  %v5449_v63 = vmul.f32 %v5385_v16, %v19183_v49  ;;  %v19185_v37 = vsub.f32 1.4, %v19184_v40  ;;  %v19187_v17 = vand.u32 2147483648, %v14687_v27  ;;  %v19191_v49 = vld [vmem:[#allocation187_spill] sm:$0xff] }
 0x4ed   : > { %19173 = vst [vmem:[#allocation94_spill] sm:$0xff] %v14922_v35  ;;  %19180 = vst [vmem:[#allocation78_spill] sm:$0xff] %v14934_v18  ;;  %v5836_v22 = vmax.f32 %v14922_v35, %v5835_v12  ;;  %v5388_v16 = vmax.f32 %v19190_v9, 0.0  ;;  %v5450_v40 = vmul.f32 %v5386_v30, %v19191_v49  ;;  %v19194_v27 = vand.u32 2147483648, %v14694_v60  ;;  %v19197_v49 = vld [vmem:[#allocation130_spill] sm:$0xff]  ;;  %v19202_v35 = vld [vmem:[#allocation131_spill] sm:$0xff] }
 0x4ee   : > { %v5640_v28 = vmul.f32 16.0, %v19185_v37  ;;  %v14947_v5 = vmul.f32 %v5639_v34, %v5447_v7  ;;  %v14953_v26 = vsel %vm4587_vm6, %v19187_v17, %v4586_v29  ;;  %v19192_v37 = vsub.f32 1.4, %v19169_v55 }
 0x4ef   : > { %19188 = vst [vmem:[#allocation271_spill] sm:$0xff] %v14953_v26  ;;  %v5837_v7 = vmax.f32 %v14934_v18, %v5836_v22  ;;  %v14969_v29 = vsel %vm4594_vm9, %v19194_v27, %v4593_v54  ;;  %v19196_v9 = vsub.f32 1.4, %v14515_v32  ;;  %v5451_v55 = vmul.f32 %v5387_v47, %v19197_v49 }
 0x4f0   : > { %19186 = vst [vmem:[#allocation183_spill] sm:$0xff] %v14947_v5  ;;  %v5641_v12 = vmul.f32 16.0, %v19192_v37  ;;  %v14963_v34 = vmul.f32 %v5640_v28, %v5448_v25  ;;  %19195 = vst [vmem:[#allocation244_spill] sm:$0xff] %v14969_v29  ;;  %v19198_v37 = vsub.f32 1.4, %v19176_v58 }
 0x4f1   : > { %v5389_v30 = vmax.f32 %v19196_v9, 0.0  ;;  %v5838_v25 = vmax.f32 %v14947_v5, %v5837_v7  ;;  %v19201_v48 = vsub.f32 1.4, %v14537_v33  ;;  %v5452_v9 = vmul.f32 %v5388_v16, %v19202_v35  ;;  %v19207_v5 = vld [vmem:[#allocation223_spill] sm:$0xff] }
 0x4f2   : > { %19193 = vst [vmem:[#allocation107_spill] sm:$0xff] %v14963_v34  ;;  %v5642_v22 = vmul.f32 16.0, %v19198_v37  ;;  %v14979_v28 = vmul.f32 %v5641_v12, %v5449_v63  ;;  %v19203_v47 = vsub.f32 1.4, %v19181_v44  ;;  %v19205_v63 = vld [vmem:[#allocation286_spill] sm:$0xff] }
 0x4f3   : > { %v5390_v17 = vmax.f32 %v19201_v48, 0.0  ;;  %v5839_v58 = vmax.f32 %v14963_v34, %v5838_v25  ;;  %v19206_v27 = vsub.f32 1.4, %v19157_v61  ;;  %v5453_v48 = vmul.f32 %v5389_v30, %v19207_v5  ;;  %v19214_v5 = vld [vmem:[#allocation224_spill] sm:$0xff] }
 0x4f4   : > { %19199 = vst [vmem:[#allocation124_spill] sm:$0xff] %v14979_v28  ;;  %v5643_v49 = vmul.f32 16.0, %v19203_v47  ;;  %v14990_v37 = vmul.f32 %v5642_v22, %v5450_v40  ;;  %v19208_v35 = vsub.f32 1.4, %v19189_v31  ;;  %v19210_v40 = vsub.f32 1.4, %v19158_v19 }
 0x4f5   : > { %v5391_v54 = vmax.f32 %v19206_v27, 0.0  ;;  %v5840_v44 = vmax.f32 %v14979_v28, %v5839_v58  ;;  %v19211_v25 = vsub.f32 1.4, %v14704_v51  ;;  %v19212_v60 = vsub.f32 1.4, %v14710_v42 }
 0x4f6   : > { %19204 = vst [vmem:[#allocation276_spill] sm:$0xff] %v14990_v37  ;;  %v5644_v16 = vmul.f32 16.0, %v19208_v35  ;;  %v15001_v47 = vmul.f32 %v5643_v49, %v5451_v55  ;;  %v5392_v22 = vmax.f32 %v19210_v40, 0.0  ;;  %v19213_v27 = vsub.f32 1.4, %v14716_v11 }
 0x4f7   : > { %v5393_v12 = vmax.f32 %v19211_v25, 0.0  ;;  %v5394_v7 = vmax.f32 %v19212_v60, 0.0  ;;  %v5454_v30 = vmul.f32 %v5390_v17, %v19214_v5  ;;  %v19215_v31 = vsub.f32 1.4, %v14515_v32  ;;  %v19221_v17 = vld [vmem:[#allocation146_spill] sm:$0xff] }
 0x4f8   : > { %19209 = vst [vmem:[#allocation275_spill] sm:$0xff] %v15001_v47  ;;  %v5395_v34 = vmax.f32 %v19213_v27, 0.0  ;;  %v5841_v55 = vmax.f32 %v14990_v37, %v5840_v44  ;;  %v15015_v49 = vmul.f32 %v5644_v16, %v5452_v9  ;;  %v19217_v58 = vsub.f32 1.4, %v14724_v24 }
 0x4f9   : > { %v5645_v35 = vmul.f32 16.0, %v19215_v31  ;;  %v19218_v25 = vsub.f32 1.4, %v14734_v52  ;;  %v19219_v60 = vsub.f32 1.4, %v14740_v46  ;;  %v5455_v5 = vmul.f32 %v5391_v54, %v19221_v17  ;;  %v19228_v54 = vld [vmem:[#allocation149_spill] sm:$0xff] }
 0x4fa   : > { %19216 = vst [vmem:[#allocation268_spill] sm:$0xff] %v15015_v49  ;;  %v5396_v40 = vmax.f32 %v19217_v58, 0.0  ;;  %v19220_v27 = vsub.f32 1.4, %v14746_v4  ;;  %v19222_v32 = vsub.f32 1.4, %v14537_v33  ;;  %v5842_v9 = vmax.f32 %v15001_v47, %v5841_v55 }
 0x4fb   : > { %v5397_v28 = vmax.f32 %v19218_v25, 0.0  ;;  %v5398_v18 = vmax.f32 %v19219_v60, 0.0  ;;  %v15029_v16 = vmul.f32 %v5645_v35, %v5453_v48  ;;  %v19224_v44 = vsub.f32 1.4, %v14760_v0 }
 0x4fc   : > { %v5399_v38 = vmax.f32 %v19220_v27, 0.0  ;;  %v5646_v31 = vmul.f32 16.0, %v19222_v32  ;;  %v19225_v25 = vsub.f32 1.4, %v14762_v39  ;;  %v19226_v60 = vsub.f32 1.4, %v14773_v10 }
 0x4fd   : > { %19223 = vst [vmem:[#allocation126_spill] sm:$0xff] %v15029_v16  ;;  %v5400_v58 = vmax.f32 %v19224_v44, 0.0  ;;  %v19227_v27 = vsub.f32 1.4, %v14775_v62  ;;  %v5456_v17 = vmul.f32 %v5392_v22, %v19228_v54  ;;  %v19229_v33 = vsub.f32 1.4, %v19157_v61 }
 0x4fe   : > { %v5401_v37 = vmax.f32 %v19225_v25, 0.0  ;;  %v5402_v13 = vmax.f32 %v19226_v60, 0.0  ;;  %v5843_v48 = vmax.f32 %v15015_v49, %v5842_v9  ;;  %v15043_v35 = vmul.f32 %v5646_v31, %v5454_v30  ;;  %v19235_v22 = vld [vmem:[#allocation230_spill] sm:$0xff] }
 0x4ff   : > { %v5403_v53 = vmax.f32 %v19227_v27, 0.0  ;;  %v5647_v32 = vmul.f32 16.0, %v19229_v33  ;;  %v19231_v55 = vsub.f32 1.4, %v14785_v43  ;;  %v19232_v25 = vsub.f32 1.4, %v14787_v59 }
 0x500   : > { %19230 = vst [vmem:[#allocation282_spill] sm:$0xff] %v15043_v35  ;;  %v19233_v60 = vsub.f32 1.4, %v14809_v50  ;;  %v19234_v27 = vsub.f32 1.4, %v14814_v14  ;;  %v5457_v54 = vmul.f32 %v5393_v12, %v19235_v22  ;;  %v5844_v30 = vmax.f32 %v15029_v16, %v5843_v48  ;;  %v19242_v12 = vld [vmem:[#allocation232_spill] sm:$0xff] }
 0x501   : > { %v5404_v44 = vmax.f32 %v19231_v55, 0.0  ;;  %v5405_v47 = vmax.f32 %v19232_v25, 0.0  ;;  %v19236_v61 = vsub.f32 1.4, %v19158_v19  ;;  %v15057_v31 = vmul.f32 %v5647_v32, %v5455_v5  ;;  %v19246_v16 = vld [vmem:[#allocation161_spill] sm:$0xff] }
 0x502   : > { %v5406_v56 = vmax.f32 %v19233_v60, 0.0  ;;  %v5407_v41 = vmax.f32 %v19234_v27, 0.0  ;;  %v19238_v9 = vsub.f32 1.4, %v14819_v45  ;;  %v19239_v25 = vsub.f32 1.4, %v14833_v3 }
 0x503   : > { %v5648_v33 = vmul.f32 16.0, %v19236_v61  ;;  %19237 = vst [vmem:[#allocation278_spill] sm:$0xff] %v15057_v31  ;;  %v19240_v60 = vsub.f32 1.4, %v14844_v2  ;;  %v19241_v27 = vsub.f32 1.4, %v14953_v26  ;;  %v5458_v22 = vmul.f32 %v5394_v7, %v19242_v12 }
 0x504   : > { %v5408_v55 = vmax.f32 %v19238_v9, 0.0  ;;  %v5409_v49 = vmax.f32 %v19239_v25, 0.0  ;;  %v19243_v19 = vsub.f32 1.4, %v14704_v51  ;;  %v5845_v5 = vmax.f32 %v15043_v35, %v5844_v30  ;;  %v19249_v26 = vld [vmem:[#allocation85_spill] sm:$0xff]  ;;  %v19253_v30 = vld [vmem:[#allocation174_spill] sm:$0xff] }
 0x505   : > { %v5410_v36 = vmax.f32 %v19240_v60, 0.0  ;;  %v5411_v8 = vmax.f32 %v19241_v27, 0.0  ;;  %v15071_v32 = vmul.f32 %v5648_v33, %v5456_v17  ;;  %v19245_v48 = vsub.f32 1.4, %v14969_v29  ;;  %v19248_v60 = vld [vmem:[#allocation248_spill] sm:$0xff]  ;;  %v19252_v17 = vld [vmem:[#allocation173_spill] sm:$0xff] }
 0x506   : > { %v5649_v61 = vmul.f32 16.0, %v19243_v19  ;;  %v5459_v25 = vmul.f32 %v5395_v34, %v19246_v16  ;;  %v5460_v57 = vmul.f32 %v5396_v40, %v19247_v15  ;;  %v5461_v2 = vmul.f32 %v5397_v28, %v19248_v60  ;;  %v19256_v40 = vld [vmem:[#allocation46_spill] sm:$0xff]  ;;  %v19259_v16 = vld [vmem:[#allocation151_spill] sm:$0xff]  ;;  %v19264_v60 = vld [vmem:[#allocation109_spill] sm:$0xff] }
 0x507   : > { %19244 = vst [vmem:[#allocation270_spill] sm:$0xff] %v15071_v32  ;;  %v5412_v9 = vmax.f32 %v19245_v48, 0.0  ;;  %v5462_v27 = vmul.f32 %v5398_v18, %v19249_v26  ;;  %v19250_v7 = vsub.f32 1.4, %v14710_v42  ;;  %v5846_v51 = vmax.f32 %v15057_v31, %v5845_v5  ;;  %v19254_v48 = vld [vmem:[#allocation263_spill] sm:$0xff] }
 0x508   : > { %v15082_v19 = vmul.f32 %v5649_v61, %v5457_v54  ;;  %v5463_v33 = vmul.f32 %v5399_v38, %v19252_v17  ;;  %v5464_v35 = vmul.f32 %v5400_v58, %v19253_v30  ;;  %v5465_v29 = vmul.f32 %v5401_v37, %v19254_v48  ;;  %v19258_v42 = vld [vmem:[#allocation155_spill] sm:$0xff]  ;;  %v19260_v54 = vld [vmem:[#allocation193_spill] sm:$0xff]  ;;  %v19269_v48 = vld [vmem:[#allocation152_spill] sm:$0xff] }
 0x509   : > { %v5650_v12 = vmul.f32 16.0, %v19250_v7  ;;  %v19255_v34 = vsub.f32 1.4, %v14716_v11  ;;  %v5466_v28 = vmul.f32 %v5402_v13, %v19256_v40  ;;  %v5847_v18 = vmax.f32 %v15071_v32, %v5846_v51  ;;  %v19263_v11 = vld [vmem:[#allocation99_spill] sm:$0xff]  ;;  %v19268_v30 = vld [vmem:[#allocation105_spill] sm:$0xff]  ;;  %v19271_v40 = vld [vmem:[#allocation166_spill] sm:$0xff] }
 0x50a   : > { %19251 = vst [vmem:[#allocation284_spill] sm:$0xff] %v15082_v19  ;;  %v15095_v5 = vmul.f32 %v19259_v16, %v19258_v42  ;;  %v15098_v61 = vmul.f32 %v5403_v53, %v19260_v54  ;;  %v19261_v38 = vsub.f32 1.4, %v14724_v24  ;;  %v15106_v7 = vmul.f32 %v19264_v60, %v19263_v11  ;;  %v19272_v24 = vld [vmem:[#allocation25_spill] sm:$0xff]  ;;  %v19274_v16 = vld [vmem:[#allocation231_spill] sm:$0xff] }
 0x50b   : > { %v5651_v15 = vmul.f32 16.0, %v19255_v34  ;;  %v15091_v26 = vmul.f32 %v5650_v12, %v5458_v22  ;;  %v5848_v13 = vmax.f32 %v15082_v19, %v5847_v18  ;;  %v19265_v22 = vld [vmem:[#allocation179_spill] sm:$0xff]  ;;  %v19266_v12 = vld [vmem:[#allocation242_spill] sm:$0xff]  ;;  %v19270_v34 = vmax.f32 %v19268_v30, %v19269_v48 }
 0x50c   : > { %v5652_v58 = vmul.f32 16.0, %v19261_v38  ;;  %v19267_v51 = vmax.f32 %v19266_v12, 0.0  ;;  %v15118_v42 = vmul.f32 %v19272_v24, %v19271_v40  ;;  %v15124_v54 = vmul.f32 %v5405_v47, %v19274_v16  ;;  %v19278_v12 = vld [vmem:[#allocation269_spill] sm:$0xff]  ;;  %v19280_v40 = vld [vmem:[#allocation26_spill] sm:$0xff]  ;;  %v19281_v24 = vld [vmem:[#allocation164_spill] sm:$0xff] }
 0x50d   : > { %19257 = vst [vmem:[#allocation186_spill] sm:$0xff] %v15091_v26  ;;  %v15102_v37 = vmul.f32 %v5651_v15, %v5459_v25  ;;  %v5760_v53 = vmax.f32 %v15095_v5, %v19270_v34  ;;  %v19273_v25 = vld [vmem:[#allocation195_spill] sm:$0xff]  ;;  %v19275_v18 = vsub.f32 1.4, %v14734_v52  ;;  %v5849_v60 = vmax.f32 %v15091_v26, %v5848_v13  ;;  %v19283_v16 = vld [vmem:[#allocation210_spill] sm:$0xff] }
 0x50e   : > { %v5253_v17 = vmul.f32 %v19267_v51, %v19265_v22  ;;  %v15121_v15 = vmul.f32 %v5404_v44, %v19273_v25  ;;  %v15128_v11 = vmul.f32 %v5652_v58, %v5460_v57  ;;  %v19277_v22 = vld [vmem:[#allocation181_spill] sm:$0xff]  ;;  %v19279_v51 = vmax.f32 %v19278_v12, 0.0  ;;  %v19282_v25 = vld [vmem:[#allocation134_spill] sm:$0xff] }
 0x50f   : > { %19262 = vst [vmem:[#allocation274_spill] sm:$0xff] %v15102_v37  ;;  %v5653_v38 = vmul.f32 16.0, %v19275_v18  ;;  %v5761_v34 = vmax.f32 %v15106_v7, %v5760_v53  ;;  %v15137_v44 = vmul.f32 %v19281_v24, %v19280_v40  ;;  %v15140_v47 = vmul.f32 %v5406_v56, %v19282_v25  ;;  %v19287_v12 = vld [vmem:[#allocation273_spill] sm:$0xff]  ;;  %v19289_v24 = vld [vmem:[#allocation36_spill] sm:$0xff]  ;;  %v19290_v56 = vld [vmem:[#allocation211_spill] sm:$0xff] }
 0x510   : > { %19276 = vst [vmem:[#allocation285_spill] sm:$0xff] %v15128_v11  ;;  %v5254_v48 = vmul.f32 %v19279_v51, %v19277_v22  ;;  %v15143_v52 = vmul.f32 %v5407_v41, %v19283_v16  ;;  %v19284_v57 = vsub.f32 1.4, %v14740_v46  ;;  %v5850_v18 = vmax.f32 %v15102_v37, %v5849_v60  ;;  %v19286_v22 = vld [vmem:[#allocation122_spill] sm:$0xff]  ;;  %v19291_v41 = vld [vmem:[#allocation20_spill] sm:$0xff] }
 0x511   : > { %v15147_v13 = vmul.f32 %v5653_v38, %v5461_v2  ;;  %v19288_v53 = vmax.f32 %v19287_v12, 0.0  ;;  %v5762_v40 = vmax.f32 %v15118_v42, %v5761_v34  ;;  %v15155_v19 = vmul.f32 %v19289_v24, %v5253_v17 }
 0x512   : > { %v5654_v58 = vmul.f32 16.0, %v19284_v57  ;;  %v15158_v25 = vmul.f32 %v5408_v55, %v19290_v56  ;;  %v15161_v16 = vmul.f32 %v5409_v49, %v19291_v41  ;;  %v19292_v46 = vsub.f32 1.4, %v14746_v4  ;;  %v19294_v57 = vld [vmem:[#allocation123_spill] sm:$0xff]  ;;  %v19298_v55 = vld [vmem:[#allocation24_spill] sm:$0xff]  ;;  %v19299_v49 = vld [vmem:[#allocation225_spill] sm:$0xff] }
 0x513   : > { %19285 = vst [vmem:[#allocation187_spill] sm:$0xff] %v15147_v13  ;;  %v5255_v51 = vmul.f32 %v19288_v53, %v19286_v22  ;;  %v5851_v60 = vmax.f32 %v15128_v11, %v5850_v18  ;;  %v19295_v22 = vld [vmem:[#allocation277_spill] sm:$0xff]  ;;  %v5763_v17 = vmax.f32 %v15137_v44, %v5762_v40  ;;  %v19297_v53 = vld [vmem:[#allocation272_spill] sm:$0xff]  ;;  %v15176_v56 = vmul.f32 %v5410_v36, %v19298_v55 }
 0x514   : > { %v5655_v2 = vmul.f32 16.0, %v19292_v46  ;;  %v15165_v38 = vmul.f32 %v5654_v58, %v5462_v27  ;;  %v19296_v12 = vmax.f32 %v19295_v22, 0.0  ;;  %v15173_v24 = vmul.f32 %v19297_v53, %v5254_v48  ;;  %v19302_v46 = vld [vmem:[#allocation184_spill] sm:$0xff] }
 0x515   : > { %v15179_v41 = vmul.f32 %v5411_v8, %v19299_v49  ;;  %v19300_v4 = vsub.f32 1.4, %v14760_v0  ;;  %v5852_v18 = vmax.f32 %v15147_v13, %v5851_v60  ;;  %v5764_v48 = vmax.f32 %v15155_v19, %v5763_v17  ;;  %v19306_v36 = vld [vmem:[#allocation228_spill] sm:$0xff] }
 0x516   : > { %19293 = vst [vmem:[#allocation130_spill] sm:$0xff] %v15165_v38  ;;  %v5256_v34 = vmul.f32 %v19296_v12, %v19294_v57  ;;  %v15183_v58 = vmul.f32 %v5655_v2, %v5463_v33  ;;  %v19303_v57 = vld [vmem:[#allocation280_spill] sm:$0xff]  ;;  %v19305_v12 = vld [vmem:[#allocation279_spill] sm:$0xff]  ;;  %v15194_v55 = vmul.f32 %v5412_v9, %v19306_v36  ;;  %v19307_v8 = vsub.f32 1.4, %v14762_v39  ;;  %v19309_v33 = vld [vmem:[#allocation185_spill] sm:$0xff] }
 0x517   : > { %v5656_v27 = vmul.f32 16.0, %v19300_v4  ;;  %v19304_v22 = vmax.f32 %v19303_v57, 0.0  ;;  %v15191_v53 = vmul.f32 %v19305_v12, %v5255_v51  ;;  %v19310_v2 = vld [vmem:[#allocation281_spill] sm:$0xff]  ;;  %v5853_v13 = vmax.f32 %v15165_v38, %v5852_v18  ;;  %v19312_v51 = vld [vmem:[#allocation283_spill] sm:$0xff]  ;;  %v19316_v36 = vld [vmem:[#allocation128_spill] sm:$0xff] }
 0x518   : > { %19301 = vst [vmem:[#allocation249_spill] sm:$0xff] %v15183_v58  ;;  %v5657_v0 = vmul.f32 16.0, %v19307_v8  ;;  %v19311_v60 = vmax.f32 %v19310_v2, 0.0  ;;  %v5765_v17 = vmax.f32 %v15173_v24, %v5764_v48  ;;  %v19313_v9 = vsub.f32 1.4, %v14773_v10  ;;  %v19321_v38 = vld [vmem:[#allocation129_spill] sm:$0xff] }
 0x519   : > { %v5257_v40 = vmul.f32 %v19304_v22, %v19302_v46  ;;  %v15198_v49 = vmul.f32 %v5656_v27, %v5464_v35  ;;  %v5513_v46 = vmul.f32 16.0, %v19303_v57  ;;  %v15207_v22 = vmul.f32 %v19312_v51, %v5256_v34  ;;  %v19315_v35 = vld [vmem:[#allocation250_spill] sm:$0xff] }
 0x51a   : > { %v5258_v4 = vmul.f32 %v19311_v60, %v19309_v33  ;;  %v5658_v12 = vmul.f32 16.0, %v19313_v9  ;;  %v15211_v39 = vmul.f32 %v5657_v0, %v5465_v29  ;;  %v5197_v27 = vmax.f32 %v19315_v35, 0.0  ;;  %v19320_v29 = vld [vmem:[#allocation251_spill] sm:$0xff] }
 0x51b   : > { %19308 = vst [vmem:[#allocation131_spill] sm:$0xff] %v15198_v49  ;;  %v19317_v8 = vmax.f32 %v19200_v21, 0.0  ;;  %v5854_v18 = vmax.f32 %v15183_v58, %v5853_v13  ;;  %v5514_v57 = vmul.f32 16.0, %v19310_v2  ;;  %v5766_v48 = vmax.f32 %v15191_v53, %v5765_v17 }
 0x51c   : > { %19314 = vst [vmem:[#allocation286_spill] sm:$0xff] %v15211_v39  ;;  %v15220_v60 = vmul.f32 %v5513_v46, %v5257_v40  ;;  %v19318_v34 = vsub.f32 1.4, %v14775_v62  ;;  %v15224_v9 = vmul.f32 %v5658_v12, %v5466_v28  ;;  %v5198_v0 = vmax.f32 %v19320_v29, 0.0  ;;  %v19325_v12 = vld [vmem:[#allocation66_spill] sm:$0xff] }
 0x51d   : > { %v5259_v33 = vmul.f32 %v19317_v8, %v19316_v36  ;;  %v19322_v37 = vmax.f32 %v19205_v63, 0.0  ;;  %v5855_v36 = vmax.f32 %v15198_v49, %v5854_v18  ;;  %v5515_v13 = vmul.f32 16.0, %v19200_v21 }
 0x51e   : > { %v5659_v51 = vmul.f32 16.0, %v19318_v34  ;;  %19319 = vst [vmem:[#allocation223_spill] sm:$0xff] %v15224_v9  ;;  %v5767_v2 = vmax.f32 %v15207_v22, %v5766_v48  ;;  %v15233_v17 = vmul.f32 %v5514_v57, %v5258_v4  ;;  %v19323_v40 = vsub.f32 1.4, %v14785_v43  ;;  %v19326_v34 = vld [vmem:[#allocation217_spill] sm:$0xff] }
 0x51f   : > { %v5260_v11 = vmul.f32 %v19322_v37, %v19321_v38  ;;  %v5199_v8 = vmax.f32 %v19325_v12, 0.0  ;;  %v5261_v58 = vmul.f32 %v5197_v27, %v19326_v34  ;;  %v5856_v37 = vmax.f32 %v15211_v39, %v5855_v36 }
 0x520   : > { %v5660_v46 = vmul.f32 16.0, %v19323_v40  ;;  %v15238_v28 = vmul.f32 %v5659_v51, %v15098_v61  ;;  %v5516_v38 = vmul.f32 16.0, %v19205_v63  ;;  %v5768_v21 = vmax.f32 %v15220_v60, %v5767_v2  ;;  %v19329_v61 = vld [vmem:[#allocation97_spill] sm:$0xff]  ;;  %v19330_v40 = vld [vmem:[#allocation218_spill] sm:$0xff] }
 0x521   : > { %v15245_v18 = vmul.f32 %v5515_v13, %v5259_v33  ;;  %v19327_v4 = vsub.f32 1.4, %v14787_v59  ;;  %v5200_v51 = vmax.f32 %v19329_v61, 0.0  ;;  %v5262_v49 = vmul.f32 %v5198_v0, %v19330_v40 }
 0x522   : > { %19324 = vst [vmem:[#allocation224_spill] sm:$0xff] %v15238_v28  ;;  %v15250_v48 = vmul.f32 %v5660_v46, %v15121_v15  ;;  %v5857_v27 = vmax.f32 %v15224_v9, %v5856_v37  ;;  %v5517_v36 = vmul.f32 16.0, %v19315_v35  ;;  %v5769_v63 = vmax.f32 %v15233_v17, %v5768_v21  ;;  %v19333_v46 = vld [vmem:[#allocation144_spill] sm:$0xff] }
 0x523   : > { %v5661_v57 = vmul.f32 16.0, %v19327_v4  ;;  %v15257_v34 = vmul.f32 %v5516_v38, %v5260_v11  ;;  %v19331_v33 = vsub.f32 1.4, %v14809_v50  ;;  %v5201_v15 = vmax.f32 %v14840_v20, 0.0 }
 0x524   : > { %19328 = vst [vmem:[#allocation146_spill] sm:$0xff] %v15250_v48  ;;  %v5263_v4 = vmul.f32 %v5199_v8, %v19333_v46  ;;  %v5858_v0 = vmax.f32 %v15238_v28, %v5857_v27  ;;  %v5518_v37 = vmul.f32 16.0, %v19320_v29  ;;  %v5770_v35 = vmax.f32 %v15245_v18, %v5769_v63 }
 0x525   : > { %v5662_v13 = vmul.f32 16.0, %v19331_v33  ;;  %v15262_v2 = vmul.f32 %v5661_v57, %v15124_v54  ;;  %v15269_v40 = vmul.f32 %v5517_v36, %v5261_v58  ;;  %v19334_v11 = vsub.f32 1.4, %v14814_v14  ;;  %v19336_v57 = vld [vmem:[#allocation145_spill] sm:$0xff] }
 0x526   : > { %v5202_v54 = vmax.f32 %v14847_v6, 0.0  ;;  %v5264_v33 = vmul.f32 %v5200_v51, %v19336_v57  ;;  %v5859_v8 = vmax.f32 %v15250_v48, %v5858_v0  ;;  %v5519_v27 = vmul.f32 16.0, %v19325_v12 }
 0x527   : > { %19332 = vst [vmem:[#allocation149_spill] sm:$0xff] %v15262_v2  ;;  %v5663_v38 = vmul.f32 16.0, %v19334_v11  ;;  %v15274_v21 = vmul.f32 %v5662_v13, %v15140_v47  ;;  %v5771_v29 = vmax.f32 %v15257_v34, %v5770_v35  ;;  %v15281_v46 = vmul.f32 %v5518_v37, %v5262_v49  ;;  %v19339_v13 = vld [vmem:[#allocation226_spill] sm:$0xff] }
 0x528   : > { %v19337_v58 = vsub.f32 1.4, %v14819_v45  ;;  %v5203_v47 = vmax.f32 %v14850_v1, 0.0  ;;  %v5265_v11 = vmul.f32 %v5201_v15, %v19339_v13  ;;  %v5860_v51 = vmax.f32 %v15262_v2, %v5859_v8  ;;  %v19347_v2 = vld [vmem:[#allocation159_spill] sm:$0xff] }
 0x529   : > { %19335 = vst [vmem:[#allocation230_spill] sm:$0xff] %v15274_v21  ;;  %v15286_v63 = vmul.f32 %v5663_v38, %v15143_v52  ;;  %v5520_v0 = vmul.f32 16.0, %v19329_v61  ;;  %v5772_v12 = vmax.f32 %v15269_v40, %v5771_v29  ;;  %v15293_v57 = vmul.f32 %v5519_v27, %v5263_v4  ;;  %v19342_v38 = vld [vmem:[#allocation227_spill] sm:$0xff] }
 0x52a   : > { %v5664_v36 = vmul.f32 16.0, %v19337_v58  ;;  %v19340_v49 = vsub.f32 1.4, %v14833_v3  ;;  %v5204_v52 = vmax.f32 %v14853_v23, 0.0  ;;  %v5266_v58 = vmul.f32 %v5202_v54, %v19342_v38  ;;  %v19343_v4 = vld [vmem:[#allocation71_spill] sm:$0xff] }
 0x52b   : > { %19338 = vst [vmem:[#allocation232_spill] sm:$0xff] %v15286_v63  ;;  %v5861_v15 = vmax.f32 %v15274_v21, %v5860_v51  ;;  %v5521_v8 = vmul.f32 16.0, %v14840_v20  ;;  %v5773_v61 = vmax.f32 %v15281_v46, %v5772_v12  ;;  %v15305_v13 = vmul.f32 %v5520_v0, %v5264_v33  ;;  %v19348_v33 = vld [vmem:[#allocation271_spill] sm:$0xff]  ;;  %v19352_v21 = vld [vmem:[#allocation160_spill] sm:$0xff] }
 0x52c   : > { %v5665_v37 = vmul.f32 16.0, %v19340_v49  ;;  %v15298_v35 = vmul.f32 %v5664_v36, %v15158_v25  ;;  %v19344_v27 = vsub.f32 1.4, %v19343_v4  ;;  %v19346_v25 = vld [vmem:[#allocation169_spill] sm:$0xff]  ;;  %v5267_v28 = vmul.f32 %v5203_v47, %v19347_v2 }
 0x52d   : > { %v5205_v36 = vmax.f32 %v19346_v25, 0.0  ;;  %v5862_v54 = vmax.f32 %v15286_v63, %v5861_v15  ;;  %v5522_v51 = vmul.f32 16.0, %v14847_v6  ;;  %v5774_v20 = vmax.f32 %v15293_v57, %v5773_v61  ;;  %v19357_v63 = vld [vmem:[#allocation243_spill] sm:$0xff] }
 0x52e   : > { %19341 = vst [vmem:[#allocation161_spill] sm:$0xff] %v15298_v35  ;;  %v5666_v29 = vmul.f32 16.0, %v19344_v27  ;;  %v15310_v49 = vmul.f32 %v5665_v37, %v15161_v16  ;;  %v15317_v38 = vmul.f32 %v5521_v8, %v5265_v11  ;;  %v19349_v0 = vsub.f32 1.4, %v19348_v33  ;;  %v19351_v16 = vld [vmem:[#allocation110_spill] sm:$0xff]  ;;  %v19353_v11 = vld [vmem:[#allocation244_spill] sm:$0xff] }
 0x52f   : > { %v5206_v37 = vmax.f32 %v19351_v16, 0.0  ;;  %v5268_v39 = vmul.f32 %v5204_v52, %v19352_v21  ;;  %v5863_v2 = vmax.f32 %v15298_v35, %v5862_v54  ;;  %v5523_v47 = vmul.f32 16.0, %v14850_v1 }
 0x530   : > { %19345 = vst [vmem:[#allocation162_spill] sm:$0xff] %v15310_v49  ;;  %v5667_v12 = vmul.f32 16.0, %v19349_v0  ;;  %v15322_v27 = vmul.f32 %v5666_v29, %v15176_v56  ;;  %v5775_v6 = vmax.f32 %v15305_v13, %v5774_v20  ;;  %v15329_v15 = vmul.f32 %v5522_v51, %v5266_v58  ;;  %v19356_v56 = vld [vmem:[#allocation287_spill] sm:$0xff]  ;;  %v19359_v20 = vld [vmem:[#allocation288_spill] sm:$0xff] }
 0x531   : > { %v19354_v8 = vsub.f32 1.4, %v19353_v11  ;;  %v5207_v29 = vmax.f32 %v19356_v56, 0.0  ;;  %v5269_v48 = vmul.f32 %v5205_v36, %v19357_v63  ;;  %v5864_v21 = vmax.f32 %v15310_v49, %v5863_v2  ;;  %v19361_v2 = vld [vmem:[#allocation188_spill] sm:$0xff] }
 0x532   : > { %19350 = vst [vmem:[#allocation248_spill] sm:$0xff] %v15322_v27  ;;  %v15334_v0 = vmul.f32 %v5667_v12, %v15179_v41  ;;  %v5524_v52 = vmul.f32 16.0, %v14853_v23  ;;  %v5776_v1 = vmax.f32 %v15317_v38, %v5775_v6  ;;  %v15341_v54 = vmul.f32 %v5523_v47, %v5267_v28  ;;  %v19360_v12 = vld [vmem:[#allocation43_spill] sm:$0xff] }
 0x533   : > { %v5668_v61 = vmul.f32 16.0, %v19354_v8  ;;  %v7477_v58 = vadd.f32 -0.1, %v14773_v10  ;;  %v5208_v41 = vmax.f32 %v19359_v20, 0.0  ;;  %v5270_v8 = vmul.f32 %v5206_v37, %v19360_v12  ;;  %v19362_v10 = vld [vmem:[#allocation289_spill] sm:$0xff] }
 0x534   : > { %19355 = vst [vmem:[#allocation85_spill] sm:$0xff] %v15334_v0  ;;  %v5865_v35 = vmax.f32 %v15322_v27, %v5864_v21  ;;  %v5525_v63 = vmul.f32 16.0, %v19346_v25  ;;  %v5777_v36 = vmax.f32 %v15329_v15, %v5776_v1  ;;  %v15352_v23 = vmul.f32 %v5524_v52, %v5268_v39  ;;  %v19364_v25 = vld [vmem:[#allocation6_spill] sm:$0xff]  ;;  %v19365_v1 = vld [vmem:[#allocation172_spill] sm:$0xff] }
 0x535   : > { %v15345_v51 = vmul.f32 %v5668_v61, %v15194_v55  ;;  %vm18189_vm7 = vcmp.lt.f32.partialorder %v19361_v2, 0.011025  ;;  %v7478_v28 = vadd.f32 -0.1, %v14775_v62  ;;  %v5209_v47 = vmax.f32 %v19362_v10, 0.0  ;;  %v19363_v55 = vld [vmem:[#allocation171_spill] sm:$0xff] }
 0x536   : > { %v5271_v6 = vmul.f32 %v5207_v29, %v19363_v55  ;;  %v5866_v61 = vmax.f32 %v15334_v0, %v5865_v35  ;;  %v5526_v37 = vmul.f32 16.0, %v19351_v16  ;;  %v5778_v21 = vmax.f32 %v15341_v54, %v5777_v36  ;;  %v19366_v16 = vld [vmem:[#allocation202_spill] sm:$0xff] }
 0x537   : > { %19358 = vst [vmem:[#allocation173_spill] sm:$0xff] %v15345_v51  ;;  %v15361_v12 = vmul.f32 %v5525_v63, %v5269_v48  ;;  %vm18190_vm8 = vcmp.lt.f32.partialorder %v19364_v25, 0.011025  ;;  %v7479_v39 = vadd.f32 -0.1, %v14785_v43  ;;  %v5210_v52 = vmax.f32 %v7477_v58, 0.0 }
 0x538   : > { %v5272_v49 = vmul.f32 %v5208_v41, %v19365_v1  ;;  %v5867_v62 = vmax.f32 %v15345_v51, %v5866_v61  ;;  %v5527_v27 = vmul.f32 16.0, %v19356_v56  ;;  %v5779_v29 = vmax.f32 %v15352_v23, %v5778_v21  ;;  %v19367_v36 = vld [vmem:[#allocation50_spill] sm:$0xff]  ;;  %v19368_v21 = vld [vmem:[#allocation189_spill] sm:$0xff] }
 0x539   : > { %v15369_v35 = vmul.f32 %v5526_v37, %v5270_v8  ;;  %vm18194_vm15 = vcmp.lt.f32.partialorder %v19366_v16, 0.011025  ;;  %v4953_v48 = vsel %vm18190_vm8, %v19367_v36, 0.0  ;;  %v7480_v63 = vadd.f32 -0.1, %v14787_v59  ;;  %v19369_v8 = vld [vmem:[#allocation12_spill] sm:$0xff] }
 0x53a   : > { %v5211_v43 = vmax.f32 %v7478_v28, 0.0  ;;  %5868 = vmax.xlane.f32.xlu0 %v5867_v62  ;;  %v5273_v55 = vmul.f32 %v5209_v47, %v4953_v48  ;;  %v5528_v41 = vmul.f32 16.0, %v19359_v20  ;;  %v5780_v61 = vmax.f32 %v15361_v12, %v5779_v29  ;;  %v19370_v20 = vld [vmem:[#allocation190_spill] sm:$0xff] }
 0x53b   : > { %v15378_v56 = vmul.f32 %v5527_v27, %v5271_v6  ;;  %vm18193_vm1 = vcmp.lt.f32.partialorder %v19368_v21, 0.011025  ;;  %v4954_v37 = vsel %vm18194_vm15, %v19369_v8, 0.0  ;;  %v7481_v1 = vadd.f32 -0.1, %v14809_v50  ;;  %v19371_v6 = vld [vmem:[#allocation201_spill] sm:$0xff] }
 0x53c   : > { %v5212_v25 = vmax.f32 %v7479_v39, 0.0  ;;  %v5274_v0 = vmul.f32 %v5210_v52, %v4954_v37  ;;  %v5529_v59 = vmul.f32 16.0, %v19362_v10  ;;  %v5781_v47 = vmax.f32 %v15369_v35, %v5780_v61  ;;  %v19372_v10 = vld [vmem:[#allocation191_spill] sm:$0xff] }
 0x53d   : > { %v15387_v62 = vmul.f32 %v5528_v41, %v5272_v49  ;;  %v4955_v27 = vsel %vm18189_vm7, %v19370_v20, 0.0  ;;  %vm18179_vm3 = vcmp.lt.f32.partialorder %v19371_v6, 0.011025  ;;  %v7482_v29 = vadd.f32 -0.1, %v14814_v14  ;;  %v19373_v41 = vld [vmem:[#allocation204_spill] sm:$0xff] }
 0x53e   : > { %v5213_v48 = vmax.f32 %v7480_v63, 0.0  ;;  %v5275_v16 = vmul.f32 %v5211_v43, %v4955_v27  ;;  %v5530_v51 = vmul.f32 16.0, %v7477_v58  ;;  %v5782_v50 = vmax.f32 %v15378_v56, %v5781_v47  ;;  %v19374_v58 = vld [vmem:[#allocation206_spill] sm:$0xff] }
 0x53f   : > { %v15395_v52 = vmul.f32 %v5529_v59, %v5273_v55  ;;  %v4956_v49 = vsel %vm18193_vm1, %v19372_v10, 0.0  ;;  %vm18180_vm13 = vcmp.lt.f32.partialorder %v19373_v41, 0.011025  ;;  %v7483_v61 = vadd.f32 -0.1, %v14819_v45  ;;  %v19375_v43 = vld [vmem:[#allocation266_spill] sm:$0xff] }
 0x540   : > { %v5214_v37 = vmax.f32 %v7481_v1, 0.0  ;;  %v5276_v2 = vmul.f32 %v5212_v25, %v4956_v49  ;;  %v5531_v9 = vmul.f32 16.0, %v7478_v28  ;;  %v5783_v14 = vmax.f32 %v15387_v62, %v5782_v50  ;;  %v19376_v28 = vld [vmem:[#allocation203_spill] sm:$0xff] }
 0x541   : > { %v15403_v26 = vmul.f32 %v5530_v51, %v5274_v0  ;;  %vm18186_vm2 = vcmp.lt.f32.partialorder %v19374_v58, 0.011025  ;;  %v4957_v55 = vsel %vm18180_vm13, %v19375_v43, 0.0  ;;  %v7484_v59 = vadd.f32 -0.1, %v14833_v3  ;;  %v19377_v25 = vld [vmem:[#allocation267_spill] sm:$0xff] }
 0x542   : > { %v5215_v47 = vmax.f32 %v7482_v29, 0.0  ;;  %v5277_v27 = vmul.f32 %v5213_v48, %v4957_v55  ;;  %v5532_v21 = vmul.f32 16.0, %v7479_v39  ;;  %v5784_v45 = vmax.f32 %v15395_v52, %v5783_v14  ;;  %v19378_v39 = vld [vmem:[#allocation205_spill] sm:$0xff] }
 0x543   : > { %v15411_v31 = vmul.f32 %v5531_v9, %v5275_v16  ;;  %vm18185_vm0 = vcmp.lt.f32.partialorder %v19376_v28, 0.011025  ;;  %v4958_v0 = vsel %vm18186_vm2, %v19377_v25, 0.0  ;;  %v7485_v51 = vadd.f32 -0.1, %v19343_v4  ;;  %v19379_v4 = vld [vmem:[#allocation207_spill] sm:$0xff] }
 0x544   : > { %v5216_v50 = vmax.f32 %v7483_v61, 0.0  ;;  %v5278_v49 = vmul.f32 %v5214_v37, %v4958_v0  ;;  %v5533_v41 = vmul.f32 16.0, %v7480_v63  ;;  %v5785_v3 = vmax.f32 %v15403_v26, %v5784_v45  ;;  %v19380_v37 = vld [vmem:[#allocation213_spill] sm:$0xff] }
 0x545   : > { %v15419_v32 = vmul.f32 %v5532_v21, %v5276_v2  ;;  %v4959_v9 = vsel %vm18179_vm3, %v19378_v39, 0.0  ;;  %v7486_v16 = vadd.f32 -0.1, %v19348_v33  ;;  %v5217_v48 = vmax.f32 %v7484_v59, 0.0 }
 0x546   : > { %v5279_v14 = vmul.f32 %v5215_v47, %v4959_v9  ;;  %v5534_v55 = vmul.f32 16.0, %v7481_v1  ;;  %v5786_v58 = vmax.f32 %v15411_v31, %v5785_v3  ;;  %v15426_v43 = vmul.f32 %v5533_v41, %v5277_v27  ;;  %v19381_v1 = vld [vmem:[#allocation108_spill] sm:$0xff]  ;;  %v19382_v47 = vld [vmem:[#allocation135_spill] sm:$0xff] }
 0x547   : > { %v4960_v63 = vsel %vm18185_vm0, %v19379_v4, 0.0  ;;  %vm18170_vm10 = vcmp.lt.f32.partialorder %v19380_v37, 0.011025  ;;  %v7487_v2 = vadd.f32 -0.1, %v19353_v11  ;;  %v5218_v21 = vmax.f32 %v7485_v51, 0.0 }
 0x548   : > { %v5280_v45 = vmul.f32 %v5216_v50, %v4960_v63  ;;  %v5535_v0 = vmul.f32 16.0, %v7482_v29  ;;  %v5787_v33 = vmax.f32 %v15419_v32, %v5786_v58  ;;  %v15434_v6 = vmul.f32 %v5534_v55, %v5278_v49  ;;  %v19383_v27 = vld [vmem:[#allocation212_spill] sm:$0xff]  ;;  %v19384_v29 = vld [vmem:[#allocation58_spill] sm:$0xff]  ;;  %v19385_v50 = vld [vmem:[#allocation215_spill] sm:$0xff] }
 0x549   : > { %vm18172_vm4 = vcmp.lt.f32.partialorder %v19381_v1, 0.011025  ;;  %v4961_v41 = vsel %vm18170_vm10, %v19382_v47, 0.0  ;;  %vm18167_vm14 = vcmp.lt.f32.partialorder %v19383_v27, 0.011025  ;;  %v5219_v3 = vmax.f32 %v7486_v16, 0.0 }
 0x54a   : > { %v5281_v9 = vmul.f32 %v5217_v48, %v4961_v41  ;;  %v5536_v28 = vmul.f32 16.0, %v7483_v61  ;;  %v5788_v11 = vmax.f32 %v15426_v43, %v5787_v33  ;;  %v15442_v39 = vmul.f32 %v5535_v0, %v5279_v14  ;;  %v19386_v4 = vld [vmem:[#allocation214_spill] sm:$0xff]  ;;  %v19387_v41 = vld [vmem:[#allocation216_spill] sm:$0xff] }
 0x54b   : > { %v4962_v58 = vsel %vm18172_vm4, %v19384_v29, 0.0  ;;  %vm18171_vm12 = vcmp.lt.f32.partialorder %v19385_v50, 0.011025  ;;  %v5220_v49 = vmax.f32 %v7487_v2, 0.0  ;;  %v5537_v63 = vmul.f32 16.0, %v7484_v59 }
 0x54c   : > { %v5282_v55 = vmul.f32 %v5218_v21, %v4962_v58  ;;  %v5789_v37 = vmax.f32 %v15434_v6, %v5788_v11  ;;  %v15449_v47 = vmul.f32 %v5536_v28, %v5280_v45  ;;  %v4963_v61 = vsel %vm18167_vm14, %v19386_v4, 0.0 }
 0x54d   : > { %v5283_v48 = vmul.f32 %v5219_v3, %v4963_v61  ;;  %v5538_v14 = vmul.f32 16.0, %v7485_v51  ;;  %v15455_v33 = vmul.f32 %v5537_v63, %v5281_v9  ;;  %v4964_v1 = vsel %vm18171_vm12, %v19387_v41, 0.0  ;;  %v19409_v41 = vld [vmem:[#allocation88_spill] sm:$0xff] }
 0x54e   : > { %v5790_v0 = vmax.f32 %v15442_v39, %v5789_v37  ;;  %v5284_v21 = vmul.f32 %v5220_v49, %v4964_v1  ;;  %v5539_v59 = vmul.f32 16.0, %v7486_v16  ;;  %v5540_v45 = vmul.f32 16.0, %v7487_v2 }
 0x54f   : > { %v15461_v28 = vmul.f32 %v5538_v14, %v5282_v55 }
 0x550   : > { %v5791_v11 = vmax.f32 %v15449_v47, %v5790_v0  ;;  %v15464_v27 = vmul.f32 %v5539_v59, %v5283_v48  ;;  %v15467_v37 = vmul.f32 %v5540_v45, %v5284_v21 }
 0x552   : > { %v5792_v58 = vmax.f32 %v15455_v33, %v5791_v11 }
 0x554   : > { %v5793_v51 = vmax.f32 %v15461_v28, %v5792_v58 }
 0x556   : > { %v5794_v3 = vmax.f32 %v15464_v27, %v5793_v51  ;;  %v19389_v51 = vld [vmem:[#allocation8_spill] sm:$0xff] }
 0x558   : > { %v5795_v9 = vmax.f32 %v15467_v37, %v5794_v3 }
 0x55a   : > { %5796 = vmax.xlane.f32.xlu1 %v5795_v9  ;;  %v19390_v9 = vmov 0.0  }
 0x55b   : > { %7054 = vst [vmem:[%s15483_s10] sm:$0xc0] %v19390_v9  ;;  %7055 = vst [vmem:[%s15483_s10 + $0x8] sm:$0xc0] %v19390_v9 }
 0x5c7   : > { %v5869_v1 = vpop.xlane.xlu0 %5868 }
 0x5c8   : > { %v5870_v16 = vrot.slane %v5869_v1, 4 }
 0x5ca   : > { %v5871_v49 = vmax.f32 %v5869_v1, %v5870_v16  ;;  %v19391_v1 = vld [vmem:[#allocation240_spill] sm:$0xff] }
 0x5cc   : > { %v5872_v2 = vrot.slane %v5871_v49, 2 }
 0x5ce   : > { %v5873_v61 = vmax.f32 %v5871_v49, %v5872_v2 }
 0x5d0   : > { %v5874_v0 = vrot.slane %v5873_v61, 1 }
 0x5d2   : > { %v5875_v11 = vmax.f32 %v5873_v61, %v5874_v0  ;;  %v19392_v61 = vld [vmem:[#allocation104_spill] sm:$0xff] }
 0x5e7   : > { %v5797_v55 = vpop.xlane.xlu1 %5796 }
 0x5e8   : > { %v5798_v63 = vrot.slane %v5797_v55, 4 }
 0x5ea   : > { %v5799_v48 = vmax.f32 %v5797_v55, %v5798_v63 }
 0x5ec   : > { %v5800_v14 = vrot.slane %v5799_v48, 2 }
 0x5ee   : > { %v5801_v21 = vmax.f32 %v5799_v48, %v5800_v14  ;;  %v19393_v14 = vld [vmem:[#allocation89_spill] sm:$0xff] }
 0x5f0   : > { %v5802_v59 = vrot.slane %v5801_v21, 1 }
 0x5f2   : > { %v5803_v45 = vmax.f32 %v5801_v21, %v5802_v59  ;;  %v19395_v59 = vld [vmem:[#allocation31_spill] sm:$0xff] }
 0x5f4   : > { %9482 = vpush %v5803_v45  ;;  %v19396_v45 = vld [vmem:[#allocation13_spill] sm:$0xff] }
 0x5f5   : > { %9484 = vpush %v5875_v11 }
 0x625   : > { %s9483_s28 = spop %9482 }
 0x626   : > { %v15478_v58 = vstv %s9483_s28  ;;  %s9485_s11 = spop %9484 }
 0x627   : > { %19388 = vst [vmem:[#allocation174_spill] sm:$0xff] %v15478_v58  ;;  %v5879_v3 = vsub.f32 %v19389_v51, %v15478_v58  ;;  %v5881_v16 = vsub.f32 %v19391_v1, %v15478_v58  ;;  %v5878_v11 = vsub.f32 %v19395_v59, %v15478_v58  ;;  %v5880_v51 = vsub.f32 %v19396_v45, %v15478_v58  ;;  %v19398_v1 = vld [vmem:[#allocation253_spill] sm:$0xff]  ;;  %v19401_v59 = vld [vmem:[#allocation256_spill] sm:$0xff]  ;;  %v19402_v45 = vld [vmem:[#allocation259_spill] sm:$0xff] }
 0x628   : > { %v5887_v50 = vsub.f32 %v19401_v59, %v15478_v58 }
 0x629   : > { %v5944_v49 = vmul.f32 1.442695, %v5879_v3  ;;  %v5948_v2 = vmul.f32 1.442695, %v5881_v16  ;;  %v19397_v3 = vld [vmem:[#allocation53_spill] sm:$0xff]  ;;  %v5885_v16 = vsub.f32 %v19398_v1, %v15478_v58 }
 0x62a   : > { %v5883_v9 = vsub.f32 %v19397_v3, %v15478_v58 }
 0x62b   : > { %9709 = vpow2.f32 %v5944_v49  ;;  %v5942_v49 = vmul.f32 1.442695, %v5878_v11  ;;  %v5960_v11 = vmul.f32 1.442695, %v5887_v50 }
 0x62c   : > { %9711 = vpow2.f32 %v5948_v2  ;;  %v19399_v2 = vld [vmem:[#allocation32_spill] sm:$0xff] }
 0x62d   : > { %9713 = vpow2.f32 %v5942_v49  ;;  %v19406_v49 = vld [vmem:[#allocation221_spill] sm:$0xff] }
 0x635   : > { %v9710_v55 = vpop.eup %9709 }
 0x636   : > { %v9712_v63 = vpop.eup %9711  ;;  %v6071_v48 = vmul.f32 %v9710_v55, %v19392_v61  ;;  %v5882_v55 = vsub.f32 %v19399_v2, %v15478_v58  ;;  %v5889_v61 = vsub.f32 %v19402_v45, %v15478_v58  ;;  %v19407_v45 = vld [vmem:[#allocation92_spill] sm:$0xff] }
 0x637   : > { %v6073_v0 = vmul.f32 %v9712_v63, %v19393_v14  ;;  %v5946_v63 = vmul.f32 1.442695, %v5880_v51  ;;  %v5956_v14 = vmul.f32 1.442695, %v5885_v16  ;;  %v19403_v51 = vld [vmem:[#allocation198_spill] sm:$0xff]  ;;  %v19405_v16 = vld [vmem:[#allocation264_spill] sm:$0xff] }
 0x638   : > { %v5950_v3 = vmul.f32 1.442695, %v5882_v55  ;;  %v5964_v2 = vmul.f32 1.442695, %v5889_v61  ;;  %v5886_v4 = vsub.f32 %v19403_v51, %v15478_v58  ;;  %v5891_v59 = vsub.f32 %v19405_v16, %v15478_v58  ;;  %v9714_v61 = vpop.eup %9713  ;;  %v19408_v51 = vld [vmem:[#allocation261_spill] sm:$0xff] }
 0x639   : > { %v15495_v21 = vpack.c.bf16 %v6073_v0, %v6071_v48  ;;  %v19400_v48 = vld [vmem:[#allocation246_spill] sm:$0xff]  ;;  %9715 = vpow2.f32 %v5946_v63  ;;  %v5893_v55 = vsub.f32 %v19406_v49, %v15478_v58 }
 0x63a   : > { %v5884_v0 = vsub.f32 %v19400_v48, %v15478_v58 }
 0x63b   : > { %19394 = vst [vmem:[#allocation263_spill] sm:$0xff] %v15495_v21  ;;  %8523 = vmatprep.subr.bf16.mxu1 %v15495_v21  ;;  %v5952_v21 = vmul.f32 1.442695, %v5883_v9  ;;  %v19404_v9 = vld [vmem:[#allocation59_spill] sm:$0xff]  ;;  %v5972_v63 = vmul.f32 1.442695, %v5893_v55 }
 0x63c   : > { %v5954_v1 = vmul.f32 1.442695, %v5884_v0  ;;  %v5888_v48 = vsub.f32 %v19404_v9, %v15478_v58 }
 0x63d   : > { %9717 = vpow2.f32 %v5952_v21  ;;  %v5958_v21 = vmul.f32 1.442695, %v5886_v4  ;;  %v19411_v4 = vld [vmem:[#allocation29_spill] sm:$0xff] }
 0x63e   : > { %9719 = vpow2.f32 %v5956_v14  ;;  %v5962_v50 = vmul.f32 1.442695, %v5888_v48  ;;  %v5968_v14 = vmul.f32 1.442695, %v5891_v59  ;;  %v19412_v59 = vld [vmem:[#allocation102_spill] sm:$0xff] }
 0x63f   : > { %9721 = vpow2.f32 %v5950_v3  ;;  %v6070_v3 = vmul.f32 %v9714_v61, %v19407_v45  ;;  %v5895_v55 = vsub.f32 %v19412_v59, %v15478_v58  ;;  %v19418_v59 = vld [vmem:[#allocation10_spill] sm:$0xff] }
 0x640   : > { %9723 = vpow2.f32 %v5954_v1  ;;  %v5890_v1 = vsub.f32 %v19408_v51, %v15478_v58  ;;  %v19415_v51 = vld [vmem:[#allocation68_spill] sm:$0xff] }
 0x641   : > { %9725 = vpow2.f32 %v5960_v11  ;;  %v19410_v11 = vld [vmem:[#allocation83_spill] sm:$0xff] }
 0x642   : > { %9727 = vpow2.f32 %v5964_v2  ;;  %v5892_v49 = vsub.f32 %v19410_v11, %v15478_v58 }
 0x643   : > { %v9716_v0 = vpop.eup %9715  ;;  %9729 = vpow2.f32 %v5958_v21  ;;  %v19414_v21 = vld [vmem:[#allocation11_spill] sm:$0xff] }
 0x644   : > { %v6072_v16 = vmul.f32 %v9716_v0, %v19409_v41  ;;  %9731 = vpow2.f32 %v5962_v50  ;;  %v5897_v0 = vsub.f32 %v19415_v51, %v15478_v58  ;;  %v5966_v41 = vmul.f32 1.442695, %v5890_v1  ;;  %v19420_v51 = vld [vmem:[#allocation56_spill] sm:$0xff]  ;;  %v19421_v1 = vld [vmem:[#allocation229_spill] sm:$0xff] }
 0x645   : > { %9733 = vpow2.f32 %v5968_v14  ;;  %v5970_v14 = vmul.f32 1.442695, %v5892_v49 }
 0x646   : > { %v15531_v61 = vpack.c.bf16 %v6072_v16, %v6070_v3  ;;  %9735 = vpow2.f32 %v5972_v63  ;;  %v19417_v3 = vld [vmem:[#allocation28_spill] sm:$0xff]  ;;  %v5980_v63 = vmul.f32 1.442695, %v5897_v0 }
 0x647   : > { %v9718_v9 = vpop.eup %9717  ;;  %9737 = vpow2.f32 %v5966_v41 }
 0x648   : > { %v9720_v2 = vpop.eup %9719  ;;  %v6075_v48 = vmul.f32 %v9718_v9, %v19411_v4  ;;  %19413 = vst [vmem:[#allocation46_spill] sm:$0xff] %v15531_v61  ;;  %8525 = vmatpush1.bf16.xpose.msra.mxu1 %v15531_v61  ;;  %v5976_v4 = vmul.f32 1.442695, %v5895_v55  ;;  %v5894_v61 = vsub.f32 %v19421_v1, %v15478_v58  ;;  %9739 = vpow2.f32 %v5970_v14  ;;  %v19423_v55 = vld [vmem:[#allocation138_spill] sm:$0xff] }
 0x649   : > { %v9722_v29 = vpop.eup %9721  ;;  %v6077_v45 = vmul.f32 %v9720_v2, %v19414_v21  ;;  %v19419_v21 = vld [vmem:[#allocation60_spill] sm:$0xff] }
 0x64a   : > { %v9724_v50 = vpop.eup %9723  ;;  %v6074_v16 = vmul.f32 %v9722_v29, %v19417_v3  ;;  %9741 = vpow2.f32 %v5976_v4  ;;  %v5899_v29 = vsub.f32 %v19423_v55, %v15478_v58  ;;  %v5974_v1 = vmul.f32 1.442695, %v5894_v61  ;;  %v19430_v3 = vld [vmem:[#allocation80_spill] sm:$0xff] }
 0x64b   : > { %v9726_v25 = vpop.eup %9725  ;;  %v15537_v11 = vpack.c.bf16 %v6077_v45, %v6075_v48  ;;  %v6076_v2 = vmul.f32 %v9724_v50, %v19418_v59  ;;  %v19422_v45 = vld [vmem:[#allocation119_spill] sm:$0xff]  ;;  %9743 = vpow2.f32 %v5980_v63  ;;  %v19429_v63 = vld [vmem:[#allocation82_spill] sm:$0xff]  ;;  %v18098_v61 = vmov 1.0  }
 0x64c   : > { %v9728_v9 = vpop.eup %9727  ;;  %v6079_v20 = vmul.f32 %v9726_v25, %v19419_v21  ;;  %v5896_v49 = vsub.f32 %v19422_v45, %v15478_v58  ;;  %v19425_v25 = vld [vmem:[#allocation62_spill] sm:$0xff]  ;;  %v5984_v4 = vmul.f32 1.442695, %v5899_v29  ;;  %v19428_v21 = vld [vmem:[#allocation45_spill] sm:$0xff]  ;;  %9745 = vpow2.f32 %v5974_v1  ;;  %6455 = vmatprep.mubr.f32.mxu1 %v18098_v61 }
 0x64d   : > { %19416 = vst [vmem:[#allocation155_spill] sm:$0xff] %v15537_v11  ;;  %8527 = vmatprep.subr.bf16.mxu1 %v15537_v11  ;;  %v6081_v36 = vmul.f32 %v9728_v9, %v19420_v51  ;;  %v9730_v48 = vpop.eup %9729  ;;  %v15550_v50 = vpack.c.bf16 %v6076_v2, %v6074_v16  ;;  %v5901_v0 = vsub.f32 %v19425_v25, %v15478_v58  ;;  %v19427_v51 = vld [vmem:[#allocation21_spill] sm:$0xff] }
 0x64e   : > { %v9732_v11 = vpop.eup %9731  ;;  %v5978_v45 = vmul.f32 1.442695, %v5896_v49  ;;  %v6078_v55 = vmul.f32 %v9730_v48, %v19427_v51  ;;  %v19432_v49 = vld [vmem:[#allocation139_spill] sm:$0xff]  ;;  %v5905_v1 = vsub.f32 %v19268_v30, %v15478_v58 }
 0x64f   : > { %19424 = vst [vmem:[#allocation151_spill] sm:$0xff] %v15550_v50  ;;  %v9734_v41 = vpop.eup %9733  ;;  %v15554_v9 = vpack.c.bf16 %v6081_v36, %v6079_v20  ;;  %v6080_v16 = vmul.f32 %v9732_v11, %v19428_v21  ;;  %v5988_v2 = vmul.f32 1.442695, %v5901_v0  ;;  %v19431_v36 = vld [vmem:[#allocation15_spill] sm:$0xff]  ;;  %v5900_v29 = vsub.f32 %v19432_v49, %v15478_v58  ;;  %v19433_v11 = vld [vmem:[#allocation150_spill] sm:$0xff] }
 0x650   : > { %v9736_v14 = vpop.eup %9735  ;;  %8529 = vmatpush1.bf16.xpose.msra.mxu1 %v15550_v50  ;;  %v6083_v59 = vmul.f32 %v9734_v41, %v19429_v63  ;;  %v5898_v20 = vsub.f32 %v19431_v36, %v15478_v58  ;;  %9747 = vpow2.f32 %v5978_v45  ;;  %v5903_v48 = vsub.f32 %v19433_v11, %v15478_v58  ;;  %v19436_v50 = vld [vmem:[#allocation38_spill] sm:$0xff] }
 0x651   : > { %19426 = vst [vmem:[#allocation193_spill] sm:$0xff] %v15554_v9  ;;  %8531 = vmatprep.subr.bf16.mxu1 %v15554_v9  ;;  %v6085_v25 = vmul.f32 %v9736_v14, %v19430_v3  ;;  %v9738_v9 = vpop.eup %9737  ;;  %9749 = vpow2.f32 %v5984_v4  ;;  %v15569_v41 = vpack.c.bf16 %v6080_v16, %v6078_v55  ;;  %v5986_v49 = vmul.f32 1.442695, %v5900_v29  ;;  %v19437_v3 = vld [vmem:[#allocation75_spill] sm:$0xff]  ;;  %v19439_v21 = vld [vmem:[#allocation34_spill] sm:$0xff] }
 0x652   : > { %v9740_v0 = vpop.eup %9739  ;;  %9751 = vpow2.f32 %v5988_v2  ;;  %v5982_v61 = vmul.f32 1.442695, %v5898_v20  ;;  %v5992_v4 = vmul.f32 1.442695, %v5903_v48  ;;  %v6082_v11 = vmul.f32 %v9738_v9, %v19436_v50  ;;  %v19438_v2 = vld [vmem:[#allocation113_spill] sm:$0xff]  ;;  %v19441_v20 = vld [vmem:[#allocation239_spill] sm:$0xff] }
 0x653   : > { %19434 = vst [vmem:[#allocation99_spill] sm:$0xff] %v15569_v41  ;;  %v15573_v36 = vpack.c.bf16 %v6085_v25, %v6083_v59  ;;  %v6084_v55 = vmul.f32 %v9740_v0, %v19437_v3  ;;  %v5996_v16 = vmul.f32 1.442695, %v5905_v1  ;;  %v19440_v59 = vld [vmem:[#allocation27_spill] sm:$0xff]  ;;  %v5904_v29 = vsub.f32 %v19441_v20, %v15478_v58  ;;  %v19444_v20 = vld [vmem:[#allocation112_spill] sm:$0xff] }
 0x654   : > { %v9742_v14 = vpop.eup %9741  ;;  %9753 = vpow2.f32 %v5982_v61  ;;  %v5902_v25 = vsub.f32 %v19440_v59, %v15478_v58  ;;  %v5907_v9 = vsub.f32 %v15106_v7, %v15478_v58  ;;  %v5909_v1 = vsub.f32 %v15137_v44, %v15478_v58 }
 0x655   : > { %19435 = vst [vmem:[#allocation109_spill] sm:$0xff] %v15573_v36  ;;  %v9744_v45 = vpop.eup %9743  ;;  %v6087_v63 = vmul.f32 %v9742_v14, %v19438_v2  ;;  %9755 = vpow2.f32 %v5986_v49  ;;  %v15587_v0 = vpack.c.bf16 %v6084_v55, %v6082_v11  ;;  %v5994_v59 = vmul.f32 1.442695, %v5904_v29  ;;  %v19447_v2 = vld [vmem:[#allocation18_spill] sm:$0xff] }
 0x656   : > { %v6089_v30 = vmul.f32 %v9744_v45, %v19439_v21  ;;  %9757 = vpow2.f32 %v5992_v4  ;;  %v5990_v45 = vmul.f32 1.442695, %v5902_v25  ;;  %v6000_v4 = vmul.f32 1.442695, %v5907_v9 }
 0x657   : > { %19442 = vst [vmem:[#allocation179_spill] sm:$0xff] %v15587_v0  ;;  %9759 = vpow2.f32 %v5996_v16  ;;  %v6004_v55 = vmul.f32 1.442695, %v5909_v1  ;;  %v19446_v16 = vld [vmem:[#allocation133_spill] sm:$0xff] }
 0x658   : > { %8533 = vmatpush1.bf16.xpose.msra.mxu1 %v15569_v41  ;;  %v9746_v41 = vpop.eup %9745  ;;  %v15591_v14 = vpack.c.bf16 %v6089_v30, %v6087_v63  ;;  %9761 = vpow2.f32 %v5990_v45  ;;  %v5906_v63 = vsub.f32 %v15095_v5, %v15478_v58  ;;  %v5908_v30 = vsub.f32 %v15118_v42, %v15478_v58 }
 0x659   : > { %8535 = vmatprep.subr.bf16.mxu1 %v15573_v36  ;;  %v6086_v7 = vmul.f32 %v9746_v41, %v19444_v20  ;;  %v19445_v36 = vld [vmem:[#allocation9_spill] sm:$0xff]  ;;  %9763 = vpow2.f32 %v5994_v59  ;;  %v5911_v41 = vsub.f32 %v15173_v24, %v15478_v58  ;;  %v19450_v59 = vld [vmem:[#allocation132_spill] sm:$0xff] }
 0x65a   : > { %v9748_v48 = vpop.eup %9747  ;;  %19443 = vst [vmem:[#allocation242_spill] sm:$0xff] %v15591_v14  ;;  %9765 = vpow2.f32 %v6000_v4  ;;  %v5998_v5 = vmul.f32 1.442695, %v5906_v63  ;;  %v6002_v42 = vmul.f32 1.442695, %v5908_v30  ;;  %v19451_v4 = vld [vmem:[#allocation49_spill] sm:$0xff]  ;;  %v5915_v30 = vsub.f32 %v15233_v17, %v15478_v58 }
 0x65b   : > { %v9750_v61 = vpop.eup %9749  ;;  %v6088_v11 = vmul.f32 %v9748_v48, %v19445_v36  ;;  %9767 = vpow2.f32 %v6004_v55  ;;  %v5913_v48 = vsub.f32 %v15207_v22, %v15478_v58  ;;  %v19452_v55 = vld [vmem:[#allocation148_spill] sm:$0xff] }
 0x65c   : > { %v9752_v49 = vpop.eup %9751  ;;  %v6091_v21 = vmul.f32 %v9750_v61, %v19446_v16  ;;  %9769 = vpow2.f32 %v5998_v5 }
 0x65d   : > { %v6093_v44 = vmul.f32 %v9752_v49, %v19447_v2  ;;  %v15605_v9 = vpack.c.bf16 %v6088_v11, %v6086_v7  ;;  %v6008_v49 = vmul.f32 1.442695, %v5911_v41  ;;  %v6012_v11 = vmul.f32 1.442695, %v5913_v48 }
 0x65e   : > { %v9754_v25 = vpop.eup %9753  ;;  %9771 = vpow2.f32 %v6002_v42  ;;  %v19456_v42 = vld [vmem:[#allocation147_spill] sm:$0xff] }
 0x65f   : > { %v9756_v29 = vpop.eup %9755  ;;  %19448 = vst [vmem:[#allocation105_spill] sm:$0xff] %v15605_v9  ;;  %v15609_v61 = vpack.c.bf16 %v6093_v44, %v6091_v21  ;;  %v6090_v24 = vmul.f32 %v9754_v25, %v19450_v59  ;;  %v5910_v21 = vsub.f32 %v15155_v19, %v15478_v58  ;;  %v5912_v44 = vsub.f32 %v15191_v53, %v15478_v58 }
 0x660   : > { %8537 = vmatpush1.bf16.xpose.msra.mxu1 %v15587_v0  ;;  %v9758_v1 = vpop.eup %9757  ;;  %v6092_v7 = vmul.f32 %v9756_v29, %v19451_v4  ;;  %v19453_v0 = vld [vmem:[#allocation73_spill] sm:$0xff]  ;;  %9773 = vpow2.f32 %v6008_v49  ;;  %v5917_v29 = vsub.f32 %v15257_v34, %v15478_v58  ;;  %v19457_v49 = vld [vmem:[#allocation70_spill] sm:$0xff] }
 0x661   : > { %8539 = vmatprep.subr.bf16.mxu1 %v15591_v14  ;;  %19449 = vst [vmem:[#allocation152_spill] sm:$0xff] %v15609_v61  ;;  %v9760_v45 = vpop.eup %9759  ;;  %v6095_v14 = vmul.f32 %v9758_v1, %v19452_v55  ;;  %9775 = vpow2.f32 %v6012_v11  ;;  %v6006_v19 = vmul.f32 1.442695, %v5910_v21  ;;  %v6010_v53 = vmul.f32 1.442695, %v5912_v44  ;;  %v19458_v11 = vld [vmem:[#allocation163_spill] sm:$0xff] }
 0x662   : > { %v6097_v22 = vmul.f32 %v9760_v45, %v19453_v0  ;;  %v9762_v63 = vpop.eup %9761  ;;  %v15623_v41 = vpack.c.bf16 %v6092_v7, %v6090_v24  ;;  %v6016_v45 = vmul.f32 1.442695, %v5915_v30  ;;  %v6020_v7 = vmul.f32 1.442695, %v5917_v29 }
 0x663   : > { %v9764_v25 = vpop.eup %9763  ;;  %v6094_v17 = vmul.f32 %v9762_v63, %v19456_v42  ;;  %9777 = vpow2.f32 %v6006_v19  ;;  %v5919_v44 = vsub.f32 %v15281_v46, %v15478_v58 }
 0x664   : > { %19454 = vst [vmem:[#allocation166_spill] sm:$0xff] %v15623_v41  ;;  %v9766_v48 = vpop.eup %9765  ;;  %v15627_v1 = vpack.c.bf16 %v6097_v22, %v6095_v14  ;;  %v6096_v24 = vmul.f32 %v9764_v25, %v19457_v49  ;;  %v5914_v14 = vsub.f32 %v15220_v60, %v15478_v58  ;;  %9779 = vpow2.f32 %v6010_v53  ;;  %v19462_v53 = vld [vmem:[#allocation158_spill] sm:$0xff] }
 0x665   : > { %v9768_v5 = vpop.eup %9767  ;;  %v5916_v22 = vsub.f32 %v15245_v18, %v15478_v58  ;;  %9781 = vpow2.f32 %v6016_v45  ;;  %v5921_v25 = vsub.f32 %v15305_v13, %v15478_v58  ;;  %v19463_v45 = vld [vmem:[#allocation4_spill] sm:$0xff] }
 0x666   : > { %19455 = vst [vmem:[#allocation25_spill] sm:$0xff] %v15627_v1  ;;  %v9770_v21 = vpop.eup %9769  ;;  %v15641_v30 = vpack.c.bf16 %v6096_v24, %v6094_v17  ;;  %9783 = vpow2.f32 %v6020_v7  ;;  %v6014_v60 = vmul.f32 1.442695, %v5914_v14  ;;  %v19464_v7 = vld [vmem:[#allocation176_spill] sm:$0xff] }
 0x667   : > { %v6018_v18 = vmul.f32 1.442695, %v5916_v22  ;;  %v6098_v46 = vmul.f32 %v9770_v21, %v19462_v53  ;;  %v6028_v24 = vmul.f32 1.442695, %v5921_v25  ;;  %v5923_v22 = vsub.f32 %v15329_v15, %v15478_v58 }
 0x668   : > { %8541 = vmatpush1.bf16.xpose.msra.mxu1 %v15605_v9  ;;  %v19459_v9 = vld [vmem:[#allocation90_spill] sm:$0xff]  ;;  %v9772_v63 = vpop.eup %9771  ;;  %19460 = vst [vmem:[#allocation195_spill] sm:$0xff] %v15641_v30  ;;  %9785 = vpow2.f32 %v6014_v60 }
 0x669   : > { %8543 = vmatprep.subr.bf16.mxu1 %v15609_v61  ;;  %v6099_v61 = vmul.f32 %v9766_v48, %v19458_v11  ;;  %v6101_v34 = vmul.f32 %v9768_v5, %v19459_v9  ;;  %v6024_v5 = vmul.f32 1.442695, %v5919_v44  ;;  %v6100_v17 = vmul.f32 %v9772_v63, %v19463_v45 }
 0x66a   : > { %v9774_v29 = vpop.eup %9773  ;;  %9787 = vpow2.f32 %v6018_v18  ;;  %v5925_v63 = vsub.f32 %v15352_v23, %v15478_v58  ;;  %v19468_v18 = vld [vmem:[#allocation175_spill] sm:$0xff] }
 0x66b   : > { %v15645_v48 = vpack.c.bf16 %v6101_v34, %v6099_v61  ;;  %v9776_v19 = vpop.eup %9775  ;;  %v5918_v61 = vsub.f32 %v15269_v40, %v15478_v58  ;;  %v5920_v34 = vsub.f32 %v15293_v57, %v15478_v58  ;;  %9789 = vpow2.f32 %v6024_v5  ;;  %v19469_v5 = vld [vmem:[#allocation117_spill] sm:$0xff] }
 0x66c   : > { %v15659_v44 = vpack.c.bf16 %v6100_v17, %v6098_v46  ;;  %9791 = vpow2.f32 %v6028_v24  ;;  %v6036_v17 = vmul.f32 1.442695, %v5925_v63  ;;  %v19470_v24 = vld [vmem:[#allocation180_spill] sm:$0xff] }
 0x66d   : > { %19461 = vst [vmem:[#allocation231_spill] sm:$0xff] %v15645_v48  ;;  %v9778_v14 = vpop.eup %9777  ;;  %v6022_v40 = vmul.f32 1.442695, %v5918_v61  ;;  %v6026_v57 = vmul.f32 1.442695, %v5920_v34  ;;  %v5927_v34 = vsub.f32 %v15369_v35, %v15478_v58 }
 0x66e   : > { %v9780_v21 = vpop.eup %9779  ;;  %19466 = vst [vmem:[#allocation181_spill] sm:$0xff] %v15659_v44  ;;  %v6102_v15 = vmul.f32 %v9778_v14, %v19468_v18 }
 0x66f   : > { %v9782_v25 = vpop.eup %9781  ;;  %v6104_v46 = vmul.f32 %v9780_v21, %v19469_v5  ;;  %9793 = vpow2.f32 %v6022_v40  ;;  %v5929_v21 = vsub.f32 %v15387_v62, %v15478_v58 }
 0x670   : > { %8545 = vmatpush1.bf16.xpose.msra.mxu1 %v15623_v41  ;;  %v19465_v41 = vld [vmem:[#allocation118_spill] sm:$0xff]  ;;  %v9784_v60 = vpop.eup %9783  ;;  %9795 = vpow2.f32 %v6026_v57 }
 0x671   : > { %8547 = vmatprep.subr.bf16.mxu1 %v15627_v1  ;;  %v6103_v1 = vmul.f32 %v9774_v29, %v19464_v7  ;;  %v6105_v13 = vmul.f32 %v9776_v19, %v19465_v41  ;;  %v6032_v19 = vmul.f32 1.442695, %v5923_v22  ;;  %v15677_v22 = vpack.c.bf16 %v6104_v46, %v6102_v15  ;;  %v19474_v57 = vld [vmem:[#allocation106_spill] sm:$0xff] }
 0x672   : > { %v9786_v61 = vpop.eup %9785  ;;  %v6044_v46 = vmul.f32 1.442695, %v5929_v21 }
 0x673   : > { %v15663_v29 = vpack.c.bf16 %v6105_v13, %v6103_v1  ;;  %v5922_v1 = vsub.f32 %v15317_v38, %v15478_v58  ;;  %v5924_v13 = vsub.f32 %v15341_v54, %v15478_v58  ;;  %9797 = vpow2.f32 %v6032_v19  ;;  %19472 = vst [vmem:[#allocation26_spill] sm:$0xff] %v15677_v22  ;;  %v19475_v19 = vld [vmem:[#allocation125_spill] sm:$0xff] }
 0x674   : > { %v9788_v14 = vpop.eup %9787  ;;  %9799 = vpow2.f32 %v6036_v17  ;;  %v6106_v35 = vmul.f32 %v9786_v61, %v19474_v57  ;;  %v19476_v17 = vld [vmem:[#allocation209_spill] sm:$0xff] }
 0x675   : > { %19467 = vst [vmem:[#allocation269_spill] sm:$0xff] %v15663_v29  ;;  %v9790_v63 = vpop.eup %9789  ;;  %v6030_v38 = vmul.f32 1.442695, %v5922_v1  ;;  %v6034_v54 = vmul.f32 1.442695, %v5924_v13  ;;  %v6108_v15 = vmul.f32 %v9788_v14, %v19475_v19  ;;  %v5931_v13 = vsub.f32 %v15403_v26, %v15478_v58 }
 0x676   : > { %v9792_v40 = vpop.eup %9791 }
 0x677   : > { %9801 = vpow2.f32 %v6030_v38  ;;  %v15697_v14 = vpack.c.bf16 %v6108_v15, %v6106_v35  ;;  %v19482_v35 = vld [vmem:[#allocation220_spill] sm:$0xff] }
 0x678   : > { %8549 = vmatpush1.bf16.xpose.msra.mxu1 %v15641_v30  ;;  %v19471_v30 = vld [vmem:[#allocation127_spill] sm:$0xff]  ;;  %9803 = vpow2.f32 %v6034_v54  ;;  %v19480_v54 = vld [vmem:[#allocation208_spill] sm:$0xff] }
 0x679   : > { %8551 = vmatprep.subr.bf16.mxu1 %v15645_v48  ;;  %v6107_v48 = vmul.f32 %v9782_v25, %v19470_v24  ;;  %v6109_v23 = vmul.f32 %v9784_v60, %v19471_v30  ;;  %v6040_v60 = vmul.f32 1.442695, %v5927_v34  ;;  %v9794_v1 = vpop.eup %9793  ;;  %v5933_v34 = vsub.f32 %v15419_v32, %v15478_v58  ;;  %19478 = vst [vmem:[#allocation134_spill] sm:$0xff] %v15697_v14 }
 0x67a   : > { %v9796_v61 = vpop.eup %9795  ;;  %v5935_v32 = vsub.f32 %v15434_v6, %v15478_v58 }
 0x67b   : > { %v15681_v25 = vpack.c.bf16 %v6109_v23, %v6107_v48  ;;  %v5926_v48 = vsub.f32 %v15361_v12, %v15478_v58  ;;  %v5928_v23 = vsub.f32 %v15378_v56, %v15478_v58  ;;  %9805 = vpow2.f32 %v6040_v60 }
 0x67c   : > { %9807 = vpow2.f32 %v6044_v46  ;;  %v6052_v26 = vmul.f32 1.442695, %v5933_v34  ;;  %v6110_v60 = vmul.f32 %v9794_v1, %v19480_v54  ;;  %v6056_v34 = vmul.f32 1.442695, %v5935_v32  ;;  %v19489_v32 = vld [vmem:[#allocation234_spill] sm:$0xff] }
 0x67d   : > { %19473 = vst [vmem:[#allocation164_spill] sm:$0xff] %v15681_v25  ;;  %v9798_v21 = vpop.eup %9797  ;;  %v6038_v12 = vmul.f32 1.442695, %v5926_v48  ;;  %v6042_v56 = vmul.f32 1.442695, %v5928_v23  ;;  %v5932_v23 = vsub.f32 %v15411_v31, %v15478_v58  ;;  %v15720_v31 = vstv %s9485_s11 }
 0x67e   : > { %v9800_v38 = vpop.eup %9799  ;;  %v6115_v15 = vmul.f32 %v9798_v21, %v19482_v35  ;;  %19486 = vst [vmem:[#allocation36_spill] sm:$0xff] %v15720_v31 }
 0x67f   : > { %9809 = vpow2.f32 %v6038_v12 }
 0x680   : > { %8553 = vmatpush1.bf16.xpose.msra.mxu1 %v15659_v44  ;;  %v19477_v44 = vld [vmem:[#allocation141_spill] sm:$0xff]  ;;  %9811 = vpow2.f32 %v6042_v56  ;;  %v19487_v56 = vld [vmem:[#allocation219_spill] sm:$0xff] }
 0x681   : > { %8555 = vmatprep.subr.bf16.mxu1 %v15663_v29  ;;  %v6111_v29 = vmul.f32 %v9790_v63, %v19476_v17  ;;  %v6113_v62 = vmul.f32 %v9792_v40, %v19477_v44  ;;  %v6048_v40 = vmul.f32 1.442695, %v5931_v13  ;;  %v9802_v48 = vpop.eup %9801  ;;  %v5937_v13 = vsub.f32 %v15449_v47, %v15478_v58 }
 0x682   : > { %v9804_v1 = vpop.eup %9803  ;;  %v5934_v47 = vsub.f32 %v15426_v43, %v15478_v58 }
 0x683   : > { %v15699_v63 = vpack.c.bf16 %v6113_v62, %v6111_v29  ;;  %v19483_v29 = vld [vmem:[#allocation157_spill] sm:$0xff]  ;;  %v5930_v62 = vsub.f32 %v15395_v52, %v15478_v58  ;;  %9813 = vpow2.f32 %v6048_v40  ;;  %v6114_v40 = vmul.f32 %v9802_v48, %v19487_v56 }
 0x684   : > { %v6117_v46 = vmul.f32 %v9800_v38, %v19483_v29  ;;  %9815 = vpow2.f32 %v6052_v26  ;;  %v6050_v38 = vmul.f32 1.442695, %v5932_v23  ;;  %v19488_v26 = vld [vmem:[#allocation156_spill] sm:$0xff]  ;;  %v5936_v23 = vsub.f32 %v15442_v39, %v15478_v58 }
 0x685   : > { %19479 = vst [vmem:[#allocation210_spill] sm:$0xff] %v15699_v63  ;;  %v6046_v52 = vmul.f32 1.442695, %v5930_v62  ;;  %9817 = vpow2.f32 %v6056_v34  ;;  %v5939_v48 = vsub.f32 %v15461_v28, %v15478_v58 }
 0x686   : > { %v15717_v21 = vpack.c.bf16 %v6117_v46, %v6115_v15  ;;  %v19490_v46 = vld [vmem:[#allocation170_spill] sm:$0xff] }
 0x687   : > { %9819 = vpow2.f32 %v6046_v52  ;;  %v6058_v52 = vmul.f32 1.442695, %v5936_v23 }
 0x688   : > { %8557 = vmatpush1.bf16.xpose.msra.mxu1 %v15677_v22  ;;  %19485 = vst [vmem:[#allocation273_spill] sm:$0xff] %v15717_v21  ;;  %9821 = vpow2.f32 %v6050_v38  ;;  %v19497_v38 = vld [vmem:[#allocation233_spill] sm:$0xff] }
 0x689   : > { %8559 = vmatprep.subr.bf16.mxu1 %v15681_v25  ;;  %v19481_v25 = vld [vmem:[#allocation140_spill] sm:$0xff] }
 0x68a   : > { %v6112_v22 = vmul.f32 %v9796_v61, %v19481_v25  ;;  %v9806_v61 = vpop.eup %9805 }
 0x68b   : > { %v9808_v12 = vpop.eup %9807  ;;  %v6119_v15 = vmul.f32 %v9806_v61, %v19489_v32  ;;  %v6054_v61 = vmul.f32 1.442695, %v5934_v47 }
 0x68c   : > { %v15715_v6 = vpack.c.bf16 %v6112_v22, %v6110_v60  ;;  %v6060_v22 = vmul.f32 1.442695, %v5937_v13  ;;  %v6116_v60 = vmul.f32 %v9804_v1, %v19488_v26  ;;  %v6121_v62 = vmul.f32 %v9808_v12, %v19490_v46  ;;  %v9810_v43 = vpop.eup %9809 }
 0x68d   : > { %v5941_v1 = vsub.f32 %v15467_v37, %v15478_v58  ;;  %v5938_v37 = vsub.f32 %v15455_v33, %v15478_v58  ;;  %v19501_v33 = vld [vmem:[#allocation241_spill] sm:$0xff] }
 0x68e   : > { %19484 = vst [vmem:[#allocation122_spill] sm:$0xff] %v15715_v6  ;;  %9823 = vpow2.f32 %v6060_v22  ;;  %v15748_v39 = vpack.c.bf16 %v6116_v60, %v6114_v40  ;;  %v15750_v34 = vpack.c.bf16 %v6121_v62, %v6119_v15  ;;  %v5940_v40 = vsub.f32 %v15464_v27, %v15478_v58  ;;  %v19499_v15 = vld [vmem:[#allocation238_spill] sm:$0xff] }
 0x68f   : > { %v6068_v28 = vmul.f32 1.442695, %v5941_v1  ;;  %9825 = vpow2.f32 %v6054_v61  ;;  %v6136_v62 = vsub.f32 %v19499_v15, %v15720_v31  ;;  %v6062_v1 = vmul.f32 1.442695, %v5938_v37  ;;  %v19504_v15 = vld [vmem:[#allocation190_spill] sm:$0xff]  ;;  %v19507_v37 = vld [vmem:[#allocation237_spill] sm:$0xff] }
 0x690   : > { %8561 = vmatpush1.bf16.xpose.msra.mxu1 %v15697_v14  ;;  %19495 = vst [vmem:[#allocation20_spill] sm:$0xff] %v15748_v39  ;;  %19496 = vst [vmem:[#allocation123_spill] sm:$0xff] %v15750_v34  ;;  %v19498_v14 = vld [vmem:[#allocation79_spill] sm:$0xff]  ;;  %9827 = vpow2.f32 %v6058_v52 }
 0x691   : > { %8563 = vmatprep.subr.bf16.mxu1 %v15699_v63  ;;  %v19491_v63 = vlaneseq  ;;  %v6201_v27 = vmul.f32 1.442695, %v6136_v62  ;;  %v19509_v62 = vld [vmem:[#allocation245_spill] sm:$0xff] }
 0x693   : > { %vm15730_vm11 = vcmp.lt.s32.totalorder %v19491_v63, 256  ;;  %v9812_v63 = vpop.eup %9811 }
 0x694   : > { %6964 = vst.msk [vmem:[%s15483_s10] ss:$8 sm:$0x3] %vm15730_vm11, %v15478_v58  ;;  %7744 = vst.msk [vmem:[%s15483_s10 + $0x1] ss:$8 sm:$0x3] %vm15730_vm11, %v15720_v31  ;;  %v9814_v13 = vpop.eup %9813  ;;  %v6120_v46 = vmul.f32 %v9812_v63, %v19498_v14 }
 0x695   : > { %v9816_v12 = vpop.eup %9815  ;;  %v6123_v47 = vmul.f32 %v9814_v13, %v19369_v8 }
 0x696   : > { %v6125_v22 = vmul.f32 %v9816_v12, %v19372_v10  ;;  %v9818_v60 = vpop.eup %9817  ;;  %v6066_v12 = vmul.f32 1.442695, %v5940_v40 }
 0x697   : > { %v9820_v23 = vpop.eup %9819 }
 0x698   : > { %8565 = vmatpush1.bf16.xpose.msra.mxu1 %v15715_v6  ;;  %v19492_v6 = vmov 0  ;;  %v9822_v63 = vpop.eup %9821  ;;  %v15768_v13 = vpack.c.bf16 %v6125_v22, %v6123_v47  ;;  %v6135_v47 = vsub.f32 %v19507_v37, %v15720_v31  ;;  %v19508_v22 = vld [vmem:[#allocation103_spill] sm:$0xff] }
 0x699   : > { %8567 = vmatprep.subr.bf16.mxu1 %v15717_v21  ;;  %v19493_v6 = vsel %vm15730_vm11, 4294967295, %v19492_v6  ;;  %v6118_v21 = vmul.f32 %v9810_v43, %v19497_v38  ;;  %v9824_v61 = vpop.eup %9823  ;;  %v6137_v40 = vsub.f32 %v19508_v22, %v15720_v31 }
 0x69a   : > { %19494 = vst [vmem:[#allocation211_spill] sm:$0xff] %v19493_v6  ;;  %v6064_v6 = vmul.f32 1.442695, %v5939_v48  ;;  %v6138_v48 = vsub.f32 %v19501_v33, %v15720_v31  ;;  %19502 = vst [vmem:[#allocation272_spill] sm:$0xff] %v15768_v13  ;;  %v19506_v33 = vld [vmem:[#allocation207_spill] sm:$0xff] }
 0x69b   : > { %v15764_v43 = vpack.c.bf16 %v6120_v46, %v6118_v21  ;;  %v19505_v46 = vld [vmem:[#allocation267_spill] sm:$0xff]  ;;  %v6199_v37 = vmul.f32 1.442695, %v6135_v47  ;;  %v6203_v22 = vmul.f32 1.442695, %v6137_v40 }
 0x69c   : > { %9829 = vpow2.f32 %v6064_v6  ;;  %v19503_v6 = vld [vmem:[#allocation50_spill] sm:$0xff]  ;;  %v6205_v21 = vmul.f32 1.442695, %v6138_v48  ;;  %v6127_v58 = vmul.f32 %v9818_v60, %v19505_v46  ;;  %v19518_v47 = vld [vmem:[#allocation247_spill] sm:$0xff] }
 0x69d   : > { %9831 = vpow2.f32 %v6068_v28  ;;  %19500 = vst [vmem:[#allocation277_spill] sm:$0xff] %v15764_v43  ;;  %v6122_v52 = vmul.f32 %v9820_v23, %v19503_v6  ;;  %v6124_v28 = vmul.f32 %v9822_v63, %v19504_v15  ;;  %v6140_v23 = vsub.f32 %v19509_v62, %v15720_v31  ;;  %v19511_v60 = vld [vmem:[#allocation254_spill] sm:$0xff]  ;;  %v19516_v15 = vld [vmem:[#allocation216_spill] sm:$0xff] }
 0x69e   : > { %9833 = vpow2.f32 %v6062_v1  ;;  %v6142_v48 = vsub.f32 %v19511_v60, %v15720_v31  ;;  %v6141_v40 = vsub.f32 %v19518_v47, %v15720_v31 }
 0x69f   : > { %9835 = vpow2.f32 %v6066_v12  ;;  %v15782_v63 = vpack.c.bf16 %v6124_v28, %v6122_v52 }
 0x6a0   : > { %8569 = vmatpush1.bf16.xpose.msra.mxu1 %v15748_v39  ;;  %9837 = vpow2.f32 %v6201_v27  ;;  %v6209_v27 = vmul.f32 1.442695, %v6140_v23  ;;  %v19513_v39 = vld [vmem:[#allocation266_spill] sm:$0xff]  ;;  %v6213_v28 = vmul.f32 1.442695, %v6142_v48  ;;  %v19519_v23 = vld [vmem:[#allocation257_spill] sm:$0xff] }
 0x6a1   : > { %8571 = vmatprep.subr.bf16.mxu1 %v15750_v34  ;;  %v6129_v34 = vmul.f32 %v9824_v61, %v19506_v33  ;;  %19510 = vst [vmem:[#allocation24_spill] sm:$0xff] %v15782_v63  ;;  %9839 = vpow2.f32 %v6205_v21  ;;  %v19514_v33 = vld [vmem:[#allocation205_spill] sm:$0xff]  ;;  %v19515_v21 = vld [vmem:[#allocation58_spill] sm:$0xff]  ;;  %v19521_v48 = vld [vmem:[#allocation260_spill] sm:$0xff]  ;;  %v6211_v47 = vmul.f32 1.442695, %v6141_v40 }
 0x6a2   : > { %9841 = vpow2.f32 %v6199_v37 }
 0x6a3   : > { %v15786_v61 = vpack.c.bf16 %v6129_v34, %v6127_v58  ;;  %v19517_v58 = vld [vmem:[#allocation35_spill] sm:$0xff]  ;;  %9843 = vpow2.f32 %v6203_v22 }
 0x6a4   : > { %v6139_v34 = vsub.f32 %v19517_v58, %v15720_v31  ;;  %9845 = vpow2.f32 %v6209_v27 }
 0x6a5   : > { %19512 = vst [vmem:[#allocation225_spill] sm:$0xff] %v15786_v61  ;;  %9847 = vpow2.f32 %v6213_v28  ;;  %v19525_v28 = vld [vmem:[#allocation104_spill] sm:$0xff] }
 0x6a6   : > { %v6207_v58 = vmul.f32 1.442695, %v6139_v34  ;;  %v19528_v34 = vld [vmem:[#allocation67_spill] sm:$0xff] }
 0x6a7   : > { %v6145_v40 = vsub.f32 %v19528_v34, %v15720_v31 }
 0x6a8   : > { %8573 = vmatpush1.bf16.xpose.msra.mxu1 %v15764_v43  ;;  %v9826_v43 = vpop.eup %9825  ;;  %9849 = vpow2.f32 %v6207_v58 }
 0x6a9   : > { %8575 = vmatprep.subr.bf16.mxu1 %v15768_v13  ;;  %v9828_v13 = vpop.eup %9827  ;;  %v6126_v62 = vmul.f32 %v9826_v43, %v19513_v39  ;;  %v6144_v43 = vsub.f32 %v19519_v23, %v15720_v31  ;;  %v19526_v39 = vld [vmem:[#allocation89_spill] sm:$0xff]  ;;  %9851 = vpow2.f32 %v6211_v47  ;;  %v6219_v34 = vmul.f32 1.442695, %v6145_v40 }
 0x6aa   : > { %v9830_v1 = vpop.eup %9829  ;;  %v6128_v52 = vmul.f32 %v9828_v13, %v19514_v33 }
 0x6ab   : > { %v9832_v12 = vpop.eup %9831  ;;  %v6131_v46 = vmul.f32 %v9830_v1, %v19515_v21  ;;  %v6146_v1 = vsub.f32 %v19521_v48, %v15720_v31  ;;  %v6217_v27 = vmul.f32 1.442695, %v6144_v43  ;;  %v19524_v21 = vld [vmem:[#allocation214_spill] sm:$0xff]  ;;  %v19529_v43 = vld [vmem:[#allocation265_spill] sm:$0xff] }
 0x6ac   : > { %v6133_v60 = vmul.f32 %v9832_v12, %v19516_v15  ;;  %v15800_v13 = vpack.c.bf16 %v6128_v52, %v6126_v62  ;;  %v19523_v15 = vld [vmem:[#allocation135_spill] sm:$0xff] }
 0x6ad   : > { %v6221_v52 = vmul.f32 1.442695, %v6146_v1  ;;  %9853 = vpow2.f32 %v6217_v27  ;;  %v19531_v1 = vld [vmem:[#allocation222_spill] sm:$0xff] }
 0x6ae   : > { %19520 = vst [vmem:[#allocation184_spill] sm:$0xff] %v15800_v13  ;;  %v15804_v12 = vpack.c.bf16 %v6133_v60, %v6131_v46  ;;  %v19527_v46 = vld [vmem:[#allocation74_spill] sm:$0xff] }
 0x6af   : > { %v6143_v60 = vsub.f32 %v19527_v46, %v15720_v31  ;;  %9855 = vpow2.f32 %v6221_v52  ;;  %v19535_v52 = vld [vmem:[#allocation29_spill] sm:$0xff] }
 0x6b0   : > { %8577 = vmatpush1.bf16.xpose.msra.mxu1 %v15782_v63  ;;  %v9834_v63 = vpop.eup %9833  ;;  %19522 = vst [vmem:[#allocation280_spill] sm:$0xff] %v15804_v12 }
 0x6b1   : > { %8579 = vmatprep.subr.bf16.mxu1 %v15786_v61  ;;  %v9836_v61 = vpop.eup %9835  ;;  %v6130_v23 = vmul.f32 %v9834_v63, %v19523_v15  ;;  %v6148_v63 = vsub.f32 %v19529_v43, %v15720_v31  ;;  %v6215_v46 = vmul.f32 1.442695, %v6143_v60  ;;  %v19536_v15 = vld [vmem:[#allocation11_spill] sm:$0xff] }
 0x6b2   : > { %v9838_v37 = vpop.eup %9837  ;;  %v6132_v62 = vmul.f32 %v9836_v61, %v19524_v21  ;;  %v19538_v60 = vld [vmem:[#allocation87_spill] sm:$0xff] }
 0x6b3   : > { %v9840_v22 = vpop.eup %9839  ;;  %v6328_v33 = vmul.f32 %v9838_v37, %v19525_v28  ;;  %v6150_v37 = vsub.f32 %v19531_v1, %v15720_v31  ;;  %v6225_v27 = vmul.f32 1.442695, %v6148_v63  ;;  %v19534_v28 = vld [vmem:[#allocation88_spill] sm:$0xff]  ;;  %9857 = vpow2.f32 %v6215_v46  ;;  %v19539_v63 = vld [vmem:[#allocation115_spill] sm:$0xff] }
 0x6b4   : > { %v6330_v48 = vmul.f32 %v9840_v22, %v19526_v39  ;;  %v15818_v61 = vpack.c.bf16 %v6132_v62, %v6130_v23  ;;  %v19533_v39 = vld [vmem:[#allocation92_spill] sm:$0xff]  ;;  %9859 = vpow2.f32 %v6219_v34  ;;  %v6149_v40 = vsub.f32 %v19538_v60, %v15720_v31  ;;  %v19545_v60 = vld [vmem:[#allocation10_spill] sm:$0xff] }
 0x6b5   : > { %v6229_v62 = vmul.f32 1.442695, %v6150_v37  ;;  %9861 = vpow2.f32 %v6225_v27  ;;  %v19541_v37 = vld [vmem:[#allocation44_spill] sm:$0xff] }
 0x6b6   : > { %19530 = vst [vmem:[#allocation279_spill] sm:$0xff] %v15818_v61  ;;  %v15822_v22 = vpack.c.bf16 %v6330_v48, %v6328_v33  ;;  %v19537_v33 = vld [vmem:[#allocation262_spill] sm:$0xff]  ;;  %v6227_v27 = vmul.f32 1.442695, %v6149_v40  ;;  %v19549_v40 = vld [vmem:[#allocation116_spill] sm:$0xff] }
 0x6b7   : > { %v6147_v48 = vsub.f32 %v19537_v33, %v15720_v31  ;;  %9863 = vpow2.f32 %v6229_v62 }
 0x6b8   : > { %8581 = vmatpush1.bf16.xpose.msra.mxu1 %v15800_v13  ;;  %v9842_v13 = vpop.eup %9841  ;;  %19532 = vst [vmem:[#allocation228_spill] sm:$0xff] %v15822_v22 }
 0x6b9   : > { %8583 = vmatprep.subr.bf16.mxu1 %v15804_v12  ;;  %v9844_v12 = vpop.eup %9843  ;;  %v6327_v43 = vmul.f32 %v9842_v13, %v19533_v39  ;;  %v6152_v13 = vsub.f32 %v19539_v63, %v15720_v31  ;;  %v6223_v34 = vmul.f32 1.442695, %v6147_v48  ;;  %v19547_v39 = vld [vmem:[#allocation56_spill] sm:$0xff] }
 0x6ba   : > { %v9846_v58 = vpop.eup %9845  ;;  %v6329_v23 = vmul.f32 %v9844_v12, %v19534_v28 }
 0x6bb   : > { %v9848_v47 = vpop.eup %9847  ;;  %v6332_v21 = vmul.f32 %v9846_v58, %v19535_v52  ;;  %v6154_v58 = vsub.f32 %v19541_v37, %v15720_v31  ;;  %v19546_v52 = vld [vmem:[#allocation60_spill] sm:$0xff]  ;;  %9865 = vpow2.f32 %v6223_v34 }
 0x6bc   : > { %v6334_v1 = vmul.f32 %v9848_v47, %v19536_v15  ;;  %v15836_v12 = vpack.c.bf16 %v6329_v23, %v6327_v43  ;;  %v19542_v47 = vmov 1.0   ;;  %v6233_v43 = vmul.f32 1.442695, %v6152_v13  ;;  %v19544_v23 = vld [vmem:[#allocation28_spill] sm:$0xff]  ;;  %v19550_v13 = vld [vmem:[#allocation235_spill] sm:$0xff] }
 0x6bd   : > { %v6237_v37 = vmul.f32 1.442695, %v6154_v58  ;;  %9867 = vpow2.f32 %v6227_v27  ;;  %v19552_v58 = vld [vmem:[#allocation7_spill] sm:$0xff] }
 0x6be   : > { %19540 = vst [vmem:[#allocation185_spill] sm:$0xff] %v15836_v12  ;;  %v15841_v33 = vpack.c.bf16 %v6334_v1, %v6332_v21  ;;  %v19548_v1 = vld [vmem:[#allocation98_spill] sm:$0xff]  ;;  %9869 = vpow2.f32 %v6233_v43 }
 0x6bf   : > { %v6151_v48 = vsub.f32 %v19548_v1, %v15720_v31  ;;  %9871 = vpow2.f32 %v6237_v37  ;;  %v19555_v37 = vld [vmem:[#allocation82_spill] sm:$0xff] }
 0x6c0   : > { %8585 = vmatpush1.bf16.xpose.msra.mxu1 %v15818_v61  ;;  %v9850_v61 = vpop.eup %9849  ;;  %19543 = vst [vmem:[#allocation281_spill] sm:$0xff] %v15841_v33 }
 0x6c1   : > { %8587 = vmatprep.subr.bf16.mxu1 %v15822_v22  ;;  %v9852_v22 = vpop.eup %9851  ;;  %v6331_v62 = vmul.f32 %v9850_v61, %v19544_v23  ;;  %v6156_v61 = vsub.f32 %v19550_v13, %v15720_v31  ;;  %v6231_v1 = vmul.f32 1.442695, %v6151_v48  ;;  %v19558_v48 = vld [vmem:[#allocation236_spill] sm:$0xff] }
 0x6c2   : > { %v9854_v46 = vpop.eup %9853  ;;  %v6333_v63 = vmul.f32 %v9852_v22, %v19545_v60  ;;  %v19556_v60 = vld [vmem:[#allocation80_spill] sm:$0xff] }
 0x6c3   : > { %v9856_v15 = vpop.eup %9855  ;;  %v6336_v28 = vmul.f32 %v9854_v46, %v19546_v52  ;;  %v6241_v43 = vmul.f32 1.442695, %v6156_v61  ;;  %9873 = vpow2.f32 %v6231_v1  ;;  %v19559_v61 = vld [vmem:[#allocation258_spill] sm:$0xff] }
 0x6c4   : > { %v6338_v21 = vmul.f32 %v9856_v15, %v19547_v39  ;;  %v15856_v22 = vpack.c.bf16 %v6333_v63, %v6331_v62  ;;  %v6158_v15 = vsub.f32 %v19552_v58, %v15720_v31  ;;  %v19554_v39 = vld [vmem:[#allocation45_spill] sm:$0xff] }
 0x6c6   : > { %19551 = vst [vmem:[#allocation283_spill] sm:$0xff] %v15856_v22  ;;  %v15860_v34 = vpack.c.bf16 %v6338_v21, %v6336_v28  ;;  %v6245_v63 = vmul.f32 1.442695, %v6158_v15  ;;  %v19557_v28 = vld [vmem:[#allocation14_spill] sm:$0xff] }
 0x6c7   : > { %6456 = vmatmul.mubr.f32.vlgmr.msra.gmra.mrb[0].mxu1 %v19542_v47  ;;  %v6155_v21 = vsub.f32 %v19557_v28, %v15720_v31  ;;  %v19561_v15 = vld [vmem:[#allocation86_spill] sm:$0xff] }
 0x6c8   : > { %8589 = vmatpush1.bf16.xpose.msra.mxu1 %v15836_v12  ;;  %6526 = vmatprep.mubr.f32.mxu1 %v19542_v47  ;;  %v6153_v12 = vsub.f32 %v19549_v40, %v15720_v31  ;;  %v9858_v47 = vpop.eup %9857  ;;  %19553 = vst [vmem:[#allocation250_spill] sm:$0xff] %v15860_v34 }
 0x6c9   : > { %8591 = vmatprep.subr.bf16.mxu1 %v15841_v33  ;;  %v9860_v33 = vpop.eup %9859  ;;  %v6335_v13 = vmul.f32 %v9858_v47, %v19427_v51  ;;  %v6160_v47 = vsub.f32 %v19559_v61, %v15720_v31  ;;  %v6239_v28 = vmul.f32 1.442695, %v6155_v21  ;;  %v19566_v21 = vld [vmem:[#allocation63_spill] sm:$0xff] }
 0x6ca   : > { %v9862_v46 = vpop.eup %9861  ;;  %v6235_v40 = vmul.f32 1.442695, %v6153_v12  ;;  %v6337_v62 = vmul.f32 %v9860_v33, %v19554_v39  ;;  %v6157_v12 = vsub.f32 %v19558_v48, %v15720_v31 }
 0x6cb   : > { %v9864_v27 = vpop.eup %9863  ;;  %v6340_v52 = vmul.f32 %v9862_v46, %v19555_v37  ;;  %v6162_v46 = vsub.f32 %v19561_v15, %v15720_v31  ;;  %v19564_v37 = vld [vmem:[#allocation34_spill] sm:$0xff] }
 0x6cc   : > { %v6342_v58 = vmul.f32 %v9864_v27, %v19556_v60  ;;  %9875 = vpow2.f32 %v6235_v40  ;;  %v15874_v33 = vpack.c.bf16 %v6337_v62, %v6335_v13  ;;  %v6243_v48 = vmul.f32 1.442695, %v6157_v12 }
 0x6cd   : > { %9877 = vpow2.f32 %v6241_v43  ;;  %v6249_v43 = vmul.f32 1.442695, %v6160_v47  ;;  %v6253_v62 = vmul.f32 1.442695, %v6162_v46  ;;  %v6161_v12 = vsub.f32 %v19566_v21, %v15720_v31  ;;  %v19567_v47 = vld [vmem:[#allocation111_spill] sm:$0xff]  ;;  %v19569_v46 = vld [vmem:[#allocation252_spill] sm:$0xff] }
 0x6ce   : > { %19560 = vst [vmem:[#allocation128_spill] sm:$0xff] %v15874_v33  ;;  %9879 = vpow2.f32 %v6245_v63  ;;  %v15878_v27 = vpack.c.bf16 %v6342_v58, %v6340_v52  ;;  %v19563_v63 = vld [vmem:[#allocation113_spill] sm:$0xff]  ;;  %v19565_v52 = vld [vmem:[#allocation255_spill] sm:$0xff] }
 0x6cf   : > { %9881 = vpow2.f32 %v6239_v28  ;;  %v6159_v58 = vsub.f32 %v19565_v52, %v15720_v31  ;;  %v6251_v21 = vmul.f32 1.442695, %v6161_v12 }
 0x6d0   : > { %8593 = vmatpush1.bf16.xpose.msra.mxu1 %v15856_v22  ;;  %v9866_v22 = vpop.eup %9865  ;;  %19562 = vst [vmem:[#allocation251_spill] sm:$0xff] %v15878_v27  ;;  %9883 = vpow2.f32 %v6243_v48 }
 0x6d1   : > { %8595 = vmatprep.subr.bf16.mxu1 %v15860_v34  ;;  %v9868_v34 = vpop.eup %9867  ;;  %v6339_v61 = vmul.f32 %v9866_v22, %v19436_v50  ;;  %9885 = vpow2.f32 %v6249_v43  ;;  %v6164_v22 = vsub.f32 %v19567_v47, %v15720_v31  ;;  %v6247_v52 = vmul.f32 1.442695, %v6159_v58  ;;  %v19572_v58 = vld [vmem:[#allocation182_spill] sm:$0xff] }
 0x6d2   : > { %v9870_v1 = vpop.eup %9869  ;;  %v6341_v13 = vmul.f32 %v9868_v34, %v19437_v3  ;;  %9887 = vpow2.f32 %v6253_v62  ;;  %v6165_v12 = vsub.f32 %v19572_v58, %v15720_v31 }
 0x6d3   : > { %v9872_v40 = vpop.eup %9871  ;;  %v6344_v60 = vmul.f32 %v9870_v1, %v19563_v63  ;;  %v6166_v1 = vsub.f32 %v19569_v46, %v15720_v31  ;;  %v6257_v43 = vmul.f32 1.442695, %v6164_v22  ;;  %9889 = vpow2.f32 %v6247_v52  ;;  %v19573_v22 = vld [vmem:[#allocation78_spill] sm:$0xff] }
 0x6d4   : > { %v6346_v15 = vmul.f32 %v9872_v40, %v19564_v37  ;;  %v15892_v34 = vpack.c.bf16 %v6341_v13, %v6339_v61  ;;  %9891 = vpow2.f32 %v6251_v21  ;;  %v6259_v58 = vmul.f32 1.442695, %v6165_v12 }
 0x6d5   : > { %v6261_v13 = vmul.f32 1.442695, %v6166_v1  ;;  %9893 = vpow2.f32 %v6257_v43  ;;  %v19575_v1 = vld [vmem:[#allocation107_spill] sm:$0xff] }
 0x6d6   : > { %19568 = vst [vmem:[#allocation129_spill] sm:$0xff] %v15892_v34  ;;  %v15896_v40 = vpack.c.bf16 %v6346_v15, %v6344_v60  ;;  %v19571_v60 = vld [vmem:[#allocation165_spill] sm:$0xff] }
 0x6d7   : > { %v6163_v15 = vsub.f32 %v19571_v60, %v15720_v31  ;;  %9895 = vpow2.f32 %v6261_v13 }
 0x6d8   : > { %8597 = vmatpush1.bf16.xpose.msra.mxu1 %v15874_v33  ;;  %v9874_v33 = vpop.eup %9873  ;;  %19570 = vst [vmem:[#allocation66_spill] sm:$0xff] %v15896_v40 }
 0x6d9   : > { %8599 = vmatprep.subr.bf16.mxu1 %v15878_v27  ;;  %v9876_v27 = vpop.eup %9875  ;;  %v6343_v47 = vmul.f32 %v9874_v33, %v19444_v20  ;;  %v6168_v33 = vsub.f32 %v19573_v22, %v15720_v31  ;;  %v6255_v60 = vmul.f32 1.442695, %v6163_v15  ;;  %v19578_v15 = vld [vmem:[#allocation183_spill] sm:$0xff] }
 0x6da   : > { %v9878_v28 = vpop.eup %9877  ;;  %v6345_v61 = vmul.f32 %v9876_v27, %v19445_v36  ;;  %v6169_v12 = vsub.f32 %v19578_v15, %v15720_v31 }
 0x6db   : > { %v9880_v48 = vpop.eup %9879  ;;  %v6348_v62 = vmul.f32 %v9878_v28, %v19446_v16  ;;  %v6170_v28 = vsub.f32 %v19575_v1, %v15720_v31  ;;  %v6265_v43 = vmul.f32 1.442695, %v6168_v33  ;;  %9897 = vpow2.f32 %v6255_v60  ;;  %v19579_v33 = vld [vmem:[#allocation276_spill] sm:$0xff] }
 0x6dc   : > { %v6350_v46 = vmul.f32 %v9880_v48, %v19447_v2  ;;  %v15910_v27 = vpack.c.bf16 %v6345_v61, %v6343_v47  ;;  %9899 = vpow2.f32 %v6259_v58  ;;  %v6267_v15 = vmul.f32 1.442695, %v6169_v12 }
 0x6dd   : > { %v6269_v61 = vmul.f32 1.442695, %v6170_v28  ;;  %9901 = vpow2.f32 %v6265_v43  ;;  %v19581_v28 = vld [vmem:[#allocation268_spill] sm:$0xff] }
 0x6de   : > { %19574 = vst [vmem:[#allocation217_spill] sm:$0xff] %v15910_v27  ;;  %v15914_v48 = vpack.c.bf16 %v6350_v46, %v6348_v62  ;;  %v19577_v62 = vld [vmem:[#allocation94_spill] sm:$0xff] }
 0x6df   : > { %v6167_v46 = vsub.f32 %v19577_v62, %v15720_v31  ;;  %9903 = vpow2.f32 %v6269_v61 }
 0x6e0   : > { %8601 = vmatpush1.bf16.xpose.msra.mxu1 %v15892_v34  ;;  %v9882_v34 = vpop.eup %9881  ;;  %19576 = vst [vmem:[#allocation97_spill] sm:$0xff] %v15914_v48 }
 0x6e1   : > { %8603 = vmatprep.subr.bf16.mxu1 %v15896_v40  ;;  %v9884_v40 = vpop.eup %9883  ;;  %v6347_v22 = vmul.f32 %v9882_v34, %v19450_v59  ;;  %v6172_v34 = vsub.f32 %v19579_v33, %v15720_v31  ;;  %v6263_v62 = vmul.f32 1.442695, %v6167_v46  ;;  %v19584_v46 = vld [vmem:[#allocation275_spill] sm:$0xff] }
 0x6e2   : > { %v9886_v52 = vpop.eup %9885  ;;  %v6349_v47 = vmul.f32 %v9884_v40, %v19451_v4  ;;  %v6173_v12 = vsub.f32 %v19584_v46, %v15720_v31 }
 0x6e3   : > { %v9888_v21 = vpop.eup %9887  ;;  %v6352_v13 = vmul.f32 %v9886_v52, %v19452_v55  ;;  %v6174_v52 = vsub.f32 %v19581_v28, %v15720_v31  ;;  %v6273_v43 = vmul.f32 1.442695, %v6172_v34  ;;  %9905 = vpow2.f32 %v6263_v62  ;;  %v19585_v34 = vld [vmem:[#allocation282_spill] sm:$0xff] }
 0x6e4   : > { %v6354_v1 = vmul.f32 %v9888_v21, %v19453_v0  ;;  %v15928_v40 = vpack.c.bf16 %v6349_v47, %v6347_v22  ;;  %9907 = vpow2.f32 %v6267_v15  ;;  %v6275_v46 = vmul.f32 1.442695, %v6173_v12 }
 0x6e5   : > { %v6277_v47 = vmul.f32 1.442695, %v6174_v52  ;;  %9909 = vpow2.f32 %v6273_v43  ;;  %v19587_v52 = vld [vmem:[#allocation270_spill] sm:$0xff] }
 0x6e6   : > { %19580 = vst [vmem:[#allocation218_spill] sm:$0xff] %v15928_v40  ;;  %v15932_v21 = vpack.c.bf16 %v6354_v1, %v6352_v13  ;;  %v19583_v13 = vld [vmem:[#allocation124_spill] sm:$0xff] }
 0x6e7   : > { %v6171_v1 = vsub.f32 %v19583_v13, %v15720_v31  ;;  %9911 = vpow2.f32 %v6277_v47  ;;  %v19589_v47 = vld [vmem:[#allocation126_spill] sm:$0xff] }
 0x6e8   : > { %8605 = vmatpush1.bf16.xpose.msra.mxu1 %v15910_v27  ;;  %v9890_v27 = vpop.eup %9889  ;;  %19582 = vst [vmem:[#allocation144_spill] sm:$0xff] %v15932_v21 }
 0x6e9   : > { %8607 = vmatprep.subr.bf16.mxu1 %v15914_v48  ;;  %v9892_v48 = vpop.eup %9891  ;;  %v6351_v33 = vmul.f32 %v9890_v27, %v19456_v42  ;;  %v6176_v27 = vsub.f32 %v19585_v34, %v15720_v31  ;;  %v6271_v13 = vmul.f32 1.442695, %v6171_v1 }
 0x6ea   : > { %v9894_v60 = vpop.eup %9893  ;;  %v6353_v22 = vmul.f32 %v9892_v48, %v19457_v49 }
 0x6eb   : > { %v9896_v58 = vpop.eup %9895  ;;  %v6356_v61 = vmul.f32 %v9894_v60, %v19458_v11  ;;  %v6178_v60 = vsub.f32 %v19587_v52, %v15720_v31  ;;  %v6281_v43 = vmul.f32 1.442695, %v6176_v27  ;;  %9913 = vpow2.f32 %v6271_v13  ;;  %v19591_v27 = vld [vmem:[#allocation186_spill] sm:$0xff] }
 0x6ec   : > { %v6358_v28 = vmul.f32 %v9896_v58, %v19459_v9  ;;  %v15946_v48 = vpack.c.bf16 %v6353_v22, %v6351_v33  ;;  %v6175_v9 = vsub.f32 %v19589_v47, %v15720_v31  ;;  %9915 = vpow2.f32 %v6275_v46 }
 0x6ed   : > { %v6285_v22 = vmul.f32 1.442695, %v6178_v60  ;;  %9917 = vpow2.f32 %v6281_v43 }
 0x6ee   : > { %19586 = vst [vmem:[#allocation145_spill] sm:$0xff] %v15946_v48  ;;  %v15950_v58 = vpack.c.bf16 %v6358_v28, %v6356_v61  ;;  %v19590_v28 = vld [vmem:[#allocation278_spill] sm:$0xff]  ;;  %v6279_v47 = vmul.f32 1.442695, %v6175_v9 }
 0x6ef   : > { %v6177_v1 = vsub.f32 %v19590_v28, %v15720_v31  ;;  %9919 = vpow2.f32 %v6285_v22 }
 0x6f0   : > { %8609 = vmatpush1.bf16.xpose.msra.mxu1 %v15928_v40  ;;  %v9898_v40 = vpop.eup %9897  ;;  %19588 = vst [vmem:[#allocation226_spill] sm:$0xff] %v15950_v58  ;;  %9921 = vpow2.f32 %v6279_v47 }
 0x6f1   : > { %8611 = vmatprep.subr.bf16.mxu1 %v15932_v21  ;;  %v9900_v21 = vpop.eup %9899  ;;  %v6355_v34 = vmul.f32 %v9898_v40, %v19462_v53 }
 0x6f2   : > { %v9902_v62 = vpop.eup %9901  ;;  %v6357_v33 = vmul.f32 %v9900_v21, %v19463_v45  ;;  %v19592_v21 = vld [vmem:[#allocation285_spill] sm:$0xff] }
 0x6f3   : > { %v9904_v15 = vpop.eup %9903  ;;  %v6360_v52 = vmul.f32 %v9902_v62, %v19464_v7  ;;  %v6182_v60 = vsub.f32 %v19592_v21, %v15720_v31 }
 0x6f4   : > { %v6362_v61 = vmul.f32 %v9904_v15, %v19465_v41  ;;  %v9906_v12 = vpop.eup %9905  ;;  %v6283_v41 = vmul.f32 1.442695, %v6177_v1 }
 0x6f5   : > { %v9908_v40 = vpop.eup %9907  ;;  %v6359_v43 = vmul.f32 %v9906_v12, %v19468_v18 }
 0x6f6   : > { %v9910_v62 = vpop.eup %9909  ;;  %v15968_v15 = vpack.c.bf16 %v6362_v61, %v6360_v52  ;;  %v6361_v28 = vmul.f32 %v9908_v40, %v19469_v5  ;;  %v19596_v52 = vld [vmem:[#allocation274_spill] sm:$0xff]  ;;  %9923 = vpow2.f32 %v6283_v41  ;;  %v19598_v40 = vld [vmem:[#allocation131_spill] sm:$0xff] }
 0x6f7   : > { %v9912_v13 = vpop.eup %9911  ;;  %v6364_v22 = vmul.f32 %v9910_v62, %v19470_v24  ;;  %v6181_v61 = vsub.f32 %v19596_v52, %v15720_v31 }
 0x6f8   : > { %8613 = vmatpush1.bf16.xpose.msra.mxu1 %v15946_v48  ;;  %v15966_v48 = vpack.c.bf16 %v6357_v33, %v6355_v34  ;;  %19594 = vst [vmem:[#allocation71_spill] sm:$0xff] %v15968_v15  ;;  %v19595_v34 = vld [vmem:[#allocation284_spill] sm:$0xff]  ;;  %v6366_v9 = vmul.f32 %v9912_v13, %v19471_v30  ;;  %v9914_v1 = vpop.eup %9913 }
 0x6f9   : > { %8615 = vmatprep.subr.bf16.mxu1 %v15950_v58  ;;  %v6180_v58 = vsub.f32 %v19591_v27, %v15720_v31  ;;  %v6293_v27 = vmul.f32 1.442695, %v6182_v60  ;;  %v6179_v33 = vsub.f32 %v19595_v34, %v15720_v31  ;;  %v9916_v12 = vpop.eup %9915  ;;  %v6186_v60 = vsub.f32 %v19598_v40, %v15720_v31 }
 0x6fa   : > { %19593 = vst [vmem:[#allocation227_spill] sm:$0xff] %v15966_v48  ;;  %v9918_v62 = vpop.eup %9917  ;;  %v15986_v13 = vpack.c.bf16 %v6366_v9, %v6364_v22  ;;  %v19602_v22 = vld [vmem:[#allocation249_spill] sm:$0xff] }
 0x6fb   : > { %v6289_v46 = vmul.f32 1.442695, %v6180_v58  ;;  %v19597_v58 = vld [vmem:[#allocation130_spill] sm:$0xff]  ;;  %v6287_v34 = vmul.f32 1.442695, %v6179_v33  ;;  %v9920_v47 = vpop.eup %9919  ;;  %v6185_v9 = vsub.f32 %v19602_v22, %v15720_v31 }
 0x6fc   : > { %v6184_v21 = vsub.f32 %v19597_v58, %v15720_v31  ;;  %19600 = vst [vmem:[#allocation159_spill] sm:$0xff] %v15986_v13  ;;  %v6301_v52 = vmul.f32 1.442695, %v6186_v60  ;;  %v6365_v58 = vmul.f32 %v9916_v12, %v19475_v19  ;;  %v6370_v33 = vmul.f32 %v9920_v47, %v19477_v44  ;;  %v19604_v12 = vld [vmem:[#allocation146_spill] sm:$0xff] }
 0x6fd   : > { %9925 = vpow2.f32 %v6289_v46  ;;  %v6363_v46 = vmul.f32 %v9914_v1, %v19474_v57  ;;  %v6190_v60 = vsub.f32 %v19604_v12, %v15720_v31 }
 0x6fe   : > { %9927 = vpow2.f32 %v6293_v27  ;;  %v6297_v41 = vmul.f32 1.442695, %v6184_v21  ;;  %v6368_v27 = vmul.f32 %v9918_v62, %v19476_v17  ;;  %v19603_v21 = vld [vmem:[#allocation223_spill] sm:$0xff] }
 0x6ff   : > { %9929 = vpow2.f32 %v6287_v34  ;;  %v6188_v40 = vsub.f32 %v19603_v21, %v15720_v31  ;;  %v6309_v22 = vmul.f32 1.442695, %v6190_v60 }
 0x700   : > { %8617 = vmatpush1.bf16.xpose.msra.mxu1 %v15966_v48  ;;  %v6291_v48 = vmul.f32 1.442695, %v6181_v61  ;;  %v9922_v61 = vpop.eup %9921 }
 0x701   : > { %8619 = vmatprep.subr.bf16.mxu1 %v15968_v15  ;;  %v15984_v15 = vpack.c.bf16 %v6361_v28, %v6359_v43  ;;  %v19601_v43 = vld [vmem:[#allocation187_spill] sm:$0xff]  ;;  %v9924_v1 = vpop.eup %9923 }
 0x702   : > { %v6183_v28 = vsub.f32 %v19601_v43, %v15720_v31  ;;  %9931 = vpow2.f32 %v6291_v48  ;;  %v16002_v43 = vpack.c.bf16 %v6365_v58, %v6363_v46  ;;  %v6305_v48 = vmul.f32 1.442695, %v6188_v40  ;;  %v19609_v40 = vld [vmem:[#allocation230_spill] sm:$0xff] }
 0x703   : > { %19599 = vst [vmem:[#allocation169_spill] sm:$0xff] %v15984_v15  ;;  %9933 = vpow2.f32 %v6297_v41  ;;  %v6367_v41 = vmul.f32 %v9922_v61, %v19480_v54  ;;  %v6369_v21 = vmul.f32 %v9924_v1, %v19481_v25  ;;  %v6192_v12 = vsub.f32 %v19609_v40, %v15720_v31  ;;  %v19610_v1 = vld [vmem:[#allocation161_spill] sm:$0xff] }
 0x704   : > { %9935 = vpow2.f32 %v6301_v52  ;;  %19605 = vst [vmem:[#allocation271_spill] sm:$0xff] %v16002_v43  ;;  %v6295_v62 = vmul.f32 1.442695, %v6183_v28  ;;  %v19607_v52 = vld [vmem:[#allocation286_spill] sm:$0xff]  ;;  %v6194_v60 = vsub.f32 %v19610_v1, %v15720_v31  ;;  %v19616_v1 = vld [vmem:[#allocation248_spill] sm:$0xff] }
 0x705   : > { %v6187_v46 = vsub.f32 %v19607_v52, %v15720_v31  ;;  %v16020_v52 = vpack.c.bf16 %v6369_v21, %v6367_v41 }
 0x706   : > { %9937 = vpow2.f32 %v6295_v62 }
 0x707   : > { %v9926_v34 = vpop.eup %9925  ;;  %19611 = vst [vmem:[#allocation160_spill] sm:$0xff] %v16020_v52 }
 0x708   : > { %8621 = vmatpush1.bf16.xpose.msra.mxu1 %v15984_v15  ;;  %v9928_v47 = vpop.eup %9927  ;;  %v6299_v15 = vmul.f32 1.442695, %v6185_v9  ;;  %v6372_v58 = vmul.f32 %v9926_v34, %v19482_v35  ;;  %v6303_v34 = vmul.f32 1.442695, %v6187_v46  ;;  %v19614_v46 = vld [vmem:[#allocation170_spill] sm:$0xff] }
 0x709   : > { %8623 = vmatprep.subr.bf16.mxu1 %v15986_v13  ;;  %v16004_v13 = vpack.c.bf16 %v6370_v33, %v6368_v27  ;;  %v6374_v28 = vmul.f32 %v9928_v47, %v19483_v29  ;;  %v19608_v27 = vld [vmem:[#allocation224_spill] sm:$0xff]  ;;  %v9930_v9 = vpop.eup %9929 }
 0x70a   : > { %v6189_v33 = vsub.f32 %v19608_v27, %v15720_v31  ;;  %9939 = vpow2.f32 %v6299_v15  ;;  %v6313_v15 = vmul.f32 1.442695, %v6192_v12  ;;  %v6317_v27 = vmul.f32 1.442695, %v6194_v60 }
 0x70b   : > { %19606 = vst [vmem:[#allocation110_spill] sm:$0xff] %v16004_v13  ;;  %9941 = vpow2.f32 %v6305_v48  ;;  %v6371_v48 = vmul.f32 %v9930_v9, %v19487_v56  ;;  %v6196_v60 = vsub.f32 %v19616_v1, %v15720_v31 }
 0x70c   : > { %v9932_v61 = vpop.eup %9931  ;;  %9943 = vpow2.f32 %v6309_v22  ;;  %v19613_v22 = vld [vmem:[#allocation149_spill] sm:$0xff] }
 0x70d   : > { %v9934_v62 = vpop.eup %9933  ;;  %v6373_v40 = vmul.f32 %v9932_v61, %v19488_v26  ;;  %v6191_v41 = vsub.f32 %v19613_v22, %v15720_v31  ;;  %9945 = vpow2.f32 %v6303_v34  ;;  %v19617_v61 = vld [vmem:[#allocation173_spill] sm:$0xff] }
 0x70e   : > { %v9936_v47 = vpop.eup %9935  ;;  %v6376_v21 = vmul.f32 %v9934_v62, %v19489_v32 }
 0x70f   : > { %v16038_v22 = vpack.c.bf16 %v6373_v40, %v6371_v48  ;;  %v6311_v62 = vmul.f32 1.442695, %v6191_v41  ;;  %v19620_v40 = vld [vmem:[#allocation162_spill] sm:$0xff] }
 0x710   : > { %8625 = vmatpush1.bf16.xpose.msra.mxu1 %v16002_v43  ;;  %v6307_v43 = vmul.f32 1.442695, %v6189_v33  ;;  %v9938_v12 = vpop.eup %9937  ;;  %v6195_v41 = vsub.f32 %v19620_v40, %v15720_v31 }
 0x711   : > { %8627 = vmatprep.subr.bf16.mxu1 %v16004_v13  ;;  %v16022_v13 = vpack.c.bf16 %v6374_v28, %v6372_v58  ;;  %v6378_v58 = vmul.f32 %v9936_v47, %v19614_v46  ;;  %v19615_v28 = vld [vmem:[#allocation232_spill] sm:$0xff]  ;;  %19618 = vst [vmem:[#allocation287_spill] sm:$0xff] %v16038_v22 }
 0x712   : > { %v6193_v33 = vsub.f32 %v19615_v28, %v15720_v31  ;;  %9947 = vpow2.f32 %v6307_v43  ;;  %v6321_v43 = vmul.f32 1.442695, %v6196_v60 }
 0x713   : > { %19612 = vst [vmem:[#allocation244_spill] sm:$0xff] %v16022_v13  ;;  %9949 = vpow2.f32 %v6313_v15  ;;  %v6375_v15 = vmul.f32 %v9938_v12, %v19497_v38 }
 0x714   : > { %v9940_v9 = vpop.eup %9939  ;;  %9951 = vpow2.f32 %v6317_v27  ;;  %v6315_v46 = vmul.f32 1.442695, %v6193_v33 }
 0x715   : > { %v9942_v34 = vpop.eup %9941  ;;  %v6377_v1 = vmul.f32 %v9940_v9, %v19498_v14  ;;  %9953 = vpow2.f32 %v6311_v62 }
 0x716   : > { %v9944_v47 = vpop.eup %9943  ;;  %v6380_v27 = vmul.f32 %v9942_v34, %v19369_v8  ;;  %9955 = vpow2.f32 %v6315_v46  ;;  %v6319_v34 = vmul.f32 1.442695, %v6195_v41 }
 0x717   : > { %v6382_v48 = vmul.f32 %v9944_v47, %v19372_v10  ;;  %9957 = vpow2.f32 %v6321_v43  ;;  %v19624_v47 = vld [vmem:[#allocation190_spill] sm:$0xff] }
 0x718   : > { %8629 = vmatpush1.bf16.xpose.msra.mxu1 %v16020_v52  ;;  %v16040_v52 = vpack.c.bf16 %v6378_v58, %v6376_v21  ;;  %v9946_v21 = vpop.eup %9945  ;;  %v19621_v58 = vld [vmem:[#allocation85_spill] sm:$0xff] }
 0x719   : > { %8631 = vmatprep.subr.bf16.mxu1 %v16022_v13  ;;  %v6198_v13 = vsub.f32 %v19617_v61, %v15720_v31  ;;  %v6197_v33 = vsub.f32 %v19621_v58, %v15720_v31  ;;  %v16054_v9 = vpack.c.bf16 %v6382_v48, %v6380_v27  ;;  %v6379_v46 = vmul.f32 %v9946_v21, %v19503_v6  ;;  %v19625_v58 = vld [vmem:[#allocation267_spill] sm:$0xff]  ;;  %v19629_v21 = vld [vmem:[#allocation266_spill] sm:$0xff] }
 0x71a   : > { %19619 = vst [vmem:[#allocation243_spill] sm:$0xff] %v16040_v52  ;;  %v19626_v31 = vld [vmem:[#allocation207_spill] sm:$0xff] }
 0x71b   : > { %v6325_v28 = vmul.f32 1.442695, %v6198_v13  ;;  %v16052_v13 = vpack.c.bf16 %v6377_v1, %v6375_v15  ;;  %19623 = vst [vmem:[#allocation43_spill] sm:$0xff] %v16054_v9  ;;  %v6323_v62 = vmul.f32 1.442695, %v6197_v33 }
 0x71c   : > { %v9948_v60 = vpop.eup %9947 }
 0x71d   : > { %9959 = vpow2.f32 %v6325_v28  ;;  %19622 = vst [vmem:[#allocation288_spill] sm:$0xff] %v16052_v13  ;;  %v9950_v12 = vpop.eup %9949  ;;  %v6381_v40 = vmul.f32 %v9948_v60, %v19624_v47 }
 0x71e   : > { %v9952_v61 = vpop.eup %9951  ;;  %v6384_v43 = vmul.f32 %v9950_v12, %v19625_v58  ;;  %9961 = vpow2.f32 %v6319_v34  ;;  %v19632_v34 = vld [vmem:[#allocation216_spill] sm:$0xff] }
 0x71f   : > { %v6386_v28 = vmul.f32 %v9952_v61, %v19626_v31  ;;  %v9954_v15 = vpop.eup %9953  ;;  %9963 = vpow2.f32 %v6323_v62  ;;  %v16062_v27 = vpack.c.bf16 %v6381_v40, %v6379_v46 }
 0x720   : > { %8633 = vmatpush1.bf16.xpose.msra.mxu1 %v16038_v22  ;;  %v9956_v1 = vpop.eup %9955  ;;  %v6383_v60 = vmul.f32 %v9954_v15, %v19629_v21 }
 0x721   : > { %8635 = vmatprep.subr.bf16.mxu1 %v16040_v52  ;;  %19627 = vst [vmem:[#allocation289_spill] sm:$0xff] %v16062_v27  ;;  %v9958_v48 = vpop.eup %9957  ;;  %v16064_v41 = vpack.c.bf16 %v6386_v28, %v6384_v43  ;;  %v19635_v43 = vld [vmem:[#allocation135_spill] sm:$0xff] }
 0x723   : > { %19628 = vst [vmem:[#allocation171_spill] sm:$0xff] %v16064_v41 }
 0x727   : > { %v9960_v33 = vpop.eup %9959 }
 0x728   : > { %8637 = vmatpush1.bf16.xpose.msra.mxu1 %v16052_v13  ;;  %v19631_v13 = vld [vmem:[#allocation58_spill] sm:$0xff]  ;;  %v6390_v52 = vmul.f32 %v9960_v33, %v19632_v34  ;;  %v9962_v62 = vpop.eup %9961  ;;  %v19640_v33 = vld [vmem:[#allocation95_spill] sm:$0xff] }
 0x729   : > { %8639 = vmatprep.subr.bf16.mxu1 %v16054_v9  ;;  %v19630_v9 = vld [vmem:[#allocation205_spill] sm:$0xff]  ;;  %v6388_v61 = vmul.f32 %v9958_v48, %v19631_v13  ;;  %v9964_v46 = vpop.eup %9963  ;;  %v6387_v28 = vmul.f32 %v9962_v62, %v19635_v43  ;;  %vm19641_vm5 = vcmp.lt.f32.partialorder %v19640_v33, 0.011025 }
 0x72a   : > { %v6385_v12 = vmul.f32 %v9956_v1, %v19630_v9  ;;  %v19638_v1 = vld [vmem:[#allocation89_spill] sm:$0xff] }
 0x72b   : > { %v16074_v40 = vpack.c.bf16 %v6390_v52, %v6388_v61  ;;  %v19642_v52 = vld [vmem:[#allocation84_spill] sm:$0xff]  ;;  %v19650_v62 = vld [vmem:[#allocation29_spill] sm:$0xff] }
 0x72c   : > { %v16072_v22 = vpack.c.bf16 %v6385_v12, %v6383_v60  ;;  %vm19643_vm6 = vcmp.lt.f32.partialorder %v19642_v52, 0.011025  ;;  %v19644_v60 = vmov 0  ;;  %v19647_v12 = vld [vmem:[#allocation92_spill] sm:$0xff] }
 0x72d   : > { %19634 = vst [vmem:[#allocation12_spill] sm:$0xff] %v16074_v40  ;;  %vm16091_vm9 = vmpackc.low %vm19643_vm6, %vm19641_vm5  ;;  %v19648_v61 = vld [vmem:[#allocation88_spill] sm:$0xff] }
 0x72e   : > { %19633 = vst [vmem:[#allocation172_spill] sm:$0xff] %v16072_v22  ;;  %v19645_v60 = vsel %vm16091_vm9, 4294967295, %v19644_v60 }
 0x72f   : > { %19646 = vst [vmem:[#allocation8_spill] sm:$0xff] %v19645_v60 }
 0x730   : > { %8641 = vmatpush1.bf16.xpose.msra.mxu1 %v16062_v27  ;;  %v19637_v27 = vld [vmem:[#allocation104_spill] sm:$0xff] }
 0x731   : > { %8643 = vmatprep.subr.bf16.mxu1 %v16064_v41  ;;  %v19636_v41 = vld [vmem:[#allocation214_spill] sm:$0xff]  ;;  %v16082_v9 = vpack.c.bf16 %v19638_v1, %v19637_v27  ;;  %v16100_v27 = vpack.c.bf16 %v19648_v61, %v19647_v12  ;;  %v19653_v1 = vld [vmem:[#allocation91_spill] sm:$0xff]  ;;  %v19660_v12 = vld [vmem:[#allocation96_spill] sm:$0xff] }
 0x732   : > { %v6389_v15 = vmul.f32 %v9964_v46, %v19636_v41  ;;  %v19651_v46 = vld [vmem:[#allocation11_spill] sm:$0xff]  ;;  %vm19654_vm14 = vcmp.lt.f32.partialorder %v19653_v1, 0.011025  ;;  %vm19661_vm10 = vcmp.lt.f32.partialorder %v19660_v12, 0.011025  ;;  %v19671_v12 = vld [vmem:[#allocation93_spill] sm:$0xff] }
 0x733   : > { %19649 = vst [vmem:[#allocation240_spill] sm:$0xff] %v16100_v27  ;;  %v19662_v61 = vld [vmem:[#allocation39_spill] sm:$0xff] }
 0x734   : > { %v16084_v48 = vpack.c.bf16 %v6389_v15, %v6387_v28  ;;  %v16104_v28 = vpack.c.bf16 %v19651_v46, %v19650_v62  ;;  %v19652_v15 = vmov 1.0   ;;  %vm19663_vm12 = vcmp.lt.f32.partialorder %v19662_v61, 0.011025  ;;  %v19667_v46 = vld [vmem:[#allocation10_spill] sm:$0xff]  ;;  %v19673_v61 = vld [vmem:[#allocation37_spill] sm:$0xff] }
 0x735   : > { %vm16122_vm4 = vmpackc.low %vm19663_vm12, %vm19661_vm10  ;;  %v19664_v62 = vmov 0  ;;  %v16132_v60 = vpack.c.bf16 %v19667_v46, %v19544_v23  ;;  %vm19674_vm10 = vcmp.lt.f32.partialorder %v19673_v61, 0.011025  ;;  %v19680_v23 = vld [vmem:[#allocation52_spill] sm:$0xff]  ;;  %v19682_v46 = vmov 0 }
 0x736   : > { %19639 = vst [vmem:[#allocation191_spill] sm:$0xff] %v16084_v48  ;;  %v19665_v62 = vsel %vm16122_vm4, 4294967295, %v19664_v62  ;;  %vm19681_vm3 = vcmp.lt.f32.partialorder %v19680_v23, 0.011025  ;;  %v19686_v61 = vld [vmem:[#allocation80_spill] sm:$0xff]  ;;  %v19691_v23 = vmov 0 }
 0x737   : > { %19666 = vst [vmem:[#allocation13_spill] sm:$0xff] %v19665_v62  ;;  %19668 = vst [vmem:[#allocation53_spill] sm:$0xff] %v16132_v60  ;;  %v19678_v62 = vld [vmem:[#allocation55_spill] sm:$0xff] }
 0x738   : > { %8645 = vmatpush1.bf16.xpose.msra.mxu1 %v16072_v22  ;;  %v19670_v22 = vld [vmem:[#allocation56_spill] sm:$0xff] }
 0x739   : > { %8647 = vmatprep.subr.bf16.mxu1 %v16074_v40  ;;  %v19657_v40 = vmov 0 }
 0x740   : > { %8649 = vmatpush1.bf16.xpose.msra.mxu1 %v16084_v48  ;;  %v19655_v48 = vld [vmem:[#allocation81_spill] sm:$0xff] }
 0x741   : > { %8652 = vmatprep.subr.msk.bf16.mxu1 %vm16091_vm9, %v16082_v9  ;;  %vm19656_vm5 = vcmp.lt.f32.partialorder %v19655_v48, 0.011025  ;;  %v19675_v48 = vmov 0 }
 0x742   : > { %vm16111_vm6 = vmpackc.low %vm19656_vm5, %vm19654_vm14  ;;  %vm19672_vm14 = vcmp.lt.f32.partialorder %v19671_v12, 0.011025  ;;  %vm19679_vm5 = vcmp.lt.f32.partialorder %v19678_v62, 0.011025  ;;  %v19689_v62 = vld [vmem:[#allocation40_spill] sm:$0xff] }
 0x743   : > { %v19658_v40 = vsel %vm16111_vm6, 4294967295, %v19657_v40  ;;  %vm16142_vm12 = vmpackc.low %vm19674_vm10, %vm19672_vm14  ;;  %vm19690_vm10 = vcmp.lt.f32.partialorder %v19689_v62, 0.011025 }
 0x744   : > { %19659 = vst [vmem:[#allocation31_spill] sm:$0xff] %v19658_v40  ;;  %v19669_v40 = vld [vmem:[#allocation60_spill] sm:$0xff]  ;;  %v19676_v48 = vsel %vm16142_vm12, 4294967295, %v19675_v48  ;;  %vm16153_vm13 = vmpackc.low %vm19681_vm3, %vm19679_vm5 }
 0x745   : > { %19677 = vst [vmem:[#allocation253_spill] sm:$0xff] %v19676_v48  ;;  %v19683_v46 = vsel %vm16153_vm13, 4294967295, %v19682_v46 }
 0x746   : > { %19684 = vst [vmem:[#allocation32_spill] sm:$0xff] %v19683_v46  ;;  %v19694_v46 = vld [vmem:[#allocation101_spill] sm:$0xff] }
 0x747   : > { %6527 = vmatmul.mubr.f32.vlgmr.msra.gmra.mrb[2].mxu1 %v19652_v15  ;;  %vm19695_vm5 = vcmp.lt.f32.partialorder %v19694_v46, 0.011025  ;;  %v19703_v46 = vld [vmem:[#allocation30_spill] sm:$0xff] }
 0x748   : > { %8655 = vmatpush1.bf16.xpose.msk.msra.mxu1 %vm16111_vm6, %v16100_v27  ;;  %6597 = vmatprep.mubr.f32.mxu1 %v19652_v15  ;;  %v16136_v27 = vpack.c.bf16 %v19670_v22, %v19669_v40  ;;  %v16162_v22 = vpack.c.bf16 %v19554_v39, %v19427_v51  ;;  %v19685_v40 = vld [vmem:[#allocation82_spill] sm:$0xff]  ;;  %v19696_v51 = vld [vmem:[#allocation33_spill] sm:$0xff]  ;;  %v19698_v39 = vmov 0 }
 0x749   : > { %8658 = vmatprep.subr.msk.bf16.mxu1 %vm16122_vm4, %v16104_v28  ;;  %v16166_v48 = vpack.c.bf16 %v19686_v61, %v19685_v40  ;;  %vm19697_vm0 = vcmp.lt.f32.partialorder %v19696_v51, 0.011025  ;;  %v16192_v61 = vpack.c.bf16 %v19437_v3, %v19436_v50  ;;  %v16196_v40 = vpack.c.bf16 %v19564_v37, %v19563_v63  ;;  %v19710_v3 = vld [vmem:[#allocation48_spill] sm:$0xff] }
 0x74a   : > { %vm16183_vm2 = vmpackc.low %vm19697_vm0, %vm19695_vm5  ;;  %v19705_v51 = vmov 0  ;;  %vm19711_vm7 = vcmp.lt.f32.partialorder %v19710_v3, 0.011025  ;;  %v19712_v50 = vmov 0  ;;  %v16222_v37 = vpack.c.bf16 %v19445_v36, %v19444_v20  ;;  %v19724_v36 = vld [vmem:[#allocation57_spill] sm:$0xff] }
 0x74b   : > { %v19699_v39 = vsel %vm16183_vm2, 4294967295, %v19698_v39  ;;  %v16226_v63 = vpack.c.bf16 %v19447_v2, %v19446_v16  ;;  %v19719_v3 = vmov 0  ;;  %vm19725_vm1 = vcmp.lt.f32.partialorder %v19724_v36, 0.011025 }
 0x74c   : > { %19700 = vst [vmem:[#allocation256_spill] sm:$0xff] %v19699_v39  ;;  %v19708_v39 = vld [vmem:[#allocation17_spill] sm:$0xff]  ;;  %v19726_v20 = vmov 0  ;;  %v16252_v2 = vpack.c.bf16 %v19451_v4, %v19450_v59  ;;  %v16256_v16 = vpack.c.bf16 %v19453_v0, %v19452_v55  ;;  %v19734_v36 = vmov 0  ;;  %v19745_v55 = vld [vmem:[#allocation90_spill] sm:$0xff] }
 0x74d   : > { %vm19709_vm5 = vcmp.lt.f32.partialorder %v19708_v39, 0.011025  ;;  %v19717_v39 = vld [vmem:[#allocation47_spill] sm:$0xff]  ;;  %v19739_v59 = vld [vmem:[#allocation69_spill] sm:$0xff]  ;;  %v19741_v4 = vmov 0  ;;  %v16282_v0 = vpack.c.bf16 %v19457_v49, %v19456_v42  ;;  %v19757_v49 = vmov 0 }
 0x74e   : > { %vm16213_vm8 = vmpackc.low %vm19711_vm7, %vm19709_vm5  ;;  %19729 = vst [vmem:[#allocation221_spill] sm:$0xff] %v16252_v2  ;;  %vm19740_vm11 = vcmp.lt.f32.partialorder %v19739_v59, 0.011025  ;;  %v19750_v59 = vmov 0  ;;  %v19755_v42 = vld [vmem:[#allocation51_spill] sm:$0xff] }
 0x74f   : > { %v19713_v50 = vsel %vm16213_vm8, 4294967295, %v19712_v50  ;;  %19744 = vst [vmem:[#allocation102_spill] sm:$0xff] %v16282_v0 }
 0x750   : > { %8661 = vmatpush1.bf16.xpose.msk.msra.mxu1 %vm16142_vm12, %v16132_v60  ;;  %v19687_v60 = vld [vmem:[#allocation19_spill] sm:$0xff]  ;;  %19714 = vst [vmem:[#allocation198_spill] sm:$0xff] %v19713_v50  ;;  %v19722_v50 = vld [vmem:[#allocation42_spill] sm:$0xff] }
 0x751   : > { %8664 = vmatprep.subr.msk.bf16.mxu1 %vm16153_vm13, %v16136_v27  ;;  %vm19688_vm14 = vcmp.lt.f32.partialorder %v19687_v60, 0.011025  ;;  %vm19723_vm5 = vcmp.lt.f32.partialorder %v19722_v50, 0.011025  ;;  %v19732_v50 = vld [vmem:[#allocation54_spill] sm:$0xff] }
 0x752   : > { %vm16172_vm3 = vmpackc.low %vm19690_vm10, %vm19688_vm14  ;;  %vm19704_vm10 = vcmp.lt.f32.partialorder %v19703_v46, 0.011025 }
 0x753   : > { %v19692_v23 = vsel %vm16172_vm3, 4294967295, %v19691_v23  ;;  %vm16243_vm15 = vmpackc.low %vm19725_vm1, %vm19723_vm5 }
 0x754   : > { %19693 = vst [vmem:[#allocation246_spill] sm:$0xff] %v19692_v23  ;;  %v19701_v23 = vld [vmem:[#allocation100_spill] sm:$0xff]  ;;  %v19727_v20 = vsel %vm16243_vm15, 4294967295, %v19726_v20 }
 0x755   : > { %vm19702_vm14 = vcmp.lt.f32.partialorder %v19701_v23, 0.011025  ;;  %19728 = vst [vmem:[#allocation264_spill] sm:$0xff] %v19727_v20  ;;  %v19737_v20 = vld [vmem:[#allocation143_spill] sm:$0xff] }
 0x756   : > { %vm16202_vm0 = vmpackc.low %vm19704_vm10, %vm19702_vm14  ;;  %vm19718_vm10 = vcmp.lt.f32.partialorder %v19717_v39, 0.011025  ;;  %vm19738_vm5 = vcmp.lt.f32.partialorder %v19737_v20, 0.011025  ;;  %v19748_v20 = vld [vmem:[#allocation65_spill] sm:$0xff] }
 0x757   : > { %v19706_v51 = vsel %vm16202_vm0, 4294967295, %v19705_v51 }
 0x758   : > { %8667 = vmatpush1.bf16.xpose.msk.msra.mxu1 %vm16172_vm3, %v16162_v22  ;;  %19707 = vst [vmem:[#allocation259_spill] sm:$0xff] %v19706_v51  ;;  %v19715_v51 = vld [vmem:[#allocation16_spill] sm:$0xff] }
 0x759   : > { %8670 = vmatprep.subr.msk.bf16.mxu1 %vm16183_vm2, %v16166_v48  ;;  %vm19716_vm14 = vcmp.lt.f32.partialorder %v19715_v51, 0.011025 }
 0x75a   : > { %vm16232_vm7 = vmpackc.low %vm19718_vm10, %vm19716_vm14  ;;  %vm19733_vm10 = vcmp.lt.f32.partialorder %v19732_v50, 0.011025 }
 0x75b   : > { %v19720_v3 = vsel %vm16232_vm7, 4294967295, %v19719_v3 }
 0x75c   : > { %19721 = vst [vmem:[#allocation59_spill] sm:$0xff] %v19720_v3  ;;  %v19730_v3 = vld [vmem:[#allocation41_spill] sm:$0xff] }
 0x75d   : > { %vm19731_vm14 = vcmp.lt.f32.partialorder %v19730_v3, 0.011025 }
 0x75e   : > { %vm16262_vm1 = vmpackc.low %vm19733_vm10, %vm19731_vm14  ;;  %vm19749_vm10 = vcmp.lt.f32.partialorder %v19748_v20, 0.011025 }
 0x75f   : > { %v19735_v36 = vsel %vm16262_vm1, 4294967295, %v19734_v36 }
 0x760   : > { %8673 = vmatpush1.bf16.xpose.msk.msra.mxu1 %vm16202_vm0, %v16192_v61  ;;  %19736 = vst [vmem:[#allocation261_spill] sm:$0xff] %v19735_v36  ;;  %v16286_v36 = vpack.c.bf16 %v19745_v55, %v19458_v11  ;;  %v16312_v11 = vpack.c.bf16 %v19463_v45, %v19462_v53  ;;  %v19760_v55 = vld [vmem:[#allocation118_spill] sm:$0xff]  ;;  %v19770_v53 = vld [vmem:[#allocation77_spill] sm:$0xff]  ;;  %v19772_v45 = vmov 0 }
 0x761   : > { %8676 = vmatprep.subr.msk.bf16.mxu1 %vm16213_vm8, %v16196_v40 }
 0x768   : > { %8679 = vmatpush1.bf16.xpose.msk.msra.mxu1 %vm16232_vm7, %v16222_v37 }
 0x769   : > { %8682 = vmatprep.subr.msk.bf16.mxu1 %vm16243_vm15, %v16226_v63  ;;  %vm16273_vm15 = vmpackc.low %vm19740_vm11, %vm19738_vm5 }
 0x76a   : > { %v19742_v4 = vsel %vm16273_vm15, 4294967295, %v19741_v4 }
 0x76b   : > { %19743 = vst [vmem:[#allocation83_spill] sm:$0xff] %v19742_v4  ;;  %v19753_v4 = vld [vmem:[#allocation64_spill] sm:$0xff] }
 0x76c   : > { %vm19754_vm5 = vcmp.lt.f32.partialorder %v19753_v4, 0.011025  ;;  %v19763_v4 = vld [vmem:[#allocation3_spill] sm:$0xff] }
 0x770   : > { %8685 = vmatpush1.bf16.xpose.msk.msra.mxu1 %vm16262_vm1, %v16252_v2  ;;  %v19746_v2 = vld [vmem:[#allocation142_spill] sm:$0xff] }
 0x771   : > { %8688 = vmatprep.subr.msk.bf16.mxu1 %vm16273_vm15, %v16256_v16  ;;  %vm19747_vm14 = vcmp.lt.f32.partialorder %v19746_v2, 0.011025  ;;  %vm19756_vm15 = vcmp.lt.f32.partialorder %v19755_v42, 0.011025  ;;  %v19765_v42 = vmov 0 }
 0x772   : > { %vm16292_vm11 = vmpackc.low %vm19749_vm10, %vm19747_vm14  ;;  %vm19764_vm10 = vcmp.lt.f32.partialorder %v19763_v4, 0.011025 }
 0x773   : > { %v19751_v59 = vsel %vm16292_vm11, 4294967295, %v19750_v59  ;;  %vm16303_vm1 = vmpackc.low %vm19756_vm15, %vm19754_vm5 }
 0x774   : > { %19752 = vst [vmem:[#allocation68_spill] sm:$0xff] %v19751_v59  ;;  %v19758_v49 = vsel %vm16303_vm1, 4294967295, %v19757_v49  ;;  %v16316_v59 = vpack.c.bf16 %v19760_v55, %v19464_v7  ;;  %v16342_v7 = vpack.c.bf16 %v19469_v5, %v19468_v18  ;;  %v16346_v55 = vpack.c.bf16 %v19471_v30, %v19470_v24  ;;  %v19784_v18 = vld [vmem:[#allocation121_spill] sm:$0xff] }
 0x775   : > { %19759 = vst [vmem:[#allocation229_spill] sm:$0xff] %v19758_v49  ;;  %v19768_v49 = vld [vmem:[#allocation76_spill] sm:$0xff]  ;;  %v19786_v5 = vmov 0  ;;  %v16372_v30 = vpack.c.bf16 %v19475_v19, %v19474_v57  ;;  %v16376_v24 = vpack.c.bf16 %v19477_v44, %v19476_v17  ;;  %v19798_v57 = vld [vmem:[#allocation137_spill] sm:$0xff]  ;;  %v19800_v19 = vmov 0 }
 0x776   : > { %vm19769_vm5 = vcmp.lt.f32.partialorder %v19768_v49, 0.011025  ;;  %v19777_v49 = vld [vmem:[#allocation114_spill] sm:$0xff]  ;;  %v16402_v44 = vpack.c.bf16 %v19481_v25, %v19480_v54  ;;  %v16406_v17 = vpack.c.bf16 %v19483_v29, %v19482_v35  ;;  %v19815_v54 = vmov 0 }
 0x777   : > { %v19813_v25 = vld [vmem:[#allocation154_spill] sm:$0xff] }
 0x778   : > { %8691 = vmatpush1.bf16.xpose.msk.msra.mxu1 %vm16292_vm11, %v16282_v0  ;;  %v19761_v0 = vld [vmem:[#allocation61_spill] sm:$0xff]  ;;  %19803 = vst [vmem:[#allocation150_spill] sm:$0xff] %v16402_v44 }
 0x779   : > { %8694 = vmatprep.subr.msk.bf16.mxu1 %vm16303_vm1, %v16286_v36  ;;  %vm19762_vm14 = vcmp.lt.f32.partialorder %v19761_v0, 0.011025  ;;  %vm19771_vm1 = vcmp.lt.f32.partialorder %v19770_v53, 0.011025  ;;  %v19779_v53 = vmov 0 }
 0x77a   : > { %vm16322_vm15 = vmpackc.low %vm19764_vm10, %vm19762_vm14  ;;  %vm19778_vm10 = vcmp.lt.f32.partialorder %v19777_v49, 0.011025 }
 0x77b   : > { %v19766_v42 = vsel %vm16322_vm15, 4294967295, %v19765_v42  ;;  %vm16333_vm11 = vmpackc.low %vm19771_vm1, %vm19769_vm5 }
 0x77c   : > { %19767 = vst [vmem:[#allocation119_spill] sm:$0xff] %v19766_v42  ;;  %v19773_v45 = vsel %vm16333_vm11, 4294967295, %v19772_v45  ;;  %v19775_v42 = vld [vmem:[#allocation72_spill] sm:$0xff] }
 0x77d   : > { %19774 = vst [vmem:[#allocation138_spill] sm:$0xff] %v19773_v45  ;;  %vm19776_vm14 = vcmp.lt.f32.partialorder %v19775_v42, 0.011025  ;;  %v19782_v45 = vld [vmem:[#allocation178_spill] sm:$0xff] }
 0x77e   : > { %vm16352_vm1 = vmpackc.low %vm19778_vm10, %vm19776_vm14  ;;  %vm19783_vm5 = vcmp.lt.f32.partialorder %v19782_v45, 0.011025  ;;  %v19791_v45 = vld [vmem:[#allocation120_spill] sm:$0xff] }
 0x77f   : > { %v19780_v53 = vsel %vm16352_vm1, 4294967295, %v19779_v53  ;;  %vm19792_vm10 = vcmp.lt.f32.partialorder %v19791_v45, 0.011025 }
 0x780   : > { %8697 = vmatpush1.bf16.xpose.msk.msra.mxu1 %vm16322_vm15, %v16312_v11  ;;  %19781 = vst [vmem:[#allocation62_spill] sm:$0xff] %v19780_v53  ;;  %v19789_v53 = vld [vmem:[#allocation177_spill] sm:$0xff] }
 0x781   : > { %8700 = vmatprep.subr.msk.bf16.mxu1 %vm16333_vm11, %v16316_v59  ;;  %vm19785_vm11 = vcmp.lt.f32.partialorder %v19784_v18, 0.011025  ;;  %vm19790_vm14 = vcmp.lt.f32.partialorder %v19789_v53, 0.011025  ;;  %v19793_v18 = vmov 0 }
 0x782   : > { %vm16363_vm15 = vmpackc.low %vm19785_vm11, %vm19783_vm5 }
 0x783   : > { %v19787_v5 = vsel %vm16363_vm15, 4294967295, %v19786_v5  ;;  %vm16382_vm11 = vmpackc.low %vm19792_vm10, %vm19790_vm14 }
 0x784   : > { %19788 = vst [vmem:[#allocation21_spill] sm:$0xff] %v19787_v5  ;;  %v19794_v18 = vsel %vm16382_vm11, 4294967295, %v19793_v18  ;;  %v19796_v5 = vld [vmem:[#allocation194_spill] sm:$0xff] }
 0x785   : > { %19795 = vst [vmem:[#allocation15_spill] sm:$0xff] %v19794_v18  ;;  %vm19797_vm5 = vcmp.lt.f32.partialorder %v19796_v5, 0.011025  ;;  %v19804_v18 = vld [vmem:[#allocation192_spill] sm:$0xff] }
 0x786   : > { %vm19805_vm14 = vcmp.lt.f32.partialorder %v19804_v18, 0.011025  ;;  %v19806_v5 = vld [vmem:[#allocation136_spill] sm:$0xff]  ;;  %v19825_v18 = vmov 0 }
 0x787   : > { %vm19807_vm10 = vcmp.lt.f32.partialorder %v19806_v5, 0.011025  ;;  %v19823_v5 = vld [vmem:[#allocation153_spill] sm:$0xff] }
 0x788   : > { %8703 = vmatpush1.bf16.xpose.msk.msra.mxu1 %vm16352_vm1, %v16342_v7 }
 0x789   : > { %8706 = vmatprep.subr.msk.bf16.mxu1 %vm16363_vm15, %v16346_v55  ;;  %vm19799_vm15 = vcmp.lt.f32.partialorder %v19798_v57, 0.011025  ;;  %v19808_v57 = vmov 0 }
 0x78a   : > { %vm16393_vm1 = vmpackc.low %vm19799_vm15, %vm19797_vm5 }
 0x78b   : > { %v19801_v19 = vsel %vm16393_vm1, 4294967295, %v19800_v19  ;;  %vm16412_vm15 = vmpackc.low %vm19807_vm10, %vm19805_vm14  ;;  %vm19824_vm14 = vcmp.lt.f32.partialorder %v19823_v5, 0.011025 }
 0x78c   : > { %19802 = vst [vmem:[#allocation139_spill] sm:$0xff] %v19801_v19  ;;  %v19809_v57 = vsel %vm16412_vm15, 4294967295, %v19808_v57  ;;  %v19811_v19 = vld [vmem:[#allocation197_spill] sm:$0xff] }
 0x78d   : > { %19810 = vst [vmem:[#allocation38_spill] sm:$0xff] %v19809_v57  ;;  %vm19812_vm5 = vcmp.lt.f32.partialorder %v19811_v19, 0.011025  ;;  %v16436_v57 = vpack.c.bf16 %v19488_v26, %v19487_v56  ;;  %v19820_v19 = vld [vmem:[#allocation170_spill] sm:$0xff]  ;;  %v19830_v56 = vld [vmem:[#allocation168_spill] sm:$0xff]  ;;  %v19832_v26 = vmov 0 }
 0x790   : > { %8709 = vmatpush1.bf16.xpose.msk.msra.mxu1 %vm16382_vm11, %v16372_v30 }
 0x791   : > { %8712 = vmatprep.subr.msk.bf16.mxu1 %vm16393_vm1, %v16376_v24  ;;  %vm19814_vm1 = vcmp.lt.f32.partialorder %v19813_v25, 0.011025  ;;  %v19821_v25 = vld [vmem:[#allocation196_spill] sm:$0xff] }
 0x792   : > { %vm16423_vm11 = vmpackc.low %vm19814_vm1, %vm19812_vm5  ;;  %vm19822_vm1 = vcmp.lt.f32.partialorder %v19821_v25, 0.011025 }
 0x793   : > { %v19816_v54 = vsel %vm16423_vm11, 4294967295, %v19815_v54  ;;  %vm16446_vm10 = vmpackc.low %vm19824_vm14, %vm19822_vm1 }
 0x794   : > { %19817 = vst [vmem:[#allocation75_spill] sm:$0xff] %v19816_v54  ;;  %v19826_v18 = vsel %vm16446_vm10, 4294967295, %v19825_v18  ;;  %v19839_v54 = vmov 0 }
 0x795   : > { %19827 = vst [vmem:[#allocation112_spill] sm:$0xff] %v19826_v18  ;;  %v19837_v18 = vld [vmem:[#allocation167_spill] sm:$0xff] }
 0x796   : > { %vm19838_vm14 = vcmp.lt.f32.partialorder %v19837_v18, 0.011025 }
 0x798   : > { %8715 = vmatpush1.bf16.xpose.msk.msra.mxu1 %vm16412_vm15, %v16402_v44  ;;  %v16440_v44 = vpack.c.bf16 %v19820_v19, %v19489_v32  ;;  %v16466_v32 = vpack.c.bf16 %v19498_v14, %v19497_v38  ;;  %v16470_v19 = vpack.c.bf16 %v19372_v10, %v19369_v8  ;;  %v19844_v14 = vld [vmem:[#allocation189_spill] sm:$0xff]  ;;  %v19846_v38 = vmov 0 }
 0x799   : > { %8718 = vmatprep.subr.msk.bf16.mxu1 %vm16423_vm11, %v16406_v17  ;;  %vm19831_vm11 = vcmp.lt.f32.partialorder %v19830_v56, 0.011025  ;;  %v16496_v8 = vpack.c.bf16 %v19624_v47, %v19503_v6  ;;  %v16500_v10 = vpack.c.bf16 %v19626_v31, %v19625_v58  ;;  %v19859_v6 = vld [vmem:[#allocation203_spill] sm:$0xff]  ;;  %v19861_v47 = vmov 0  ;;  %v19864_v31 = vld [vmem:[#allocation205_spill] sm:$0xff] }
 0x79a   : > { %v16430_v35 = vpop.f32.mrb[0].mxu1  ;;  %v16526_v58 = vpack.c.bf16 %v19864_v31, %v19629_v21  ;;  %v19874_v21 = vld [vmem:[#allocation215_spill] sm:$0xff]  ;;  %v19876_v31 = vmov 0 }
 0x79b   : > { %19818 = vst [vmem:[#allocation27_spill] sm:$0xff] %v16430_v35  ;;  %v16432_v29 = vpop.f32.mrb[1].mxu1  ;;  %v19835_v35 = vld [vmem:[#allocation199_spill] sm:$0xff]  ;;  %19849 = vst [vmem:[#allocation132_spill] sm:$0xff] %v16496_v8 }
 0x79c   : > { %19819 = vst [vmem:[#allocation239_spill] sm:$0xff] %v16432_v29  ;;  %v19828_v29 = vld [vmem:[#allocation200_spill] sm:$0xff]  ;;  %vm19836_vm1 = vcmp.lt.f32.partialorder %v19835_v35, 0.011025 }
 0x79d   : > { %vm19829_vm5 = vcmp.lt.f32.partialorder %v19828_v29, 0.011025 }
 0x79e   : > { %vm16457_vm15 = vmpackc.low %vm19831_vm11, %vm19829_vm5 }
 0x79f   : > { %v19833_v26 = vsel %vm16457_vm15, 4294967295, %v19832_v26  ;;  %vm16476_vm11 = vmpackc.low %vm19838_vm14, %vm19836_vm1 }
 0x7a0   : > { %8721 = vmatpush1.bf16.xpose.msk.msra.mxu1 %vm16446_vm10, %v16436_v57  ;;  %19834 = vst [vmem:[#allocation9_spill] sm:$0xff] %v19833_v26  ;;  %v19840_v54 = vsel %vm16476_vm11, 4294967295, %v19839_v54  ;;  %v19842_v26 = vld [vmem:[#allocation202_spill] sm:$0xff] }
 0x7a1   : > { %8724 = vmatprep.subr.msk.bf16.mxu1 %vm16457_vm15, %v16440_v44  ;;  %19841 = vst [vmem:[#allocation133_spill] sm:$0xff] %v19840_v54  ;;  %vm19843_vm5 = vcmp.lt.f32.partialorder %v19842_v26, 0.011025  ;;  %vm19845_vm15 = vcmp.lt.f32.partialorder %v19844_v14, 0.011025  ;;  %v19850_v54 = vld [vmem:[#allocation6_spill] sm:$0xff] }
 0x7a2   : > { %vm16487_vm10 = vmpackc.low %vm19845_vm15, %vm19843_vm5  ;;  %vm19851_vm1 = vcmp.lt.f32.partialorder %v19850_v54, 0.011025  ;;  %v19852_v26 = vld [vmem:[#allocation188_spill] sm:$0xff]  ;;  %v19854_v14 = vmov 0 }
 0x7a3   : > { %v19847_v38 = vsel %vm16487_vm10, 4294967295, %v19846_v38  ;;  %vm19853_vm14 = vcmp.lt.f32.partialorder %v19852_v26, 0.011025 }
 0x7a4   : > { %19848 = vst [vmem:[#allocation18_spill] sm:$0xff] %v19847_v38  ;;  %vm16506_vm15 = vmpackc.low %vm19853_vm14, %vm19851_vm1  ;;  %v19857_v38 = vld [vmem:[#allocation206_spill] sm:$0xff] }
 0x7a5   : > { %v19855_v14 = vsel %vm16506_vm15, 4294967295, %v19854_v14  ;;  %vm19858_vm5 = vcmp.lt.f32.partialorder %v19857_v38, 0.011025  ;;  %v19867_v38 = vld [vmem:[#allocation201_spill] sm:$0xff] }
 0x7a6   : > { %19856 = vst [vmem:[#allocation49_spill] sm:$0xff] %v19855_v14  ;;  %v16530_v14 = vpack.c.bf16 %v19632_v34, %v19631_v13  ;;  %vm19868_vm14 = vcmp.lt.f32.partialorder %v19867_v38, 0.011025  ;;  %v16556_v13 = vpack.c.bf16 %v19636_v41, %v19635_v43  ;;  %v19879_v34 = vld [vmem:[#allocation213_spill] sm:$0xff]  ;;  %v19894_v43 = vmov 0 }
 0x7a7   : > { %v19892_v41 = vld [vmem:[#allocation81_spill] sm:$0xff] }
 0x7a8   : > { %8727 = vmatpush1.bf16.xpose.msk.msra.mxu1 %vm16476_vm11, %v16466_v32 }
 0x7a9   : > { %8730 = vmatprep.subr.msk.bf16.mxu1 %vm16487_vm10, %v16470_v19  ;;  %vm19860_vm10 = vcmp.lt.f32.partialorder %v19859_v6, 0.011025  ;;  %v19869_v6 = vmov 0 }
 0x7aa   : > { %vm16517_vm11 = vmpackc.low %vm19860_vm10, %vm19858_vm5 }
 0x7ab   : > { %v19862_v47 = vsel %vm16517_vm11, 4294967295, %v19861_v47 }
 0x7ac   : > { %19863 = vst [vmem:[#allocation148_spill] sm:$0xff] %v19862_v47  ;;  %v19872_v47 = vld [vmem:[#allocation108_spill] sm:$0xff] }
 0x7ad   : > { %vm19873_vm5 = vcmp.lt.f32.partialorder %v19872_v47, 0.011025  ;;  %v19883_v47 = vmov 0 }
 0x7b0   : > { %8733 = vmatpush1.bf16.xpose.msk.msra.mxu1 %vm16506_vm15, %v16496_v8  ;;  %v19865_v8 = vld [vmem:[#allocation204_spill] sm:$0xff] }
 0x7b1   : > { %8736 = vmatprep.subr.msk.bf16.mxu1 %vm16517_vm11, %v16500_v10  ;;  %vm19866_vm1 = vcmp.lt.f32.partialorder %v19865_v8, 0.011025  ;;  %vm19875_vm11 = vcmp.lt.f32.partialorder %v19874_v21, 0.011025 }
 0x7b2   : > { %vm16536_vm10 = vmpackc.low %vm19868_vm14, %vm19866_vm1  ;;  %vm19880_vm1 = vcmp.lt.f32.partialorder %v19879_v34, 0.011025 }
 0x7b3   : > { %v19870_v6 = vsel %vm16536_vm10, 4294967295, %v19869_v6  ;;  %vm16547_vm15 = vmpackc.low %vm19875_vm11, %vm19873_vm5  ;;  %vm19886_vm11 = vcmp.gt.f32.partialorder %v19640_v33, 0.02405601  ;;  %vm19887_vm5 = vcmp.gt.f32.partialorder %v19642_v52, 0.02405601  ;;  %v19897_v33 = vld [vmem:[#allocation240_spill] sm:$0xff] }
 0x7b4   : > { %19871 = vst [vmem:[#allocation73_spill] sm:$0xff] %v19870_v6  ;;  %v19877_v31 = vsel %vm16547_vm15, 4294967295, %v19876_v31  ;;  %v19881_v6 = vld [vmem:[#allocation212_spill] sm:$0xff] }
 0x7b5   : > { %19878 = vst [vmem:[#allocation147_spill] sm:$0xff] %v19877_v31  ;;  %vm19882_vm14 = vcmp.lt.f32.partialorder %v19881_v6, 0.011025  ;;  %v19888_v31 = vmov 0  ;;  %v19898_v52 = vld [vmem:[#allocation96_spill] sm:$0xff] }
 0x7b8   : > { %8739 = vmatpush1.bf16.xpose.msk.msra.mxu1 %vm16536_vm10, %v16526_v58  ;;  %vm16562_vm10 = vmpackc.low %vm19882_vm14, %vm19880_vm1  ;;  %vm19891_vm1 = vcmp.gt.f32.partialorder %v19653_v1, 0.02405601  ;;  %vm19893_vm14 = vcmp.gt.f32.partialorder %v19892_v41, 0.02405601  ;;  %v19905_v1 = vld [vmem:[#allocation37_spill] sm:$0xff]  ;;  %v19907_v41 = vmov 0 }
 0x7b9   : > { %8742 = vmatprep.subr.msk.bf16.mxu1 %vm16547_vm15, %v16530_v14  ;;  %v19884_v47 = vsel %vm16562_vm10, 4294967295, %v19883_v47  ;;  %vm16573_vm15 = vmpackc.low %vm19887_vm5, %vm19886_vm11  ;;  %vm19899_vm11 = vcmp.gt.f32.partialorder %v19898_v52, 0.02405601  ;;  %v19909_v52 = vld [vmem:[#allocation53_spill] sm:$0xff] }
 0x7ba   : > { %19885 = vst [vmem:[#allocation70_spill] sm:$0xff] %v19884_v47  ;;  %v19889_v31 = vsel %vm16573_vm15, 4294967295, %v19888_v31  ;;  %vm16585_vm7 = vmpackc.low %vm19893_vm14, %vm19891_vm1  ;;  %v19900_v47 = vld [vmem:[#allocation39_spill] sm:$0xff]  ;;  %vm19904_vm1 = vcmp.gt.f32.partialorder %v19671_v12, 0.02405601  ;;  %v19918_v12 = vmov 0 }
 0x7bb   : > { %19890 = vst [vmem:[#allocation163_spill] sm:$0xff] %v19889_v31  ;;  %v19895_v43 = vsel %vm16585_vm7, 4294967295, %v19894_v43  ;;  %vm19901_vm5 = vcmp.gt.f32.partialorder %v19900_v47, 0.02405601  ;;  %v19902_v31 = vmov 0  ;;  %v19910_v47 = vld [vmem:[#allocation55_spill] sm:$0xff] }
 0x7bc   : > { %19896 = vst [vmem:[#allocation158_spill] sm:$0xff] %v19895_v43  ;;  %vm19906_vm14 = vcmp.gt.f32.partialorder %v19905_v1, 0.02405601  ;;  %v19912_v43 = vld [vmem:[#allocation52_spill] sm:$0xff]  ;;  %v19922_v1 = vld [vmem:[#allocation33_spill] sm:$0xff] }
 0x7c0   : > { %8745 = vmatpush1.bf16.xpose.msk.msra.mxu1 %vm16562_vm10, %v16556_v13  ;;  %vm16596_vm10 = vmpackc.low %vm19901_vm5, %vm19899_vm11  ;;  %vm19911_vm11 = vcmp.gt.f32.partialorder %v19910_v47, 0.02405601  ;;  %vm19913_vm5 = vcmp.gt.f32.partialorder %v19912_v43, 0.02405601  ;;  %v19920_v43 = vld [vmem:[#allocation101_spill] sm:$0xff]  ;;  %v19924_v47 = vmov 0 }
 0x7c1   : > { %8748 = vmatprep.subr.msk.bf16.mxu1 %vm16573_vm15, %v16082_v9  ;;  %v19903_v31 = vsel %vm16596_vm10, 4294967295, %v19902_v31  ;;  %vm16608_vm15 = vmpackc.low %vm19906_vm14, %vm19904_vm1  ;;  %vm19916_vm1 = vcmp.gt.f32.partialorder %v19687_v60, 0.02405601  ;;  %vm19917_vm14 = vcmp.gt.f32.partialorder %v19689_v62, 0.02405601  ;;  %v19928_v60 = vmov 0 }
 0x7c2   : > { %v19908_v41 = vsel %vm16608_vm15, 4294967295, %v19907_v41  ;;  %v19930_v62 = vld [vmem:[#allocation17_spill] sm:$0xff] }
 0x7c7   : > { %6598 = vmatmul.mubr.f32.vlgmr.msra.gmra.mrb[4].mxu1 %v19652_v15 }
 0x7c8   : > { %8751 = vmatpush1.bf16.xpose.msk.msra.mxu1 %vm16585_vm7, %v19897_v33  ;;  %6668 = vmatprep.mubr.f32.mxu1 %v19652_v15  ;;  %vm16619_vm7 = vmpackc.low %vm19913_vm5, %vm19911_vm11  ;;  %v19914_v33 = vmov 0  ;;  %vm19921_vm11 = vcmp.gt.f32.partialorder %v19920_v43, 0.02405601  ;;  %vm19923_vm5 = vcmp.gt.f32.partialorder %v19922_v1, 0.02405601  ;;  %v19932_v43 = vld [vmem:[#allocation48_spill] sm:$0xff] }
 0x7c9   : > { %8754 = vmatprep.subr.msk.bf16.mxu1 %vm16596_vm10, %v16104_v28  ;;  %v19915_v33 = vsel %vm16619_vm7, 4294967295, %v19914_v33  ;;  %vm16630_vm10 = vmpackc.low %vm19917_vm14, %vm19916_vm1  ;;  %vm19926_vm1 = vcmp.gt.f32.partialorder %v19701_v23, 0.02405601  ;;  %vm19927_vm14 = vcmp.gt.f32.partialorder %v19703_v46, 0.02405601  ;;  %v19934_v1 = vmov 0 }
 0x7ca   : > { %v19919_v12 = vsel %vm16630_vm10, 4294967295, %v19918_v12  ;;  %v19938_v23 = vmov 0  ;;  %v19941_v46 = vld [vmem:[#allocation42_spill] sm:$0xff] }
 0x7d0   : > { %8757 = vmatpush1.bf16.xpose.msk.msra.mxu1 %vm16608_vm15, %v19909_v52  ;;  %vm16641_vm15 = vmpackc.low %vm19923_vm5, %vm19921_vm11  ;;  %vm19931_vm11 = vcmp.gt.f32.partialorder %v19930_v62, 0.02405601  ;;  %vm19933_vm5 = vcmp.gt.f32.partialorder %v19932_v43, 0.02405601  ;;  %v19943_v62 = vld [vmem:[#allocation57_spill] sm:$0xff]  ;;  %v19945_v43 = vmov 0 }
 0x7d1   : > { %8760 = vmatprep.subr.msk.bf16.mxu1 %vm16619_vm7, %v16136_v27  ;;  %v19925_v47 = vsel %vm16641_vm15, 4294967295, %v19924_v47  ;;  %vm16652_vm7 = vmpackc.low %vm19927_vm14, %vm19926_vm1  ;;  %vm19936_vm1 = vcmp.gt.f32.partialorder %v19715_v51, 0.02405601  ;;  %vm19937_vm14 = vcmp.gt.f32.partialorder %v19717_v39, 0.02405601  ;;  %v19949_v51 = vmov 0 }
 0x7d2   : > { %v19929_v60 = vsel %vm16652_vm7, 4294967295, %v19928_v60  ;;  %v19952_v39 = vld [vmem:[#allocation221_spill] sm:$0xff] }
 0x7d8   : > { %8763 = vmatpush1.bf16.xpose.msk.msra.mxu1 %vm16630_vm10, %v16162_v22  ;;  %vm16663_vm10 = vmpackc.low %vm19933_vm5, %vm19931_vm11  ;;  %vm19942_vm11 = vcmp.gt.f32.partialorder %v19941_v46, 0.02405601  ;;  %vm19944_vm5 = vcmp.gt.f32.partialorder %v19943_v62, 0.02405601  ;;  %v19953_v46 = vld [vmem:[#allocation143_spill] sm:$0xff]  ;;  %v19955_v62 = vld [vmem:[#allocation69_spill] sm:$0xff] }
 0x7d9   : > { %8766 = vmatprep.subr.msk.bf16.mxu1 %vm16641_vm15, %v16166_v48  ;;  %v19935_v1 = vsel %vm16663_vm10, 4294967295, %v19934_v1  ;;  %vm16674_vm15 = vmpackc.low %vm19937_vm14, %vm19936_vm1  ;;  %vm19947_vm1 = vcmp.gt.f32.partialorder %v19730_v3, 0.02405601  ;;  %vm19948_vm14 = vcmp.gt.f32.partialorder %v19732_v50, 0.02405601  ;;  %v19961_v3 = vmov 0 }
 0x7da   : > { %v19939_v23 = vsel %vm16674_vm15, 4294967295, %v19938_v23  ;;  %v19963_v50 = vld [vmem:[#allocation102_spill] sm:$0xff] }
 0x7db   : > { %19940 = vst [vmem:[#allocation4_spill] sm:$0xff] %v19939_v23  ;;  %v19957_v23 = vmov 0 }
 0x7e0   : > { %8769 = vmatpush1.bf16.xpose.msk.msra.mxu1 %vm16652_vm7, %v16192_v61  ;;  %vm16685_vm7 = vmpackc.low %vm19944_vm5, %vm19942_vm11  ;;  %vm19954_vm11 = vcmp.gt.f32.partialorder %v19953_v46, 0.02405601  ;;  %vm19956_vm5 = vcmp.gt.f32.partialorder %v19955_v62, 0.02405601  ;;  %v19964_v46 = vld [vmem:[#allocation64_spill] sm:$0xff]  ;;  %v19966_v62 = vld [vmem:[#allocation51_spill] sm:$0xff] }
 0x7e1   : > { %8772 = vmatprep.subr.msk.bf16.mxu1 %vm16663_vm10, %v16196_v40  ;;  %v19946_v43 = vsel %vm16685_vm7, 4294967295, %v19945_v43  ;;  %vm16696_vm10 = vmpackc.low %vm19948_vm14, %vm19947_vm1  ;;  %vm19959_vm1 = vcmp.gt.f32.partialorder %v19746_v2, 0.02405601  ;;  %vm19960_vm14 = vcmp.gt.f32.partialorder %v19748_v20, 0.02405601  ;;  %v19972_v20 = vmov 0 }
 0x7e2   : > { %v19950_v51 = vsel %vm16696_vm10, 4294967295, %v19949_v51  ;;  %v19974_v2 = vld [vmem:[#allocation76_spill] sm:$0xff] }
 0x7e3   : > { %19951 = vst [vmem:[#allocation176_spill] sm:$0xff] %v19950_v51  ;;  %v19968_v51 = vmov 0 }
 0x7e8   : > { %8775 = vmatpush1.bf16.xpose.msk.msra.mxu1 %vm16674_vm15, %v16222_v37  ;;  %vm16707_vm15 = vmpackc.low %vm19956_vm5, %vm19954_vm11  ;;  %vm19965_vm11 = vcmp.gt.f32.partialorder %v19964_v46, 0.02405601  ;;  %vm19967_vm5 = vcmp.gt.f32.partialorder %v19966_v62, 0.02405601  ;;  %v19976_v46 = vld [vmem:[#allocation77_spill] sm:$0xff]  ;;  %v19978_v62 = vmov 0 }
 0x7e9   : > { %8778 = vmatprep.subr.msk.bf16.mxu1 %vm16685_vm7, %v16226_v63  ;;  %v19958_v23 = vsel %vm16707_vm15, 4294967295, %v19957_v23  ;;  %vm16718_vm7 = vmpackc.low %vm19960_vm14, %vm19959_vm1  ;;  %vm19970_vm1 = vcmp.gt.f32.partialorder %v19761_v0, 0.02405601  ;;  %vm19971_vm14 = vcmp.gt.f32.partialorder %v19763_v4, 0.02405601  ;;  %v19982_v4 = vmov 0 }
 0x7ea   : > { %v19962_v3 = vsel %vm16718_vm7, 4294967295, %v19961_v3  ;;  %v19985_v0 = vld [vmem:[#allocation178_spill] sm:$0xff] }
 0x7f0   : > { %8781 = vmatpush1.bf16.xpose.msk.msra.mxu1 %vm16696_vm10, %v19952_v39  ;;  %vm16729_vm10 = vmpackc.low %vm19967_vm5, %vm19965_vm11  ;;  %vm19975_vm11 = vcmp.gt.f32.partialorder %v19974_v2, 0.02405601  ;;  %vm19977_vm5 = vcmp.gt.f32.partialorder %v19976_v46, 0.02405601  ;;  %v19987_v2 = vld [vmem:[#allocation121_spill] sm:$0xff]  ;;  %v19989_v46 = vmov 0 }
 0x7f1   : > { %8784 = vmatprep.subr.msk.bf16.mxu1 %vm16707_vm15, %v16256_v16  ;;  %v19969_v51 = vsel %vm16729_vm10, 4294967295, %v19968_v51  ;;  %vm16740_vm15 = vmpackc.low %vm19971_vm14, %vm19970_vm1  ;;  %vm19980_vm1 = vcmp.gt.f32.partialorder %v19775_v42, 0.02405601  ;;  %vm19981_vm14 = vcmp.gt.f32.partialorder %v19777_v49, 0.02405601  ;;  %v19994_v42 = vmov 0 }
 0x7f2   : > { %v19973_v20 = vsel %vm16740_vm15, 4294967295, %v19972_v20  ;;  %v19997_v49 = vld [vmem:[#allocation194_spill] sm:$0xff] }
 0x7f8   : > { %8787 = vmatpush1.bf16.xpose.msk.msra.mxu1 %vm16718_vm7, %v19963_v50  ;;  %vm16751_vm7 = vmpackc.low %vm19977_vm5, %vm19975_vm11  ;;  %vm19986_vm11 = vcmp.gt.f32.partialorder %v19985_v0, 0.02405601  ;;  %vm19988_vm5 = vcmp.gt.f32.partialorder %v19987_v2, 0.02405601  ;;  %v19999_v0 = vld [vmem:[#allocation137_spill] sm:$0xff]  ;;  %v20001_v2 = vmov 0 }
 0x7f9   : > { %8790 = vmatprep.subr.msk.bf16.mxu1 %vm16729_vm10, %v16286_v36  ;;  %v19979_v62 = vsel %vm16751_vm7, 4294967295, %v19978_v62  ;;  %vm16762_vm10 = vmpackc.low %vm19981_vm14, %vm19980_vm1  ;;  %vm19992_vm1 = vcmp.gt.f32.partialorder %v19789_v53, 0.02405601  ;;  %vm19993_vm14 = vcmp.gt.f32.partialorder %v19791_v45, 0.02405601  ;;  %v20003_v53 = vld [vmem:[#allocation192_spill] sm:$0xff] }
 0x7fa   : > { %v19983_v4 = vsel %vm16762_vm10, 4294967295, %v19982_v4  ;;  %v20005_v45 = vld [vmem:[#allocation136_spill] sm:$0xff] }
 0x7fb   : > { %19984 = vst [vmem:[#allocation175_spill] sm:$0xff] %v19983_v4  ;;  %v20014_v4 = vmov 0 }
 0x800   : > { %8793 = vmatpush1.bf16.xpose.msk.msra.mxu1 %vm16740_vm15, %v16312_v11  ;;  %vm16773_vm15 = vmpackc.low %vm19988_vm5, %vm19986_vm11  ;;  %vm19998_vm11 = vcmp.gt.f32.partialorder %v19997_v49, 0.02405601  ;;  %vm20000_vm5 = vcmp.gt.f32.partialorder %v19999_v0, 0.02405601  ;;  %v20010_v49 = vld [vmem:[#allocation197_spill] sm:$0xff]  ;;  %v20012_v0 = vld [vmem:[#allocation154_spill] sm:$0xff] }
 0x801   : > { %8796 = vmatprep.subr.msk.bf16.mxu1 %vm16751_vm7, %v16316_v59  ;;  %v19990_v46 = vsel %vm16773_vm15, 4294967295, %v19989_v46  ;;  %vm16784_vm7 = vmpackc.low %vm19993_vm14, %vm19992_vm1  ;;  %vm20004_vm1 = vcmp.gt.f32.partialorder %v20003_v53, 0.02405601  ;;  %vm20006_vm14 = vcmp.gt.f32.partialorder %v20005_v45, 0.02405601 }
 0x802   : > { %19991 = vst [vmem:[#allocation117_spill] sm:$0xff] %v19990_v46  ;;  %v19995_v42 = vsel %vm16784_vm7, 4294967295, %v19994_v42  ;;  %v20007_v46 = vmov 0 }
 0x803   : > { %19996 = vst [vmem:[#allocation180_spill] sm:$0xff] %v19995_v42  ;;  %v20009_v42 = vld [vmem:[#allocation150_spill] sm:$0xff] }
 0x808   : > { %8799 = vmatpush1.bf16.xpose.msk.msra.mxu1 %vm16762_vm10, %v16342_v7  ;;  %vm16795_vm10 = vmpackc.low %vm20000_vm5, %vm19998_vm11  ;;  %vm20011_vm11 = vcmp.gt.f32.partialorder %v20010_v49, 0.02405601  ;;  %vm20013_vm5 = vcmp.gt.f32.partialorder %v20012_v0, 0.02405601  ;;  %v20020_v49 = vmov 0  ;;  %v20024_v0 = vmov 0 }
 0x809   : > { %8802 = vmatprep.subr.msk.bf16.mxu1 %vm16773_vm15, %v16346_v55  ;;  %v20002_v2 = vsel %vm16795_vm10, 4294967295, %v20001_v2  ;;  %vm16806_vm15 = vmpackc.low %vm20006_vm14, %vm20004_vm1  ;;  %vm20018_vm1 = vcmp.gt.f32.partialorder %v19821_v25, 0.02405601  ;;  %vm20019_vm14 = vcmp.gt.f32.partialorder %v19823_v5, 0.02405601  ;;  %v20028_v5 = vmov 0 }
 0x80a   : > { %v20008_v46 = vsel %vm16806_vm15, 4294967295, %v20007_v46  ;;  %v20030_v25 = vld [vmem:[#allocation202_spill] sm:$0xff] }
 0x810   : > { %8805 = vmatpush1.bf16.xpose.msk.msra.mxu1 %vm16784_vm7, %v16372_v30  ;;  %vm16817_vm7 = vmpackc.low %vm20013_vm5, %vm20011_vm11  ;;  %vm20022_vm11 = vcmp.gt.f32.partialorder %v19828_v29, 0.02405601  ;;  %vm20023_vm5 = vcmp.gt.f32.partialorder %v19830_v56, 0.02405601  ;;  %v20032_v29 = vld [vmem:[#allocation189_spill] sm:$0xff]  ;;  %v20034_v56 = vmov 0 }
 0x811   : > { %8808 = vmatprep.subr.msk.bf16.mxu1 %vm16795_vm10, %v16376_v24  ;;  %v20015_v4 = vsel %vm16817_vm7, 4294967295, %v20014_v4 }
 0x818   : > { %8811 = vmatpush1.bf16.xpose.msk.msra.mxu1 %vm16806_vm15, %v20009_v42  ;;  %vm16832_vm15 = vmpackc.low %vm20019_vm14, %vm20018_vm1  ;;  %vm20026_vm1 = vcmp.gt.f32.partialorder %v19835_v35, 0.02405601  ;;  %vm20027_vm14 = vcmp.gt.f32.partialorder %v19837_v18, 0.02405601  ;;  %v20038_v18 = vmov 0  ;;  %v20040_v35 = vld [vmem:[#allocation132_spill] sm:$0xff] }
 0x819   : > { %8814 = vmatprep.subr.msk.bf16.mxu1 %vm16817_vm7, %v16406_v17  ;;  %v20021_v49 = vsel %vm16832_vm15, 4294967295, %v20020_v49  ;;  %vm16843_vm7 = vmpackc.low %vm20023_vm5, %vm20022_vm11  ;;  %vm20031_vm11 = vcmp.gt.f32.partialorder %v20030_v25, 0.02405601  ;;  %vm20033_vm5 = vcmp.gt.f32.partialorder %v20032_v29, 0.02405601  ;;  %v20041_v25 = vld [vmem:[#allocation206_spill] sm:$0xff] }
 0x81a   : > { %v16824_v53 = vpop.f32.mrb[2].mxu1  ;;  %v20025_v0 = vsel %vm16843_vm7, 4294967295, %v20024_v0  ;;  %vm16854_vm10 = vmpackc.low %vm20027_vm14, %vm20026_vm1  ;;  %vm20036_vm1 = vcmp.gt.f32.partialorder %v19850_v54, 0.02405601  ;;  %vm20037_vm14 = vcmp.gt.f32.partialorder %v19852_v26, 0.02405601 }
 0x81b   : > { %20016 = vst [vmem:[#allocation127_spill] sm:$0xff] %v16824_v53  ;;  %v16826_v45 = vpop.f32.mrb[3].mxu1  ;;  %v20029_v5 = vsel %vm16854_vm10, 4294967295, %v20028_v5  ;;  %v20043_v29 = vld [vmem:[#allocation203_spill] sm:$0xff]  ;;  %v20050_v54 = vmov 0  ;;  %v20053_v26 = vld [vmem:[#allocation108_spill] sm:$0xff] }
 0x81c   : > { %20017 = vst [vmem:[#allocation106_spill] sm:$0xff] %v16826_v45  ;;  %v20045_v45 = vmov 0  ;;  %v20070_v53 = vld [vmem:[#allocation109_spill] sm:$0xff] }
 0x820   : > { %8817 = vmatpush1.bf16.xpose.msk.msra.mxu1 %vm16832_vm15, %v16436_v57  ;;  %vm16865_vm15 = vmpackc.low %vm20033_vm5, %vm20031_vm11  ;;  %vm20042_vm11 = vcmp.gt.f32.partialorder %v20041_v25, 0.02405601  ;;  %vm20044_vm5 = vcmp.gt.f32.partialorder %v20043_v29, 0.02405601  ;;  %v20056_v25 = vmov 0  ;;  %v20066_v29 = vld [vmem:[#allocation155_spill] sm:$0xff] }
 0x821   : > { %8820 = vmatprep.subr.msk.bf16.mxu1 %vm16843_vm7, %v16440_v44  ;;  %v20035_v56 = vsel %vm16865_vm15, 4294967295, %v20034_v56  ;;  %vm16876_vm7 = vmpackc.low %vm20037_vm14, %vm20036_vm1  ;;  %vm20048_vm1 = vcmp.gt.f32.partialorder %v19865_v8, 0.02405601  ;;  %vm20049_vm14 = vcmp.gt.f32.partialorder %v19867_v38, 0.02405601  ;;  %v20061_v38 = vmov 0 }
 0x822   : > { %v20039_v18 = vsel %vm16876_vm7, 4294967295, %v20038_v18  ;;  %v20064_v8 = vld [vmem:[#allocation263_spill] sm:$0xff] }
 0x828   : > { %8823 = vmatpush1.bf16.xpose.msk.msra.mxu1 %vm16854_vm10, %v16466_v32  ;;  %vm16887_vm10 = vmpackc.low %vm20044_vm5, %vm20042_vm11  ;;  %vm20054_vm11 = vcmp.gt.f32.partialorder %v20053_v26, 0.02405601  ;;  %vm20055_vm5 = vcmp.gt.f32.partialorder %v19874_v21, 0.02405601  ;;  %v20065_v21 = vld [vmem:[#allocation46_spill] sm:$0xff]  ;;  %v20069_v26 = vld [vmem:[#allocation99_spill] sm:$0xff] }
 0x829   : > { %8826 = vmatprep.subr.msk.bf16.mxu1 %vm16865_vm15, %v16470_v19  ;;  %v20046_v45 = vsel %vm16887_vm10, 4294967295, %v20045_v45  ;;  %vm16898_vm15 = vmpackc.low %vm20049_vm14, %vm20048_vm1  ;;  %vm20059_vm1 = vcmp.gt.f32.partialorder %v19879_v34, 0.02405601  ;;  %vm20060_vm14 = vcmp.gt.f32.partialorder %v19881_v6, 0.02405601  ;;  %v20067_v34 = vld [vmem:[#allocation151_spill] sm:$0xff] }
 0x82a   : > { %20047 = vst [vmem:[#allocation125_spill] sm:$0xff] %v20046_v45  ;;  %v20051_v54 = vsel %vm16898_vm15, 4294967295, %v20050_v54  ;;  %v20068_v6 = vld [vmem:[#allocation193_spill] sm:$0xff] }
 0x82b   : > { %20052 = vst [vmem:[#allocation209_spill] sm:$0xff] %v20051_v54  ;;  %v20074_v54 = vld [vmem:[#allocation152_spill] sm:$0xff]  ;;  %v20076_v45 = vld [vmem:[#allocation25_spill] sm:$0xff] }
 0x830   : > { %8829 = vmatpush1.bf16.xpose.msk.msra.mxu1 %vm16876_vm7, %v20040_v35  ;;  %vm16909_vm7 = vmpackc.low %vm20055_vm5, %vm20054_vm11 }
 0x831   : > { %8832 = vmatprep.subr.msk.bf16.mxu1 %vm16887_vm10, %v16500_v10  ;;  %v20057_v25 = vsel %vm16909_vm7, 4294967295, %v20056_v25  ;;  %vm16920_vm10 = vmpackc.low %vm20060_vm14, %vm20059_vm1 }
 0x832   : > { %20058 = vst [vmem:[#allocation141_spill] sm:$0xff] %v20057_v25  ;;  %v20062_v38 = vsel %vm16920_vm10, 4294967295, %v20061_v38  ;;  %v20072_v25 = vld [vmem:[#allocation242_spill] sm:$0xff] }
 0x833   : > { %20063 = vst [vmem:[#allocation208_spill] sm:$0xff] %v20062_v38  ;;  %v20071_v38 = vld [vmem:[#allocation179_spill] sm:$0xff] }
 0x838   : > { %8835 = vmatpush1.bf16.xpose.msk.msra.mxu1 %vm16898_vm15, %v16526_v58 }
 0x839   : > { %8838 = vmatprep.subr.msk.bf16.mxu1 %vm16909_vm7, %v16530_v14 }
 0x840   : > { %8841 = vmatpush1.bf16.xpose.msk.msra.mxu1 %vm16920_vm10, %v16556_v13 }
 0x841   : > { %8843 = vmatprep.subr.bf16.mxu1 %v20064_v8  ;;  %v20073_v8 = vld [vmem:[#allocation105_spill] sm:$0xff] }
 0x847   : > { %6669 = vmatmul.mubr.f32.vlgmr.msra.gmra.mrb[6].mxu1 %v19652_v15 }
 0x848   : > { %8845 = vmatpush1.bf16.msra.mxu1 %v20065_v21  ;;  %6739 = vmatprep.mubr.f32.mxu1 %v19652_v15  ;;  %v20075_v21 = vld [vmem:[#allocation166_spill] sm:$0xff] }
 0x849   : > { %8847 = vmatprep.subr.bf16.mxu1 %v20066_v29  ;;  %v20077_v29 = vld [vmem:[#allocation195_spill] sm:$0xff] }
 0x84c   : > { %8849 = vmatpush1.bf16.msra.mxu1 %v20067_v34  ;;  %v20078_v34 = vld [vmem:[#allocation231_spill] sm:$0xff] }
 0x84d   : > { %8851 = vmatprep.subr.bf16.mxu1 %v20068_v6  ;;  %v20079_v6 = vld [vmem:[#allocation181_spill] sm:$0xff] }
 0x850   : > { %8853 = vmatpush1.bf16.msra.mxu1 %v20069_v26  ;;  %v20080_v26 = vld [vmem:[#allocation269_spill] sm:$0xff] }
 0x851   : > { %8855 = vmatprep.subr.bf16.mxu1 %v20070_v53  ;;  %v20081_v53 = vld [vmem:[#allocation26_spill] sm:$0xff] }
 0x854   : > { %8857 = vmatpush1.bf16.msra.mxu1 %v20071_v38  ;;  %v20082_v38 = vld [vmem:[#allocation164_spill] sm:$0xff] }
 0x855   : > { %8859 = vmatprep.subr.bf16.mxu1 %v20072_v25  ;;  %v20083_v25 = vld [vmem:[#allocation134_spill] sm:$0xff] }
 0x858   : > { %8861 = vmatpush1.bf16.msra.mxu1 %v20073_v8  ;;  %v20084_v8 = vld [vmem:[#allocation210_spill] sm:$0xff] }
 0x859   : > { %8863 = vmatprep.subr.bf16.mxu1 %v20074_v54  ;;  %v20085_v54 = vld [vmem:[#allocation122_spill] sm:$0xff] }
 0x85c   : > { %8865 = vmatpush1.bf16.msra.mxu1 %v20075_v21  ;;  %v20086_v21 = vld [vmem:[#allocation273_spill] sm:$0xff] }
 0x85d   : > { %8867 = vmatprep.subr.bf16.mxu1 %v20076_v45  ;;  %v20087_v45 = vld [vmem:[#allocation20_spill] sm:$0xff] }
 0x860   : > { %8869 = vmatpush1.bf16.msra.mxu1 %v20077_v29  ;;  %v20088_v29 = vld [vmem:[#allocation123_spill] sm:$0xff] }
 0x861   : > { %8871 = vmatprep.subr.bf16.mxu1 %v20078_v34  ;;  %v20089_v34 = vld [vmem:[#allocation277_spill] sm:$0xff] }
 0x864   : > { %8873 = vmatpush1.bf16.msra.mxu1 %v20079_v6  ;;  %v20090_v6 = vld [vmem:[#allocation272_spill] sm:$0xff] }
 0x865   : > { %8875 = vmatprep.subr.bf16.mxu1 %v20080_v26  ;;  %v20091_v26 = vld [vmem:[#allocation24_spill] sm:$0xff] }
 0x868   : > { %8877 = vmatpush1.bf16.msra.mxu1 %v20081_v53  ;;  %v20092_v53 = vld [vmem:[#allocation225_spill] sm:$0xff] }
 0x869   : > { %8879 = vmatprep.subr.bf16.mxu1 %v20082_v38  ;;  %v20093_v38 = vld [vmem:[#allocation184_spill] sm:$0xff] }
 0x86c   : > { %8881 = vmatpush1.bf16.msra.mxu1 %v20083_v25  ;;  %v20094_v25 = vld [vmem:[#allocation280_spill] sm:$0xff] }
 0x86d   : > { %8883 = vmatprep.subr.bf16.mxu1 %v20084_v8  ;;  %v20095_v8 = vld [vmem:[#allocation279_spill] sm:$0xff] }
 0x870   : > { %8885 = vmatpush1.bf16.msra.mxu1 %v20085_v54  ;;  %v20096_v54 = vld [vmem:[#allocation228_spill] sm:$0xff] }
 0x871   : > { %8887 = vmatprep.subr.bf16.mxu1 %v20086_v21  ;;  %v20097_v21 = vld [vmem:[#allocation185_spill] sm:$0xff] }
 0x874   : > { %8889 = vmatpush1.bf16.msra.mxu1 %v20087_v45  ;;  %v20098_v45 = vld [vmem:[#allocation281_spill] sm:$0xff] }
 0x875   : > { %8891 = vmatprep.subr.bf16.mxu1 %v20088_v29  ;;  %v20099_v29 = vld [vmem:[#allocation283_spill] sm:$0xff] }
 0x878   : > { %8893 = vmatpush1.bf16.msra.mxu1 %v20089_v34  ;;  %v20100_v34 = vld [vmem:[#allocation250_spill] sm:$0xff] }
 0x879   : > { %8895 = vmatprep.subr.bf16.mxu1 %v20090_v6  ;;  %v20101_v6 = vld [vmem:[#allocation128_spill] sm:$0xff] }
 0x87c   : > { %8897 = vmatpush1.bf16.msra.mxu1 %v20091_v26  ;;  %v20102_v26 = vld [vmem:[#allocation251_spill] sm:$0xff] }
 0x87d   : > { %8899 = vmatprep.subr.bf16.mxu1 %v20092_v53  ;;  %v20103_v53 = vld [vmem:[#allocation129_spill] sm:$0xff] }
 0x880   : > { %8901 = vmatpush1.bf16.msra.mxu1 %v20093_v38  ;;  %v20104_v38 = vld [vmem:[#allocation66_spill] sm:$0xff] }
 0x881   : > { %8903 = vmatprep.subr.bf16.mxu1 %v20094_v25  ;;  %v20105_v25 = vld [vmem:[#allocation217_spill] sm:$0xff] }
 0x884   : > { %8905 = vmatpush1.bf16.msra.mxu1 %v20095_v8  ;;  %v20106_v8 = vld [vmem:[#allocation97_spill] sm:$0xff] }
 0x885   : > { %8907 = vmatprep.subr.bf16.mxu1 %v20096_v54 }
 0x887   : > { %6740 = vmatmul.mubr.f32.vlgmr.msra.gmra.mrb[8].mxu1 %v19652_v15 }
 0x888   : > { %8909 = vmatpush1.bf16.msra.mxu1 %v20097_v21  ;;  %6810 = vmatprep.mubr.f32.mxu1 %v19652_v15 }
 0x889   : > { %8911 = vmatprep.subr.bf16.mxu1 %v20098_v45  ;;  %v20109_v45 = vld [vmem:[#allocation218_spill] sm:$0xff] }
 0x88c   : > { %8913 = vmatpush1.bf16.msra.mxu1 %v20099_v29  ;;  %v20110_v29 = vld [vmem:[#allocation144_spill] sm:$0xff] }
 0x88d   : > { %8915 = vmatprep.subr.bf16.mxu1 %v20100_v34  ;;  %v20111_v34 = vld [vmem:[#allocation145_spill] sm:$0xff] }
 0x890   : > { %8917 = vmatpush1.bf16.msra.mxu1 %v20101_v6  ;;  %v20112_v6 = vld [vmem:[#allocation226_spill] sm:$0xff] }
 0x891   : > { %8919 = vmatprep.subr.bf16.mxu1 %v20102_v26  ;;  %v20113_v26 = vld [vmem:[#allocation227_spill] sm:$0xff] }
 0x894   : > { %8921 = vmatpush1.bf16.msra.mxu1 %v20103_v53  ;;  %v20114_v53 = vld [vmem:[#allocation71_spill] sm:$0xff] }
 0x895   : > { %8923 = vmatprep.subr.bf16.mxu1 %v20104_v38  ;;  %v20115_v38 = vld [vmem:[#allocation169_spill] sm:$0xff] }
 0x898   : > { %8925 = vmatpush1.bf16.msra.mxu1 %v20105_v25  ;;  %v20116_v25 = vld [vmem:[#allocation159_spill] sm:$0xff] }
 0x899   : > { %8927 = vmatprep.subr.bf16.mxu1 %v20106_v8  ;;  %v20117_v8 = vld [vmem:[#allocation271_spill] sm:$0xff] }
 0x89a   : > { %v16974_v54 = vpop.f32.mrb[4].mxu1 }
 0x89b   : > { %20107 = vst [vmem:[#allocation140_spill] sm:$0xff] %v16974_v54  ;;  %v16976_v21 = vpop.f32.mrb[5].mxu1  ;;  %v20118_v54 = vld [vmem:[#allocation110_spill] sm:$0xff] }
 0x89c   : > { %20108 = vst [vmem:[#allocation220_spill] sm:$0xff] %v16976_v21  ;;  %8929 = vmatpush1.bf16.msra.mxu1 %v20109_v45  ;;  %v20119_v21 = vld [vmem:[#allocation160_spill] sm:$0xff] }
 0x89d   : > { %8931 = vmatprep.subr.bf16.mxu1 %v20110_v29  ;;  %v20120_v45 = vld [vmem:[#allocation244_spill] sm:$0xff]  ;;  %v20121_v29 = vld [vmem:[#allocation287_spill] sm:$0xff] }
 0x8a0   : > { %8933 = vmatpush1.bf16.msra.mxu1 %v20111_v34  ;;  %v20122_v34 = vld [vmem:[#allocation243_spill] sm:$0xff] }
 0x8a1   : > { %8935 = vmatprep.subr.bf16.mxu1 %v20112_v6  ;;  %v20123_v6 = vld [vmem:[#allocation288_spill] sm:$0xff] }
 0x8a4   : > { %8937 = vmatpush1.bf16.msra.mxu1 %v20113_v26  ;;  %v20124_v26 = vld [vmem:[#allocation43_spill] sm:$0xff] }
 0x8a5   : > { %8939 = vmatprep.subr.bf16.mxu1 %v20114_v53  ;;  %v20125_v53 = vld [vmem:[#allocation289_spill] sm:$0xff] }
 0x8a8   : > { %8941 = vmatpush1.bf16.msra.mxu1 %v20115_v38  ;;  %v20126_v38 = vld [vmem:[#allocation171_spill] sm:$0xff] }
 0x8a9   : > { %8943 = vmatprep.subr.bf16.mxu1 %v20116_v25  ;;  %v20127_v25 = vld [vmem:[#allocation172_spill] sm:$0xff] }
 0x8ac   : > { %8945 = vmatpush1.bf16.msra.mxu1 %v20117_v8  ;;  %v20128_v8 = vld [vmem:[#allocation12_spill] sm:$0xff] }
 0x8ad   : > { %8947 = vmatprep.subr.bf16.mxu1 %v20118_v54  ;;  %v20129_v54 = vld [vmem:[#allocation191_spill] sm:$0xff] }
 0x8b0   : > { %8949 = vmatpush1.bf16.msra.mxu1 %v20119_v21  ;;  %v20142_v21 = vld [vmem:[#allocation264_spill] sm:$0xff] }
 0x8b1   : > { %8951 = vmatprep.subr.bf16.mxu1 %v20120_v45  ;;  %v20131_v45 = vld [vmem:[#allocation240_spill] sm:$0xff] }
 0x8b4   : > { %8953 = vmatpush1.bf16.msra.mxu1 %v20121_v29  ;;  %v20144_v29 = vld [vmem:[#allocation261_spill] sm:$0xff] }
 0x8b5   : > { %8955 = vmatprep.subr.bf16.mxu1 %v20122_v34  ;;  %v20146_v34 = vld [vmem:[#allocation83_spill] sm:$0xff] }
 0x8b8   : > { %8957 = vmatpush1.bf16.msra.mxu1 %v20123_v6  ;;  %v20148_v6 = vld [vmem:[#allocation68_spill] sm:$0xff] }
 0x8b9   : > { %8959 = vmatprep.subr.bf16.mxu1 %v20124_v26  ;;  %v20150_v26 = vld [vmem:[#allocation229_spill] sm:$0xff] }
 0x8bc   : > { %8961 = vmatpush1.bf16.msra.mxu1 %v20125_v53  ;;  %v20152_v53 = vld [vmem:[#allocation119_spill] sm:$0xff] }
 0x8bd   : > { %8963 = vmatprep.subr.bf16.mxu1 %v20126_v38  ;;  %v20154_v38 = vld [vmem:[#allocation138_spill] sm:$0xff] }
 0x8c0   : > { %8965 = vmatpush1.bf16.msra.mxu1 %v20127_v25  ;;  %v20156_v25 = vld [vmem:[#allocation62_spill] sm:$0xff] }
 0x8c1   : > { %8967 = vmatprep.subr.bf16.mxu1 %v20128_v8  ;;  %v20158_v8 = vld [vmem:[#allocation21_spill] sm:$0xff] }
 0x8c2   : > { %vm20159_vm11 = vnez %v20158_v8  ;;  %v20178_v8 = vld [vmem:[#allocation148_spill] sm:$0xff] }
 0x8c4   : > { %8969 = vmatpush1.bf16.msra.mxu1 %v20129_v54  ;;  %v20140_v54 = vld [vmem:[#allocation59_spill] sm:$0xff] }
 0x8c5   : > { %8972 = vmatprep.subr.msk.bf16.mxu1 %vm16091_vm9, %v16082_v9  ;;  %vm20149_vm9 = vnez %v20148_v6  ;;  %v20168_v6 = vld [vmem:[#allocation112_spill] sm:$0xff] }
 0x8c7   : > { %6811 = vmatmul.mubr.f32.vlgmr.msra.gmra.mrb[10].mxu1 %v19652_v15 }
 0x8c8   : > { %8975 = vmatpush1.bf16.msk.msra.mxu1 %vm16111_vm6, %v20131_v45  ;;  %6881 = vmatprep.mubr.f32.mxu1 %v19652_v15  ;;  %vm20151_vm6 = vnez %v20150_v26  ;;  %v20170_v26 = vld [vmem:[#allocation9_spill] sm:$0xff] }
 0x8c9   : > { %8978 = vmatprep.subr.msk.bf16.mxu1 %vm16122_vm4, %v16104_v28  ;;  %vm20141_vm4 = vnez %v20140_v54  ;;  %v20160_v54 = vld [vmem:[#allocation15_spill] sm:$0xff] }
 0x8ca   : > { %vm20161_vm5 = vnez %v20160_v54  ;;  %v20180_v54 = vld [vmem:[#allocation73_spill] sm:$0xff] }
 0x8cc   : > { %8981 = vmatpush1.bf16.msk.msra.mxu1 %vm16142_vm12, %v19909_v52  ;;  %vm20153_vm12 = vnez %v20152_v53  ;;  %v20172_v53 = vld [vmem:[#allocation133_spill] sm:$0xff] }
 0x8cd   : > { %8984 = vmatprep.subr.msk.bf16.mxu1 %vm16153_vm13, %v16136_v27  ;;  %vm20143_vm13 = vnez %v20142_v21  ;;  %v20162_v21 = vld [vmem:[#allocation139_spill] sm:$0xff] }
 0x8ce   : > { %vm20163_vm1 = vnez %v20162_v21  ;;  %v20182_v21 = vld [vmem:[#allocation147_spill] sm:$0xff] }
 0x8d0   : > { %8987 = vmatpush1.bf16.msk.msra.mxu1 %vm16172_vm3, %v16162_v22  ;;  %vm20155_vm3 = vnez %v20154_v38  ;;  %v20174_v38 = vld [vmem:[#allocation18_spill] sm:$0xff] }
 0x8d1   : > { %8990 = vmatprep.subr.msk.bf16.mxu1 %vm16183_vm2, %v16166_v48  ;;  %vm20145_vm2 = vnez %v20144_v29  ;;  %v20164_v29 = vld [vmem:[#allocation38_spill] sm:$0xff] }
 0x8d2   : > { %vm20165_vm14 = vnez %v20164_v29  ;;  %v20184_v29 = vld [vmem:[#allocation70_spill] sm:$0xff] }
 0x8d4   : > { %8993 = vmatpush1.bf16.msk.msra.mxu1 %vm16202_vm0, %v16192_v61  ;;  %vm20157_vm0 = vnez %v20156_v25  ;;  %v20176_v25 = vld [vmem:[#allocation49_spill] sm:$0xff] }
 0x8d5   : > { %8996 = vmatprep.subr.msk.bf16.mxu1 %vm16213_vm8, %v16196_v40  ;;  %vm20147_vm8 = vnez %v20146_v34  ;;  %v20166_v34 = vld [vmem:[#allocation75_spill] sm:$0xff] }
 0x8d8   : > { %8999 = vmatpush1.bf16.msk.msra.mxu1 %vm20141_vm4, %v16222_v37  ;;  %vm20167_vm4 = vnez %v20166_v34  ;;  %v20186_v34 = vld [vmem:[#allocation163_spill] sm:$0xff] }
 0x8d9   : > { %9002 = vmatprep.subr.msk.bf16.mxu1 %vm20143_vm13, %v16226_v63  ;;  %vm20169_vm13 = vnez %v20168_v6  ;;  %v20188_v6 = vld [vmem:[#allocation158_spill] sm:$0xff] }
 0x8dc   : > { %9005 = vmatpush1.bf16.msk.msra.mxu1 %vm20145_vm2, %v19952_v39  ;;  %vm20171_vm2 = vnez %v20170_v26 }
 0x8dd   : > { %9008 = vmatprep.subr.msk.bf16.mxu1 %vm20147_vm8, %v16256_v16  ;;  %vm20173_vm8 = vnez %v20172_v53 }
 0x8e0   : > { %9011 = vmatpush1.bf16.msk.msra.mxu1 %vm20149_vm9, %v19963_v50  ;;  %vm20175_vm9 = vnez %v20174_v38 }
 0x8e1   : > { %9014 = vmatprep.subr.msk.bf16.mxu1 %vm20151_vm6, %v16286_v36  ;;  %vm20177_vm6 = vnez %v20176_v25 }
 0x8e4   : > { %9017 = vmatpush1.bf16.msk.msra.mxu1 %vm20153_vm12, %v16312_v11  ;;  %vm20179_vm12 = vnez %v20178_v8 }
 0x8e5   : > { %9020 = vmatprep.subr.msk.bf16.mxu1 %vm20155_vm3, %v16316_v59  ;;  %vm20181_vm3 = vnez %v20180_v54 }
 0x8e8   : > { %9023 = vmatpush1.bf16.msk.msra.mxu1 %vm20157_vm0, %v16342_v7  ;;  %vm20183_vm0 = vnez %v20182_v21 }
 0x8e9   : > { %9026 = vmatprep.subr.msk.bf16.mxu1 %vm20159_vm11, %v16346_v55  ;;  %vm20185_vm11 = vnez %v20184_v29 }
 0x8ec   : > { %9029 = vmatpush1.bf16.msk.msra.mxu1 %vm20161_vm5, %v16372_v30  ;;  %vm20187_vm5 = vnez %v20186_v34 }
 0x8ed   : > { %9032 = vmatprep.subr.msk.bf16.mxu1 %vm20163_vm1, %v16376_v24  ;;  %vm20189_vm1 = vnez %v20188_v6 }
 0x8f0   : > { %9035 = vmatpush1.bf16.msk.msra.mxu1 %vm20165_vm14, %v20009_v42  ;;  %vm20190_vm14 = vnez %v19903_v31 }
 0x8f1   : > { %9038 = vmatprep.subr.msk.bf16.mxu1 %vm20167_vm4, %v16406_v17  ;;  %vm20191_vm4 = vnez %v19908_v41 }
 0x8f4   : > { %9041 = vmatpush1.bf16.msk.msra.mxu1 %vm20169_vm13, %v16436_v57  ;;  %vm20192_vm13 = vnez %v19915_v33 }
 0x8f5   : > { %9044 = vmatprep.subr.msk.bf16.mxu1 %vm20171_vm2, %v16440_v44  ;;  %vm20193_vm2 = vnez %v19919_v12 }
 0x8f8   : > { %9047 = vmatpush1.bf16.msk.msra.mxu1 %vm20173_vm8, %v16466_v32  ;;  %vm20194_vm8 = vnez %v19925_v47 }
 0x8f9   : > { %9050 = vmatprep.subr.msk.bf16.mxu1 %vm20175_vm9, %v16470_v19  ;;  %vm20195_vm9 = vnez %v19929_v60 }
 0x8fc   : > { %9053 = vmatpush1.bf16.msk.msra.mxu1 %vm20177_vm6, %v20040_v35  ;;  %vm20196_vm6 = vnez %v19935_v1 }
 0x8fd   : > { %9056 = vmatprep.subr.msk.bf16.mxu1 %vm20179_vm12, %v16500_v10 }
 0x900   : > { %9059 = vmatpush1.bf16.msk.msra.mxu1 %vm20181_vm3, %v16526_v58  ;;  %vm20199_vm3 = vnez %v19946_v43 }
 0x901   : > { %9062 = vmatprep.subr.msk.bf16.mxu1 %vm20183_vm0, %v16530_v14 }
 0x904   : > { %9065 = vmatpush1.bf16.msk.msra.mxu1 %vm20185_vm11, %v16556_v13  ;;  %vm20202_vm11 = vnez %v19958_v23 }
 0x905   : > { %9068 = vmatprep.subr.msk.bf16.mxu1 %vm20187_vm5, %v16082_v9  ;;  %v20197_v9 = vld [vmem:[#allocation4_spill] sm:$0xff]  ;;  %vm20203_vm5 = vnez %v19962_v3 }
 0x906   : > { %vm20198_vm12 = vnez %v20197_v9 }
 0x907   : > { %6882 = vmatmul.mubr.f32.vlgmr.msra.gmra.mrb[12].mxu1 %v19652_v15 }
 0x908   : > { %9071 = vmatpush1.bf16.msk.msra.mxu1 %vm20189_vm1, %v20131_v45  ;;  %6952 = vmatprep.mubr.f32.mxu1 %v19652_v15  ;;  %vm20204_vm1 = vnez %v19969_v51  ;;  %v10019_v51 = vmov (!%p7749_p10), 0.0  }
 0x909   : > { %9074 = vmatprep.subr.msk.bf16.mxu1 %vm20190_vm14, %v16104_v28  ;;  %vm20205_vm14 = vnez %v19973_v20  ;;  %7060 = vst [vmem:[#allocation2] sm:$0xff] (!%p7749_p10), %v10019_v51  ;;  %7061 = vst [vmem:[#allocation2 + $0x8] sm:$0xff] (!%p7749_p10), %v10019_v51 }
 0x90c   : > { %9077 = vmatpush1.bf16.msk.msra.mxu1 %vm20191_vm4, %v19909_v52  ;;  %vm20206_vm4 = vnez %v19979_v62 }
 0x90d   : > { %9080 = vmatprep.subr.msk.bf16.mxu1 %vm20192_vm13, %v16136_v27 }
 0x910   : > { %9083 = vmatpush1.bf16.msk.msra.mxu1 %vm20193_vm2, %v16162_v22  ;;  %v20207_v22 = vld [vmem:[#allocation175_spill] sm:$0xff] }
 0x911   : > { %9086 = vmatprep.subr.msk.bf16.mxu1 %vm20194_vm8, %v16166_v48  ;;  %v20200_v48 = vld [vmem:[#allocation176_spill] sm:$0xff]  ;;  %vm20208_vm13 = vnez %v20207_v22 }
 0x912   : > { %vm20201_vm0 = vnez %v20200_v48 }
 0x914   : > { %9089 = vmatpush1.bf16.msk.msra.mxu1 %vm20195_vm9, %v16192_v61  ;;  %v20209_v61 = vld [vmem:[#allocation117_spill] sm:$0xff]  ;;  %vm20213_vm9 = vnez %v20002_v2 }
 0x915   : > { %9092 = vmatprep.subr.msk.bf16.mxu1 %vm20196_vm6, %v16196_v40  ;;  %vm20210_vm2 = vnez %v20209_v61  ;;  %v20211_v40 = vld [vmem:[#allocation180_spill] sm:$0xff]  ;;  %vm20214_vm6 = vnez %v20008_v46 }
 0x916   : > { %vm20212_vm8 = vnez %v20211_v40 }
 0x918   : > { %9095 = vmatpush1.bf16.msk.msra.mxu1 %vm20198_vm12, %v16222_v37  ;;  %vm20215_vm12 = vnez %v20015_v4  ;;  %v20221_v37 = vld [vmem:[#allocation125_spill] sm:$0xff] }
 0x919   : > { %9098 = vmatprep.subr.msk.bf16.mxu1 %vm20199_vm3, %v16226_v63  ;;  %vm20216_vm3 = vnez %v20021_v49 }
 0x91a   : > { %v17138_v27 = vpop.f32.mrb[6].mxu1 }
 0x91b   : > { %v17140_v28 = vpop.f32.mrb[7].mxu1 }
 0x91c   : > { %9101 = vmatpush1.bf16.msk.msra.mxu1 %vm20201_vm0, %v19952_v39  ;;  %vm20217_vm0 = vnez %v20025_v0  ;;  %v10020_v39 = vmov (!%p7749_p10), -1e+30  }
 0x91d   : > { %9104 = vmatprep.subr.msk.bf16.mxu1 %vm20202_vm11, %v16256_v16  ;;  %vm20218_vm11 = vnez %v20029_v5  ;;  %7062 = vst [vmem:[#allocation2] sm:$0x3] (!%p7749_p10), %v10020_v39  ;;  %7063 = vst [vmem:[#allocation2 + $0x8] sm:$0x3] (!%p7749_p10), %v10020_v39 }
 0x920   : > { %9107 = vmatpush1.bf16.msk.msra.mxu1 %vm20203_vm5, %v19963_v50  ;;  %vm20219_vm5 = vnez %v20035_v56 }
 0x921   : > { %9110 = vmatprep.subr.msk.bf16.mxu1 %vm20204_vm1, %v16286_v36  ;;  %vm20220_vm1 = vnez %v20039_v18 }
 0x924   : > { %9113 = vmatpush1.bf16.msk.msra.mxu1 %vm20205_vm14, %v16312_v11  ;;  %vm20222_vm14 = vnez %v20221_v37 }
 0x925   : > { %9116 = vmatprep.subr.msk.bf16.mxu1 %vm20206_vm4, %v16316_v59  ;;  %v10018_v59 = vmov 1966171168  }
 0x926   : > { %v6974_v11 = vunpack.c.l.s4 %v10018_v59 }
 0x928   : > { %9119 = vmatpush1.bf16.msk.msra.mxu1 %vm20208_vm13, %v16342_v7  ;;  %v6975_v7 = vunpack.c.0.s8 %v6974_v11 }
 0x929   : > { %9122 = vmatprep.subr.msk.bf16.mxu1 %vm20210_vm2, %v16346_v55 }
 0x92c   : > { %9125 = vmatpush1.bf16.msk.msra.mxu1 %vm20212_vm8, %v16372_v30  ;;  %v20226_v30 = vld [vmem:[#allocation22_spill] sm:$0xff] }
 0x92d   : > { %9128 = vmatprep.subr.msk.bf16.mxu1 %vm20213_vm9, %v16376_v24  ;;  %v17207_v24 = vsub.s32 %v6975_v7, %v20226_v30 }
 0x930   : > { %9131 = vmatpush1.bf16.msk.msra.mxu1 %vm20214_vm6, %v20009_v42 }
 0x931   : > { %9134 = vmatprep.subr.msk.bf16.mxu1 %vm20215_vm12, %v16406_v17 }
 0x934   : > { %9137 = vmatpush1.bf16.msk.msra.mxu1 %vm20216_vm3, %v16436_v57 }
 0x935   : > { %9140 = vmatprep.subr.msk.bf16.mxu1 %vm20217_vm0, %v16440_v44 }
 0x938   : > { %9143 = vmatpush1.bf16.msk.msra.mxu1 %vm20218_vm11, %v16466_v32 }
 0x939   : > { %9146 = vmatprep.subr.msk.bf16.mxu1 %vm20219_vm5, %v16470_v19  ;;  %v20227_v19 = vld [vmem:[#allocation211_spill] sm:$0xff] }
 0x93c   : > { %9149 = vmatpush1.bf16.msk.msra.mxu1 %vm20220_vm1, %v20040_v35 }
 0x93d   : > { %9152 = vmatprep.subr.msk.bf16.mxu1 %vm20222_vm14, %v16500_v10 }
 0x940   : > { %9155 = vmatpush1.bf16.msk.msra.mxu1 %vm16898_vm15, %v16526_v58 }
 0x941   : > { %9158 = vmatprep.subr.msk.bf16.mxu1 %vm16909_vm7, %v16530_v14  ;;  %vm20228_vm7 = vnez %v20227_v19 }
 0x944   : > { %9161 = vmatpush1.bf16.msk.msra.mxu1 %vm16920_vm10, %v16556_v13 }
 0x947   : > { %6953 = vmatmul.mubr.f32.vlgmr.msra.gmra.mrb[14].mxu1 %v19652_v15 }
 0x95a   : > { %v6741_v55 = vpop.f32.mrb[8].mxu1 }
 0x95b   : > { %v6743_v57 = vpop.f32.mrb[9].mxu1 }
 0x95c   : > { %v6972_v44 = vcombine.low %v6741_v55, %v6743_v57 }
 0x95e   : > { %v6979_v17 = vrot.slane %v6972_v44, %v17207_v24 }
 0x960   : > { %v6986_v32 = vrot.slane %v6979_v17, %v17207_v24 }
 0x962   : > { %7745 = vst.msk [vmem:[%s15483_s10 + $0x2] ss:$8 sm:$0x3] %vm20228_vm7, %v6986_v32 }
 0x99a   : > { %v6812_v14 = vpop.f32.mrb[10].mxu1 }
 0x99b   : > { %v6814_v15 = vpop.f32.mrb[11].mxu1 }
 0x99c   : > { %v6993_v10 = vcombine.low %v6812_v14, %v6814_v15 }
 0x99e   : > { %v7000_v58 = vrot.slane %v6993_v10, %v17207_v24 }
 0x9a0   : > { %v7007_v31 = vrot.slane %v7000_v58, %v17207_v24 }
 0x9a2   : > { %7746 = vst.msk [vmem:[%s15483_s10 + $0x3] ss:$8 sm:$0x3] %vm20228_vm7, %v7007_v31 }
 0x9da   : > { %v6883_v13 = vpop.f32.mrb[12].mxu1 }
 0x9db   : > { %v6885_v33 = vpop.f32.mrb[13].mxu1 }
 0x9dc   : > { %v7014_v41 = vcombine.low %v6883_v13, %v6885_v33 }
 0x9de   : > { %v7021_v52 = vrot.slane %v7014_v41, %v17207_v24 }
 0x9e0   : > { %v7028_v12 = vrot.slane %v7021_v52, %v17207_v24 }
 0x9e2   : > { %7747 = vst.msk [vmem:[%s15483_s10 + $0x4] ss:$8 sm:$0x3] %vm20228_vm7, %v7028_v12 }
 0xa1a   : > { %v6954_v47 = vpop.f32.mrb[14].mxu1 }
 0xa1b   : > { %v6956_v60 = vpop.f32.mrb[15].mxu1 }
 0xa1c   : > { %v7035_v1 = vcombine.low %v6954_v47, %v6956_v60  ;;  %7059 = sbr.rel (%p7749_p10) target bundleno = 2595 (0xa23), region = 40 }
 0xa1e   : > { %v7042_v23 = vrot.slane %v7035_v1, %v17207_v24 }
 0xa20   : > { %v7049_v43 = vrot.slane %v7042_v23, %v17207_v24 }
 0xa22   : > { %7748 = vst.msk [vmem:[%s15483_s10 + $0x5] ss:$8 sm:$0x3] %vm20228_vm7, %v7049_v43 }
 0xa23 PF: > { %v7064_v3 = vld [vmem:[#allocation2] ss:$8 sm:$0x3]  ;;  %v20229_v50 = vld [vmem:[#allocation220_spill] sm:$0xff]  ;;  %v7186_v4 = vcombine.low %v17138_v27, %v17140_v28  ;;  %v20233_v35 = vld [vmem:[#allocation211_spill] sm:$0xff]  ;;  %p7750_p11 = scmp.ne.s32.totalorder %s9995_s18, 1 }
 0xa24   : > { %v20230_v20 = vld [vmem:[#allocation140_spill] sm:$0xff]  ;;  %v20231_v46 = vld [vmem:[#allocation174_spill] sm:$0xff]  ;;  %vm20234_vm15 = vnez %v20233_v35  ;;  %v20235_v48 = vld [vmem:[#allocation5_spill] sm:$0xff] }
 0xa25   : > { %v7163_v62 = vcombine.low %v20230_v20, %v20229_v50  ;;  %v7067_v42 = vmax.f32 %v7064_v3, %v20231_v46  ;;  %v7066_v2 = vld [vmem:[#allocation2 + $0x1] ss:$8 sm:$0x3]  ;;  %v20232_v49 = vld [vmem:[#allocation36_spill] sm:$0xff]  ;;  %v7193_v56 = vrot.slane %v7186_v4, %v17207_v24  ;;  %v20236_v61 = vld [vmem:[#allocation23_spill] sm:$0xff] }
 0xa26   : > { %v7068_v0 = vmax.f32 %v7066_v2, %v20232_v49  ;;  %v7160_v45 = vld [vmem:[#allocation2 + $0x4] ss:$8 sm:$0x3]  ;;  %v7183_v26 = vld [vmem:[#allocation2 + $0x5] ss:$8 sm:$0x3] }
 0xa27   : > { %v7170_v5 = vrot.slane %v7163_v62, %v17207_v24  ;;  %v7075_v18 = vsub.f32 %v20231_v46, %v7067_v42  ;;  %7155 = vst.msk [vmem:[#allocation2] ss:$8 sm:$0x3] %vm20234_vm15, %v7067_v42  ;;  %v7071_v53 = vsub.f32 %v7064_v3, %v7067_v42  ;;  %v7200_v8 = vrot.slane %v7193_v56, %v17207_v24  ;;  %v20237_v63 = vld [vmem:[#allocation27_spill] sm:$0xff]  ;;  %v20240_v32 = vld [vmem:[#allocation106_spill] sm:$0xff] }
 0xa28   : > { %v7118_v38 = vsub.f32 %v20232_v49, %v7068_v0  ;;  %7157 = vst.msk [vmem:[#allocation2 + $0x1] ss:$8 sm:$0x3] %vm20234_vm15, %v7068_v0  ;;  %v7114_v21 = vsub.f32 %v7066_v2, %v7068_v0  ;;  %v20238_v16 = vld [vmem:[#allocation239_spill] sm:$0xff] }
 0xa29   : > { %v7177_v25 = vrot.slane %v7170_v5, %v17207_v24  ;;  %v7076_v54 = vmul.f32 1.442695, %v7075_v18  ;;  %v7202_v6 = vadd.f32 %v7200_v8, %v7183_v26  ;;  %v7072_v9 = vmul.f32 1.442695, %v7071_v53  ;;  %v20239_v44 = vld [vmem:[#allocation127_spill] sm:$0xff] }
 0xa2a   : > { %v7119_v29 = vmul.f32 1.442695, %v7118_v38  ;;  %v7115_v27 = vmul.f32 1.442695, %v7114_v21 }
 0xa2b   : > { %v7179_v34 = vadd.f32 %v7177_v25, %v7160_v45  ;;  %9965 = vpow2.f32 %v7076_v54  ;;  %7203 = vst.msk [vmem:[#allocation2 + $0x5] ss:$8 sm:$0x3] %vm20234_vm15, %v7202_v6  ;;  %v7070_v30 = vld [vmem:[#allocation2 + $0x2] ss:$8 sm:$0x3] }
 0xa2c   : > { %9967 = vpow2.f32 %v7119_v29  ;;  %v7113_v15 = vld [vmem:[#allocation2 + $0x3] ss:$8 sm:$0x3] }
 0xa2d   : > { %7180 = vst.msk [vmem:[#allocation2 + $0x4] ss:$8 sm:$0x3] %vm20234_vm15, %v7179_v34  ;;  %9969 = vpow2.f32 %v7072_v9 }
 0xa2e   : > { %9971 = vpow2.f32 %v7115_v27 }
 0xa35   : > { %v9966_v28 = vpop.eup %9965 }
 0xa36   : > { %v7082_v22 = vrot.slane %v9966_v28, %v20235_v48  ;;  %v7086_v40 = vrot.slane %v9966_v28, %v20236_v61  ;;  %v9968_v37 = vpop.eup %9967 }
 0xa37   : > { %v7125_v11 = vrot.slane %v9968_v37, %v20235_v48  ;;  %v7129_v7 = vrot.slane %v9968_v37, %v20236_v61  ;;  %v9970_v55 = vpop.eup %9969 }
 0xa38   : > { %v7089_v36 = vmul.f32 %v7082_v22, %v20237_v63  ;;  %v7090_v59 = vmul.f32 %v7086_v40, %v20238_v16  ;;  %v9972_v14 = vpop.eup %9971  ;;  %v7074_v10 = vmul.f32 %v9970_v55, %v7070_v30 }
 0xa39   : > { %v7132_v17 = vmul.f32 %v7125_v11, %v20239_v44  ;;  %v7133_v19 = vmul.f32 %v7129_v7, %v20240_v32  ;;  %v7117_v33 = vmul.f32 %v9972_v14, %v7113_v15 }
 0xa3a   : > { %v7093_v57 = vcombine.low %v7089_v36, %v7090_v59 }
 0xa3b   : > { %v7136_v31 = vcombine.low %v7132_v17, %v7133_v19 }
 0xa3c   : > { %v7100_v58 = vrot.slane %v7093_v57, %v17207_v24 }
 0xa3d   : > { %v7143_v41 = vrot.slane %v7136_v31, %v17207_v24  ;;  %7208 = sbr.rel (%p7750_p11) target bundleno = 2636 (0xa4c), region = 44 }
 0xa3e   : > { %v7107_v13 = vrot.slane %v7100_v58, %v17207_v24 }
 0xa3f   : > { %v7150_v12 = vrot.slane %v7143_v41, %v17207_v24 }
 0xa40   : > { %v7109_v52 = vadd.f32 %v7107_v13, %v7074_v10 }
 0xa41   : > { %v7152_v47 = vadd.f32 %v7150_v12, %v7117_v33 }
 0xa42   : > { %7110 = vst.msk [vmem:[#allocation2 + $0x2] ss:$8 sm:$0x3] %vm20234_vm15, %v7109_v52 }
 0xa43   : > { %7153 = vst.msk [vmem:[#allocation2 + $0x3] ss:$8 sm:$0x3] %vm20234_vm15, %v7152_v47 }
 0xa4a   : > { %v7209_v60 = vld [vmem:[#allocation2] sm:$0xff]  ;;  %v7210_v1 = vld [vmem:[#allocation2 + $0x8] sm:$0xff] }
 0xa4b   : > { %7211 = vst [vmem:[%s17038_s15] sm:$0xff] %v7209_v60  ;;  %7212 = vst [vmem:[%s17038_s15 + $0x8] sm:$0xff] %v7210_v1 }
 0xa4c PF: > { %s16_s22 = sadd.s32 1, %s10011_s22   ;;  %s20241_s18 = smov %s10003_s20 }
 0xa4d   : > { %p13_p12 = scmp.ge.s32.totalorder %s16_s22, 6   ;;  %s20242_s19 = smov %s10007_s21 }
 0xa4e   : > { %s20243_s20 = smov %s20246_s23  ;;  %s20244_s21 = smov %s20250_s24 }
 0xa4f   :  { %15 = sbr.rel (!%p13_p12) target bundleno = 3 (0x3), region = 107 }

</bundles_post_ra>
